<compile_context>
chip_gen: v7x
topology: tpu7x:2x2x1
jax: 0.10.0
libtpu: 0.0.40
codegen_flags: <defaults>
</compile_context>

<pallas_src>
import jax
import jax.numpy as jnp
import numpy as np
from jax.experimental import pallas as pl
from jax.experimental.pallas import tpu as pltpu

N_EMBED = 384
HIDDEN = 4 * N_EMBED          # 1536
H_CHUNK = 512                 # hidden-dim chunk (multiple of 128); 1536 / 512 = 3 chunks
TM = 256                      # row tile: multiple of 256 (v6e/v7x MXU), fits default VMEM
# dropout = 0.2 in the module; forward implemented in eval mode -> identity.


def _ffwd_kernel(x_ref, w1_ref, b1_ref, w2_ref, b2_ref, o_ref):
    """One row-tile: out = relu(x @ W1 + b1) @ W2 + b2, hidden dim chunked."""
    # Cast x to bf16 in-kernel (VPU, hidden under MXU) instead of in the wrapper.
    x = x_ref[...].astype(jnp.bfloat16)                       # (TM, C)
    acc = jnp.zeros(o_ref.shape, jnp.float32)                 # (TM, C) f32 accumulator

    n_chunks = HIDDEN // H_CHUNK
    for k in range(n_chunks):                                  # static, fully unrolled
        lo = k * H_CHUNK
        hi = lo + H_CHUNK
        # First linear chunk + bias + ReLU (f32 accumulate / f32 activation math).
        h = jnp.dot(x, w1_ref[:, lo:hi],
                    preferred_element_type=jnp.float32)        # (TM, H_CHUNK) f32
        h = jnp.maximum(h + b1_ref[:, lo:hi], 0.0)
        # Second linear chunk, accumulated in f32.
        acc = acc + jnp.dot(h.astype(jnp.bfloat16), w2_ref[lo:hi, :],
                            preferred_element_type=jnp.float32)

    # TODO(synk): nn.Dropout(0.2) is identity in eval mode; training-mode RNG
    # dropout not reproduced here.
    o_ref[...] = (acc + b2_ref[...]).astype(o_ref.dtype)


def prepare_params(w1, b1, w2, b2):
    """One-time parameter prep (outside the per-forward path): bf16 MXU weights,
    f32 row-vector biases."""
    return (w1.astype(jnp.bfloat16),
            b1.reshape(1, HIDDEN).astype(jnp.float32),
            w2.astype(jnp.bfloat16),
            b2.reshape(1, N_EMBED).astype(jnp.float32))


@jax.jit
def feed_forward(x, w1b, b1r, w2b, b2r):
    """x: (B, T, C) f32; prepped params from prepare_params(). Returns (B, T, C) bf16."""
    B, T, C = x.shape
    H = HIDDEN
    rows = B * T

    # Flatten tokens (free, contiguous). No dtype cast here: x stays f32 and is
    # cast to bf16 inside the kernel.
    x2d = x.reshape(rows, C)

    grid = (pl.cdiv(rows, TM),)   # ragged last block handled by Pallas

    flops = 4 * rows * C * H                              # two matmuls
    bytes_accessed = (rows * C * 4          # x (f32 in)
                      + rows * C * 2        # out (bf16)
                      + 2 * (C * H * 2)     # W1 + W2 (bf16)
                      + H * 4 + C * 4)      # biases (f32)

    out = pl.pallas_call(
        _ffwd_kernel,
        out_shape=jax.ShapeDtypeStruct((rows, C), jnp.bfloat16),
        grid=grid,
        in_specs=[
            pl.BlockSpec((TM, C), lambda i: (i, 0)),     # x row tile (f32)
            pl.BlockSpec((C, H), lambda i: (0, 0)),      # W1 (bf16, resident)
            pl.BlockSpec((1, H), lambda i: (0, 0)),      # b1
            pl.BlockSpec((H, C), lambda i: (0, 0)),      # W2 (bf16, resident)
            pl.BlockSpec((1, C), lambda i: (0, 0)),      # b2
        ],
        out_specs=pl.BlockSpec((TM, C), lambda i: (i, 0)),
        compiler_params=pltpu.CompilerParams(
            dimension_semantics=("parallel",),
            # Audited at TM=256: ~9 MiB (double-buffered x/out, 2x bf16 weight
            # buffers, chunked hidden scratch) — 32 MiB leaves ample headroom
            # on every generation (v7x physical VMEM is 64 MiB).
            vmem_limit_bytes=32 * 1024 * 1024),
        cost_estimate=pl.CostEstimate(flops=flops, transcendentals=0,
                                      bytes_accessed=bytes_accessed),
    )(x2d, w1b, b1r, w2b, b2r)

    return out.reshape(B, T, C)


def reference(x, w1, b1, w2, b2):
    """Pure-JAX (f32) reference mirroring the PyTorch forward (eval mode)."""
    h = jnp.maximum(x @ w1 + b1, 0.0)
    return h @ w2 + b2


if __name__ == "__main__":
    key = jax.random.PRNGKey(0)
    kx, k1, kb1, k2, kb2 = jax.random.split(key, 5)

    B, T = 2, 16   # small demo shapes; embedding width fixed by the module (384)

    x = jax.random.normal(kx, (B, T, N_EMBED), jnp.float32)

    # (in, out) layout = transpose of PyTorch nn.Linear.weight.
    w1 = jax.random.normal(k1, (N_EMBED, HIDDEN), jnp.float32) * 0.02
    b1 = jax.random.normal(kb1, (HIDDEN,), jnp.float32) * 0.02
    w2 = jax.random.normal(k2, (HIDDEN, N_EMBED), jnp.float32) * 0.02
    b2 = jax.random.normal(kb2, (N_EMBED,), jnp.float32) * 0.02

    params = prepare_params(w1, b1, w2, b2)   # one-time weight casts (not per call)

    out = feed_forward(x, *params)
    out = jax.block_until_ready(out)

    ref = reference(x, w1, b1, w2, b2)
    assert out.shape == (B, T, N_EMBED)
    # Tolerance loosened: MXU operands and the output are bf16 (f32 accumulation);
    # the reference is pure f32.
    np.testing.assert_allclose(np.asarray(out, dtype=np.float32), np.asarray(ref),
                               rtol=2e-2, atol=2e-2)
    print("KERNEL_OK")
</pallas_src>

<mosaic_0001>
module attributes {stable_mosaic.version = 11 : i64} {
  func.func @_ffwd_kernel(%arg0: i32, %arg1: memref<256x384xf32, #tpu.memory_space<vmem>>, %arg2: memref<384x1536xbf16, #tpu.memory_space<vmem>>, %arg3: memref<1x1536xf32, #tpu.memory_space<vmem>>, %arg4: memref<1536x384xbf16, #tpu.memory_space<vmem>>, %arg5: memref<1x384xf32, #tpu.memory_space<vmem>>, %arg6: memref<256x384xbf16, #tpu.memory_space<vmem>>) attributes {dimension_semantics = [#tpu.dimension_semantics<parallel>], iteration_bounds = array<i64: 1>, scalar_prefetch = 0 : i64, scratch_operands = 0 : i64, tpu.core_type = #tpu.core_type<tc>, window_params = [{transform_indices = @transform_0, window_bounds = array<i64: 256, 384>}, {pipeline_mode = #tpu.pipeline_mode<synchronous>, transform_indices = @transform_1, window_bounds = array<i64: 384, 1536>}, {pipeline_mode = #tpu.pipeline_mode<synchronous>, transform_indices = @transform_2, window_bounds = array<i64: 1, 1536>}, {pipeline_mode = #tpu.pipeline_mode<synchronous>, transform_indices = @transform_3, window_bounds = array<i64: 1536, 384>}, {pipeline_mode = #tpu.pipeline_mode<synchronous>, transform_indices = @transform_4, window_bounds = array<i64: 1, 384>}, {transform_indices = @transform_5, window_bounds = array<i64: 256, 384>}]} {
    %c0 = arith.constant 0 : index
    %c0_0 = arith.constant 0 : index
    %0 = vector.load %arg1[%c0, %c0_0] : memref<256x384xf32, #tpu.memory_space<vmem>>, vector<256x384xf32>
    %1 = arith.truncf %0 : vector<256x384xf32> to vector<256x384xbf16>
    %cst = arith.constant 0.000000e+00 : f32
    %2 = vector.broadcast %cst : f32 to vector<256x384xf32>
    %c0_1 = arith.constant 0 : index
    %c0_2 = arith.constant 0 : index
    %3 = vector.load %arg2[%c0_1, %c0_2] : memref<384x1536xbf16, #tpu.memory_space<vmem>>, vector<384x512xbf16>
    %cst_3 = arith.constant dense<0.000000e+00> : vector<256x512xf32>
    %4 = tpu.matmul %1, %3, %cst_3 {dimension_numbers = #tpu.dot_dimension_numbers<[1], [0], [0], [1], [0, 0, 1, 1], [], []>} : vector<256x384xbf16>, vector<384x512xbf16>, vector<256x512xf32> -> vector<256x512xf32>
    %c0_4 = arith.constant 0 : index
    %c0_5 = arith.constant 0 : index
    %5 = vector.load %arg3[%c0_4, %c0_5] : memref<1x1536xf32, #tpu.memory_space<vmem>>, vector<1x512xf32>
    %6 = vector.broadcast %5 : vector<1x512xf32> to vector<256x512xf32>
    %7 = arith.addf %4, %6 : vector<256x512xf32>
    %cst_6 = arith.constant 0.000000e+00 : f32
    %8 = vector.broadcast %cst_6 : f32 to vector<256x512xf32>
    %9 = arith.maximumf %7, %8 : vector<256x512xf32>
    %10 = arith.truncf %9 : vector<256x512xf32> to vector<256x512xbf16>
    %c0_7 = arith.constant 0 : index
    %c0_8 = arith.constant 0 : index
    %11 = vector.load %arg4[%c0_7, %c0_8] : memref<1536x384xbf16, #tpu.memory_space<vmem>>, vector<512x384xbf16>
    %cst_9 = arith.constant dense<0.000000e+00> : vector<256x384xf32>
    %12 = tpu.matmul %10, %11, %cst_9 {dimension_numbers = #tpu.dot_dimension_numbers<[1], [0], [0], [1], [0, 0, 1, 1], [], []>} : vector<256x512xbf16>, vector<512x384xbf16>, vector<256x384xf32> -> vector<256x384xf32>
    %13 = arith.addf %2, %12 : vector<256x384xf32>
    %c0_10 = arith.constant 0 : index
    %c512 = arith.constant 512 : index
    %14 = vector.load %arg2[%c0_10, %c512] : memref<384x1536xbf16, #tpu.memory_space<vmem>>, vector<384x512xbf16>
    %cst_11 = arith.constant dense<0.000000e+00> : vector<256x512xf32>
    %15 = tpu.matmul %1, %14, %cst_11 {dimension_numbers = #tpu.dot_dimension_numbers<[1], [0], [0], [1], [0, 0, 1, 1], [], []>} : vector<256x384xbf16>, vector<384x512xbf16>, vector<256x512xf32> -> vector<256x512xf32>
    %c0_12 = arith.constant 0 : index
    %c512_13 = arith.constant 512 : index
    %16 = vector.load %arg3[%c0_12, %c512_13] : memref<1x1536xf32, #tpu.memory_space<vmem>>, vector<1x512xf32>
    %17 = vector.broadcast %16 : vector<1x512xf32> to vector<256x512xf32>
    %18 = arith.addf %15, %17 : vector<256x512xf32>
    %cst_14 = arith.constant 0.000000e+00 : f32
    %19 = vector.broadcast %cst_14 : f32 to vector<256x512xf32>
    %20 = arith.maximumf %18, %19 : vector<256x512xf32>
    %21 = arith.truncf %20 : vector<256x512xf32> to vector<256x512xbf16>
    %c512_15 = arith.constant 512 : index
    %c0_16 = arith.constant 0 : index
    %22 = vector.load %arg4[%c512_15, %c0_16] : memref<1536x384xbf16, #tpu.memory_space<vmem>>, vector<512x384xbf16>
    %cst_17 = arith.constant dense<0.000000e+00> : vector<256x384xf32>
    %23 = tpu.matmul %21, %22, %cst_17 {dimension_numbers = #tpu.dot_dimension_numbers<[1], [0], [0], [1], [0, 0, 1, 1], [], []>} : vector<256x512xbf16>, vector<512x384xbf16>, vector<256x384xf32> -> vector<256x384xf32>
    %24 = arith.addf %13, %23 : vector<256x384xf32>
    %c0_18 = arith.constant 0 : index
    %c1024 = arith.constant 1024 : index
    %25 = vector.load %arg2[%c0_18, %c1024] : memref<384x1536xbf16, #tpu.memory_space<vmem>>, vector<384x512xbf16>
    %cst_19 = arith.constant dense<0.000000e+00> : vector<256x512xf32>
    %26 = tpu.matmul %1, %25, %cst_19 {dimension_numbers = #tpu.dot_dimension_numbers<[1], [0], [0], [1], [0, 0, 1, 1], [], []>} : vector<256x384xbf16>, vector<384x512xbf16>, vector<256x512xf32> -> vector<256x512xf32>
    %c0_20 = arith.constant 0 : index
    %c1024_21 = arith.constant 1024 : index
    %27 = vector.load %arg3[%c0_20, %c1024_21] : memref<1x1536xf32, #tpu.memory_space<vmem>>, vector<1x512xf32>
    %28 = vector.broadcast %27 : vector<1x512xf32> to vector<256x512xf32>
    %29 = arith.addf %26, %28 : vector<256x512xf32>
    %cst_22 = arith.constant 0.000000e+00 : f32
    %30 = vector.broadcast %cst_22 : f32 to vector<256x512xf32>
    %31 = arith.maximumf %29, %30 : vector<256x512xf32>
    %32 = arith.truncf %31 : vector<256x512xf32> to vector<256x512xbf16>
    %c1024_23 = arith.constant 1024 : index
    %c0_24 = arith.constant 0 : index
    %33 = vector.load %arg4[%c1024_23, %c0_24] : memref<1536x384xbf16, #tpu.memory_space<vmem>>, vector<512x384xbf16>
    %cst_25 = arith.constant dense<0.000000e+00> : vector<256x384xf32>
    %34 = tpu.matmul %32, %33, %cst_25 {dimension_numbers = #tpu.dot_dimension_numbers<[1], [0], [0], [1], [0, 0, 1, 1], [], []>} : vector<256x512xbf16>, vector<512x384xbf16>, vector<256x384xf32> -> vector<256x384xf32>
    %35 = arith.addf %24, %34 : vector<256x384xf32>
    %c0_26 = arith.constant 0 : index
    %c0_27 = arith.constant 0 : index
    %36 = vector.load %arg5[%c0_26, %c0_27] : memref<1x384xf32, #tpu.memory_space<vmem>>, vector<1x384xf32>
    %37 = vector.broadcast %36 : vector<1x384xf32> to vector<256x384xf32>
    %38 = arith.addf %35, %37 : vector<256x384xf32>
    %39 = arith.truncf %38 : vector<256x384xf32> to vector<256x384xbf16>
    %c0_28 = arith.constant 0 : index
    %c0_29 = arith.constant 0 : index
    %40 = vector.load %arg6[%c0_28, %c0_29] : memref<256x384xbf16, #tpu.memory_space<vmem>>, vector<256x384xbf16>
    tpu.vector_store %arg6[%c0_28, %c0_29], %39 {strides = array<i32>} : memref<256x384xbf16, #tpu.memory_space<vmem>>, vector<256x384xbf16>,
    return
  }
  func.func @transform_0(%arg0: i32) -> (i32, i32) {
    %c0_i32 = arith.constant 0 : i32
    %c0_i32_0 = arith.constant 0 : i32
    return %arg0, %c0_i32 : i32, i32
  }
  func.func @transform_1(%arg0: i32) -> (i32, i32) {
    %c0_i32 = arith.constant 0 : i32
    %c0_i32_0 = arith.constant 0 : i32
    %c0_i32_1 = arith.constant 0 : i32
    return %c0_i32, %c0_i32_0 : i32, i32
  }
  func.func @transform_2(%arg0: i32) -> (i32, i32) {
    %c0_i32 = arith.constant 0 : i32
    %c0_i32_0 = arith.constant 0 : i32
    %c0_i32_1 = arith.constant 0 : i32
    return %c0_i32, %c0_i32_0 : i32, i32
  }
  func.func @transform_3(%arg0: i32) -> (i32, i32) {
    %c0_i32 = arith.constant 0 : i32
    %c0_i32_0 = arith.constant 0 : i32
    %c0_i32_1 = arith.constant 0 : i32
    return %c0_i32, %c0_i32_0 : i32, i32
  }
  func.func @transform_4(%arg0: i32) -> (i32, i32) {
    %c0_i32 = arith.constant 0 : i32
    %c0_i32_0 = arith.constant 0 : i32
    %c0_i32_1 = arith.constant 0 : i32
    return %c0_i32, %c0_i32_0 : i32, i32
  }
  func.func @transform_5(%arg0: i32) -> (i32, i32) {
    %c0_i32 = arith.constant 0 : i32
    %c0_i32_0 = arith.constant 0 : i32
    return %arg0, %c0_i32 : i32, i32
  }
}

</mosaic_0001>

<bundles_post_ra>
// kernel: feed_forward.1
= control target key start
LH: loop header
LB: loop body
LE: loop exit
PB: predicated region body
PF: predicated region fallthrough
CT: control target
= control target key end

     0   :  { %10 = vsyncpa [#allocation3], 0  ;;  %s15131_s0 = inlined_call_operand.hbm [shape: f32[32,384], index: 0, kind: input, shape index: {}]   ;;  %s15132_s1 = inlined_call_operand.hbm [shape: bf16[384,1536], index: 1, kind: input, shape index: {}]   ;;  %s15133_s2 = inlined_call_operand.hbm [shape: f32[1,1536], index: 2, kind: input, shape index: {}]   ;;  %s15134_s3 = inlined_call_operand.hbm [shape: bf16[1536,384], index: 3, kind: input, shape index: {}]   ;;  %s15135_s4 = inlined_call_operand.hbm [shape: f32[1,384], index: 4, kind: input, shape index: {}]   ;;  %s15136_s5 = inlined_call_operand.hbm [shape: bf16[32,384], index: 5, kind: output, shape index: {}]  }
   0x1   :  { %11 = vsyncpa [#allocation6], 0 }
   0x2   :  { %12 = vsyncpa [#allocation9], 0 }
   0x3   :  { %13 = vsyncpa [#allocation4], 0 }
   0x4   :  { %18 = vsyncadd [#allocation3], 10752  ;;  %s13005_s18 = smov [#allocation5]   ;;  %s12865_s22 = scalar_lea.hbm %s15132_s1, 36864 }
   0x5   :  { %s31_s19 = sshll.u32 %s13005_s18, 4  ;;  %p12866_p0 = scmp.ne.s32.totalorder %s15132_s1, %s12865_s22  ;;  %s32_s19 = int_to_ptr.vmem [resolvable:$true] %s31_s19 }
   0x6   :  { %p12869_p1 = scmp.lt.u32.totalorder %s12865_s22, %s15132_s1 }
   0x8   :  { %p12871_p2 = pnand %p12869_p1, %p12866_p0 }
   0xa   :  { %12874 = shalt.err (!%p12871_p2)
}
   0xb   :  { %s12875_s27 = scalar_lea.vmem %s32_s19, 36864  ;;  %p12880_p4 = scmp.lt.s32.totalorder %s32_s19, %s32_s19 }
   0xc   :  { %p12876_p3 = scmp.ne.s32.totalorder %s32_s19, %s12875_s27  ;;  %p12881_p5 = scmp.lt.s32.totalorder %s12875_s27, %s12875_s27 }
   0xe   :  { %p12882_p6 = por %p12881_p5, %p12880_p4 }
  0x10   :  { %p12883_p7 = pnand %p12882_p6, %p12876_p3 }
  0x12   :  { %12886 = shalt.err (!%p12883_p7)
}
  0x13   :  { %s13006_s28 = smov 768   ;;  %s13007_s29 = smov 48  }
  0x14   :  { %37 = dma.hbm_to_vmem [thread:$0]  %s15132_s1, 36864, %s32_s19, [#allocation6], %s13006_s28, %s13006_s28, %s13007_s29  }
  0x15   :  { %s13008_s7 = smov [#allocation8]   ;;  %s12887_s11 = scalar_lea.hbm %s15134_s3, 36864 }
  0x16   :  { %s53_s8 = sshll.u32 %s13008_s7, 4  ;;  %p12888_p8 = scmp.ne.s32.totalorder %s15134_s3, %s12887_s11  ;;  %s54_s8 = int_to_ptr.vmem [resolvable:$true] %s53_s8 }
  0x17   :  { %p12891_p9 = scmp.lt.u32.totalorder %s12887_s11, %s15134_s3 }
  0x19   :  { %p12893_p10 = pnand %p12891_p9, %p12888_p8 }
  0x1b   :  { %12896 = shalt.err (!%p12893_p10)
}
  0x1c   :  { %s12897_s16 = scalar_lea.vmem %s54_s8, 36864  ;;  %p12902_p12 = scmp.lt.s32.totalorder %s54_s8, %s54_s8 }
  0x1d   :  { %p12898_p11 = scmp.ne.s32.totalorder %s54_s8, %s12897_s16  ;;  %p12903_p13 = scmp.lt.s32.totalorder %s12897_s16, %s12897_s16 }
  0x1f   :  { %p12904_p0 = por %p12903_p13, %p12902_p12 }
  0x21   :  { %p12905_p1 = pnand %p12904_p0, %p12898_p11 }
  0x23   :  { %12908 = shalt.err (!%p12905_p1)
}
  0x24   :  { %s13009_s1 = smov 192   ;;  %s13010_s17 = smov 12  }
  0x25   :  { %59 = dma.hbm_to_vmem [thread:$0]  %s15134_s3, 36864, %s54_s8, [#allocation9], %s13009_s1, %s13009_s1, %s13010_s17  }
  0x26   :  { %s13011_s20 = smov [#allocation2]   ;;  %s12909_s24 = scalar_lea.hbm %s15131_s0, 1536 }
  0x27   :  { %s19_s21 = sshll.u32 %s13011_s20, 4  ;;  %p12910_p2 = scmp.ne.s32.totalorder %s15131_s0, %s12909_s24  ;;  %s20_s21 = int_to_ptr.vmem [resolvable:$true] %s19_s21 }
  0x28   :  { %p12913_p3 = scmp.lt.u32.totalorder %s12909_s24, %s15131_s0 }
  0x2a   :  { %p12915_p4 = pnand %p12913_p3, %p12910_p2 }
  0x2c   :  { %12918 = shalt.err (!%p12915_p4)
}
  0x2d   :  { %s12919_s29 = scalar_lea.vmem %s20_s21, 1536  ;;  %s12923_s3 = scalar_lea.vmem %s20_s21, 12288 }
  0x2e   :  { %p12920_p5 = scmp.ne.s32.totalorder %s20_s21, %s12919_s29  ;;  %p12924_p6 = scmp.lt.s32.totalorder %s20_s21, %s20_s21 }
  0x2f   :  { %p12925_p7 = scmp.lt.s32.totalorder %s12923_s3, %s12919_s29 }
  0x31   :  { %p12926_p8 = por %p12925_p7, %p12924_p6 }
  0x33   :  { %p12927_p9 = pnand %p12926_p8, %p12920_p5 }
  0x35   :  { %12930 = shalt.err (!%p12927_p9)
}
  0x36   :  { %s13012_s30 = smov 384   ;;  %s13013_s6 = smov 24  }
  0x37   :  { %25 = dma.hbm_to_vmem [thread:$0]  %s15131_s0, 1536, %s20_s21, [#allocation3], %s13012_s30, %s13012_s30, %s13013_s6  }
  0x38   :  { %s13014_s9 = smov [#allocation7]   ;;  %s13015_s11 = smov [#allocation10]  }
  0x39   :  { %s44_s10 = sshll.u32 %s13014_s9, 4  ;;  %s66_s12 = sshll.u32 %s13015_s11, 4  ;;  %s45_s10 = int_to_ptr.vmem [resolvable:$true] %s44_s10  ;;  %s67_s12 = int_to_ptr.vmem [resolvable:$true] %s66_s12 }
  0x3a   :  { %s12931_s15 = scalar_lea.hbm %s15133_s2, 192 }
  0x3b   :  { %p12932_p10 = scmp.ne.s32.totalorder %s15133_s2, %s12931_s15  ;;  %p12935_p11 = scmp.lt.u32.totalorder %s12931_s15, %s15133_s2 }
  0x3d   :  { %p12937_p12 = pnand %p12935_p11, %p12932_p10 }
  0x3f   :  { %12940 = shalt.err (!%p12937_p12)
}
  0x40   :  { %s12941_s0 = scalar_lea.vmem %s45_s10, 192  ;;  %p12946_p0 = scmp.lt.s32.totalorder %s45_s10, %s45_s10 }
  0x41   :  { %p12942_p13 = scmp.ne.s32.totalorder %s45_s10, %s12941_s0  ;;  %p12947_p1 = scmp.lt.s32.totalorder %s12941_s0, %s12941_s0 }
  0x43   :  { %p12948_p2 = por %p12947_p1, %p12946_p0 }
  0x45   :  { %p12949_p3 = pnand %p12948_p2, %p12942_p13 }
  0x47   :  { %12952 = shalt.err (!%p12949_p3)
}
  0x48   :  { %47 = dma.hbm_to_vmem [thread:$0]  %s15133_s2, 192, %s45_s10, [#allocation6]  }
  0x49   :  { %s12953_s25 = scalar_lea.hbm %s15135_s4, 48 }
  0x4a   :  { %p12954_p4 = scmp.ne.s32.totalorder %s15135_s4, %s12953_s25  ;;  %p12957_p5 = scmp.lt.u32.totalorder %s12953_s25, %s15135_s4 }
  0x4c   :  { %p12959_p6 = pnand %p12957_p5, %p12954_p4 }
  0x4e   :  { %12962 = shalt.err (!%p12959_p6)
}
  0x4f   :  { %s12963_s3 = scalar_lea.vmem %s67_s12, 48  ;;  %s12967_s30 = scalar_lea.vmem %s67_s12, 64 }
  0x50   :  { %p12964_p7 = scmp.ne.s32.totalorder %s67_s12, %s12963_s3  ;;  %p12968_p8 = scmp.lt.s32.totalorder %s67_s12, %s67_s12 }
  0x51   :  { %p12969_p9 = scmp.lt.s32.totalorder %s12967_s30, %s12963_s3 }
  0x53   :  { %p12970_p10 = por %p12969_p9, %p12968_p8 }
  0x55   :  { %p12971_p11 = pnand %p12970_p10, %p12964_p7 }
  0x57   :  { %12974 = shalt.err (!%p12971_p11)
}
  0x58   :  { %69 = dma.hbm_to_vmem [thread:$0]  %s15135_s4, 48, %s67_s12, [#allocation9]  }
  0x59   :  { %12997 = dma.done.wait [#allocation3], 12288  }
  0x5a   :  { %12998 = vsyncadd [#allocation3], 4294955008 }
  0x5b   :  { %12999 = dma.done.wait [#allocation6], 37056  }
  0x5c   :  { %13000 = vsyncadd [#allocation6], 4294930240 }
  0x5d   :  { %13001 = dma.done.wait [#allocation9], 36912  }
  0x5e   :  { %13002 = vsyncadd [#allocation9], 4294930384  ;;  %v12049_v0 = vld [vmem:[#allocation5 + $0x4] ss:$48 sps:$4 sm:$0xff]   ;;  %v12051_v1 = vld [vmem:[#allocation5 + $0xc] ss:$48 sps:$4 sm:$0xff]  }
  0x5f   :  { %828 = vmatprep.subr.bf16.mxu0 %v12049_v0  ;;  %v12053_v2 = vld [vmem:[#allocation5] ss:$48 sps:$4 sm:$0xff]   ;;  %v12054_v3 = vld [vmem:[#allocation5 + $0x8] ss:$48 sps:$4 sm:$0xff]   ;;  %1214 = vmatprep.subr.bf16.mxu1 %v12051_v1  ;;  %v12055_v4 = vld [vmem:[#allocation5 + $0x64] ss:$48 sps:$4 sm:$0xff]  }
  0x60   :  { %829 = vmatpush1.bf16.msra.mxu0 %v12053_v2  ;;  %1215 = vmatpush1.bf16.msra.mxu1 %v12054_v3  ;;  %v12057_v5 = vld [vmem:[#allocation5 + $0x6c] ss:$48 sps:$4 sm:$0xff]   ;;  %v12059_v6 = vld [vmem:[#allocation5 + $0x60] ss:$48 sps:$4 sm:$0xff]   ;;  %v12060_v7 = vld [vmem:[#allocation5 + $0x68] ss:$48 sps:$4 sm:$0xff]  }
  0x61   :  { %830 = vmatprep.subr.bf16.mxu0 %v12055_v4  ;;  %1216 = vmatprep.subr.bf16.mxu1 %v12057_v5  ;;  %v12061_v8 = vld [vmem:[#allocation5 + $0xc4] ss:$48 sps:$4 sm:$0xff]   ;;  %v12063_v9 = vld [vmem:[#allocation5 + $0xcc] ss:$48 sps:$4 sm:$0xff]   ;;  %v12065_v10 = vld [vmem:[#allocation5 + $0xc0] ss:$48 sps:$4 sm:$0xff]  }
  0x62   :  { %v12066_v11 = vld [vmem:[#allocation5 + $0xc8] ss:$48 sps:$4 sm:$0xff]   ;;  %v12067_v12 = vld [vmem:[#allocation5 + $0x124] ss:$48 sps:$4 sm:$0xff]   ;;  %v12069_v13 = vld [vmem:[#allocation5 + $0x12c] ss:$48 sps:$4 sm:$0xff]  }
  0x63   :  { %v12071_v14 = vld [vmem:[#allocation5 + $0x120] ss:$48 sps:$4 sm:$0xff]   ;;  %v12072_v15 = vld [vmem:[#allocation5 + $0x128] ss:$48 sps:$4 sm:$0xff]   ;;  %v12073_v16 = vld [vmem:[#allocation5 + $0x184] ss:$48 sps:$4 sm:$0xff]  }
  0x64   :  { %831 = vmatpush1.bf16.msra.mxu0 %v12059_v6  ;;  %1217 = vmatpush1.bf16.msra.mxu1 %v12060_v7  ;;  %v12075_v17 = vld [vmem:[#allocation5 + $0x18c] ss:$48 sps:$4 sm:$0xff]   ;;  %v12077_v18 = vld [vmem:[#allocation5 + $0x180] ss:$48 sps:$4 sm:$0xff]   ;;  %v12078_v19 = vld [vmem:[#allocation5 + $0x188] ss:$48 sps:$4 sm:$0xff]  }
  0x65   :  { %832 = vmatprep.subr.bf16.mxu0 %v12061_v8  ;;  %1218 = vmatprep.subr.bf16.mxu1 %v12063_v9  ;;  %v12079_v20 = vld [vmem:[#allocation5 + $0x1e4] ss:$48 sps:$4 sm:$0xff]   ;;  %v12081_v21 = vld [vmem:[#allocation5 + $0x1ec] ss:$48 sps:$4 sm:$0xff]   ;;  %v12083_v22 = vld [vmem:[#allocation5 + $0x1e0] ss:$48 sps:$4 sm:$0xff]  }
  0x66   :  { %v12084_v23 = vld [vmem:[#allocation5 + $0x1e8] ss:$48 sps:$4 sm:$0xff]   ;;  %v12085_v24 = vld [vmem:[#allocation5 + $0x244] ss:$48 sps:$4 sm:$0xff]   ;;  %v12087_v25 = vld [vmem:[#allocation5 + $0x24c] ss:$48 sps:$4 sm:$0xff]  }
  0x67   :  { %v12089_v26 = vld [vmem:[#allocation5 + $0x240] ss:$48 sps:$4 sm:$0xff]   ;;  %v12090_v27 = vld [vmem:[#allocation5 + $0x248] ss:$48 sps:$4 sm:$0xff]   ;;  %v12091_v28 = vld [vmem:[#allocation5 + $0x2a4] ss:$48 sps:$4 sm:$0xff]  }
  0x68   :  { %833 = vmatpush1.bf16.msra.mxu0 %v12065_v10  ;;  %1219 = vmatpush1.bf16.msra.mxu1 %v12066_v11  ;;  %v12093_v29 = vld [vmem:[#allocation5 + $0x2ac] ss:$48 sps:$4 sm:$0xff]   ;;  %v12095_v30 = vld [vmem:[#allocation5 + $0x2a0] ss:$48 sps:$4 sm:$0xff]   ;;  %v12096_v31 = vld [vmem:[#allocation5 + $0x2a8] ss:$48 sps:$4 sm:$0xff]  }
  0x69   :  { %834 = vmatprep.subr.bf16.mxu0 %v12067_v12  ;;  %1220 = vmatprep.subr.bf16.mxu1 %v12069_v13  ;;  %v12097_v32 = vld [vmem:[#allocation5 + $0x304] ss:$48 sps:$4 sm:$0xff]   ;;  %v12099_v33 = vld [vmem:[#allocation5 + $0x30c] ss:$48 sps:$4 sm:$0xff]   ;;  %v12101_v34 = vld [vmem:[#allocation5 + $0x300] ss:$48 sps:$4 sm:$0xff]  }
  0x6a   :  { %v12102_v35 = vld [vmem:[#allocation5 + $0x308] ss:$48 sps:$4 sm:$0xff]   ;;  %v12103_v36 = vld [vmem:[#allocation5 + $0x364] ss:$48 sps:$4 sm:$0xff]   ;;  %v12105_v37 = vld [vmem:[#allocation5 + $0x36c] ss:$48 sps:$4 sm:$0xff]  }
  0x6b   :  { %v12107_v38 = vld [vmem:[#allocation5 + $0x360] ss:$48 sps:$4 sm:$0xff]   ;;  %v12108_v39 = vld [vmem:[#allocation5 + $0x368] ss:$48 sps:$4 sm:$0xff]   ;;  %v12109_v40 = vld [vmem:[#allocation5 + $0x3c4] ss:$48 sps:$4 sm:$0xff]  }
  0x6c   :  { %835 = vmatpush1.bf16.msra.mxu0 %v12071_v14  ;;  %1221 = vmatpush1.bf16.msra.mxu1 %v12072_v15  ;;  %v12111_v41 = vld [vmem:[#allocation5 + $0x3cc] ss:$48 sps:$4 sm:$0xff]   ;;  %v12113_v42 = vld [vmem:[#allocation5 + $0x3c0] ss:$48 sps:$4 sm:$0xff]   ;;  %v12114_v43 = vld [vmem:[#allocation5 + $0x3c8] ss:$48 sps:$4 sm:$0xff]  }
  0x6d   :  { %836 = vmatprep.subr.bf16.mxu0 %v12073_v16  ;;  %1222 = vmatprep.subr.bf16.mxu1 %v12075_v17  ;;  %v12115_v44 = vld [vmem:[#allocation5 + $0x424] ss:$48 sps:$4 sm:$0xff]   ;;  %v12117_v45 = vld [vmem:[#allocation5 + $0x42c] ss:$48 sps:$4 sm:$0xff]   ;;  %v12119_v47 = vld [vmem:[#allocation5 + $0x420] ss:$48 sps:$4 sm:$0xff]  }
  0x6e   :  { %v87_v46 = vld [vmem:[#allocation2 + $0x8] sm:$0xff]  ;;  %v90_v48 = vld [vmem:[#allocation2 + $0x20] sm:$0xff]  ;;  %v89_v4 = vld [vmem:[#allocation2 + $0x18] sm:$0xff] }
  0x6f   :  { %v12120_v49 = vld [vmem:[#allocation5 + $0x428] ss:$48 sps:$4 sm:$0xff]   ;;  %v13111_v50 = vpack.c.bf16 %v90_v48, %v87_v46  ;;  %v12121_v51 = vld [vmem:[#allocation5 + $0x484] ss:$48 sps:$4 sm:$0xff]   ;;  %v12123_v52 = vld [vmem:[#allocation5 + $0x48c] ss:$48 sps:$4 sm:$0xff]  }
  0x70   :  { %837 = vmatpush1.bf16.msra.mxu0 %v12077_v18  ;;  %1223 = vmatpush1.bf16.msra.mxu1 %v12078_v19  ;;  %v12125_v53 = vld [vmem:[#allocation5 + $0x480] ss:$48 sps:$4 sm:$0xff]   ;;  %v12126_v54 = vld [vmem:[#allocation5 + $0x488] ss:$48 sps:$4 sm:$0xff]   ;;  %v12127_v55 = vld [vmem:[#allocation5 + $0x4e4] ss:$48 sps:$4 sm:$0xff]  }
  0x71   :  { %838 = vmatprep.subr.bf16.mxu0 %v12079_v20  ;;  %1224 = vmatprep.subr.bf16.mxu1 %v12081_v21  ;;  %15300 = vst [vmem:[#allocation16_spill] sm:$0xff] %v13111_v50  ;;  %v12129_v56 = vld [vmem:[#allocation5 + $0x4ec] ss:$48 sps:$4 sm:$0xff]   ;;  %v12131_v57 = vld [vmem:[#allocation5 + $0x4e0] ss:$48 sps:$4 sm:$0xff]  }
  0x72   :  { %860 = vmatprep.mubr.bf16.mxu0 %v13111_v50  ;;  %1246 = vmatprep.mubr.bf16.mxu1 %v13111_v50  ;;  %v12132_v58 = vld [vmem:[#allocation5 + $0x4e8] ss:$48 sps:$4 sm:$0xff]   ;;  %v12133_v59 = vld [vmem:[#allocation5 + $0x544] ss:$48 sps:$4 sm:$0xff]   ;;  %v12135_v60 = vld [vmem:[#allocation5 + $0x54c] ss:$48 sps:$4 sm:$0xff]  }
  0x73   :  { %v12137_v61 = vld [vmem:[#allocation5 + $0x540] ss:$48 sps:$4 sm:$0xff]   ;;  %v12138_v62 = vld [vmem:[#allocation5 + $0x548] ss:$48 sps:$4 sm:$0xff]   ;;  %v12139_v63 = vld [vmem:[#allocation5 + $0x5a4] ss:$48 sps:$4 sm:$0xff]  }
  0x74   :  { %839 = vmatpush1.bf16.msra.mxu0 %v12083_v22  ;;  %1225 = vmatpush1.bf16.msra.mxu1 %v12084_v23  ;;  %v12141_v0 = vld [vmem:[#allocation5 + $0x5ac] ss:$48 sps:$4 sm:$0xff]   ;;  %v12143_v1 = vld [vmem:[#allocation5 + $0x5a0] ss:$48 sps:$4 sm:$0xff]   ;;  %v12144_v2 = vld [vmem:[#allocation5 + $0x5a8] ss:$48 sps:$4 sm:$0xff]  }
  0x75   :  { %840 = vmatprep.subr.bf16.mxu0 %v12085_v24  ;;  %1226 = vmatprep.subr.bf16.mxu1 %v12087_v25  ;;  %v86_v3 = vld [vmem:[#allocation2] sm:$0xff]  ;;  %v93_v6 = vld [vmem:[#allocation2 + $0x38] sm:$0xff]  ;;  %v96_v7 = vld [vmem:[#allocation2 + $0x50] sm:$0xff] }
  0x76   :  { %v12147_v5 = vld [vmem:[#allocation5 + $0x604] ss:$48 sps:$4 sm:$0xff]   ;;  %v13115_v8 = vpack.c.bf16 %v89_v4, %v86_v3  ;;  %v12145_v9 = vld [vmem:[#allocation5 + $0x600] ss:$48 sps:$4 sm:$0xff]   ;;  %v13117_v10 = vpack.c.bf16 %v96_v7, %v93_v6  ;;  %v95_v13 = vld [vmem:[#allocation2 + $0x48] sm:$0xff] }
  0x77   :  { %v12150_v11 = vld [vmem:[#allocation5 + $0x664] ss:$48 sps:$4 sm:$0xff]   ;;  %v99_v14 = vld [vmem:[#allocation2 + $0x68] sm:$0xff]  ;;  %v12148_v16 = vld [vmem:[#allocation5 + $0x660] ss:$48 sps:$4 sm:$0xff]  }
  0x78   :  { %841 = vmatpush1.bf16.msra.mxu0 %v12089_v26  ;;  %1227 = vmatpush1.bf16.msra.mxu1 %v12090_v27  ;;  %15301 = vst [vmem:[#allocation17_spill] sm:$0xff] %v13115_v8  ;;  %15302 = vst [vmem:[#allocation18_spill] sm:$0xff] %v13117_v10  ;;  %v92_v12 = vld [vmem:[#allocation2 + $0x30] sm:$0xff]  ;;  %v102_v15 = vld [vmem:[#allocation2 + $0x80] sm:$0xff] }
  0x79   :  { %842 = vmatprep.subr.bf16.mxu0 %v12091_v28  ;;  %1228 = vmatprep.subr.bf16.mxu1 %v12093_v29  ;;  %v12153_v17 = vld [vmem:[#allocation5 + $0x6c4] ss:$48 sps:$4 sm:$0xff]   ;;  %v12166_v18 = vld [vmem:[#allocation5 + $0x608] ss:$48 sps:$4 sm:$0xff]   ;;  %v12168_v19 = vld [vmem:[#allocation5 + $0x60c] ss:$48 sps:$4 sm:$0xff]   ;;  %v13123_v20 = vpack.c.bf16 %v95_v13, %v92_v12  ;;  %v13125_v22 = vpack.c.bf16 %v102_v15, %v99_v14 }
  0x7a   :  { %v12171_v21 = vld [vmem:[#allocation5 + $0x66c] ss:$48 sps:$4 sm:$0xff]   ;;  %v12151_v23 = vld [vmem:[#allocation5 + $0x6c0] ss:$48 sps:$4 sm:$0xff]   ;;  %v12169_v24 = vld [vmem:[#allocation5 + $0x668] ss:$48 sps:$4 sm:$0xff]  }
  0x7b   :  { %15303 = vst [vmem:[#allocation19_spill] sm:$0xff] %v13123_v20  ;;  %15304 = vst [vmem:[#allocation20_spill] sm:$0xff] %v13125_v22  ;;  %v12156_v25 = vld [vmem:[#allocation5 + $0x724] ss:$48 sps:$4 sm:$0xff]   ;;  %v12174_v26 = vld [vmem:[#allocation5 + $0x6cc] ss:$48 sps:$4 sm:$0xff]  }
  0x7c   :  { %843 = vmatpush1.bf16.msra.mxu0 %v12095_v30  ;;  %1229 = vmatpush1.bf16.msra.mxu1 %v12096_v31  ;;  %v98_v27 = vld [vmem:[#allocation2 + $0x60] sm:$0xff]  ;;  %v101_v28 = vld [vmem:[#allocation2 + $0x78] sm:$0xff]  ;;  %v108_v30 = vld [vmem:[#allocation2 + $0xb0] sm:$0xff] }
  0x7d   :  { %844 = vmatprep.subr.bf16.mxu0 %v12097_v32  ;;  %1230 = vmatprep.subr.bf16.mxu1 %v12099_v33  ;;  %v105_v29 = vld [vmem:[#allocation2 + $0x98] sm:$0xff]  ;;  %v12154_v31 = vld [vmem:[#allocation5 + $0x720] ss:$48 sps:$4 sm:$0xff]   ;;  %v12159_v33 = vld [vmem:[#allocation5 + $0x784] ss:$48 sps:$4 sm:$0xff]  }
  0x7e   :  { %v12172_v32 = vld [vmem:[#allocation5 + $0x6c8] ss:$48 sps:$4 sm:$0xff]   ;;  %v12165_v46 = vld [vmem:[#allocation5 + $0x844] ss:$48 sps:$4 sm:$0xff]   ;;  %v12186_v48 = vld [vmem:[#allocation5 + $0x7ec] ss:$48 sps:$4 sm:$0xff]  }
  0x7f   :  { %v116_v3 = vld [vmem:[#allocation2 + $0xf0] sm:$0xff]  ;;  %v119_v4 = vld [vmem:[#allocation2 + $0x108] sm:$0xff]  ;;  %v126_v6 = vld [vmem:[#allocation2 + $0x140] sm:$0xff] }
  0x80   :  { %845 = vmatpush1.bf16.msra.mxu0 %v12101_v34  ;;  %1231 = vmatpush1.bf16.msra.mxu1 %v12102_v35  ;;  %v12177_v34 = vld [vmem:[#allocation5 + $0x72c] ss:$48 sps:$4 sm:$0xff]   ;;  %v13131_v35 = vpack.c.bf16 %v101_v28, %v98_v27  ;;  %v13155_v7 = vpack.c.bf16 %v119_v4, %v116_v3  ;;  %v132_v14 = vld [vmem:[#allocation2 + $0x170] sm:$0xff] }
  0x81   :  { %846 = vmatprep.subr.bf16.mxu0 %v12103_v36  ;;  %1232 = vmatprep.subr.bf16.mxu1 %v12105_v37  ;;  %v13133_v36 = vpack.c.bf16 %v108_v30, %v105_v29  ;;  %v12157_v37 = vld [vmem:[#allocation5 + $0x780] ss:$48 sps:$4 sm:$0xff]   ;;  %v125_v12 = vld [vmem:[#allocation2 + $0x138] sm:$0xff] }
  0x82   :  { %15305 = vst [vmem:[#allocation21_spill] sm:$0xff] %v13131_v35  ;;  %15311 = vst [vmem:[#allocation27_spill] sm:$0xff] %v13155_v7  ;;  %v129_v13 = vld [vmem:[#allocation2 + $0x158] sm:$0xff]  ;;  %v144_v28 = vld [vmem:[#allocation2 + $0x1d0] sm:$0xff] }
  0x83   :  { %15306 = vst [vmem:[#allocation22_spill] sm:$0xff] %v13133_v36  ;;  %v141_v27 = vld [vmem:[#allocation2 + $0x1b8] sm:$0xff] }
  0x84   :  { %847 = vmatpush1.bf16.msra.mxu0 %v12107_v38  ;;  %1233 = vmatpush1.bf16.msra.mxu1 %v12108_v39  ;;  %v12175_v38 = vld [vmem:[#allocation5 + $0x728] ss:$48 sps:$4 sm:$0xff]   ;;  %v104_v39 = vld [vmem:[#allocation2 + $0x90] sm:$0xff]  ;;  %v13181_v30 = vpack.c.bf16 %v144_v28, %v141_v27 }
  0x85   :  { %848 = vmatprep.subr.bf16.mxu0 %v12109_v40  ;;  %1234 = vmatprep.subr.bf16.mxu1 %v12111_v41  ;;  %v12162_v40 = vld [vmem:[#allocation5 + $0x7e4] ss:$48 sps:$4 sm:$0xff]   ;;  %v12183_v41 = vld [vmem:[#allocation5 + $0x78c] ss:$48 sps:$4 sm:$0xff]   ;;  %v12193_v27 = vld [vmem:[#allocation5 + $0x10] ss:$48 sps:$4 sm:$0xff]  }
  0x86   :  { %15318 = vst [vmem:[#allocation34_spill] sm:$0xff] %v13181_v30 }
  0x88   :  { %849 = vmatpush1.bf16.msra.mxu0 %v12113_v42  ;;  %1235 = vmatpush1.bf16.msra.mxu1 %v12114_v43  ;;  %v107_v42 = vld [vmem:[#allocation2 + $0xa8] sm:$0xff] }
  0x89   :  { %850 = vmatprep.subr.bf16.mxu0 %v12115_v44  ;;  %1236 = vmatprep.subr.bf16.mxu1 %v12117_v45  ;;  %v111_v43 = vld [vmem:[#allocation2 + $0xc8] sm:$0xff]  ;;  %v114_v44 = vld [vmem:[#allocation2 + $0xe0] sm:$0xff] }
  0x8a   :  { %v12160_v45 = vld [vmem:[#allocation5 + $0x7e0] ss:$48 sps:$4 sm:$0xff]  }
  0x8c   :  { %851 = vmatpush1.bf16.msra.mxu0 %v12119_v47  ;;  %1237 = vmatpush1.bf16.msra.mxu1 %v12120_v49  ;;  %v12181_v47 = vld [vmem:[#allocation5 + $0x788] ss:$48 sps:$4 sm:$0xff]   ;;  %v13139_v49 = vpack.c.bf16 %v107_v42, %v104_v39 }
  0x8d   :  { %852 = vmatprep.subr.bf16.mxu0 %v12121_v51  ;;  %1238 = vmatprep.subr.bf16.mxu1 %v12123_v52  ;;  %v13141_v51 = vpack.c.bf16 %v114_v44, %v111_v43  ;;  %v12163_v52 = vld [vmem:[#allocation5 + $0x840] ss:$48 sps:$4 sm:$0xff]   ;;  %v153_v42 = vld [vmem:[#allocation2 + $0x218] sm:$0xff] }
  0x8e   :  { %15307 = vst [vmem:[#allocation23_spill] sm:$0xff] %v13139_v49  ;;  %v156_v43 = vld [vmem:[#allocation2 + $0x230] sm:$0xff] }
  0x8f   :  { %15308 = vst [vmem:[#allocation24_spill] sm:$0xff] %v13141_v51 }
  0x90   :  { %853 = vmatpush1.bf16.msra.mxu0 %v12125_v53  ;;  %1239 = vmatpush1.bf16.msra.mxu1 %v12126_v54  ;;  %v12180_v53 = vld [vmem:[#allocation5 + $0x8a4] ss:$48 sps:$4 sm:$0xff]   ;;  %v12184_v54 = vld [vmem:[#allocation5 + $0x7e8] ss:$48 sps:$4 sm:$0xff]  }
  0x91   :  { %854 = vmatprep.subr.bf16.mxu0 %v12127_v55  ;;  %1240 = vmatprep.subr.bf16.mxu1 %v12129_v56  ;;  %v110_v55 = vld [vmem:[#allocation2 + $0xc0] sm:$0xff]  ;;  %v12189_v56 = vld [vmem:[#allocation5 + $0x84c] ss:$48 sps:$4 sm:$0xff]  }
  0x94   :  { %855 = vmatpush1.bf16.msra.mxu0 %v12131_v57  ;;  %1241 = vmatpush1.bf16.msra.mxu1 %v12132_v58  ;;  %v113_v57 = vld [vmem:[#allocation2 + $0xd8] sm:$0xff] }
  0x95   :  { %856 = vmatprep.subr.bf16.mxu0 %v12133_v59  ;;  %1242 = vmatprep.subr.bf16.mxu1 %v12135_v60  ;;  %v117_v58 = vld [vmem:[#allocation2 + $0xf8] sm:$0xff]  ;;  %v120_v59 = vld [vmem:[#allocation2 + $0x110] sm:$0xff] }
  0x96   :  { %v12178_v60 = vld [vmem:[#allocation5 + $0x8a0] ss:$48 sps:$4 sm:$0xff]  }
  0x98   :  { %857 = vmatpush1.bf16.msra.mxu0 %v12137_v61  ;;  %1243 = vmatpush1.bf16.msra.mxu1 %v12138_v62  ;;  %v12187_v61 = vld [vmem:[#allocation5 + $0x848] ss:$48 sps:$4 sm:$0xff]   ;;  %v12192_v62 = vld [vmem:[#allocation5 + $0x8ac] ss:$48 sps:$4 sm:$0xff]  }
  0x99   :  { %858 = vmatprep.subr.bf16.mxu0 %v12139_v63  ;;  %1244 = vmatprep.subr.bf16.mxu1 %v12141_v0  ;;  %v12195_v63 = vld [vmem:[#allocation5 + $0x14] ss:$48 sps:$4 sm:$0xff]   ;;  %v13147_v0 = vpack.c.bf16 %v113_v57, %v110_v55  ;;  %v165_v57 = vld [vmem:[#allocation2 + $0x278] sm:$0xff] }
  0x9a   :  { %v158_v55 = vld [vmem:[#allocation2 + $0x240] sm:$0xff] }
  0x9b   :  { %15309 = vst [vmem:[#allocation25_spill] sm:$0xff] %v13147_v0 }
  0x9c   :  { %859 = vmatpush1.bf16.msra.mxu0 %v12143_v1  ;;  %1245 = vmatpush1.bf16.msra.mxu1 %v12144_v2  ;;  %v12190_v1 = vld [vmem:[#allocation5 + $0x8a8] ss:$48 sps:$4 sm:$0xff]   ;;  %v13149_v2 = vpack.c.bf16 %v120_v59, %v117_v58  ;;  %v168_v58 = vld [vmem:[#allocation2 + $0x290] sm:$0xff] }
  0x9d   :  { %1021 = vmatprep.subr.bf16.mxu0 %v12147_v5  ;;  %1407 = vmatprep.subr.bf16.mxu1 %v12168_v19  ;;  %v123_v5 = vld [vmem:[#allocation2 + $0x128] sm:$0xff] }
  0x9e   :  { %15310 = vst [vmem:[#allocation26_spill] sm:$0xff] %v13149_v2  ;;  %v135_v19 = vld [vmem:[#allocation2 + $0x188] sm:$0xff] }
  0x9f   :  { %861 = vmatmul.mubr.bf16.vlgmr.msra.gmra.mrb[0].mxu0 %v13115_v8  ;;  %1247 = vmatmul.mubr.bf16.vlgmr.msra.gmra.mrb[0].mxu1 %v13115_v8 }
  0xa0   :  { %1022 = vmatpush1.bf16.msra.mxu0 %v12145_v9  ;;  %870 = vmatprep.mubr.bf16.mxu0 %v13117_v10  ;;  %v13157_v9 = vpack.c.bf16 %v126_v6, %v123_v5  ;;  %v170_v5 = vld [vmem:[#allocation2 + $0x2a0] sm:$0xff]  ;;  %v173_v6 = vld [vmem:[#allocation2 + $0x2b8] sm:$0xff] }
  0xa1   :  { %1256 = vmatprep.mubr.bf16.mxu1 %v13117_v10  ;;  %1023 = vmatprep.subr.bf16.mxu0 %v12150_v11  ;;  %v122_v11 = vld [vmem:[#allocation2 + $0x120] sm:$0xff] }
  0xa2   :  { %1408 = vmatpush1.bf16.msra.mxu1 %v12166_v18  ;;  %15312 = vst [vmem:[#allocation28_spill] sm:$0xff] %v13157_v9  ;;  %v13163_v15 = vpack.c.bf16 %v125_v12, %v122_v11  ;;  %v131_v18 = vld [vmem:[#allocation2 + $0x168] sm:$0xff]  ;;  %v177_v11 = vld [vmem:[#allocation2 + $0x2d8] sm:$0xff]  ;;  %v180_v12 = vld [vmem:[#allocation2 + $0x2f0] sm:$0xff] }
  0xa3   :  { %1409 = vmatprep.subr.bf16.mxu1 %v12171_v21  ;;  %v138_v21 = vld [vmem:[#allocation2 + $0x1a0] sm:$0xff] }
  0xa4   :  { %1024 = vmatpush1.bf16.msra.mxu0 %v12148_v16  ;;  %15313 = vst [vmem:[#allocation29_spill] sm:$0xff] %v13163_v15  ;;  %v13165_v16 = vpack.c.bf16 %v132_v14, %v129_v13  ;;  %v13227_v13 = vpack.c.bf16 %v173_v6, %v170_v5  ;;  %v13229_v14 = vpack.c.bf16 %v180_v12, %v177_v11  ;;  %v12240_v5 = vld [vmem:[#allocation5 + $0x19c] ss:$48 sps:$4 sm:$0xff]   ;;  %v12210_v6 = vld [vmem:[#allocation5 + $0x1f4] ss:$48 sps:$4 sm:$0xff]  }
  0xa5   :  { %1025 = vmatprep.subr.bf16.mxu0 %v12153_v17  ;;  %v128_v17 = vld [vmem:[#allocation2 + $0x150] sm:$0xff]  ;;  %v12238_v11 = vld [vmem:[#allocation5 + $0x198] ss:$48 sps:$4 sm:$0xff]   ;;  %v106_v12 = vld [vmem:[#allocation2 + $0xa0] sm:$0xff] }
  0xa6   :  { %1410 = vmatpush1.bf16.msra.mxu1 %v12169_v24  ;;  %15314 = vst [vmem:[#allocation30_spill] sm:$0xff] %v13165_v16  ;;  %v13173_v24 = vpack.c.bf16 %v138_v21, %v135_v19  ;;  %15329 = vst [vmem:[#allocation45_spill] sm:$0xff] %v13227_v13  ;;  %v88_v21 = vld [vmem:[#allocation2 + $0x10] sm:$0xff] }
  0xa7   :  { %871 = vmatmul.mubr.bf16.gmra.mrb[4].mxu0 %v13123_v20  ;;  %1257 = vmatmul.mubr.bf16.gmra.mrb[4].mxu1 %v13123_v20  ;;  %15330 = vst [vmem:[#allocation46_spill] sm:$0xff] %v13229_v14 }
  0xa8   :  { %880 = vmatprep.mubr.bf16.mxu0 %v13125_v22  ;;  %1266 = vmatprep.mubr.bf16.mxu1 %v13125_v22  ;;  %15316 = vst [vmem:[#allocation32_spill] sm:$0xff] %v13173_v24 }
  0xa9   :  { %1026 = vmatpush1.bf16.msra.mxu0 %v12151_v23  ;;  %1411 = vmatprep.subr.bf16.mxu1 %v12174_v26  ;;  %v13171_v23 = vpack.c.bf16 %v131_v18, %v128_v17  ;;  %v137_v26 = vld [vmem:[#allocation2 + $0x198] sm:$0xff]  ;;  %v176_v17 = vld [vmem:[#allocation2 + $0x2d0] sm:$0xff]  ;;  %v179_v18 = vld [vmem:[#allocation2 + $0x2e8] sm:$0xff] }
  0xaa   :  { %1027 = vmatprep.subr.bf16.mxu0 %v12156_v25  ;;  %1412 = vmatpush1.bf16.msra.mxu1 %v12172_v32  ;;  %v134_v25 = vld [vmem:[#allocation2 + $0x180] sm:$0xff]  ;;  %v140_v32 = vld [vmem:[#allocation2 + $0x1b0] sm:$0xff]  ;;  %v13235_v19 = vpack.c.bf16 %v179_v18, %v176_v17  ;;  %v109_v17 = vld [vmem:[#allocation2 + $0xb8] sm:$0xff] }
  0xab   :  { %1413 = vmatprep.subr.bf16.mxu1 %v12177_v34  ;;  %15315 = vst [vmem:[#allocation31_spill] sm:$0xff] %v13171_v23  ;;  %v13179_v29 = vpack.c.bf16 %v137_v26, %v134_v25  ;;  %v147_v34 = vld [vmem:[#allocation2 + $0x1e8] sm:$0xff]  ;;  %v15137_v25 = vmov 0   ;;  %v12208_v18 = vld [vmem:[#allocation5 + $0x1f0] ss:$48 sps:$4 sm:$0xff]  }
  0xac   :  { %15331 = vst [vmem:[#allocation47_spill] sm:$0xff] %v13235_v19  ;;  %v91_v26 = vld [vmem:[#allocation2 + $0x28] sm:$0xff] }
  0xad   :  { %1028 = vmatpush1.bf16.msra.mxu0 %v12154_v31  ;;  %15317 = vst [vmem:[#allocation33_spill] sm:$0xff] %v13179_v29  ;;  %v12222_v31 = vld [vmem:[#allocation5 + $0x1c] ss:$48 sps:$4 sm:$0xff]   ;;  %v13241_v28 = vpack.c.bf16 %v91_v26, %v88_v21  ;;  %v12213_v26 = vld [vmem:[#allocation5 + $0x254] ss:$48 sps:$4 sm:$0xff]  }
  0xae   :  { %1029 = vmatprep.subr.bf16.mxu0 %v12159_v33  ;;  %1414 = vmatpush1.bf16.msra.mxu1 %v12175_v38  ;;  %v143_v33 = vld [vmem:[#allocation2 + $0x1c8] sm:$0xff] }
  0xaf   :  { %881 = vmatmul.mubr.bf16.gmra.mrb[8].mxu0 %v13131_v35  ;;  %1267 = vmatmul.mubr.bf16.gmra.mrb[8].mxu1 %v13131_v35  ;;  %v13187_v38 = vpack.c.bf16 %v143_v33, %v140_v32  ;;  %15332 = vst [vmem:[#allocation48_spill] sm:$0xff] %v13241_v28  ;;  %v12220_v32 = vld [vmem:[#allocation5 + $0x18] ss:$48 sps:$4 sm:$0xff]   ;;  %v94_v33 = vld [vmem:[#allocation2 + $0x40] sm:$0xff]  ;;  %v12243_v21 = vld [vmem:[#allocation5 + $0x1fc] ss:$48 sps:$4 sm:$0xff]  }
  0xb0   :  { %890 = vmatprep.mubr.bf16.mxu0 %v13133_v36  ;;  %1276 = vmatprep.mubr.bf16.mxu1 %v13133_v36 }
  0xb1   :  { %1030 = vmatpush1.bf16.msra.mxu0 %v12157_v37  ;;  %1415 = vmatprep.subr.bf16.mxu1 %v12183_v41  ;;  %v150_v37 = vld [vmem:[#allocation2 + $0x200] sm:$0xff]  ;;  %15319 = vst [vmem:[#allocation35_spill] sm:$0xff] %v13187_v38  ;;  %v149_v41 = vld [vmem:[#allocation2 + $0x1f8] sm:$0xff] }
  0xb2   :  { %1031 = vmatprep.subr.bf16.mxu0 %v12162_v40  ;;  %1416 = vmatpush1.bf16.msra.mxu1 %v12181_v47  ;;  %v13189_v39 = vpack.c.bf16 %v150_v37, %v147_v34  ;;  %v146_v40 = vld [vmem:[#allocation2 + $0x1e0] sm:$0xff]  ;;  %v155_v47 = vld [vmem:[#allocation2 + $0x228] sm:$0xff]  ;;  %v97_v34 = vld [vmem:[#allocation2 + $0x58] sm:$0xff] }
  0xb3   :  { %1417 = vmatprep.subr.bf16.mxu1 %v12186_v48  ;;  %v13195_v44 = vpack.c.bf16 %v149_v41, %v146_v40  ;;  %v159_v48 = vld [vmem:[#allocation2 + $0x248] sm:$0xff]  ;;  %v12196_v37 = vld [vmem:[#allocation5 + $0x70] ss:$48 sps:$4 sm:$0xff]   ;;  %v12201_v40 = vld [vmem:[#allocation5 + $0xd4] ss:$48 sps:$4 sm:$0xff]  }
  0xb4   :  { %15320 = vst [vmem:[#allocation36_spill] sm:$0xff] %v13189_v39  ;;  %v12225_v41 = vld [vmem:[#allocation5 + $0x7c] ss:$48 sps:$4 sm:$0xff]  }
  0xb5   :  { %1032 = vmatpush1.bf16.msra.mxu0 %v12160_v45  ;;  %15321 = vst [vmem:[#allocation37_spill] sm:$0xff] %v13195_v44  ;;  %v13197_v45 = vpack.c.bf16 %v156_v43, %v153_v42  ;;  %v12223_v42 = vld [vmem:[#allocation5 + $0x78] ss:$48 sps:$4 sm:$0xff]   ;;  %v13247_v43 = vpack.c.bf16 %v97_v34, %v94_v33  ;;  %v12249_v33 = vld [vmem:[#allocation5 + $0x25c] ss:$48 sps:$4 sm:$0xff]  }
  0xb6   :  { %1033 = vmatprep.subr.bf16.mxu0 %v12165_v46  ;;  %1418 = vmatpush1.bf16.msra.mxu1 %v12184_v54  ;;  %v152_v46 = vld [vmem:[#allocation2 + $0x210] sm:$0xff] }
  0xb7   :  { %891 = vmatmul.mubr.bf16.gmra.mrb[12].mxu0 %v13139_v49  ;;  %1277 = vmatmul.mubr.bf16.gmra.mrb[12].mxu1 %v13139_v49  ;;  %15322 = vst [vmem:[#allocation38_spill] sm:$0xff] %v13197_v45  ;;  %15333 = vst [vmem:[#allocation49_spill] sm:$0xff] %v13247_v43  ;;  %v12216_v34 = vld [vmem:[#allocation5 + $0x2b4] ss:$48 sps:$4 sm:$0xff]  }
  0xb8   :  { %900 = vmatprep.mubr.bf16.mxu0 %v13141_v51  ;;  %1286 = vmatprep.mubr.bf16.mxu1 %v13141_v51 }
  0xb9   :  { %1034 = vmatpush1.bf16.msra.mxu0 %v12163_v52  ;;  %1419 = vmatprep.subr.bf16.mxu1 %v12189_v56  ;;  %v162_v52 = vld [vmem:[#allocation2 + $0x260] sm:$0xff]  ;;  %v161_v56 = vld [vmem:[#allocation2 + $0x258] sm:$0xff] }
  0xba   :  { %1035 = vmatprep.subr.bf16.mxu0 %v12180_v53  ;;  %1420 = vmatpush1.bf16.msra.mxu1 %v12187_v61  ;;  %v13203_v53 = vpack.c.bf16 %v155_v47, %v152_v46  ;;  %v13205_v54 = vpack.c.bf16 %v162_v52, %v159_v48  ;;  %v13211_v59 = vpack.c.bf16 %v161_v56, %v158_v55  ;;  %v164_v61 = vld [vmem:[#allocation2 + $0x270] sm:$0xff]  ;;  %v12231_v47 = vld [vmem:[#allocation5 + $0xdc] ss:$48 sps:$4 sm:$0xff]   ;;  %v12229_v52 = vld [vmem:[#allocation5 + $0xd8] ss:$48 sps:$4 sm:$0xff]  }
  0xbb   :  { %1421 = vmatprep.subr.bf16.mxu1 %v12192_v62  ;;  %v167_v62 = vld [vmem:[#allocation2 + $0x288] sm:$0xff]  ;;  %v12199_v46 = vld [vmem:[#allocation5 + $0xd0] ss:$48 sps:$4 sm:$0xff]   ;;  %v12204_v48 = vld [vmem:[#allocation5 + $0x134] ss:$48 sps:$4 sm:$0xff]  }
  0xbc   :  { %15323 = vst [vmem:[#allocation39_spill] sm:$0xff] %v13203_v53  ;;  %15324 = vst [vmem:[#allocation40_spill] sm:$0xff] %v13205_v54  ;;  %v13219_v3 = vpack.c.bf16 %v167_v62, %v164_v61  ;;  %v12234_v55 = vld [vmem:[#allocation5 + $0x13c] ss:$48 sps:$4 sm:$0xff]   ;;  %v100_v56 = vld [vmem:[#allocation2 + $0x70] sm:$0xff] }
  0xbd   :  { %1036 = vmatpush1.bf16.msra.mxu0 %v12178_v60  ;;  %15325 = vst [vmem:[#allocation41_spill] sm:$0xff] %v13211_v59  ;;  %v13213_v60 = vpack.c.bf16 %v168_v58, %v165_v57  ;;  %v103_v57 = vld [vmem:[#allocation2 + $0x88] sm:$0xff]  ;;  %v12202_v58 = vld [vmem:[#allocation5 + $0x130] ss:$48 sps:$4 sm:$0xff]   ;;  %v12207_v61 = vld [vmem:[#allocation5 + $0x194] ss:$48 sps:$4 sm:$0xff]  }
  0xbe   :  { %2518 = vmatprep.subr.bf16.mxu0 %v12195_v63  ;;  %1422 = vmatpush1.bf16.msra.mxu1 %v12190_v1  ;;  %v171_v63 = vld [vmem:[#allocation2 + $0x2a8] sm:$0xff]  ;;  %v174_v1 = vld [vmem:[#allocation2 + $0x2c0] sm:$0xff]  ;;  %15327 = vst [vmem:[#allocation43_spill] sm:$0xff] %v13219_v3 }
  0xbf   :  { %901 = vmatmul.mubr.bf16.gmra.mrb[16].mxu0 %v13147_v0  ;;  %1287 = vmatmul.mubr.bf16.gmra.mrb[16].mxu1 %v13147_v0  ;;  %15326 = vst [vmem:[#allocation42_spill] sm:$0xff] %v13213_v60  ;;  %v13221_v4 = vpack.c.bf16 %v174_v1, %v171_v63  ;;  %v12232_v62 = vld [vmem:[#allocation5 + $0x138] ss:$48 sps:$4 sm:$0xff]   ;;  %v13253_v63 = vpack.c.bf16 %v103_v57, %v100_v56  ;;  %v12205_v1 = vld [vmem:[#allocation5 + $0x190] ss:$48 sps:$4 sm:$0xff]  }
  0xc0   :  { %910 = vmatprep.mubr.bf16.mxu0 %v13149_v2  ;;  %1296 = vmatprep.mubr.bf16.mxu1 %v13149_v2  ;;  %v12258_v56 = vld [vmem:[#allocation5 + $0x31c] ss:$48 sps:$4 sm:$0xff]   ;;  %v12228_v57 = vld [vmem:[#allocation5 + $0x374] ss:$48 sps:$4 sm:$0xff]  }
  0xc1   :  { %2904 = vmatprep.subr.bf16.mxu1 %v12222_v31  ;;  %15328 = vst [vmem:[#allocation44_spill] sm:$0xff] %v13221_v4  ;;  %v12198_v31 = vld [vmem:[#allocation5 + $0x74] ss:$48 sps:$4 sm:$0xff]   ;;  %15334 = vst [vmem:[#allocation50_spill] sm:$0xff] %v13253_v63 }
  0xc7   :  { %911 = vmatmul.mubr.bf16.gmra.mrb[20].mxu0 %v13155_v7  ;;  %1297 = vmatmul.mubr.bf16.gmra.mrb[20].mxu1 %v13155_v7 }
  0xc8   :  { %920 = vmatprep.mubr.bf16.mxu0 %v13157_v9  ;;  %1306 = vmatprep.mubr.bf16.mxu1 %v13157_v9 }
  0xcf   :  { %921 = vmatmul.mubr.bf16.gmra.mrb[24].mxu0 %v13163_v15  ;;  %1307 = vmatmul.mubr.bf16.gmra.mrb[24].mxu1 %v13163_v15 }
  0xd0   :  { %930 = vmatprep.mubr.bf16.mxu0 %v13165_v16  ;;  %1316 = vmatprep.mubr.bf16.mxu1 %v13165_v16 }
  0xd7   :  { %931 = vmatmul.mubr.bf16.gmra.mrb[28].mxu0 %v13171_v23  ;;  %1317 = vmatmul.mubr.bf16.gmra.mrb[28].mxu1 %v13171_v23 }
  0xd8   :  { %940 = vmatprep.mubr.bf16.mxu0 %v13173_v24  ;;  %1326 = vmatprep.mubr.bf16.mxu1 %v13173_v24 }
  0xdf   :  { %941 = vmatmul.mubr.bf16.gmra.mrb[32].mxu0 %v13179_v29  ;;  %1327 = vmatmul.mubr.bf16.gmra.mrb[32].mxu1 %v13179_v29 }
  0xe0   :  { %950 = vmatprep.mubr.bf16.mxu0 %v13181_v30  ;;  %1336 = vmatprep.mubr.bf16.mxu1 %v13181_v30 }
  0xe7   :  { %951 = vmatmul.mubr.bf16.gmra.mrb[36].mxu0 %v13187_v38  ;;  %1337 = vmatmul.mubr.bf16.gmra.mrb[36].mxu1 %v13187_v38 }
  0xe8   :  { %960 = vmatprep.mubr.bf16.mxu0 %v13189_v39  ;;  %1346 = vmatprep.mubr.bf16.mxu1 %v13189_v39 }
  0xef   :  { %961 = vmatmul.mubr.bf16.gmra.mrb[40].mxu0 %v13195_v44  ;;  %1347 = vmatmul.mubr.bf16.gmra.mrb[40].mxu1 %v13195_v44 }
  0xf0   :  { %970 = vmatprep.mubr.bf16.mxu0 %v13197_v45  ;;  %1356 = vmatprep.mubr.bf16.mxu1 %v13197_v45 }
  0xf7   :  { %971 = vmatmul.mubr.bf16.gmra.mrb[44].mxu0 %v13203_v53  ;;  %1357 = vmatmul.mubr.bf16.gmra.mrb[44].mxu1 %v13203_v53 }
  0xf8   :  { %980 = vmatprep.mubr.bf16.mxu0 %v13205_v54  ;;  %1366 = vmatprep.mubr.bf16.mxu1 %v13205_v54 }
  0xff   :  { %981 = vmatmul.mubr.bf16.gmra.mrb[48].mxu0 %v13211_v59  ;;  %1367 = vmatmul.mubr.bf16.gmra.mrb[48].mxu1 %v13211_v59 }
 0x100   :  { %990 = vmatprep.mubr.bf16.mxu0 %v13213_v60  ;;  %1376 = vmatprep.mubr.bf16.mxu1 %v13213_v60 }
 0x107   :  { %991 = vmatmul.mubr.bf16.gmra.mrb[52].mxu0 %v13219_v3  ;;  %1377 = vmatmul.mubr.bf16.gmra.mrb[52].mxu1 %v13219_v3 }
 0x108   :  { %1000 = vmatprep.mubr.bf16.mxu0 %v13221_v4  ;;  %1386 = vmatprep.mubr.bf16.mxu1 %v13221_v4 }
 0x10f   :  { %1001 = vmatmul.mubr.bf16.gmra.mrb[56].mxu0 %v13227_v13  ;;  %1387 = vmatmul.mubr.bf16.gmra.mrb[56].mxu1 %v13227_v13 }
 0x110   :  { %1010 = vmatprep.mubr.bf16.mxu0 %v13229_v14  ;;  %1396 = vmatprep.mubr.bf16.mxu1 %v13229_v14 }
 0x117   :  { %1011 = vmatmul.mubr.bf16.gmra.mrb[60].mxu0 %v13235_v19  ;;  %1397 = vmatmul.mubr.bf16.gmra.mrb[60].mxu1 %v13235_v19 }
 0x118   :  { %1053 = vmatprep.mubr.bf16.mxu0 %v15137_v25  ;;  %1439 = vmatprep.mubr.bf16.mxu1 %v15137_v25 }
 0x11f   :  { %1054 = vmatmul.mubr.bf16.vlgmr.msra.gmra.mrb[0].mxu0 %v13241_v28  ;;  %1440 = vmatmul.mubr.bf16.vlgmr.msra.gmra.mrb[0].mxu1 %v13241_v28 }
 0x120   :  { %2519 = vmatpush1.bf16.msra.mxu0 %v12193_v27  ;;  %1063 = vmatprep.mubr.bf16.mxu0 %v15137_v25  ;;  %v12241_v27 = vld [vmem:[#allocation5 + $0x1f8] ss:$48 sps:$4 sm:$0xff]  }
 0x121   :  { %1449 = vmatprep.mubr.bf16.mxu1 %v15137_v25  ;;  %2520 = vmatprep.subr.bf16.mxu0 %v12198_v31  ;;  %v13259_v31 = vpack.c.bf16 %v109_v17, %v106_v12  ;;  %v12235_v17 = vld [vmem:[#allocation5 + $0x3d0] ss:$48 sps:$4 sm:$0xff]  }
 0x122   :  { %2905 = vmatpush1.bf16.msra.mxu1 %v12220_v32  ;;  %v12211_v32 = vld [vmem:[#allocation5 + $0x250] ss:$48 sps:$4 sm:$0xff]  }
 0x123   :  { %2906 = vmatprep.subr.bf16.mxu1 %v12225_v41  ;;  %15335 = vst [vmem:[#allocation51_spill] sm:$0xff] %v13259_v31  ;;  %v112_v41 = vld [vmem:[#allocation2 + $0xd0] sm:$0xff] }
 0x124   :  { %2521 = vmatpush1.bf16.msra.mxu0 %v12196_v37  ;;  %v12247_v37 = vld [vmem:[#allocation5 + $0x258] ss:$48 sps:$4 sm:$0xff]  }
 0x125   :  { %2522 = vmatprep.subr.bf16.mxu0 %v12201_v40  ;;  %v12252_v40 = vld [vmem:[#allocation5 + $0x2bc] ss:$48 sps:$4 sm:$0xff]  }
 0x126   :  { %2907 = vmatpush1.bf16.msra.mxu1 %v12223_v42  ;;  %v115_v42 = vld [vmem:[#allocation2 + $0xe8] sm:$0xff] }
 0x127   :  { %1064 = vmatmul.mubr.bf16.gmra.mrb[4].mxu0 %v13247_v43  ;;  %1450 = vmatmul.mubr.bf16.gmra.mrb[4].mxu1 %v13247_v43 }
 0x128   :  { %1073 = vmatprep.mubr.bf16.mxu0 %v15137_v25  ;;  %1459 = vmatprep.mubr.bf16.mxu1 %v15137_v25 }
 0x129   :  { %2523 = vmatpush1.bf16.msra.mxu0 %v12199_v46  ;;  %2908 = vmatprep.subr.bf16.mxu1 %v12231_v47  ;;  %v12214_v46 = vld [vmem:[#allocation5 + $0x2b0] ss:$48 sps:$4 sm:$0xff]   ;;  %v12219_v47 = vld [vmem:[#allocation5 + $0x314] ss:$48 sps:$4 sm:$0xff]  }
 0x12a   :  { %2524 = vmatprep.subr.bf16.mxu0 %v12204_v48  ;;  %2909 = vmatpush1.bf16.msra.mxu1 %v12229_v52  ;;  %v12250_v48 = vld [vmem:[#allocation5 + $0x2b8] ss:$48 sps:$4 sm:$0xff]   ;;  %v13265_v52 = vpack.c.bf16 %v115_v42, %v112_v41  ;;  %v12253_v42 = vld [vmem:[#allocation5 + $0x490] ss:$48 sps:$4 sm:$0xff]  }
 0x12b   :  { %2910 = vmatprep.subr.bf16.mxu1 %v12234_v55  ;;  %v12217_v55 = vld [vmem:[#allocation5 + $0x310] ss:$48 sps:$4 sm:$0xff]  }
 0x12c   :  { %15336 = vst [vmem:[#allocation52_spill] sm:$0xff] %v13265_v52 }
 0x12d   :  { %2525 = vmatpush1.bf16.msra.mxu0 %v12202_v58  ;;  %v12256_v58 = vld [vmem:[#allocation5 + $0x318] ss:$48 sps:$4 sm:$0xff]  }
 0x12e   :  { %2526 = vmatprep.subr.bf16.mxu0 %v12207_v61  ;;  %2911 = vmatpush1.bf16.msra.mxu1 %v12232_v62  ;;  %v118_v61 = vld [vmem:[#allocation2 + $0x100] sm:$0xff]  ;;  %v121_v62 = vld [vmem:[#allocation2 + $0x118] sm:$0xff] }
 0x12f   :  { %1074 = vmatmul.mubr.bf16.gmra.mrb[8].mxu0 %v13253_v63  ;;  %1460 = vmatmul.mubr.bf16.gmra.mrb[8].mxu1 %v13253_v63  ;;  %v13271_v12 = vpack.c.bf16 %v121_v62, %v118_v61  ;;  %v12273_v61 = vld [vmem:[#allocation5 + $0x554] ss:$48 sps:$4 sm:$0xff]   ;;  %v12277_v62 = vld [vmem:[#allocation5 + $0x4f8] ss:$48 sps:$4 sm:$0xff]  }
 0x130   :  { %1083 = vmatprep.mubr.bf16.mxu0 %v15137_v25  ;;  %1469 = vmatprep.mubr.bf16.mxu1 %v15137_v25 }
 0x131   :  { %2527 = vmatpush1.bf16.msra.mxu0 %v12205_v1  ;;  %2912 = vmatprep.subr.bf16.mxu1 %v12240_v5  ;;  %v12226_v1 = vld [vmem:[#allocation5 + $0x370] ss:$48 sps:$4 sm:$0xff]   ;;  %v12261_v5 = vld [vmem:[#allocation5 + $0x37c] ss:$48 sps:$4 sm:$0xff]   ;;  %15337 = vst [vmem:[#allocation53_spill] sm:$0xff] %v13271_v12 }
 0x132   :  { %2528 = vmatprep.subr.bf16.mxu0 %v12210_v6  ;;  %2913 = vmatpush1.bf16.msra.mxu1 %v12238_v11  ;;  %v12237_v6 = vld [vmem:[#allocation5 + $0x3d4] ss:$48 sps:$4 sm:$0xff]   ;;  %v12259_v11 = vld [vmem:[#allocation5 + $0x378] ss:$48 sps:$4 sm:$0xff]  }
 0x133   :  { %2914 = vmatprep.subr.bf16.mxu1 %v12243_v21  ;;  %v12246_v21 = vld [vmem:[#allocation5 + $0x434] ss:$48 sps:$4 sm:$0xff]  }
 0x135   :  { %2529 = vmatpush1.bf16.msra.mxu0 %v12208_v18  ;;  %v12267_v18 = vld [vmem:[#allocation5 + $0x3dc] ss:$48 sps:$4 sm:$0xff]  }
 0x136   :  { %2530 = vmatprep.subr.bf16.mxu0 %v12213_v26  ;;  %2915 = vmatpush1.bf16.msra.mxu1 %v12241_v27  ;;  %v12265_v26 = vld [vmem:[#allocation5 + $0x3d8] ss:$48 sps:$4 sm:$0xff]   ;;  %v12270_v27 = vld [vmem:[#allocation5 + $0x43c] ss:$48 sps:$4 sm:$0xff]  }
 0x137   :  { %1084 = vmatmul.mubr.bf16.gmra.mrb[12].mxu0 %v13259_v31  ;;  %1470 = vmatmul.mubr.bf16.gmra.mrb[12].mxu1 %v13259_v31 }
 0x138   :  { %1093 = vmatprep.mubr.bf16.mxu0 %v15137_v25  ;;  %1479 = vmatprep.mubr.bf16.mxu1 %v15137_v25 }
 0x139   :  { %2531 = vmatpush1.bf16.msra.mxu0 %v12211_v32  ;;  %2916 = vmatprep.subr.bf16.mxu1 %v12249_v33  ;;  %v124_v32 = vld [vmem:[#allocation2 + $0x130] sm:$0xff]  ;;  %v127_v33 = vld [vmem:[#allocation2 + $0x148] sm:$0xff] }
 0x13a   :  { %2532 = vmatprep.subr.bf16.mxu0 %v12216_v34  ;;  %2917 = vmatpush1.bf16.msra.mxu1 %v12247_v37  ;;  %v12244_v34 = vld [vmem:[#allocation5 + $0x430] ss:$48 sps:$4 sm:$0xff]   ;;  %v12255_v37 = vld [vmem:[#allocation5 + $0x494] ss:$48 sps:$4 sm:$0xff]   ;;  %v13277_v41 = vpack.c.bf16 %v127_v33, %v124_v32  ;;  %v12286_v32 = vld [vmem:[#allocation5 + $0x5b8] ss:$48 sps:$4 sm:$0xff]  }
 0x13b   :  { %2918 = vmatprep.subr.bf16.mxu1 %v12252_v40  ;;  %v12268_v40 = vld [vmem:[#allocation5 + $0x438] ss:$48 sps:$4 sm:$0xff]   ;;  %v12291_v33 = vld [vmem:[#allocation5 + $0x614] ss:$48 sps:$4 sm:$0xff]  }
 0x13c   :  { %15338 = vst [vmem:[#allocation54_spill] sm:$0xff] %v13277_v41 }
 0x13d   :  { %2533 = vmatpush1.bf16.msra.mxu0 %v12214_v46  ;;  %v12276_v46 = vld [vmem:[#allocation5 + $0x49c] ss:$48 sps:$4 sm:$0xff]  }
 0x13e   :  { %2534 = vmatprep.subr.bf16.mxu0 %v12219_v47  ;;  %2919 = vmatpush1.bf16.msra.mxu1 %v12250_v48  ;;  %v12264_v47 = vld [vmem:[#allocation5 + $0x4f4] ss:$48 sps:$4 sm:$0xff]   ;;  %v12274_v48 = vld [vmem:[#allocation5 + $0x498] ss:$48 sps:$4 sm:$0xff]  }
 0x13f   :  { %1094 = vmatmul.mubr.bf16.gmra.mrb[16].mxu0 %v13265_v52  ;;  %1480 = vmatmul.mubr.bf16.gmra.mrb[16].mxu1 %v13265_v52 }
 0x140   :  { %1103 = vmatprep.mubr.bf16.mxu0 %v15137_v25  ;;  %1489 = vmatprep.mubr.bf16.mxu1 %v15137_v25 }
 0x141   :  { %2535 = vmatpush1.bf16.msra.mxu0 %v12217_v55  ;;  %2920 = vmatprep.subr.bf16.mxu1 %v12258_v56  ;;  %v130_v55 = vld [vmem:[#allocation2 + $0x160] sm:$0xff]  ;;  %v133_v56 = vld [vmem:[#allocation2 + $0x178] sm:$0xff] }
 0x142   :  { %2536 = vmatprep.subr.bf16.mxu0 %v12228_v57  ;;  %2921 = vmatpush1.bf16.msra.mxu1 %v12256_v58  ;;  %v12262_v57 = vld [vmem:[#allocation5 + $0x4f0] ss:$48 sps:$4 sm:$0xff]   ;;  %v12279_v58 = vld [vmem:[#allocation5 + $0x4fc] ss:$48 sps:$4 sm:$0xff]  }
 0x143   :  { %2922 = vmatprep.subr.bf16.mxu1 %v12261_v5  ;;  %v12271_v5 = vld [vmem:[#allocation5 + $0x550] ss:$48 sps:$4 sm:$0xff]  }
 0x145   :  { %2537 = vmatpush1.bf16.msra.mxu0 %v12226_v1  ;;  %v13283_v1 = vpack.c.bf16 %v133_v56, %v130_v55  ;;  %v154_v55 = vld [vmem:[#allocation2 + $0x220] sm:$0xff]  ;;  %v157_v56 = vld [vmem:[#allocation2 + $0x238] sm:$0xff] }
 0x146   :  { %2538 = vmatprep.subr.bf16.mxu0 %v12237_v6  ;;  %2923 = vmatpush1.bf16.msra.mxu1 %v12259_v11  ;;  %v12285_v6 = vld [vmem:[#allocation5 + $0x55c] ss:$48 sps:$4 sm:$0xff]   ;;  %v12282_v11 = vld [vmem:[#allocation5 + $0x5b4] ss:$48 sps:$4 sm:$0xff]  }
 0x147   :  { %1104 = vmatmul.mubr.bf16.gmra.mrb[20].mxu0 %v13271_v12  ;;  %1490 = vmatmul.mubr.bf16.gmra.mrb[20].mxu1 %v13271_v12  ;;  %15339 = vst [vmem:[#allocation55_spill] sm:$0xff] %v13283_v1 }
 0x148   :  { %1113 = vmatprep.mubr.bf16.mxu0 %v15137_v25  ;;  %1499 = vmatprep.mubr.bf16.mxu1 %v15137_v25 }
 0x149   :  { %2539 = vmatpush1.bf16.msra.mxu0 %v12235_v17  ;;  %2924 = vmatprep.subr.bf16.mxu1 %v12267_v18  ;;  %v12283_v17 = vld [vmem:[#allocation5 + $0x558] ss:$48 sps:$4 sm:$0xff]   ;;  %v12288_v18 = vld [vmem:[#allocation5 + $0x5bc] ss:$48 sps:$4 sm:$0xff]  }
 0x14a   :  { %2540 = vmatprep.subr.bf16.mxu0 %v12246_v21  ;;  %2925 = vmatpush1.bf16.msra.mxu1 %v12265_v26  ;;  %v136_v21 = vld [vmem:[#allocation2 + $0x190] sm:$0xff]  ;;  %v139_v26 = vld [vmem:[#allocation2 + $0x1a8] sm:$0xff] }
 0x14b   :  { %2926 = vmatprep.subr.bf16.mxu1 %v12270_v27  ;;  %v12280_v27 = vld [vmem:[#allocation5 + $0x5b0] ss:$48 sps:$4 sm:$0xff]  }
 0x14d   :  { %2541 = vmatpush1.bf16.msra.mxu0 %v12244_v34  ;;  %v13289_v34 = vpack.c.bf16 %v139_v26, %v136_v21  ;;  %v175_v21 = vld [vmem:[#allocation2 + $0x2c8] sm:$0xff] }
 0x14e   :  { %2542 = vmatprep.subr.bf16.mxu0 %v12255_v37  ;;  %2927 = vmatpush1.bf16.msra.mxu1 %v12268_v40  ;;  %v142_v37 = vld [vmem:[#allocation2 + $0x1c0] sm:$0xff]  ;;  %v145_v40 = vld [vmem:[#allocation2 + $0x1d8] sm:$0xff] }
 0x14f   :  { %1114 = vmatmul.mubr.bf16.gmra.mrb[24].mxu0 %v13277_v41  ;;  %1500 = vmatmul.mubr.bf16.gmra.mrb[24].mxu1 %v13277_v41  ;;  %15340 = vst [vmem:[#allocation56_spill] sm:$0xff] %v13289_v34 }
 0x150   :  { %1123 = vmatprep.mubr.bf16.mxu0 %v15137_v25  ;;  %1509 = vmatprep.mubr.bf16.mxu1 %v15137_v25 }
 0x151   :  { %2543 = vmatpush1.bf16.msra.mxu0 %v12253_v42  ;;  %2928 = vmatprep.subr.bf16.mxu1 %v12276_v46  ;;  %v13295_v42 = vpack.c.bf16 %v145_v40, %v142_v37  ;;  %v148_v46 = vld [vmem:[#allocation2 + $0x1f0] sm:$0xff] }
 0x152   :  { %2544 = vmatprep.subr.bf16.mxu0 %v12264_v47  ;;  %2929 = vmatpush1.bf16.msra.mxu1 %v12274_v48  ;;  %v151_v47 = vld [vmem:[#allocation2 + $0x208] sm:$0xff]  ;;  %v12289_v37 = vld [vmem:[#allocation5 + $0x610] ss:$48 sps:$4 sm:$0xff]   ;;  %v12294_v40 = vld [vmem:[#allocation5 + $0x674] ss:$48 sps:$4 sm:$0xff]  }
 0x153   :  { %2930 = vmatprep.subr.bf16.mxu1 %v12279_v58  ;;  %15341 = vst [vmem:[#allocation57_spill] sm:$0xff] %v13295_v42  ;;  %v13301_v48 = vpack.c.bf16 %v151_v47, %v148_v46  ;;  %v160_v58 = vld [vmem:[#allocation2 + $0x250] sm:$0xff]  ;;  %v12310_v46 = vld [vmem:[#allocation5 + $0x618] ss:$48 sps:$4 sm:$0xff]   ;;  %v12315_v47 = vld [vmem:[#allocation5 + $0x67c] ss:$48 sps:$4 sm:$0xff]  }
 0x155   :  { %2545 = vmatpush1.bf16.msra.mxu0 %v12262_v57  ;;  %15342 = vst [vmem:[#allocation58_spill] sm:$0xff] %v13301_v48  ;;  %v13307_v57 = vpack.c.bf16 %v157_v56, %v154_v55  ;;  %v12292_v55 = vld [vmem:[#allocation5 + $0x670] ss:$48 sps:$4 sm:$0xff]   ;;  %v12297_v56 = vld [vmem:[#allocation5 + $0x6d4] ss:$48 sps:$4 sm:$0xff]  }
 0x156   :  { %2546 = vmatprep.subr.bf16.mxu0 %v12273_v61  ;;  %2931 = vmatpush1.bf16.msra.mxu1 %v12277_v62  ;;  %v163_v61 = vld [vmem:[#allocation2 + $0x268] sm:$0xff] }
 0x157   :  { %1124 = vmatmul.mubr.bf16.gmra.mrb[28].mxu0 %v13283_v1  ;;  %1510 = vmatmul.mubr.bf16.gmra.mrb[28].mxu1 %v13283_v1  ;;  %15343 = vst [vmem:[#allocation59_spill] sm:$0xff] %v13307_v57  ;;  %v13313_v62 = vpack.c.bf16 %v163_v61, %v160_v58  ;;  %v12313_v58 = vld [vmem:[#allocation5 + $0x678] ss:$48 sps:$4 sm:$0xff]   ;;  %v12295_v61 = vld [vmem:[#allocation5 + $0x6d0] ss:$48 sps:$4 sm:$0xff]  }
 0x158   :  { %1133 = vmatprep.mubr.bf16.mxu0 %v15137_v25  ;;  %1519 = vmatprep.mubr.bf16.mxu1 %v15137_v25 }
 0x159   :  { %2547 = vmatpush1.bf16.msra.mxu0 %v12271_v5  ;;  %2932 = vmatprep.subr.bf16.mxu1 %v12285_v6  ;;  %15344 = vst [vmem:[#allocation60_spill] sm:$0xff] %v13313_v62  ;;  %v12312_v5 = vld [vmem:[#allocation5 + $0x61c] ss:$48 sps:$4 sm:$0xff]   ;;  %v166_v6 = vld [vmem:[#allocation2 + $0x280] sm:$0xff] }
 0x15a   :  { %2548 = vmatprep.subr.bf16.mxu0 %v12282_v11  ;;  %2933 = vmatpush1.bf16.msra.mxu1 %v12283_v17  ;;  %v169_v11 = vld [vmem:[#allocation2 + $0x298] sm:$0xff] }
 0x15b   :  { %2934 = vmatprep.subr.bf16.mxu1 %v12288_v18  ;;  %v13319_v17 = vpack.c.bf16 %v169_v11, %v166_v6  ;;  %v172_v18 = vld [vmem:[#allocation2 + $0x2b0] sm:$0xff]  ;;  %v12316_v11 = vld [vmem:[#allocation5 + $0x6d8] ss:$48 sps:$4 sm:$0xff]  }
 0x15c   :  { %v13325_v26 = vpack.c.bf16 %v175_v21, %v172_v18  ;;  %v12300_v6 = vld [vmem:[#allocation5 + $0x734] ss:$48 sps:$4 sm:$0xff]   ;;  %v12321_v18 = vld [vmem:[#allocation5 + $0x73c] ss:$48 sps:$4 sm:$0xff]   ;;  %v12298_v21 = vld [vmem:[#allocation5 + $0x730] ss:$48 sps:$4 sm:$0xff]  }
 0x15d   :  { %2549 = vmatpush1.bf16.msra.mxu0 %v12280_v27  ;;  %15345 = vst [vmem:[#allocation61_spill] sm:$0xff] %v13319_v17  ;;  %v178_v27 = vld [vmem:[#allocation2 + $0x2e0] sm:$0xff] }
 0x15e   :  { %2935 = vmatpush1.bf16.msra.mxu1 %v12286_v32  ;;  %2711 = vmatprep.subr.bf16.mxu0 %v12291_v33  ;;  %15346 = vst [vmem:[#allocation62_spill] sm:$0xff] %v13325_v26  ;;  %v181_v32 = vld [vmem:[#allocation2 + $0x2f8] sm:$0xff] }
 0x15f   :  { %1134 = vmatmul.mubr.bf16.gmra.mrb[32].mxu0 %v13289_v34  ;;  %1520 = vmatmul.mubr.bf16.gmra.mrb[32].mxu1 %v13289_v34  ;;  %v13331_v33 = vpack.c.bf16 %v181_v32, %v178_v27  ;;  %v12303_v27 = vld [vmem:[#allocation5 + $0x794] ss:$48 sps:$4 sm:$0xff]   ;;  %v12319_v32 = vld [vmem:[#allocation5 + $0x738] ss:$48 sps:$4 sm:$0xff]  }
 0x160   :  { %1143 = vmatprep.mubr.bf16.mxu0 %v15137_v25  ;;  %1529 = vmatprep.mubr.bf16.mxu1 %v15137_v25 }
 0x161   :  { %3097 = vmatprep.subr.bf16.mxu1 %v12312_v5  ;;  %15347 = vst [vmem:[#allocation63_spill] sm:$0xff] %v13331_v33  ;;  %v12318_v5 = vld [vmem:[#allocation5 + $0x6dc] ss:$48 sps:$4 sm:$0xff]  }
 0x167   :  { %1144 = vmatmul.mubr.bf16.gmra.mrb[36].mxu0 %v13295_v42  ;;  %1530 = vmatmul.mubr.bf16.gmra.mrb[36].mxu1 %v13295_v42 }
 0x168   :  { %1153 = vmatprep.mubr.bf16.mxu0 %v15137_v25  ;;  %1539 = vmatprep.mubr.bf16.mxu1 %v15137_v25 }
 0x16f   :  { %1154 = vmatmul.mubr.bf16.gmra.mrb[40].mxu0 %v13301_v48  ;;  %1540 = vmatmul.mubr.bf16.gmra.mrb[40].mxu1 %v13301_v48 }
 0x170   :  { %1163 = vmatprep.mubr.bf16.mxu0 %v15137_v25  ;;  %1549 = vmatprep.mubr.bf16.mxu1 %v15137_v25 }
 0x177   :  { %1164 = vmatmul.mubr.bf16.gmra.mrb[44].mxu0 %v13307_v57  ;;  %1550 = vmatmul.mubr.bf16.gmra.mrb[44].mxu1 %v13307_v57 }
 0x178   :  { %1173 = vmatprep.mubr.bf16.mxu0 %v15137_v25  ;;  %1559 = vmatprep.mubr.bf16.mxu1 %v15137_v25 }
 0x17f   :  { %1174 = vmatmul.mubr.bf16.gmra.mrb[48].mxu0 %v13313_v62  ;;  %1560 = vmatmul.mubr.bf16.gmra.mrb[48].mxu1 %v13313_v62 }
 0x180   :  { %1183 = vmatprep.mubr.bf16.mxu0 %v15137_v25  ;;  %1569 = vmatprep.mubr.bf16.mxu1 %v15137_v25 }
 0x187   :  { %1184 = vmatmul.mubr.bf16.gmra.mrb[52].mxu0 %v13319_v17  ;;  %1570 = vmatmul.mubr.bf16.gmra.mrb[52].mxu1 %v13319_v17 }
 0x188   :  { %1193 = vmatprep.mubr.bf16.mxu0 %v15137_v25  ;;  %1579 = vmatprep.mubr.bf16.mxu1 %v15137_v25 }
 0x18f   :  { %1194 = vmatmul.mubr.bf16.gmra.mrb[56].mxu0 %v13325_v26  ;;  %1580 = vmatmul.mubr.bf16.gmra.mrb[56].mxu1 %v13325_v26 }
 0x190   :  { %1203 = vmatprep.mubr.bf16.mxu0 %v15137_v25  ;;  %1589 = vmatprep.mubr.bf16.mxu1 %v15137_v25 }
 0x197   :  { %1204 = vmatmul.mubr.bf16.gmra.mrb[60].mxu0 %v13331_v33  ;;  %1590 = vmatmul.mubr.bf16.gmra.mrb[60].mxu1 %v13331_v33 }
 0x198   :  { %2550 = vmatprep.mubr.bf16.mxu0 %v13111_v50  ;;  %2936 = vmatprep.mubr.bf16.mxu1 %v13111_v50 }
 0x19f   :  { %2551 = vmatmul.mubr.bf16.vlgmr.msra.gmra.mrb[64].mxu0 %v13115_v8  ;;  %2937 = vmatmul.mubr.bf16.vlgmr.msra.gmra.mrb[64].mxu1 %v13115_v8  ;;  %v12342_v8 = vld [vmem:[#allocation8 + $0x31c] ss:$12 sps:$4 sm:$0xff]  }
 0x1a0   :  { %2712 = vmatpush1.bf16.msra.mxu0 %v12289_v37  ;;  %2560 = vmatprep.mubr.bf16.mxu0 %v13117_v10  ;;  %v12301_v37 = vld [vmem:[#allocation5 + $0x790] ss:$48 sps:$4 sm:$0xff]  }
 0x1a1   :  { %2946 = vmatprep.mubr.bf16.mxu1 %v13117_v10  ;;  %2713 = vmatprep.subr.bf16.mxu0 %v12294_v40  ;;  %v12327_v40 = vld [vmem:[#allocation5 + $0x79c] ss:$48 sps:$4 sm:$0xff]  }
 0x1a2   :  { %3098 = vmatpush1.bf16.msra.mxu1 %v12310_v46  ;;  %v12306_v46 = vld [vmem:[#allocation5 + $0x7f4] ss:$48 sps:$4 sm:$0xff]  }
 0x1a3   :  { %3099 = vmatprep.subr.bf16.mxu1 %v12315_v47  ;;  %v12325_v47 = vld [vmem:[#allocation5 + $0x798] ss:$48 sps:$4 sm:$0xff]  }
 0x1a4   :  { %2714 = vmatpush1.bf16.msra.mxu0 %v12292_v55  ;;  %v12330_v55 = vld [vmem:[#allocation5 + $0x7fc] ss:$48 sps:$4 sm:$0xff]  }
 0x1a5   :  { %2715 = vmatprep.subr.bf16.mxu0 %v12297_v56  ;;  %v12304_v56 = vld [vmem:[#allocation5 + $0x7f0] ss:$48 sps:$4 sm:$0xff]  }
 0x1a6   :  { %3100 = vmatpush1.bf16.msra.mxu1 %v12313_v58  ;;  %v12309_v58 = vld [vmem:[#allocation5 + $0x854] ss:$48 sps:$4 sm:$0xff]  }
 0x1a7   :  { %2561 = vmatmul.mubr.bf16.gmra.mrb[68].mxu0 %v13123_v20  ;;  %2947 = vmatmul.mubr.bf16.gmra.mrb[68].mxu1 %v13123_v20  ;;  %v15361_v20 = vmov 0  }
 0x1a8   :  { %2570 = vmatprep.mubr.bf16.mxu0 %v13125_v22  ;;  %2956 = vmatprep.mubr.bf16.mxu1 %v13125_v22 }
 0x1a9   :  { %2716 = vmatpush1.bf16.msra.mxu0 %v12295_v61  ;;  %3101 = vmatprep.subr.bf16.mxu1 %v12318_v5  ;;  %v12328_v61 = vld [vmem:[#allocation5 + $0x7f8] ss:$48 sps:$4 sm:$0xff]   ;;  %v12307_v5 = vld [vmem:[#allocation5 + $0x850] ss:$48 sps:$4 sm:$0xff]  }
 0x1aa   :  { %2717 = vmatprep.subr.bf16.mxu0 %v12300_v6  ;;  %3102 = vmatpush1.bf16.msra.mxu1 %v12316_v11  ;;  %v12333_v6 = vld [vmem:[#allocation5 + $0x85c] ss:$48 sps:$4 sm:$0xff]   ;;  %v12324_v11 = vld [vmem:[#allocation5 + $0x8b4] ss:$48 sps:$4 sm:$0xff]  }
 0x1ab   :  { %3103 = vmatprep.subr.bf16.mxu1 %v12321_v18  ;;  %v12331_v18 = vld [vmem:[#allocation5 + $0x858] ss:$48 sps:$4 sm:$0xff]  }
 0x1ad   :  { %2718 = vmatpush1.bf16.msra.mxu0 %v12298_v21  ;;  %v12336_v21 = vld [vmem:[#allocation5 + $0x8bc] ss:$48 sps:$4 sm:$0xff]  }
 0x1ae   :  { %2719 = vmatprep.subr.bf16.mxu0 %v12303_v27  ;;  %3104 = vmatpush1.bf16.msra.mxu1 %v12319_v32  ;;  %v12322_v27 = vld [vmem:[#allocation5 + $0x8b0] ss:$48 sps:$4 sm:$0xff]   ;;  %v12334_v32 = vld [vmem:[#allocation5 + $0x8b8] ss:$48 sps:$4 sm:$0xff]  }
 0x1af   :  { %2571 = vmatmul.mubr.bf16.gmra.mrb[72].mxu0 %v13131_v35  ;;  %2957 = vmatmul.mubr.bf16.gmra.mrb[72].mxu1 %v13131_v35 }
 0x1b0   :  { %2580 = vmatprep.mubr.bf16.mxu0 %v13133_v36  ;;  %2966 = vmatprep.mubr.bf16.mxu1 %v13133_v36 }
 0x1b1   :  { %2720 = vmatpush1.bf16.msra.mxu0 %v12301_v37  ;;  %3105 = vmatprep.subr.bf16.mxu1 %v12327_v40  ;;  %v328_v37 = vlaneseq }
 0x1b2   :  { %2721 = vmatprep.subr.bf16.mxu0 %v12306_v46  ;;  %3106 = vmatpush1.bf16.msra.mxu1 %v12325_v47 }
 0x1b3   :  { %3107 = vmatprep.subr.bf16.mxu1 %v12330_v55  ;;  %v329_v40 = vshrl.u32 %v328_v37, 7  ;;  %v326_v55 = vld [vmem:[#allocation7] sm:$0xf] }
 0x1b5   :  { %2722 = vmatpush1.bf16.msra.mxu0 %v12304_v56  ;;  %v13377_v46 = vsub.s32 0, %v329_v40  ;;  %v13379_v47 = vsub.s32 2, %v329_v40  ;;  %v13381_v56 = vsub.s32 1, %v329_v40 }
 0x1b6   :  { %2723 = vmatprep.subr.bf16.mxu0 %v12309_v58  ;;  %3108 = vmatpush1.bf16.msra.mxu1 %v12328_v61  ;;  %v13383_v58 = vsub.s32 3, %v329_v40 }
 0x1b7   :  { %2581 = vmatmul.mubr.bf16.gmra.mrb[76].mxu0 %v13139_v49  ;;  %2967 = vmatmul.mubr.bf16.gmra.mrb[76].mxu1 %v13139_v49  ;;  %15348 = vst [vmem:[#allocation64_spill] sm:$0xff] %v13377_v46  ;;  %15349 = vst [vmem:[#allocation65_spill] sm:$0xff] %v13379_v47  ;;  %v13388_v61 = vrot.slane %v326_v55, %v13377_v46 }
 0x1b8   :  { %2590 = vmatprep.mubr.bf16.mxu0 %v13141_v51  ;;  %2976 = vmatprep.mubr.bf16.mxu1 %v13141_v51  ;;  %15350 = vst [vmem:[#allocation66_spill] sm:$0xff] %v13381_v56  ;;  %15351 = vst [vmem:[#allocation67_spill] sm:$0xff] %v13383_v58 }
 0x1b9   :  { %2724 = vmatpush1.bf16.msra.mxu0 %v12307_v5  ;;  %3109 = vmatprep.subr.bf16.mxu1 %v12333_v6  ;;  %v13391_v5 = vrot.slane %v326_v55, %v13379_v47  ;;  %v13394_v6 = vrot.slane %v326_v55, %v13381_v56 }
 0x1ba   :  { %2725 = vmatprep.subr.bf16.mxu0 %v12324_v11  ;;  %3110 = vmatpush1.bf16.msra.mxu1 %v12331_v18  ;;  %v13397_v11 = vrot.slane %v326_v55, %v13383_v58 }
 0x1bb   :  { %3111 = vmatprep.subr.bf16.mxu1 %v12336_v21 }
 0x1bd   :  { %2726 = vmatpush1.bf16.msra.mxu0 %v12322_v27 }
 0x1be   :  { %3112 = vmatpush1.bf16.msra.mxu1 %v12334_v32 }
 0x1bf   :  { %2591 = vmatmul.mubr.bf16.gmra.mrb[80].mxu0 %v13147_v0  ;;  %2977 = vmatmul.mubr.bf16.gmra.mrb[80].mxu1 %v13147_v0 }
 0x1c0   :  { %2600 = vmatprep.mubr.bf16.mxu0 %v13149_v2  ;;  %2986 = vmatprep.mubr.bf16.mxu1 %v13149_v2 }
 0x1c7   :  { %2601 = vmatmul.mubr.bf16.gmra.mrb[84].mxu0 %v13155_v7  ;;  %2987 = vmatmul.mubr.bf16.gmra.mrb[84].mxu1 %v13155_v7 }
 0x1c8   :  { %2610 = vmatprep.mubr.bf16.mxu0 %v13157_v9  ;;  %2996 = vmatprep.mubr.bf16.mxu1 %v13157_v9 }
 0x1cf   :  { %2611 = vmatmul.mubr.bf16.gmra.mrb[88].mxu0 %v13163_v15  ;;  %2997 = vmatmul.mubr.bf16.gmra.mrb[88].mxu1 %v13163_v15 }
 0x1d0   :  { %2620 = vmatprep.mubr.bf16.mxu0 %v13165_v16  ;;  %3006 = vmatprep.mubr.bf16.mxu1 %v13165_v16 }
 0x1d7   :  { %2621 = vmatmul.mubr.bf16.gmra.mrb[92].mxu0 %v13171_v23  ;;  %3007 = vmatmul.mubr.bf16.gmra.mrb[92].mxu1 %v13171_v23 }
 0x1d8   :  { %2630 = vmatprep.mubr.bf16.mxu0 %v13173_v24  ;;  %3016 = vmatprep.mubr.bf16.mxu1 %v13173_v24 }
 0x1df   :  { %2631 = vmatmul.mubr.bf16.gmra.mrb[96].mxu0 %v13179_v29  ;;  %3017 = vmatmul.mubr.bf16.gmra.mrb[96].mxu1 %v13179_v29 }
 0x1e0   :  { %2640 = vmatprep.mubr.bf16.mxu0 %v13181_v30  ;;  %3026 = vmatprep.mubr.bf16.mxu1 %v13181_v30 }
 0x1e7   :  { %2641 = vmatmul.mubr.bf16.gmra.mrb[100].mxu0 %v13187_v38  ;;  %3027 = vmatmul.mubr.bf16.gmra.mrb[100].mxu1 %v13187_v38 }
 0x1e8   :  { %2650 = vmatprep.mubr.bf16.mxu0 %v13189_v39  ;;  %3036 = vmatprep.mubr.bf16.mxu1 %v13189_v39 }
 0x1ef   :  { %2651 = vmatmul.mubr.bf16.gmra.mrb[104].mxu0 %v13195_v44  ;;  %3037 = vmatmul.mubr.bf16.gmra.mrb[104].mxu1 %v13195_v44 }
 0x1f0   :  { %2660 = vmatprep.mubr.bf16.mxu0 %v13197_v45  ;;  %3046 = vmatprep.mubr.bf16.mxu1 %v13197_v45 }
 0x1f2   :  { %v1055_v18 = vpop.f32.mrb[0].mxu0  ;;  %v1441_v21 = vpop.f32.mrb[0].mxu1 }
 0x1f3   :  { %v10948_v27 = vadd.f32 %v1055_v18, %v13388_v61  ;;  %v11012_v32 = vadd.f32 %v1441_v21, %v13391_v5  ;;  %v1057_v37 = vpop.f32.mrb[1].mxu0  ;;  %v1443_v40 = vpop.f32.mrb[1].mxu1 }
 0x1f4   :  { %v10949_v25 = vadd.f32 %v1057_v37, %v13394_v6  ;;  %v11013_v44 = vadd.f32 %v1443_v40, %v13397_v11  ;;  %v1059_v39 = vpop.f32.mrb[2].mxu0  ;;  %v1445_v38 = vpop.f32.mrb[2].mxu1  ;;  %v12339_v37 = vld [vmem:[#allocation8 + $0x304] ss:$12 sps:$4 sm:$0xff]  }
 0x1f5   :  { %v10950_v55 = vadd.f32 %v1059_v39, %v13388_v61  ;;  %v11014_v30 = vadd.f32 %v1445_v38, %v13391_v5  ;;  %v1061_v29 = vpop.f32.mrb[3].mxu0  ;;  %v1447_v45 = vpop.f32.mrb[3].mxu1  ;;  %v1600_v23 = vmax.f32 %v10948_v27, 0.0  ;;  %v1602_v21 = vmax.f32 %v11012_v32, 0.0  ;;  %4122 = vmatprep.subr.bf16.mxu0 %v12339_v37 }
 0x1f6   :  { %v10951_v24 = vadd.f32 %v1061_v29, %v13394_v6  ;;  %v11015_v18 = vadd.f32 %v1447_v45, %v13397_v11  ;;  %v1601_v40 = vmax.f32 %v10949_v25, 0.0  ;;  %v1603_v9 = vmax.f32 %v11013_v44, 0.0 }
 0x1f7   :  { %v1604_v16 = vmax.f32 %v10950_v55, 0.0  ;;  %v1606_v15 = vmax.f32 %v11014_v30, 0.0  ;;  %2661 = vmatmul.mubr.bf16.gmra.mrb[108].mxu0 %v13203_v53  ;;  %3047 = vmatmul.mubr.bf16.gmra.mrb[108].mxu1 %v13203_v53 }
 0x1f8   :  { %v1605_v39 = vmax.f32 %v10951_v24, 0.0  ;;  %v1607_v7 = vmax.f32 %v11015_v18, 0.0  ;;  %2670 = vmatprep.mubr.bf16.mxu0 %v13205_v54  ;;  %3056 = vmatprep.mubr.bf16.mxu1 %v13205_v54 }
 0x1f9   :  { %v13413_v29 = vpack.c.bf16 %v1604_v16, %v1600_v23  ;;  %v13415_v38 = vpack.c.bf16 %v1606_v15, %v1602_v21 }
 0x1fa   :  { %v13417_v45 = vpack.c.bf16 %v1605_v39, %v1601_v40  ;;  %v1065_v30 = vpop.f32.mrb[4].mxu0  ;;  %v1451_v27 = vpop.f32.mrb[4].mxu1  ;;  %v13419_v32 = vpack.c.bf16 %v1607_v7, %v1603_v9 }
 0x1fb   :  { %15352 = vst [vmem:[#allocation68_spill] sm:$0xff] %v13415_v38  ;;  %v10952_v25 = vadd.f32 %v1065_v30, %v13388_v61  ;;  %v11016_v24 = vadd.f32 %v1451_v27, %v13391_v5  ;;  %v1067_v44 = vpop.f32.mrb[5].mxu0  ;;  %v1453_v55 = vpop.f32.mrb[5].mxu1 }
 0x1fc   :  { %15353 = vst [vmem:[#allocation69_spill] sm:$0xff] %v13419_v32  ;;  %v10953_v18 = vadd.f32 %v1067_v44, %v13394_v6  ;;  %v11017_v16 = vadd.f32 %v1453_v55, %v13397_v11  ;;  %v1069_v23 = vpop.f32.mrb[6].mxu0  ;;  %v1455_v15 = vpop.f32.mrb[6].mxu1 }
 0x1fd   :  { %v10954_v21 = vadd.f32 %v1069_v23, %v13388_v61  ;;  %v11018_v37 = vadd.f32 %v1455_v15, %v13391_v5  ;;  %v1071_v40 = vpop.f32.mrb[7].mxu0  ;;  %v1457_v39 = vpop.f32.mrb[7].mxu1  ;;  %v1608_v30 = vmax.f32 %v10952_v25, 0.0  ;;  %v1610_v27 = vmax.f32 %v11016_v24, 0.0 }
 0x1fe   :  { %v10955_v7 = vadd.f32 %v1071_v40, %v13394_v6  ;;  %v11019_v9 = vadd.f32 %v1457_v39, %v13397_v11  ;;  %v1609_v44 = vmax.f32 %v10953_v18, 0.0  ;;  %v1611_v55 = vmax.f32 %v11017_v16, 0.0 }
 0x1ff   :  { %v1612_v54 = vmax.f32 %v10954_v21, 0.0  ;;  %v1614_v53 = vmax.f32 %v11018_v37, 0.0  ;;  %2671 = vmatmul.mubr.bf16.gmra.mrb[112].mxu0 %v13211_v59  ;;  %3057 = vmatmul.mubr.bf16.gmra.mrb[112].mxu1 %v13211_v59 }
 0x200   :  { %v1613_v2 = vmax.f32 %v10955_v7, 0.0  ;;  %v1615_v23 = vmax.f32 %v11019_v9, 0.0  ;;  %2680 = vmatprep.mubr.bf16.mxu0 %v13213_v60  ;;  %3066 = vmatprep.mubr.bf16.mxu1 %v13213_v60 }
 0x201   :  { %v13433_v15 = vpack.c.bf16 %v1612_v54, %v1608_v30  ;;  %v13435_v40 = vpack.c.bf16 %v1614_v53, %v1610_v27 }
 0x202   :  { %v13437_v25 = vpack.c.bf16 %v1613_v2, %v1609_v44  ;;  %v1075_v24 = vpop.f32.mrb[8].mxu0  ;;  %v1461_v21 = vpop.f32.mrb[8].mxu1  ;;  %v13439_v37 = vpack.c.bf16 %v1615_v23, %v1611_v55 }
 0x203   :  { %15354 = vst [vmem:[#allocation70_spill] sm:$0xff] %v13435_v40  ;;  %v10956_v39 = vadd.f32 %v1075_v24, %v13388_v61  ;;  %v11020_v18 = vadd.f32 %v1461_v21, %v13391_v5  ;;  %v1077_v16 = vpop.f32.mrb[9].mxu0  ;;  %v1463_v7 = vpop.f32.mrb[9].mxu1 }
 0x204   :  { %15355 = vst [vmem:[#allocation71_spill] sm:$0xff] %v13439_v37  ;;  %v10957_v9 = vadd.f32 %v1077_v16, %v13394_v6  ;;  %v11021_v60 = vadd.f32 %v1463_v7, %v13397_v11  ;;  %v1079_v54 = vpop.f32.mrb[10].mxu0  ;;  %v1465_v30 = vpop.f32.mrb[10].mxu1 }
 0x205   :  { %v10958_v53 = vadd.f32 %v1079_v54, %v13388_v61  ;;  %v11022_v2 = vadd.f32 %v1465_v30, %v13391_v5  ;;  %v1081_v27 = vpop.f32.mrb[11].mxu0  ;;  %v1467_v44 = vpop.f32.mrb[11].mxu1  ;;  %v1616_v24 = vmax.f32 %v10956_v39, 0.0  ;;  %v1618_v21 = vmax.f32 %v11020_v18, 0.0 }
 0x206   :  { %v10959_v55 = vadd.f32 %v1081_v27, %v13394_v6  ;;  %v11023_v23 = vadd.f32 %v1467_v44, %v13397_v11  ;;  %v1617_v16 = vmax.f32 %v10957_v9, 0.0  ;;  %v1619_v7 = vmax.f32 %v11021_v60, 0.0 }
 0x207   :  { %v1620_v59 = vmax.f32 %v10958_v53, 0.0  ;;  %v1622_v0 = vmax.f32 %v11022_v2, 0.0  ;;  %2681 = vmatmul.mubr.bf16.gmra.mrb[116].mxu0 %v13219_v3  ;;  %3067 = vmatmul.mubr.bf16.gmra.mrb[116].mxu1 %v13219_v3 }
 0x208   :  { %v1621_v51 = vmax.f32 %v10959_v55, 0.0  ;;  %v1623_v54 = vmax.f32 %v11023_v23, 0.0  ;;  %2690 = vmatprep.mubr.bf16.mxu0 %v13221_v4  ;;  %3076 = vmatprep.mubr.bf16.mxu1 %v13221_v4 }
 0x209   :  { %v13453_v30 = vpack.c.bf16 %v1620_v59, %v1616_v24  ;;  %v13455_v27 = vpack.c.bf16 %v1622_v0, %v1618_v21 }
 0x20a   :  { %v13457_v39 = vpack.c.bf16 %v1621_v51, %v1617_v16  ;;  %v1085_v18 = vpop.f32.mrb[12].mxu0  ;;  %v1471_v53 = vpop.f32.mrb[12].mxu1  ;;  %v13459_v2 = vpack.c.bf16 %v1623_v54, %v1619_v7 }
 0x20b   :  { %15356 = vst [vmem:[#allocation72_spill] sm:$0xff] %v13455_v27  ;;  %v10960_v44 = vadd.f32 %v1085_v18, %v13388_v61  ;;  %v11024_v60 = vadd.f32 %v1471_v53, %v13391_v5  ;;  %v1087_v9 = vpop.f32.mrb[13].mxu0  ;;  %v1473_v55 = vpop.f32.mrb[13].mxu1 }
 0x20c   :  { %15357 = vst [vmem:[#allocation73_spill] sm:$0xff] %v13459_v2  ;;  %v10961_v23 = vadd.f32 %v1087_v9, %v13394_v6  ;;  %v11025_v4 = vadd.f32 %v1473_v55, %v13397_v11  ;;  %v1089_v59 = vpop.f32.mrb[14].mxu0  ;;  %v1475_v24 = vpop.f32.mrb[14].mxu1 }
 0x20d   :  { %v10962_v0 = vadd.f32 %v1089_v59, %v13388_v61  ;;  %v11026_v51 = vadd.f32 %v1475_v24, %v13391_v5  ;;  %v1091_v21 = vpop.f32.mrb[15].mxu0  ;;  %v1477_v16 = vpop.f32.mrb[15].mxu1  ;;  %v1624_v18 = vmax.f32 %v10960_v44, 0.0  ;;  %v1626_v53 = vmax.f32 %v11024_v60, 0.0 }
 0x20e   :  { %v10963_v7 = vadd.f32 %v1091_v21, %v13394_v6  ;;  %v11027_v54 = vadd.f32 %v1477_v16, %v13397_v11  ;;  %v1625_v9 = vmax.f32 %v10961_v23, 0.0  ;;  %v1627_v55 = vmax.f32 %v11025_v4, 0.0 }
 0x20f   :  { %v1628_v3 = vmax.f32 %v10962_v0, 0.0  ;;  %v1630_v49 = vmax.f32 %v11026_v51, 0.0  ;;  %2691 = vmatmul.mubr.bf16.gmra.mrb[120].mxu0 %v13227_v13  ;;  %3077 = vmatmul.mubr.bf16.gmra.mrb[120].mxu1 %v13227_v13 }
 0x210   :  { %v1629_v36 = vmax.f32 %v10963_v7, 0.0  ;;  %v1631_v59 = vmax.f32 %v11027_v54, 0.0  ;;  %2700 = vmatprep.mubr.bf16.mxu0 %v13229_v14  ;;  %3086 = vmatprep.mubr.bf16.mxu1 %v13229_v14 }
 0x211   :  { %v13473_v24 = vpack.c.bf16 %v1628_v3, %v1624_v18  ;;  %v13475_v21 = vpack.c.bf16 %v1630_v49, %v1626_v53 }
 0x212   :  { %v13477_v44 = vpack.c.bf16 %v1629_v36, %v1625_v9  ;;  %v1095_v60 = vpop.f32.mrb[16].mxu0  ;;  %v1481_v0 = vpop.f32.mrb[16].mxu1  ;;  %v13479_v51 = vpack.c.bf16 %v1631_v59, %v1627_v55 }
 0x213   :  { %15358 = vst [vmem:[#allocation74_spill] sm:$0xff] %v13473_v24  ;;  %15359 = vst [vmem:[#allocation75_spill] sm:$0xff] %v13475_v21  ;;  %v10964_v16 = vadd.f32 %v1095_v60, %v13388_v61  ;;  %v11028_v4 = vadd.f32 %v1481_v0, %v13391_v5  ;;  %v1097_v23 = vpop.f32.mrb[17].mxu0  ;;  %v1483_v7 = vpop.f32.mrb[17].mxu1 }
 0x214   :  { %15360 = vst [vmem:[#allocation76_spill] sm:$0xff] %v13479_v51  ;;  %v10965_v54 = vadd.f32 %v1097_v23, %v13394_v6  ;;  %v11029_v14 = vadd.f32 %v1483_v7, %v13397_v11  ;;  %v1099_v3 = vpop.f32.mrb[18].mxu0  ;;  %v1485_v18 = vpop.f32.mrb[18].mxu1 }
 0x215   :  { %v10966_v49 = vadd.f32 %v1099_v3, %v13388_v61  ;;  %v11030_v36 = vadd.f32 %v1485_v18, %v13391_v5  ;;  %v1101_v53 = vpop.f32.mrb[19].mxu0  ;;  %v1487_v9 = vpop.f32.mrb[19].mxu1  ;;  %v1632_v60 = vmax.f32 %v10964_v16, 0.0  ;;  %v1634_v0 = vmax.f32 %v11028_v4, 0.0 }
 0x216   :  { %v10967_v55 = vadd.f32 %v1101_v53, %v13394_v6  ;;  %v11031_v59 = vadd.f32 %v1487_v9, %v13397_v11  ;;  %v1633_v23 = vmax.f32 %v10965_v54, 0.0  ;;  %v1635_v7 = vmax.f32 %v11029_v14, 0.0 }
 0x217   :  { %v1636_v13 = vmax.f32 %v10966_v49, 0.0  ;;  %v1638_v35 = vmax.f32 %v11030_v36, 0.0  ;;  %2701 = vmatmul.mubr.bf16.gmra.mrb[124].mxu0 %v13235_v19  ;;  %3087 = vmatmul.mubr.bf16.gmra.mrb[124].mxu1 %v13235_v19 }
 0x218   :  { %v1637_v22 = vmax.f32 %v10967_v55, 0.0  ;;  %v1639_v3 = vmax.f32 %v11031_v59, 0.0  ;;  %2743 = vmatprep.mubr.bf16.mxu0 %v15361_v20  ;;  %3129 = vmatprep.mubr.bf16.mxu1 %v15361_v20 }
 0x219   :  { %v13493_v18 = vpack.c.bf16 %v1636_v13, %v1632_v60  ;;  %v13495_v53 = vpack.c.bf16 %v1638_v35, %v1634_v0 }
 0x21a   :  { %v13497_v16 = vpack.c.bf16 %v1637_v22, %v1633_v23  ;;  %v1105_v4 = vpop.f32.mrb[20].mxu0  ;;  %v1491_v49 = vpop.f32.mrb[20].mxu1  ;;  %v13499_v36 = vpack.c.bf16 %v1639_v3, %v1635_v7  ;;  %v12337_v7 = vld [vmem:[#allocation8 + $0x300] ss:$12 sps:$4 sm:$0xff]  }
 0x21b   :  { %15362 = vst [vmem:[#allocation77_spill] sm:$0xff] %v13493_v18  ;;  %15363 = vst [vmem:[#allocation78_spill] sm:$0xff] %v13495_v53  ;;  %v10968_v9 = vadd.f32 %v1105_v4, %v13388_v61  ;;  %v11032_v14 = vadd.f32 %v1491_v49, %v13391_v5  ;;  %v1107_v54 = vpop.f32.mrb[21].mxu0  ;;  %v1493_v55 = vpop.f32.mrb[21].mxu1 }
 0x21c   :  { %15364 = vst [vmem:[#allocation79_spill] sm:$0xff] %v13497_v16  ;;  %15365 = vst [vmem:[#allocation80_spill] sm:$0xff] %v13499_v36  ;;  %v10969_v59 = vadd.f32 %v1107_v54, %v13394_v6  ;;  %v11033_v19 = vadd.f32 %v1493_v55, %v13397_v11  ;;  %v1109_v13 = vpop.f32.mrb[22].mxu0  ;;  %v1495_v60 = vpop.f32.mrb[22].mxu1  ;;  %v12373_v55 = vld [vmem:[#allocation8 + $0x3c8] ss:$12 sps:$4 sm:$0xff]  }
 0x21d   :  { %v10970_v35 = vadd.f32 %v1109_v13, %v13388_v61  ;;  %v11034_v22 = vadd.f32 %v1495_v60, %v13391_v5  ;;  %v1111_v0 = vpop.f32.mrb[23].mxu0  ;;  %v1497_v23 = vpop.f32.mrb[23].mxu1  ;;  %v1640_v3 = vmax.f32 %v10968_v9, 0.0  ;;  %v1642_v10 = vmax.f32 %v11032_v14, 0.0  ;;  %v12374_v13 = vld [vmem:[#allocation8 + $0x308] ss:$12 sps:$4 sm:$0xff]   ;;  %10276 = vmatprep.subr.bf16.mxu1 %v12373_v55 }
 0x21e   :  { %v10971_v4 = vadd.f32 %v1111_v0, %v13394_v6  ;;  %v11035_v49 = vadd.f32 %v1497_v23, %v13397_v11  ;;  %v1641_v53 = vmax.f32 %v10969_v59, 0.0  ;;  %v1643_v60 = vmax.f32 %v11033_v19, 0.0  ;;  %v12340_v14 = vld [vmem:[#allocation8 + $0x318] ss:$12 sps:$4 sm:$0xff]   ;;  %v12345_v19 = vld [vmem:[#allocation8 + $0x334] ss:$12 sps:$4 sm:$0xff]  }
 0x21f   :  { %v1644_v50 = vmax.f32 %v10970_v35, 0.0  ;;  %v1646_v54 = vmax.f32 %v11034_v22, 0.0  ;;  %2744 = vmatmul.mubr.bf16.vlgmr.msra.gmra.mrb[64].mxu0 %v13241_v28  ;;  %3130 = vmatmul.mubr.bf16.vlgmr.msra.gmra.mrb[64].mxu1 %v13241_v28  ;;  %v12378_v35 = vld [vmem:[#allocation8 + $0x3e0] ss:$12 sps:$4 sm:$0xff]  }
 0x220   :  { %v1645_v36 = vmax.f32 %v10971_v4, 0.0  ;;  %v1647_v21 = vmax.f32 %v11035_v49, 0.0  ;;  %2753 = vmatprep.mubr.bf16.mxu0 %v15361_v20  ;;  %3139 = vmatprep.mubr.bf16.mxu1 %v15361_v20  ;;  %v12379_v59 = vld [vmem:[#allocation8 + $0x320] ss:$12 sps:$4 sm:$0xff]  }
 0x221   :  { %v13513_v9 = vpack.c.bf16 %v1644_v50, %v1640_v3  ;;  %4123 = vmatpush1.bf16.msra.mxu0 %v12337_v7  ;;  %v13515_v22 = vpack.c.bf16 %v1646_v54, %v1642_v10  ;;  %10277 = vmatpush3.bf16.msra.mxu1 %v12374_v13 }
 0x222   :  { %v13517_v0 = vpack.c.bf16 %v1645_v36, %v1641_v53  ;;  %v1115_v23 = vpop.f32.mrb[24].mxu0  ;;  %v1501_v28 = vpop.f32.mrb[24].mxu1  ;;  %4124 = vmatprep.subr.bf16.mxu0 %v12342_v8  ;;  %v13519_v4 = vpack.c.bf16 %v1647_v21, %v1643_v60  ;;  %10278 = vmatprep.subr.bf16.mxu1 %v12378_v35  ;;  %v12343_v60 = vld [vmem:[#allocation8 + $0x330] ss:$12 sps:$4 sm:$0xff]   ;;  %v12348_v35 = vld [vmem:[#allocation8 + $0x34c] ss:$12 sps:$4 sm:$0xff]  }
 0x223   :  { %15366 = vst [vmem:[#allocation81_spill] sm:$0xff] %v13513_v9  ;;  %15367 = vst [vmem:[#allocation82_spill] sm:$0xff] %v13515_v22  ;;  %v10972_v49 = vadd.f32 %v1115_v23, %v13388_v61  ;;  %v11036_v50 = vadd.f32 %v1501_v28, %v13391_v5  ;;  %v1117_v7 = vpop.f32.mrb[25].mxu0  ;;  %v1503_v3 = vpop.f32.mrb[25].mxu1  ;;  %v12383_v23 = vld [vmem:[#allocation8 + $0x3f8] ss:$12 sps:$4 sm:$0xff]  }
 0x224   :  { %15368 = vst [vmem:[#allocation83_spill] sm:$0xff] %v13517_v0  ;;  %15369 = vst [vmem:[#allocation84_spill] sm:$0xff] %v13519_v4  ;;  %v10973_v10 = vadd.f32 %v1117_v7, %v13394_v6  ;;  %v11037_v53 = vadd.f32 %v1503_v3, %v13397_v11  ;;  %v1119_v36 = vpop.f32.mrb[26].mxu0  ;;  %v1505_v54 = vpop.f32.mrb[26].mxu1  ;;  %v12384_v7 = vld [vmem:[#allocation8 + $0x338] ss:$12 sps:$4 sm:$0xff]  }
 0x225   :  { %v10974_v8 = vadd.f32 %v1119_v36, %v13388_v61  ;;  %v11038_v55 = vadd.f32 %v1505_v54, %v13391_v5  ;;  %v1121_v13 = vpop.f32.mrb[27].mxu0  ;;  %v1507_v21 = vpop.f32.mrb[27].mxu1  ;;  %4125 = vmatpush1.bf16.msra.mxu0 %v12340_v14  ;;  %10279 = vmatpush3.bf16.msra.mxu1 %v12379_v59  ;;  %v1648_v3 = vmax.f32 %v10972_v49, 0.0  ;;  %v1650_v4 = vmax.f32 %v11036_v50, 0.0  ;;  %v12385_v36 = vld [vmem:[#allocation8 + $0x410] ss:$12 sps:$4 sm:$0xff]  }
 0x226   :  { %v10975_v28 = vadd.f32 %v1121_v13, %v13394_v6  ;;  %v11039_v22 = vadd.f32 %v1507_v21, %v13397_v11  ;;  %4126 = vmatprep.subr.bf16.mxu0 %v12345_v19  ;;  %v1649_v14 = vmax.f32 %v10973_v10, 0.0  ;;  %v1651_v54 = vmax.f32 %v11037_v53, 0.0  ;;  %v12346_v59 = vld [vmem:[#allocation8 + $0x348] ss:$12 sps:$4 sm:$0xff]   ;;  %10280 = vmatprep.subr.bf16.mxu1 %v12383_v23  ;;  %v12351_v10 = vld [vmem:[#allocation8 + $0x364] ss:$12 sps:$4 sm:$0xff]  }
 0x227   :  { %v1652_v51 = vmax.f32 %v10974_v8, 0.0  ;;  %v1654_v27 = vmax.f32 %v11038_v55, 0.0  ;;  %2754 = vmatmul.mubr.bf16.gmra.mrb[68].mxu0 %v13247_v43  ;;  %3140 = vmatmul.mubr.bf16.gmra.mrb[68].mxu1 %v13247_v43  ;;  %v12386_v53 = vld [vmem:[#allocation8 + $0x350] ss:$12 sps:$4 sm:$0xff]  }
 0x228   :  { %v1653_v2 = vmax.f32 %v10975_v28, 0.0  ;;  %v1655_v40 = vmax.f32 %v11039_v22, 0.0  ;;  %2763 = vmatprep.mubr.bf16.mxu0 %v15361_v20  ;;  %3149 = vmatprep.mubr.bf16.mxu1 %v15361_v20 }
 0x229   :  { %v13533_v19 = vpack.c.bf16 %v1652_v51, %v1648_v3  ;;  %4127 = vmatpush1.bf16.msra.mxu0 %v12343_v60  ;;  %v13535_v49 = vpack.c.bf16 %v1654_v27, %v1650_v4  ;;  %10281 = vmatpush3.bf16.msra.mxu1 %v12384_v7  ;;  %v12349_v3 = vld [vmem:[#allocation8 + $0x360] ss:$12 sps:$4 sm:$0xff]  }
 0x22a   :  { %v13537_v50 = vpack.c.bf16 %v1653_v2, %v1649_v14  ;;  %v1125_v8 = vpop.f32.mrb[28].mxu0  ;;  %v1511_v55 = vpop.f32.mrb[28].mxu1  ;;  %4128 = vmatprep.subr.bf16.mxu0 %v12348_v35  ;;  %v13539_v22 = vpack.c.bf16 %v1655_v40, %v1651_v54  ;;  %10282 = vmatprep.subr.bf16.mxu1 %v12385_v36  ;;  %v12390_v14 = vld [vmem:[#allocation8 + $0x428] ss:$12 sps:$4 sm:$0xff]  }
 0x22b   :  { %15370 = vst [vmem:[#allocation85_spill] sm:$0xff] %v13533_v19  ;;  %15371 = vst [vmem:[#allocation86_spill] sm:$0xff] %v13535_v49  ;;  %v10976_v13 = vadd.f32 %v1125_v8, %v13388_v61  ;;  %v11040_v51 = vadd.f32 %v1511_v55, %v13391_v5  ;;  %v1127_v21 = vpop.f32.mrb[29].mxu0  ;;  %v1513_v60 = vpop.f32.mrb[29].mxu1  ;;  %v12354_v36 = vld [vmem:[#allocation8 + $0x37c] ss:$12 sps:$4 sm:$0xff]  }
 0x22c   :  { %15372 = vst [vmem:[#allocation87_spill] sm:$0xff] %v13537_v50  ;;  %15373 = vst [vmem:[#allocation88_spill] sm:$0xff] %v13539_v22  ;;  %v10977_v27 = vadd.f32 %v1127_v21, %v13394_v6  ;;  %v11041_v2 = vadd.f32 %v1513_v60, %v13397_v11  ;;  %v1129_v4 = vpop.f32.mrb[30].mxu0  ;;  %v1515_v23 = vpop.f32.mrb[30].mxu1  ;;  %v12391_v55 = vld [vmem:[#allocation8 + $0x368] ss:$12 sps:$4 sm:$0xff]  }
 0x22d   :  { %v10978_v28 = vadd.f32 %v1129_v4, %v13388_v61  ;;  %v11042_v35 = vadd.f32 %v1515_v23, %v13391_v5  ;;  %v1131_v7 = vpop.f32.mrb[31].mxu0  ;;  %v1517_v40 = vpop.f32.mrb[31].mxu1  ;;  %4129 = vmatpush1.bf16.msra.mxu0 %v12346_v59  ;;  %10283 = vmatpush3.bf16.msra.mxu1 %v12386_v53  ;;  %v1656_v21 = vmax.f32 %v10976_v13, 0.0  ;;  %v1658_v60 = vmax.f32 %v11040_v51, 0.0  ;;  %v12392_v4 = vld [vmem:[#allocation8 + $0x440] ss:$12 sps:$4 sm:$0xff]  }
 0x22e   :  { %v10979_v54 = vadd.f32 %v1131_v7, %v13394_v6  ;;  %v11043_v8 = vadd.f32 %v1517_v40, %v13397_v11  ;;  %4130 = vmatprep.subr.bf16.mxu0 %v12351_v10  ;;  %v1657_v59 = vmax.f32 %v10977_v27, 0.0  ;;  %v1659_v23 = vmax.f32 %v11041_v2, 0.0  ;;  %v12352_v53 = vld [vmem:[#allocation8 + $0x378] ss:$12 sps:$4 sm:$0xff]   ;;  %10284 = vmatprep.subr.bf16.mxu1 %v12390_v14  ;;  %v12357_v27 = vld [vmem:[#allocation8 + $0x394] ss:$12 sps:$4 sm:$0xff]  }
 0x22f   :  { %v1660_v43 = vmax.f32 %v10978_v28, 0.0  ;;  %v1662_v49 = vmax.f32 %v11042_v35, 0.0  ;;  %2764 = vmatmul.mubr.bf16.gmra.mrb[72].mxu0 %v13253_v63  ;;  %3150 = vmatmul.mubr.bf16.gmra.mrb[72].mxu1 %v13253_v63 }
 0x230   :  { %v1661_v22 = vmax.f32 %v10979_v54, 0.0  ;;  %v1663_v37 = vmax.f32 %v11043_v8, 0.0  ;;  %2773 = vmatprep.mubr.bf16.mxu0 %v15361_v20  ;;  %3159 = vmatprep.mubr.bf16.mxu1 %v15361_v20 }
 0x231   :  { %v13553_v10 = vpack.c.bf16 %v1660_v43, %v1656_v21  ;;  %4131 = vmatpush1.bf16.msra.mxu0 %v12349_v3  ;;  %v13555_v13 = vpack.c.bf16 %v1662_v49, %v1658_v60  ;;  %10285 = vmatpush3.bf16.msra.mxu1 %v12391_v55  ;;  %v12355_v21 = vld [vmem:[#allocation8 + $0x390] ss:$12 sps:$4 sm:$0xff]  }
 0x232   :  { %v13557_v51 = vpack.c.bf16 %v1661_v22, %v1657_v59  ;;  %v1135_v28 = vpop.f32.mrb[32].mxu0  ;;  %v1521_v35 = vpop.f32.mrb[32].mxu1  ;;  %4132 = vmatprep.subr.bf16.mxu0 %v12354_v36  ;;  %v13559_v2 = vpack.c.bf16 %v1663_v37, %v1659_v23  ;;  %10286 = vmatprep.subr.bf16.mxu1 %v12392_v4  ;;  %v12360_v4 = vld [vmem:[#allocation8 + $0x3ac] ss:$12 sps:$4 sm:$0xff]  }
 0x233   :  { %15374 = vst [vmem:[#allocation89_spill] sm:$0xff] %v13553_v10  ;;  %15375 = vst [vmem:[#allocation90_spill] sm:$0xff] %v13555_v13  ;;  %v10980_v7 = vadd.f32 %v1135_v28, %v13388_v61  ;;  %v11044_v40 = vadd.f32 %v1521_v35, %v13391_v5  ;;  %v1137_v43 = vpop.f32.mrb[33].mxu0  ;;  %v1523_v54 = vpop.f32.mrb[33].mxu1 }
 0x234   :  { %15376 = vst [vmem:[#allocation91_spill] sm:$0xff] %v13557_v51  ;;  %15377 = vst [vmem:[#allocation92_spill] sm:$0xff] %v13559_v2  ;;  %v10981_v3 = vadd.f32 %v1137_v43, %v13394_v6  ;;  %v11045_v49 = vadd.f32 %v1523_v54, %v13397_v11  ;;  %v1139_v22 = vpop.f32.mrb[34].mxu0  ;;  %v1525_v14 = vpop.f32.mrb[34].mxu1 }
 0x235   :  { %v10982_v8 = vadd.f32 %v1139_v22, %v13388_v61  ;;  %v11046_v36 = vadd.f32 %v1525_v14, %v13391_v5  ;;  %v1141_v55 = vpop.f32.mrb[35].mxu0  ;;  %v1527_v37 = vpop.f32.mrb[35].mxu1  ;;  %4133 = vmatpush1.bf16.msra.mxu0 %v12352_v53  ;;  %v1664_v23 = vmax.f32 %v10980_v7, 0.0  ;;  %v1666_v28 = vmax.f32 %v11044_v40, 0.0 }
 0x236   :  { %v10983_v60 = vadd.f32 %v1141_v55, %v13394_v6  ;;  %v11047_v59 = vadd.f32 %v1527_v37, %v13397_v11  ;;  %4134 = vmatprep.subr.bf16.mxu0 %v12357_v27  ;;  %v1665_v54 = vmax.f32 %v10981_v3, 0.0  ;;  %v1667_v22 = vmax.f32 %v11045_v49, 0.0  ;;  %v12358_v27 = vld [vmem:[#allocation8 + $0x3a8] ss:$12 sps:$4 sm:$0xff]   ;;  %v12363_v55 = vld [vmem:[#allocation8 + $0x3c4] ss:$12 sps:$4 sm:$0xff]  }
 0x237   :  { %v1668_v35 = vmax.f32 %v10982_v8, 0.0  ;;  %v1670_v43 = vmax.f32 %v11046_v36, 0.0  ;;  %2774 = vmatmul.mubr.bf16.gmra.mrb[76].mxu0 %v13259_v31  ;;  %3160 = vmatmul.mubr.bf16.gmra.mrb[76].mxu1 %v13259_v31 }
 0x238   :  { %v1669_v14 = vmax.f32 %v10983_v60, 0.0  ;;  %v1671_v63 = vmax.f32 %v11047_v59, 0.0  ;;  %2783 = vmatprep.mubr.bf16.mxu0 %v15361_v20  ;;  %3169 = vmatprep.mubr.bf16.mxu1 %v15361_v20 }
 0x239   :  { %v13573_v53 = vpack.c.bf16 %v1668_v35, %v1664_v23  ;;  %4135 = vmatpush1.bf16.msra.mxu0 %v12355_v21  ;;  %v13575_v7 = vpack.c.bf16 %v1670_v43, %v1666_v28 }
 0x23a   :  { %v13577_v40 = vpack.c.bf16 %v1669_v14, %v1665_v54  ;;  %v1145_v8 = vpop.f32.mrb[36].mxu0  ;;  %v1531_v36 = vpop.f32.mrb[36].mxu1  ;;  %4136 = vmatprep.subr.bf16.mxu0 %v12360_v4  ;;  %v13579_v3 = vpack.c.bf16 %v1671_v63, %v1667_v22  ;;  %v12361_v63 = vld [vmem:[#allocation8 + $0x3c0] ss:$12 sps:$4 sm:$0xff]  }
 0x23b   :  { %15378 = vst [vmem:[#allocation93_spill] sm:$0xff] %v13573_v53  ;;  %15379 = vst [vmem:[#allocation94_spill] sm:$0xff] %v13575_v7  ;;  %v10984_v49 = vadd.f32 %v1145_v8, %v13388_v61  ;;  %v11048_v37 = vadd.f32 %v1531_v36, %v13391_v5  ;;  %v1147_v60 = vpop.f32.mrb[37].mxu0  ;;  %v1533_v59 = vpop.f32.mrb[37].mxu1  ;;  %v12366_v36 = vld [vmem:[#allocation8 + $0x3dc] ss:$12 sps:$4 sm:$0xff]  }
 0x23c   :  { %15380 = vst [vmem:[#allocation95_spill] sm:$0xff] %v13577_v40  ;;  %15381 = vst [vmem:[#allocation96_spill] sm:$0xff] %v13579_v3  ;;  %v10985_v23 = vadd.f32 %v1147_v60, %v13394_v6  ;;  %v11049_v21 = vadd.f32 %v1533_v59, %v13397_v11  ;;  %v1149_v28 = vpop.f32.mrb[38].mxu0  ;;  %v1535_v35 = vpop.f32.mrb[38].mxu1 }
 0x23d   :  { %v10986_v43 = vadd.f32 %v1149_v28, %v13388_v61  ;;  %v11050_v54 = vadd.f32 %v1535_v35, %v13391_v5  ;;  %v1151_v4 = vpop.f32.mrb[39].mxu0  ;;  %v1537_v14 = vpop.f32.mrb[39].mxu1  ;;  %4137 = vmatpush1.bf16.msra.mxu0 %v12358_v27  ;;  %v1672_v31 = vmax.f32 %v10984_v49, 0.0  ;;  %v1674_v60 = vmax.f32 %v11048_v37, 0.0 }
 0x23e   :  { %v10987_v22 = vadd.f32 %v1151_v4, %v13394_v6  ;;  %v11051_v8 = vadd.f32 %v1537_v14, %v13397_v11  ;;  %4138 = vmatprep.subr.bf16.mxu0 %v12363_v55  ;;  %v1673_v28 = vmax.f32 %v10985_v23, 0.0  ;;  %v1675_v35 = vmax.f32 %v11049_v21, 0.0  ;;  %v12364_v55 = vld [vmem:[#allocation8 + $0x3d8] ss:$12 sps:$4 sm:$0xff]   ;;  %v12369_v4 = vld [vmem:[#allocation8 + $0x3f4] ss:$12 sps:$4 sm:$0xff]  }
 0x23f   :  { %v1676_v7 = vmax.f32 %v10986_v43, 0.0  ;;  %v1678_v59 = vmax.f32 %v11050_v54, 0.0  ;;  %2784 = vmatmul.mubr.bf16.gmra.mrb[80].mxu0 %v13265_v52  ;;  %3170 = vmatmul.mubr.bf16.gmra.mrb[80].mxu1 %v13265_v52 }
 0x240   :  { %v1677_v3 = vmax.f32 %v10987_v22, 0.0  ;;  %v1679_v13 = vmax.f32 %v11051_v8, 0.0  ;;  %2793 = vmatprep.mubr.bf16.mxu0 %v15361_v20  ;;  %3179 = vmatprep.mubr.bf16.mxu1 %v15361_v20 }
 0x241   :  { %v13593_v27 = vpack.c.bf16 %v1676_v7, %v1672_v31  ;;  %4139 = vmatpush1.bf16.msra.mxu0 %v12361_v63  ;;  %v13595_v49 = vpack.c.bf16 %v1678_v59, %v1674_v60 }
 0x242   :  { %v13597_v37 = vpack.c.bf16 %v1677_v3, %v1673_v28  ;;  %v1155_v43 = vpop.f32.mrb[40].mxu0  ;;  %v1541_v54 = vpop.f32.mrb[40].mxu1  ;;  %4140 = vmatprep.subr.bf16.mxu0 %v12366_v36  ;;  %v13599_v23 = vpack.c.bf16 %v1679_v13, %v1675_v35  ;;  %v12367_v13 = vld [vmem:[#allocation8 + $0x3f0] ss:$12 sps:$4 sm:$0xff]  }
 0x243   :  { %15382 = vst [vmem:[#allocation97_spill] sm:$0xff] %v13593_v27  ;;  %15383 = vst [vmem:[#allocation98_spill] sm:$0xff] %v13595_v49  ;;  %v10988_v21 = vadd.f32 %v1155_v43, %v13388_v61  ;;  %v11052_v14 = vadd.f32 %v1541_v54, %v13391_v5  ;;  %v1157_v22 = vpop.f32.mrb[41].mxu0  ;;  %v1543_v8 = vpop.f32.mrb[41].mxu1  ;;  %v12372_v54 = vld [vmem:[#allocation8 + $0x40c] ss:$12 sps:$4 sm:$0xff]  }
 0x244   :  { %15384 = vst [vmem:[#allocation99_spill] sm:$0xff] %v13597_v37  ;;  %15385 = vst [vmem:[#allocation100_spill] sm:$0xff] %v13599_v23  ;;  %v10989_v31 = vadd.f32 %v1157_v22, %v13394_v6  ;;  %v11053_v7 = vadd.f32 %v1543_v8, %v13397_v11  ;;  %v1159_v63 = vpop.f32.mrb[42].mxu0  ;;  %v1545_v60 = vpop.f32.mrb[42].mxu1 }
 0x245   :  { %v10990_v3 = vadd.f32 %v1159_v63, %v13388_v61  ;;  %v11054_v59 = vadd.f32 %v1545_v60, %v13391_v5  ;;  %v1161_v36 = vpop.f32.mrb[43].mxu0  ;;  %v1547_v28 = vpop.f32.mrb[43].mxu1  ;;  %4141 = vmatpush1.bf16.msra.mxu0 %v12364_v55  ;;  %v1680_v52 = vmax.f32 %v10988_v21, 0.0  ;;  %v1682_v22 = vmax.f32 %v11052_v14, 0.0 }
 0x246   :  { %v10991_v35 = vadd.f32 %v1161_v36, %v13394_v6  ;;  %v11055_v43 = vadd.f32 %v1547_v28, %v13397_v11  ;;  %4142 = vmatprep.subr.bf16.mxu0 %v12369_v4  ;;  %v1681_v63 = vmax.f32 %v10989_v31, 0.0  ;;  %v1683_v60 = vmax.f32 %v11053_v7, 0.0  ;;  %v12370_v4 = vld [vmem:[#allocation8 + $0x408] ss:$12 sps:$4 sm:$0xff]   ;;  %v12377_v36 = vld [vmem:[#allocation8 + $0x424] ss:$12 sps:$4 sm:$0xff]  }
 0x247   :  { %v1684_v49 = vmax.f32 %v10990_v3, 0.0  ;;  %v1686_v8 = vmax.f32 %v11054_v59, 0.0  ;;  %2794 = vmatmul.mubr.bf16.gmra.mrb[84].mxu0 %v13271_v12  ;;  %3180 = vmatmul.mubr.bf16.gmra.mrb[84].mxu1 %v13271_v12 }
 0x248   :  { %v1685_v23 = vmax.f32 %v10991_v35, 0.0  ;;  %v1687_v2 = vmax.f32 %v11055_v43, 0.0  ;;  %2803 = vmatprep.mubr.bf16.mxu0 %v15361_v20  ;;  %3189 = vmatprep.mubr.bf16.mxu1 %v15361_v20 }
 0x249   :  { %v13613_v55 = vpack.c.bf16 %v1684_v49, %v1680_v52  ;;  %4143 = vmatpush1.bf16.msra.mxu0 %v12367_v13  ;;  %v13615_v21 = vpack.c.bf16 %v1686_v8, %v1682_v22 }
 0x24a   :  { %v13617_v14 = vpack.c.bf16 %v1685_v23, %v1681_v63  ;;  %v1165_v3 = vpop.f32.mrb[44].mxu0  ;;  %v1551_v59 = vpop.f32.mrb[44].mxu1  ;;  %4144 = vmatprep.subr.bf16.mxu0 %v12372_v54  ;;  %v13619_v31 = vpack.c.bf16 %v1687_v2, %v1683_v60  ;;  %v12375_v2 = vld [vmem:[#allocation8 + $0x420] ss:$12 sps:$4 sm:$0xff]  }
 0x24b   :  { %15386 = vst [vmem:[#allocation101_spill] sm:$0xff] %v13613_v55  ;;  %15387 = vst [vmem:[#allocation102_spill] sm:$0xff] %v13615_v21  ;;  %v10992_v7 = vadd.f32 %v1165_v3, %v13388_v61  ;;  %v11056_v28 = vadd.f32 %v1551_v59, %v13391_v5  ;;  %v1167_v35 = vpop.f32.mrb[45].mxu0  ;;  %v1553_v43 = vpop.f32.mrb[45].mxu1  ;;  %v12382_v59 = vld [vmem:[#allocation8 + $0x43c] ss:$12 sps:$4 sm:$0xff]  }
 0x24c   :  { %15388 = vst [vmem:[#allocation103_spill] sm:$0xff] %v13617_v14  ;;  %15389 = vst [vmem:[#allocation104_spill] sm:$0xff] %v13619_v31  ;;  %v10993_v52 = vadd.f32 %v1167_v35, %v13394_v6  ;;  %v11057_v49 = vadd.f32 %v1553_v43, %v13397_v11  ;;  %v1169_v13 = vpop.f32.mrb[46].mxu0  ;;  %v1555_v22 = vpop.f32.mrb[46].mxu1 }
 0x24d   :  { %v10994_v23 = vadd.f32 %v1169_v13, %v13388_v61  ;;  %v11058_v8 = vadd.f32 %v1555_v22, %v13391_v5  ;;  %v1171_v54 = vpop.f32.mrb[47].mxu0  ;;  %v1557_v63 = vpop.f32.mrb[47].mxu1  ;;  %4145 = vmatpush1.bf16.msra.mxu0 %v12370_v4  ;;  %v1688_v12 = vmax.f32 %v10992_v7, 0.0  ;;  %v1690_v35 = vmax.f32 %v11056_v28, 0.0 }
 0x24e   :  { %v10995_v60 = vadd.f32 %v1171_v54, %v13394_v6  ;;  %v11059_v3 = vadd.f32 %v1557_v63, %v13397_v11  ;;  %4146 = vmatprep.subr.bf16.mxu0 %v12377_v36  ;;  %v1689_v13 = vmax.f32 %v10993_v52, 0.0  ;;  %v1691_v22 = vmax.f32 %v11057_v49, 0.0  ;;  %v12380_v36 = vld [vmem:[#allocation8 + $0x438] ss:$12 sps:$4 sm:$0xff]   ;;  %v12389_v54 = vld [vmem:[#allocation8 + $0x454] ss:$12 sps:$4 sm:$0xff]  }
 0x24f   :  { %v1692_v21 = vmax.f32 %v10994_v23, 0.0  ;;  %v1694_v43 = vmax.f32 %v11058_v8, 0.0  ;;  %2804 = vmatmul.mubr.bf16.gmra.mrb[88].mxu0 %v13277_v41  ;;  %3190 = vmatmul.mubr.bf16.gmra.mrb[88].mxu1 %v13277_v41 }
 0x250   :  { %v1693_v31 = vmax.f32 %v10995_v60, 0.0  ;;  %v1695_v38 = vmax.f32 %v11059_v3, 0.0  ;;  %2813 = vmatprep.mubr.bf16.mxu0 %v15361_v20  ;;  %3199 = vmatprep.mubr.bf16.mxu1 %v15361_v20 }
 0x251   :  { %v13633_v4 = vpack.c.bf16 %v1692_v21, %v1688_v12  ;;  %4147 = vmatpush1.bf16.msra.mxu0 %v12375_v2  ;;  %v13635_v7 = vpack.c.bf16 %v1694_v43, %v1690_v35 }
 0x252   :  { %v13637_v28 = vpack.c.bf16 %v1693_v31, %v1689_v13  ;;  %v1175_v23 = vpop.f32.mrb[48].mxu0  ;;  %v1561_v8 = vpop.f32.mrb[48].mxu1  ;;  %4148 = vmatprep.subr.bf16.mxu0 %v12382_v59  ;;  %v13639_v52 = vpack.c.bf16 %v1695_v38, %v1691_v22  ;;  %v12387_v38 = vld [vmem:[#allocation8 + $0x450] ss:$12 sps:$4 sm:$0xff]  }
 0x253   :  { %15390 = vst [vmem:[#allocation105_spill] sm:$0xff] %v13633_v4  ;;  %15391 = vst [vmem:[#allocation106_spill] sm:$0xff] %v13635_v7  ;;  %v10996_v49 = vadd.f32 %v1175_v23, %v13388_v61  ;;  %v11060_v63 = vadd.f32 %v1561_v8, %v13391_v5  ;;  %v1177_v60 = vpop.f32.mrb[49].mxu0  ;;  %v1563_v3 = vpop.f32.mrb[49].mxu1 }
 0x254   :  { %15392 = vst [vmem:[#allocation107_spill] sm:$0xff] %v13637_v28  ;;  %15393 = vst [vmem:[#allocation108_spill] sm:$0xff] %v13639_v52  ;;  %v10997_v12 = vadd.f32 %v1177_v60, %v13394_v6  ;;  %v11061_v21 = vadd.f32 %v1563_v3, %v13397_v11  ;;  %v1179_v2 = vpop.f32.mrb[50].mxu0  ;;  %v1565_v35 = vpop.f32.mrb[50].mxu1 }
 0x255   :  { %v10998_v31 = vadd.f32 %v1179_v2, %v13388_v61  ;;  %v11062_v43 = vadd.f32 %v1565_v35, %v13391_v5  ;;  %v1181_v59 = vpop.f32.mrb[51].mxu0  ;;  %v1567_v13 = vpop.f32.mrb[51].mxu1  ;;  %4149 = vmatpush1.bf16.msra.mxu0 %v12380_v36  ;;  %v1696_v8 = vmax.f32 %v10996_v49, 0.0  ;;  %v1698_v41 = vmax.f32 %v11060_v63, 0.0 }
 0x256   :  { %v10999_v22 = vadd.f32 %v1181_v59, %v13394_v6  ;;  %v11063_v23 = vadd.f32 %v1567_v13, %v13397_v11  ;;  %4150 = vmatprep.subr.bf16.mxu0 %v12389_v54  ;;  %v1697_v3 = vmax.f32 %v10997_v12, 0.0  ;;  %v1699_v2 = vmax.f32 %v11061_v21, 0.0 }
 0x257   :  { %v1700_v60 = vmax.f32 %v10998_v31, 0.0  ;;  %v1702_v7 = vmax.f32 %v11062_v43, 0.0  ;;  %2814 = vmatmul.mubr.bf16.gmra.mrb[92].mxu0 %v13283_v1  ;;  %3200 = vmatmul.mubr.bf16.gmra.mrb[92].mxu1 %v13283_v1 }
 0x258   :  { %v1701_v35 = vmax.f32 %v10999_v22, 0.0  ;;  %v1703_v52 = vmax.f32 %v11063_v23, 0.0  ;;  %2823 = vmatprep.mubr.bf16.mxu0 %v15361_v20  ;;  %3209 = vmatprep.mubr.bf16.mxu1 %v15361_v20 }
 0x259   :  { %v13653_v36 = vpack.c.bf16 %v1700_v60, %v1696_v8  ;;  %4151 = vmatpush1.bf16.msra.mxu0 %v12387_v38  ;;  %v13655_v54 = vpack.c.bf16 %v1702_v7, %v1698_v41 }
 0x25a   :  { %v13657_v49 = vpack.c.bf16 %v1701_v35, %v1697_v3  ;;  %v1185_v63 = vpop.f32.mrb[52].mxu0  ;;  %v1571_v31 = vpop.f32.mrb[52].mxu1  ;;  %v13659_v43 = vpack.c.bf16 %v1703_v52, %v1699_v2 }
 0x25b   :  { %15394 = vst [vmem:[#allocation109_spill] sm:$0xff] %v13653_v36  ;;  %15395 = vst [vmem:[#allocation110_spill] sm:$0xff] %v13655_v54  ;;  %v11000_v12 = vadd.f32 %v1185_v63, %v13388_v61  ;;  %v11064_v21 = vadd.f32 %v1571_v31, %v13391_v5  ;;  %v1187_v59 = vpop.f32.mrb[53].mxu0  ;;  %v1573_v13 = vpop.f32.mrb[53].mxu1 }
 0x25c   :  { %15396 = vst [vmem:[#allocation111_spill] sm:$0xff] %v13657_v49  ;;  %15397 = vst [vmem:[#allocation112_spill] sm:$0xff] %v13659_v43  ;;  %v11001_v22 = vadd.f32 %v1187_v59, %v13394_v6  ;;  %v11065_v23 = vadd.f32 %v1573_v13, %v13397_v11  ;;  %v1189_v8 = vpop.f32.mrb[54].mxu0  ;;  %v1575_v38 = vpop.f32.mrb[54].mxu1 }
 0x25d   :  { %v11002_v41 = vadd.f32 %v1189_v8, %v13388_v61  ;;  %v11066_v7 = vadd.f32 %v1575_v38, %v13391_v5  ;;  %v1191_v60 = vpop.f32.mrb[55].mxu0  ;;  %v1577_v3 = vpop.f32.mrb[55].mxu1  ;;  %v1704_v35 = vmax.f32 %v11000_v12, 0.0  ;;  %v1706_v63 = vmax.f32 %v11064_v21, 0.0 }
 0x25e   :  { %v11003_v52 = vadd.f32 %v1191_v60, %v13394_v6  ;;  %v11067_v2 = vadd.f32 %v1577_v3, %v13397_v11  ;;  %v1705_v59 = vmax.f32 %v11001_v22, 0.0  ;;  %v1707_v13 = vmax.f32 %v11065_v23, 0.0 }
 0x25f   :  { %v1708_v31 = vmax.f32 %v11002_v41, 0.0  ;;  %v1710_v1 = vmax.f32 %v11066_v7, 0.0  ;;  %2824 = vmatmul.mubr.bf16.gmra.mrb[96].mxu0 %v13289_v34  ;;  %3210 = vmatmul.mubr.bf16.gmra.mrb[96].mxu1 %v13289_v34 }
 0x260   :  { %v1709_v54 = vmax.f32 %v11003_v52, 0.0  ;;  %v1711_v8 = vmax.f32 %v11067_v2, 0.0  ;;  %2833 = vmatprep.mubr.bf16.mxu0 %v15361_v20  ;;  %3219 = vmatprep.mubr.bf16.mxu1 %v15361_v20 }
 0x261   :  { %v13673_v38 = vpack.c.bf16 %v1708_v31, %v1704_v35  ;;  %v13675_v60 = vpack.c.bf16 %v1710_v1, %v1706_v63 }
 0x262   :  { %v13677_v12 = vpack.c.bf16 %v1709_v54, %v1705_v59  ;;  %v1195_v21 = vpop.f32.mrb[56].mxu0  ;;  %v1581_v41 = vpop.f32.mrb[56].mxu1  ;;  %v13679_v7 = vpack.c.bf16 %v1711_v8, %v1707_v13 }
 0x263   :  { %15398 = vst [vmem:[#allocation113_spill] sm:$0xff] %v13673_v38  ;;  %15399 = vst [vmem:[#allocation114_spill] sm:$0xff] %v13675_v60  ;;  %v11004_v3 = vadd.f32 %v1195_v21, %v13388_v61  ;;  %v11068_v22 = vadd.f32 %v1581_v41, %v13391_v5  ;;  %v1197_v23 = vpop.f32.mrb[57].mxu0  ;;  %v1583_v52 = vpop.f32.mrb[57].mxu1 }
 0x264   :  { %15400 = vst [vmem:[#allocation115_spill] sm:$0xff] %v13677_v12  ;;  %15401 = vst [vmem:[#allocation116_spill] sm:$0xff] %v13679_v7  ;;  %v11005_v2 = vadd.f32 %v1197_v23, %v13394_v6  ;;  %v11069_v34 = vadd.f32 %v1583_v52, %v13397_v11  ;;  %v1199_v35 = vpop.f32.mrb[58].mxu0  ;;  %v1585_v31 = vpop.f32.mrb[58].mxu1 }
 0x265   :  { %v11006_v1 = vadd.f32 %v1199_v35, %v13388_v61  ;;  %v11070_v54 = vadd.f32 %v1585_v31, %v13391_v5  ;;  %v1201_v63 = vpop.f32.mrb[59].mxu0  ;;  %v1587_v59 = vpop.f32.mrb[59].mxu1  ;;  %v1712_v21 = vmax.f32 %v11004_v3, 0.0  ;;  %v1714_v41 = vmax.f32 %v11068_v22, 0.0 }
 0x266   :  { %v11007_v13 = vadd.f32 %v1201_v63, %v13394_v6  ;;  %v11071_v8 = vadd.f32 %v1587_v59, %v13397_v11  ;;  %v1713_v23 = vmax.f32 %v11005_v2, 0.0  ;;  %v1715_v52 = vmax.f32 %v11069_v34, 0.0 }
 0x267   :  { %v1716_v60 = vmax.f32 %v11006_v1, 0.0  ;;  %v1718_v7 = vmax.f32 %v11070_v54, 0.0  ;;  %2834 = vmatmul.mubr.bf16.gmra.mrb[100].mxu0 %v13295_v42  ;;  %3220 = vmatmul.mubr.bf16.gmra.mrb[100].mxu1 %v13295_v42 }
 0x268   :  { %v1717_v43 = vmax.f32 %v11007_v13, 0.0  ;;  %v1719_v35 = vmax.f32 %v11071_v8, 0.0  ;;  %2843 = vmatprep.mubr.bf16.mxu0 %v15361_v20  ;;  %3229 = vmatprep.mubr.bf16.mxu1 %v15361_v20 }
 0x269   :  { %v13693_v31 = vpack.c.bf16 %v1716_v60, %v1712_v21  ;;  %v13695_v63 = vpack.c.bf16 %v1718_v7, %v1714_v41 }
 0x26a   :  { %v13697_v3 = vpack.c.bf16 %v1717_v43, %v1713_v23  ;;  %v1205_v22 = vpop.f32.mrb[60].mxu0  ;;  %v1591_v1 = vpop.f32.mrb[60].mxu1  ;;  %v13699_v54 = vpack.c.bf16 %v1719_v35, %v1715_v52 }
 0x26b   :  { %15402 = vst [vmem:[#allocation117_spill] sm:$0xff] %v13693_v31  ;;  %15403 = vst [vmem:[#allocation118_spill] sm:$0xff] %v13695_v63  ;;  %v11008_v59 = vadd.f32 %v1205_v22, %v13388_v61  ;;  %v11072_v34 = vadd.f32 %v1591_v1, %v13391_v5  ;;  %v1207_v2 = vpop.f32.mrb[61].mxu0  ;;  %v1593_v13 = vpop.f32.mrb[61].mxu1 }
 0x26c   :  { %15404 = vst [vmem:[#allocation119_spill] sm:$0xff] %v13697_v3  ;;  %15405 = vst [vmem:[#allocation120_spill] sm:$0xff] %v13699_v54  ;;  %v11009_v8 = vadd.f32 %v1207_v2, %v13394_v6  ;;  %v11073_v42 = vadd.f32 %v1593_v13, %v13397_v11  ;;  %v1209_v60 = vpop.f32.mrb[62].mxu0  ;;  %v1595_v21 = vpop.f32.mrb[62].mxu1 }
 0x26d   :  { %v11010_v7 = vadd.f32 %v1209_v60, %v13388_v61  ;;  %v11074_v43 = vadd.f32 %v1595_v21, %v13391_v5  ;;  %v1211_v41 = vpop.f32.mrb[63].mxu0  ;;  %v1597_v23 = vpop.f32.mrb[63].mxu1  ;;  %v1720_v22 = vmax.f32 %v11008_v59, 0.0  ;;  %v1722_v1 = vmax.f32 %v11072_v34, 0.0  ;;  %v12393_v5 = vld [vmem:[#allocation8 + $0x380] ss:$12 sps:$4 sm:$0xff]  }
 0x26e   :  { %v11011_v52 = vadd.f32 %v1211_v41, %v13394_v6  ;;  %v11075_v35 = vadd.f32 %v1597_v23, %v13397_v11  ;;  %v1721_v2 = vmax.f32 %v11009_v8, 0.0  ;;  %v1723_v13 = vmax.f32 %v11073_v42, 0.0  ;;  %10287 = vmatpush3.bf16.msra.mxu1 %v12393_v5  ;;  %v12397_v60 = vld [vmem:[#allocation8 + $0x458] ss:$12 sps:$4 sm:$0xff]   ;;  %v12399_v8 = vld [vmem:[#allocation8 + $0x470] ss:$12 sps:$4 sm:$0xff]  }
 0x26f   :  { %v1724_v63 = vmax.f32 %v11010_v7, 0.0  ;;  %v1726_v54 = vmax.f32 %v11074_v43, 0.0  ;;  %2844 = vmatmul.mubr.bf16.gmra.mrb[104].mxu0 %v13301_v48  ;;  %3230 = vmatmul.mubr.bf16.gmra.mrb[104].mxu1 %v13301_v48  ;;  %v12398_v21 = vld [vmem:[#allocation8 + $0x398] ss:$12 sps:$4 sm:$0xff]   ;;  %v12437_v7 = vld [vmem:[#allocation8 + $0x548] ss:$12 sps:$4 sm:$0xff]  }
 0x270   :  { %v1725_v32 = vmax.f32 %v11011_v52, 0.0  ;;  %v1727_v61 = vmax.f32 %v11075_v35, 0.0  ;;  %2853 = vmatprep.mubr.bf16.mxu0 %v15361_v20  ;;  %3239 = vmatprep.mubr.bf16.mxu1 %v15361_v20  ;;  %v12396_v42 = vld [vmem:[#allocation8 + $0x46c] ss:$12 sps:$4 sm:$0xff]   ;;  %v12438_v48 = vld [vmem:[#allocation8 + $0x488] ss:$12 sps:$4 sm:$0xff]  }
 0x271   :  { %v13713_v6 = vpack.c.bf16 %v1724_v63, %v1720_v22  ;;  %v13715_v11 = vpack.c.bf16 %v1726_v54, %v1722_v1  ;;  %10288 = vmatprep.subr.bf16.mxu1 %v12397_v60  ;;  %v12394_v63 = vld [vmem:[#allocation8 + $0x468] ss:$12 sps:$4 sm:$0xff]   ;;  %4152 = vmatprep.subr.bf16.mxu0 %v12396_v42  ;;  %v12403_v54 = vld [vmem:[#allocation8 + $0x484] ss:$12 sps:$4 sm:$0xff]   ;;  %v2016_v43 = vld [vmem:[#allocation7 + $0x4] sm:$0xf] }
 0x272   :  { %v13717_v59 = vpack.c.bf16 %v1725_v32, %v1721_v2  ;;  %v13719_v34 = vpack.c.bf16 %v1727_v61, %v1723_v13  ;;  %10289 = vmatpush3.bf16.msra.mxu1 %v12398_v21  ;;  %v12400_v32 = vld [vmem:[#allocation8 + $0x3b0] ss:$12 sps:$4 sm:$0xff]   ;;  %4153 = vmatpush1.bf16.msra.mxu0 %v12394_v63  ;;  %v13740_v41 = vrot.slane %v2016_v43, %v13377_v46 }
 0x273   :  { %15406 = vst [vmem:[#allocation121_spill] sm:$0xff] %v13713_v6  ;;  %15407 = vst [vmem:[#allocation122_spill] sm:$0xff] %v13715_v11  ;;  %10290 = vmatprep.subr.bf16.mxu1 %v12399_v8  ;;  %4315 = vmatprep.subr.bf16.mxu0 %v12403_v54  ;;  %v13743_v23 = vrot.slane %v2016_v43, %v13379_v47  ;;  %v13746_v52 = vrot.slane %v2016_v43, %v13381_v56 }
 0x274   :  { %15408 = vst [vmem:[#allocation123_spill] sm:$0xff] %v13717_v59  ;;  %15409 = vst [vmem:[#allocation124_spill] sm:$0xff] %v13719_v34  ;;  %v13749_v35 = vrot.slane %v2016_v43, %v13383_v58 }
 0x276   :  { %10291 = vmatpush3.bf16.msra.mxu1 %v12400_v32 }
 0x277   :  { %2854 = vmatmul.mubr.bf16.gmra.mrb[108].mxu0 %v13307_v57  ;;  %3240 = vmatmul.mubr.bf16.gmra.mrb[108].mxu1 %v13307_v57  ;;  %v12401_v57 = vld [vmem:[#allocation8 + $0x480] ss:$12 sps:$4 sm:$0xff]  }
 0x278   :  { %2863 = vmatprep.mubr.bf16.mxu0 %v15361_v20  ;;  %3249 = vmatprep.mubr.bf16.mxu1 %v15361_v20 }
 0x279   :  { %10388 = vmatprep.subr.bf16.mxu1 %v12437_v7 }
 0x27f   :  { %2864 = vmatmul.mubr.bf16.gmra.mrb[112].mxu0 %v13313_v62  ;;  %3250 = vmatmul.mubr.bf16.gmra.mrb[112].mxu1 %v13313_v62 }
 0x280   :  { %2873 = vmatprep.mubr.bf16.mxu0 %v15361_v20  ;;  %3259 = vmatprep.mubr.bf16.mxu1 %v15361_v20 }
 0x287   :  { %2874 = vmatmul.mubr.bf16.gmra.mrb[116].mxu0 %v13319_v17  ;;  %3260 = vmatmul.mubr.bf16.gmra.mrb[116].mxu1 %v13319_v17 }
 0x288   :  { %2883 = vmatprep.mubr.bf16.mxu0 %v15361_v20  ;;  %3269 = vmatprep.mubr.bf16.mxu1 %v15361_v20 }
 0x28f   :  { %2884 = vmatmul.mubr.bf16.gmra.mrb[120].mxu0 %v13325_v26  ;;  %3270 = vmatmul.mubr.bf16.gmra.mrb[120].mxu1 %v13325_v26 }
 0x290   :  { %2893 = vmatprep.mubr.bf16.mxu0 %v15361_v20  ;;  %3279 = vmatprep.mubr.bf16.mxu1 %v15361_v20 }
 0x297   :  { %2894 = vmatmul.mubr.bf16.gmra.mrb[124].mxu0 %v13331_v33  ;;  %3280 = vmatmul.mubr.bf16.gmra.mrb[124].mxu1 %v13331_v33 }
 0x2f2   :  { %v2745_v22 = vpop.f32.mrb[64].mxu0  ;;  %v3131_v1 = vpop.f32.mrb[64].mxu1 }
 0x2f3   :  { %v11076_v2 = vadd.f32 %v2745_v22, %v13740_v41  ;;  %v11140_v13 = vadd.f32 %v3131_v1, %v13743_v23  ;;  %v2747_v61 = vpop.f32.mrb[65].mxu0  ;;  %v3133_v5 = vpop.f32.mrb[65].mxu1 }
 0x2f4   :  { %v11077_v60 = vadd.f32 %v2747_v61, %v13746_v52  ;;  %v11141_v21 = vadd.f32 %v3133_v5, %v13749_v35  ;;  %v2749_v42 = vpop.f32.mrb[66].mxu0  ;;  %v3135_v8 = vpop.f32.mrb[66].mxu1 }
 0x2f5   :  { %v11078_v63 = vadd.f32 %v2749_v42, %v13740_v41  ;;  %v11142_v32 = vadd.f32 %v3135_v8, %v13743_v23  ;;  %v2751_v54 = vpop.f32.mrb[67].mxu0  ;;  %v3137_v7 = vpop.f32.mrb[67].mxu1  ;;  %v3290_v58 = vmax.f32 %v11076_v2, 0.0  ;;  %v3292_v1 = vmax.f32 %v11140_v13, 0.0 }
 0x2f6   :  { %v11079_v43 = vadd.f32 %v2751_v54, %v13746_v52  ;;  %v11143_v22 = vadd.f32 %v3137_v7, %v13749_v35  ;;  %v3291_v46 = vmax.f32 %v11077_v60, 0.0  ;;  %v3293_v61 = vmax.f32 %v11141_v21, 0.0  ;;  %v12406_v60 = vld [vmem:[#allocation8 + $0x49c] ss:$12 sps:$4 sm:$0xff]   ;;  %v12442_v21 = vld [vmem:[#allocation8 + $0x560] ss:$12 sps:$4 sm:$0xff]  }
 0x2f7   :  { %v3294_v56 = vmax.f32 %v11078_v63, 0.0  ;;  %v3296_v47 = vmax.f32 %v11142_v32, 0.0 }
 0x2f8   :  { %v3295_v33 = vmax.f32 %v11079_v43, 0.0  ;;  %v3297_v5 = vmax.f32 %v11143_v22, 0.0 }
 0x2f9   :  { %v3418_v26 = vpack.c.bf16 %v3294_v56, %v3290_v58  ;;  %v13759_v17 = vpack.c.bf16 %v3296_v47, %v3292_v1  ;;  %v12404_v1 = vld [vmem:[#allocation8 + $0x498] ss:$12 sps:$4 sm:$0xff]  }
 0x2fa   :  { %v3419_v42 = vpack.c.bf16 %v3295_v33, %v3291_v46  ;;  %v2755_v62 = vpop.f32.mrb[68].mxu0  ;;  %v3141_v8 = vpop.f32.mrb[68].mxu1  ;;  %v13761_v20 = vpack.c.bf16 %v3297_v5, %v3293_v61  ;;  %v12409_v61 = vld [vmem:[#allocation8 + $0x4b4] ss:$12 sps:$4 sm:$0xff]  }
 0x2fb   :  { %v11080_v54 = vadd.f32 %v2755_v62, %v13740_v41  ;;  %v11144_v2 = vadd.f32 %v3141_v8, %v13743_v23  ;;  %v2757_v13 = vpop.f32.mrb[69].mxu0  ;;  %v3143_v63 = vpop.f32.mrb[69].mxu1  ;;  %v12443_v5 = vld [vmem:[#allocation8 + $0x4a0] ss:$12 sps:$4 sm:$0xff]  }
 0x2fc   :  { %v11081_v32 = vadd.f32 %v2757_v13, %v13746_v52  ;;  %v11145_v47 = vadd.f32 %v3143_v63, %v13749_v35  ;;  %v2759_v56 = vpop.f32.mrb[70].mxu0  ;;  %v3145_v33 = vpop.f32.mrb[70].mxu1  ;;  %4154 = vmatprep.mubr.bf16.mxu0 %v3419_v42  ;;  %4540 = vmatprep.mubr.bf16.mxu1 %v3419_v42 }
 0x2fd   :  { %v11082_v46 = vadd.f32 %v2759_v56, %v13740_v41  ;;  %v11146_v58 = vadd.f32 %v3145_v33, %v13743_v23  ;;  %v2761_v7 = vpop.f32.mrb[71].mxu0  ;;  %v3147_v62 = vpop.f32.mrb[71].mxu1  ;;  %4155 = vmatmul.mubr.bf16.vlgmr.msra.gmra.mrb[128].mxu0 %v3418_v26  ;;  %4541 = vmatmul.mubr.bf16.vlgmr.msra.gmra.mrb[128].mxu1 %v3418_v26  ;;  %v3298_v8 = vmax.f32 %v11080_v54, 0.0  ;;  %v3300_v13 = vmax.f32 %v11144_v2, 0.0  ;;  %v12447_v56 = vld [vmem:[#allocation8 + $0x578] ss:$12 sps:$4 sm:$0xff]  }
 0x2fe   :  { %v11083_v43 = vadd.f32 %v2761_v7, %v13746_v52  ;;  %v11147_v22 = vadd.f32 %v3147_v62, %v13749_v35  ;;  %4316 = vmatpush1.bf16.msra.mxu0 %v12401_v57  ;;  %10389 = vmatpush3.bf16.msra.mxu1 %v12438_v48  ;;  %v3299_v33 = vmax.f32 %v11081_v32, 0.0  ;;  %v3301_v11 = vmax.f32 %v11145_v47, 0.0  ;;  %v12407_v48 = vld [vmem:[#allocation8 + $0x4b0] ss:$12 sps:$4 sm:$0xff]   ;;  %v12448_v54 = vld [vmem:[#allocation8 + $0x4b8] ss:$12 sps:$4 sm:$0xff]  }
 0x2ff   :  { %v3302_v42 = vmax.f32 %v11082_v46, 0.0  ;;  %v3304_v63 = vmax.f32 %v11146_v58, 0.0  ;;  %4317 = vmatprep.subr.bf16.mxu0 %v12406_v60  ;;  %10390 = vmatprep.subr.bf16.mxu1 %v12442_v21  ;;  %v12412_v46 = vld [vmem:[#allocation8 + $0x4cc] ss:$12 sps:$4 sm:$0xff]   ;;  %v12449_v58 = vld [vmem:[#allocation8 + $0x590] ss:$12 sps:$4 sm:$0xff]  }
 0x300   :  { %v3303_v34 = vmax.f32 %v11083_v43, 0.0  ;;  %v3305_v26 = vmax.f32 %v11147_v22, 0.0 }
 0x301   :  { %v3422_v6 = vpack.c.bf16 %v3302_v42, %v3298_v8  ;;  %v13771_v7 = vpack.c.bf16 %v3304_v63, %v3300_v13  ;;  %v12410_v42 = vld [vmem:[#allocation8 + $0x4c8] ss:$12 sps:$4 sm:$0xff]   ;;  %v12415_v63 = vld [vmem:[#allocation8 + $0x4e4] ss:$12 sps:$4 sm:$0xff]  }
 0x302   :  { %v3423_v62 = vpack.c.bf16 %v3303_v34, %v3299_v33  ;;  %v2765_v57 = vpop.f32.mrb[72].mxu0  ;;  %v3151_v59 = vpop.f32.mrb[72].mxu1  ;;  %4318 = vmatpush1.bf16.msra.mxu0 %v12404_v1  ;;  %10391 = vmatpush3.bf16.msra.mxu1 %v12443_v5  ;;  %v13773_v2 = vpack.c.bf16 %v3305_v26, %v3301_v11 }
 0x303   :  { %v11084_v60 = vadd.f32 %v2765_v57, %v13740_v41  ;;  %v11148_v21 = vadd.f32 %v3151_v59, %v13743_v23  ;;  %v2767_v32 = vpop.f32.mrb[73].mxu0  ;;  %v3153_v47 = vpop.f32.mrb[73].mxu1  ;;  %4319 = vmatprep.subr.bf16.mxu0 %v12409_v61  ;;  %10392 = vmatprep.subr.bf16.mxu1 %v12447_v56  ;;  %v12450_v56 = vld [vmem:[#allocation8 + $0x4d0] ss:$12 sps:$4 sm:$0xff]  }
 0x304   :  { %v11085_v34 = vadd.f32 %v2767_v32, %v13746_v52  ;;  %v11149_v43 = vadd.f32 %v3153_v47, %v13749_v35  ;;  %v2769_v22 = vpop.f32.mrb[74].mxu0  ;;  %v3155_v1 = vpop.f32.mrb[74].mxu1  ;;  %4164 = vmatprep.mubr.bf16.mxu0 %v3423_v62  ;;  %4548 = vmatprep.mubr.bf16.mxu1 %v3423_v62  ;;  %v12454_v32 = vld [vmem:[#allocation8 + $0x5a8] ss:$12 sps:$4 sm:$0xff]  }
 0x305   :  { %v11086_v11 = vadd.f32 %v2769_v22, %v13740_v41  ;;  %v11150_v5 = vadd.f32 %v3155_v1, %v13743_v23  ;;  %v2771_v8 = vpop.f32.mrb[75].mxu0  ;;  %v3157_v59 = vpop.f32.mrb[75].mxu1  ;;  %4165 = vmatmul.mubr.bf16.gmra.mrb[132].mxu0 %v3422_v6  ;;  %4549 = vmatmul.mubr.bf16.gmra.mrb[132].mxu1 %v3422_v6  ;;  %v3306_v33 = vmax.f32 %v11084_v60, 0.0  ;;  %v3308_v26 = vmax.f32 %v11148_v21, 0.0  ;;  %v12455_v60 = vld [vmem:[#allocation8 + $0x4e8] ss:$12 sps:$4 sm:$0xff]  }
 0x306   :  { %v11087_v61 = vadd.f32 %v2771_v8, %v13746_v52  ;;  %v11151_v13 = vadd.f32 %v3157_v59, %v13749_v35  ;;  %4320 = vmatpush1.bf16.msra.mxu0 %v12407_v48  ;;  %10393 = vmatpush3.bf16.msra.mxu1 %v12448_v54  ;;  %v3307_v47 = vmax.f32 %v11085_v34, 0.0  ;;  %v3309_v22 = vmax.f32 %v11149_v43, 0.0  ;;  %v12413_v54 = vld [vmem:[#allocation8 + $0x4e0] ss:$12 sps:$4 sm:$0xff]  }
 0x307   :  { %v3310_v62 = vmax.f32 %v11086_v11, 0.0  ;;  %v3312_v57 = vmax.f32 %v11150_v5, 0.0  ;;  %4321 = vmatprep.subr.bf16.mxu0 %v12412_v46  ;;  %10394 = vmatprep.subr.bf16.mxu1 %v12449_v58  ;;  %v12418_v11 = vld [vmem:[#allocation8 + $0x4fc] ss:$12 sps:$4 sm:$0xff]   ;;  %v12456_v5 = vld [vmem:[#allocation8 + $0x5c0] ss:$12 sps:$4 sm:$0xff]  }
 0x308   :  { %v3311_v1 = vmax.f32 %v11087_v61, 0.0  ;;  %v3313_v6 = vmax.f32 %v11151_v13, 0.0 }
 0x309   :  { %v3426_v31 = vpack.c.bf16 %v3310_v62, %v3306_v33  ;;  %v13783_v8 = vpack.c.bf16 %v3312_v57, %v3308_v26 }
 0x30a   :  { %v3427_v59 = vpack.c.bf16 %v3311_v1, %v3307_v47  ;;  %v2775_v48 = vpop.f32.mrb[76].mxu0  ;;  %v3161_v3 = vpop.f32.mrb[76].mxu1  ;;  %4322 = vmatpush1.bf16.msra.mxu0 %v12410_v42  ;;  %10395 = vmatpush3.bf16.msra.mxu1 %v12450_v56  ;;  %v13785_v21 = vpack.c.bf16 %v3313_v6, %v3309_v22  ;;  %v12421_v47 = vld [vmem:[#allocation8 + $0x514] ss:$12 sps:$4 sm:$0xff]  }
 0x30b   :  { %v11088_v46 = vadd.f32 %v2775_v48, %v13740_v41  ;;  %v11152_v58 = vadd.f32 %v3161_v3, %v13743_v23  ;;  %v2777_v34 = vpop.f32.mrb[77].mxu0  ;;  %v3163_v43 = vpop.f32.mrb[77].mxu1  ;;  %4323 = vmatprep.subr.bf16.mxu0 %v12415_v63  ;;  %10396 = vmatprep.subr.bf16.mxu1 %v12454_v32  ;;  %v12416_v32 = vld [vmem:[#allocation8 + $0x4f8] ss:$12 sps:$4 sm:$0xff]   ;;  %v12457_v22 = vld [vmem:[#allocation8 + $0x500] ss:$12 sps:$4 sm:$0xff]  }
 0x30c   :  { %v11089_v61 = vadd.f32 %v2777_v34, %v13746_v52  ;;  %v11153_v13 = vadd.f32 %v3163_v43, %v13749_v35  ;;  %v2779_v42 = vpop.f32.mrb[78].mxu0  ;;  %v3165_v33 = vpop.f32.mrb[78].mxu1  ;;  %4174 = vmatprep.mubr.bf16.mxu0 %v3427_v59  ;;  %4556 = vmatprep.mubr.bf16.mxu1 %v3427_v59  ;;  %v12461_v34 = vld [vmem:[#allocation8 + $0x5d8] ss:$12 sps:$4 sm:$0xff]  }
 0x30d   :  { %v11090_v56 = vadd.f32 %v2779_v42, %v13740_v41  ;;  %v11154_v26 = vadd.f32 %v3165_v33, %v13743_v23  ;;  %v2781_v62 = vpop.f32.mrb[79].mxu0  ;;  %v3167_v3 = vpop.f32.mrb[79].mxu1  ;;  %4175 = vmatmul.mubr.bf16.gmra.mrb[136].mxu0 %v3426_v31  ;;  %4557 = vmatmul.mubr.bf16.gmra.mrb[136].mxu1 %v3426_v31  ;;  %v3314_v1 = vmax.f32 %v11088_v46, 0.0  ;;  %v3316_v6 = vmax.f32 %v11152_v58, 0.0  ;;  %v12462_v46 = vld [vmem:[#allocation8 + $0x518] ss:$12 sps:$4 sm:$0xff]  }
 0x30e   :  { %v11091_v63 = vadd.f32 %v2781_v62, %v13746_v52  ;;  %v11155_v57 = vadd.f32 %v3167_v3, %v13749_v35  ;;  %4324 = vmatpush1.bf16.msra.mxu0 %v12413_v54  ;;  %10397 = vmatpush3.bf16.msra.mxu1 %v12455_v60  ;;  %v3315_v43 = vmax.f32 %v11089_v61, 0.0  ;;  %v3317_v42 = vmax.f32 %v11153_v13, 0.0  ;;  %v12419_v60 = vld [vmem:[#allocation8 + $0x510] ss:$12 sps:$4 sm:$0xff]  }
 0x30f   :  { %v3318_v59 = vmax.f32 %v11090_v56, 0.0  ;;  %v3320_v48 = vmax.f32 %v11154_v26, 0.0  ;;  %4325 = vmatprep.subr.bf16.mxu0 %v12418_v11  ;;  %10398 = vmatprep.subr.bf16.mxu1 %v12456_v5  ;;  %v12424_v56 = vld [vmem:[#allocation8 + $0x52c] ss:$12 sps:$4 sm:$0xff]   ;;  %v12463_v26 = vld [vmem:[#allocation8 + $0x5f0] ss:$12 sps:$4 sm:$0xff]  }
 0x310   :  { %v3319_v33 = vmax.f32 %v11091_v63, 0.0  ;;  %v3321_v31 = vmax.f32 %v11155_v57, 0.0 }
 0x311   :  { %v3430_v38 = vpack.c.bf16 %v3318_v59, %v3314_v1  ;;  %v13795_v62 = vpack.c.bf16 %v3320_v48, %v3316_v6 }
 0x312   :  { %v3431_v3 = vpack.c.bf16 %v3319_v33, %v3315_v43  ;;  %v2785_v54 = vpop.f32.mrb[80].mxu0  ;;  %v3171_v12 = vpop.f32.mrb[80].mxu1  ;;  %4326 = vmatpush1.bf16.msra.mxu0 %v12416_v32  ;;  %10399 = vmatpush3.bf16.msra.mxu1 %v12457_v22  ;;  %v13797_v58 = vpack.c.bf16 %v3321_v31, %v3317_v42  ;;  %v12464_v43 = vld [vmem:[#allocation8 + $0x530] ss:$12 sps:$4 sm:$0xff]  }
 0x313   :  { %v11092_v11 = vadd.f32 %v2785_v54, %v13740_v41  ;;  %v11156_v5 = vadd.f32 %v3171_v12, %v13743_v23  ;;  %v2787_v61 = vpop.f32.mrb[81].mxu0  ;;  %v3173_v13 = vpop.f32.mrb[81].mxu1  ;;  %4327 = vmatprep.subr.bf16.mxu0 %v12421_v47  ;;  %10400 = vmatprep.subr.bf16.mxu1 %v12461_v34  ;;  %v12422_v34 = vld [vmem:[#allocation8 + $0x528] ss:$12 sps:$4 sm:$0xff]   ;;  %v12427_v54 = vld [vmem:[#allocation8 + $0x544] ss:$12 sps:$4 sm:$0xff]  }
 0x314   :  { %v11093_v63 = vadd.f32 %v2787_v61, %v13746_v52  ;;  %v11157_v57 = vadd.f32 %v3173_v13, %v13749_v35  ;;  %v2789_v32 = vpop.f32.mrb[82].mxu0  ;;  %v3175_v1 = vpop.f32.mrb[82].mxu1  ;;  %4184 = vmatprep.mubr.bf16.mxu0 %v3431_v3  ;;  %4564 = vmatprep.mubr.bf16.mxu1 %v3431_v3 }
 0x315   :  { %v11094_v22 = vadd.f32 %v2789_v32, %v13740_v41  ;;  %v11158_v6 = vadd.f32 %v3175_v1, %v13743_v23  ;;  %v2791_v59 = vpop.f32.mrb[83].mxu0  ;;  %v3177_v12 = vpop.f32.mrb[83].mxu1  ;;  %4185 = vmatmul.mubr.bf16.gmra.mrb[140].mxu0 %v3430_v38  ;;  %4565 = vmatmul.mubr.bf16.gmra.mrb[140].mxu1 %v3430_v38  ;;  %v3322_v42 = vmax.f32 %v11092_v11, 0.0  ;;  %v3324_v33 = vmax.f32 %v11156_v5, 0.0 }
 0x316   :  { %v11095_v47 = vadd.f32 %v2791_v59, %v13746_v52  ;;  %v11159_v48 = vadd.f32 %v3177_v12, %v13749_v35  ;;  %4328 = vmatpush1.bf16.msra.mxu0 %v12419_v60  ;;  %10401 = vmatpush3.bf16.msra.mxu1 %v12462_v46  ;;  %v3323_v61 = vmax.f32 %v11093_v63, 0.0  ;;  %v3325_v13 = vmax.f32 %v11157_v57, 0.0  ;;  %v12425_v46 = vld [vmem:[#allocation8 + $0x540] ss:$12 sps:$4 sm:$0xff]   ;;  %v12430_v57 = vld [vmem:[#allocation8 + $0x55c] ss:$12 sps:$4 sm:$0xff]  }
 0x317   :  { %v3326_v31 = vmax.f32 %v11094_v22, 0.0  ;;  %v3328_v3 = vmax.f32 %v11158_v6, 0.0  ;;  %4329 = vmatprep.subr.bf16.mxu0 %v12424_v56  ;;  %10402 = vmatprep.subr.bf16.mxu1 %v12463_v26 }
 0x318   :  { %v3327_v32 = vmax.f32 %v11095_v47, 0.0  ;;  %v3329_v1 = vmax.f32 %v11159_v48, 0.0 }
 0x319   :  { %v3434_v38 = vpack.c.bf16 %v3326_v31, %v3322_v42  ;;  %v13807_v36 = vpack.c.bf16 %v3328_v3, %v3324_v33 }
 0x31a   :  { %v3435_v59 = vpack.c.bf16 %v3327_v32, %v3323_v61  ;;  %v2795_v12 = vpop.f32.mrb[84].mxu0  ;;  %v3181_v60 = vpop.f32.mrb[84].mxu1  ;;  %4330 = vmatpush1.bf16.msra.mxu0 %v12422_v34  ;;  %10403 = vmatpush3.bf16.msra.mxu1 %v12464_v43  ;;  %v13809_v11 = vpack.c.bf16 %v3329_v1, %v3325_v13 }
 0x31b   :  { %v11096_v5 = vadd.f32 %v2795_v12, %v13740_v41  ;;  %v11160_v56 = vadd.f32 %v3181_v60, %v13743_v23  ;;  %v2797_v26 = vpop.f32.mrb[85].mxu0  ;;  %v3183_v63 = vpop.f32.mrb[85].mxu1  ;;  %4331 = vmatprep.subr.bf16.mxu0 %v12427_v54  ;;  %v12428_v54 = vld [vmem:[#allocation8 + $0x558] ss:$12 sps:$4 sm:$0xff]  }
 0x31c   :  { %v11097_v22 = vadd.f32 %v2797_v26, %v13746_v52  ;;  %v11161_v6 = vadd.f32 %v3183_v63, %v13749_v35  ;;  %v2799_v47 = vpop.f32.mrb[86].mxu0  ;;  %v3185_v48 = vpop.f32.mrb[86].mxu1  ;;  %4194 = vmatprep.mubr.bf16.mxu0 %v3435_v59  ;;  %4572 = vmatprep.mubr.bf16.mxu1 %v3435_v59  ;;  %v12433_v59 = vld [vmem:[#allocation8 + $0x574] ss:$12 sps:$4 sm:$0xff]  }
 0x31d   :  { %v11098_v34 = vadd.f32 %v2799_v47, %v13740_v41  ;;  %v11162_v43 = vadd.f32 %v3185_v48, %v13743_v23  ;;  %v2801_v42 = vpop.f32.mrb[87].mxu0  ;;  %v3187_v33 = vpop.f32.mrb[87].mxu1  ;;  %4195 = vmatmul.mubr.bf16.gmra.mrb[144].mxu0 %v3434_v38  ;;  %4573 = vmatmul.mubr.bf16.gmra.mrb[144].mxu1 %v3434_v38  ;;  %v3330_v61 = vmax.f32 %v11096_v5, 0.0  ;;  %v3332_v13 = vmax.f32 %v11160_v56, 0.0 }
 0x31e   :  { %v11099_v31 = vadd.f32 %v2801_v42, %v13746_v52  ;;  %v11163_v3 = vadd.f32 %v3187_v33, %v13749_v35  ;;  %4332 = vmatpush1.bf16.msra.mxu0 %v12425_v46  ;;  %v3331_v12 = vmax.f32 %v11097_v22, 0.0  ;;  %v3333_v60 = vmax.f32 %v11161_v6, 0.0  ;;  %v12431_v33 = vld [vmem:[#allocation8 + $0x570] ss:$12 sps:$4 sm:$0xff]   ;;  %v12436_v22 = vld [vmem:[#allocation8 + $0x58c] ss:$12 sps:$4 sm:$0xff]  }
 0x31f   :  { %v3334_v32 = vmax.f32 %v11098_v34, 0.0  ;;  %v3336_v1 = vmax.f32 %v11162_v43, 0.0  ;;  %4333 = vmatprep.subr.bf16.mxu0 %v12430_v57 }
 0x320   :  { %v3335_v26 = vmax.f32 %v11099_v31, 0.0  ;;  %v3337_v63 = vmax.f32 %v11163_v3, 0.0 }
 0x321   :  { %v3438_v47 = vpack.c.bf16 %v3334_v32, %v3330_v61  ;;  %v13819_v48 = vpack.c.bf16 %v3336_v1, %v3332_v13 }
 0x322   :  { %v3439_v38 = vpack.c.bf16 %v3335_v26, %v3331_v12  ;;  %v2805_v49 = vpop.f32.mrb[88].mxu0  ;;  %v3191_v42 = vpop.f32.mrb[88].mxu1  ;;  %4334 = vmatpush1.bf16.msra.mxu0 %v12428_v54  ;;  %v13821_v46 = vpack.c.bf16 %v3337_v63, %v3333_v60 }
 0x323   :  { %v11100_v5 = vadd.f32 %v2805_v49, %v13740_v41  ;;  %v11164_v56 = vadd.f32 %v3191_v42, %v13743_v23  ;;  %v2807_v57 = vpop.f32.mrb[89].mxu0  ;;  %v3193_v34 = vpop.f32.mrb[89].mxu1  ;;  %4335 = vmatprep.subr.bf16.mxu0 %v12433_v59  ;;  %v12434_v59 = vld [vmem:[#allocation8 + $0x588] ss:$12 sps:$4 sm:$0xff]  }
 0x324   :  { %v11101_v6 = vadd.f32 %v2807_v57, %v13746_v52  ;;  %v11165_v43 = vadd.f32 %v3193_v34, %v13749_v35  ;;  %v2809_v31 = vpop.f32.mrb[90].mxu0  ;;  %v3195_v3 = vpop.f32.mrb[90].mxu1  ;;  %4204 = vmatprep.mubr.bf16.mxu0 %v3439_v38  ;;  %4580 = vmatprep.mubr.bf16.mxu1 %v3439_v38  ;;  %v12441_v38 = vld [vmem:[#allocation8 + $0x5a4] ss:$12 sps:$4 sm:$0xff]  }
 0x325   :  { %v11102_v54 = vadd.f32 %v2809_v31, %v13740_v41  ;;  %v11166_v61 = vadd.f32 %v3195_v3, %v13743_v23  ;;  %v2811_v13 = vpop.f32.mrb[91].mxu0  ;;  %v3197_v49 = vpop.f32.mrb[91].mxu1  ;;  %4205 = vmatmul.mubr.bf16.gmra.mrb[148].mxu0 %v3438_v47  ;;  %4581 = vmatmul.mubr.bf16.gmra.mrb[148].mxu1 %v3438_v47  ;;  %v3338_v12 = vmax.f32 %v11100_v5, 0.0  ;;  %v3340_v60 = vmax.f32 %v11164_v56, 0.0 }
 0x326   :  { %v11103_v32 = vadd.f32 %v2811_v13, %v13746_v52  ;;  %v11167_v1 = vadd.f32 %v3197_v49, %v13749_v35  ;;  %4336 = vmatpush1.bf16.msra.mxu0 %v12431_v33  ;;  %v3339_v42 = vmax.f32 %v11101_v6, 0.0  ;;  %v3341_v57 = vmax.f32 %v11165_v43, 0.0  ;;  %v12439_v49 = vld [vmem:[#allocation8 + $0x5a0] ss:$12 sps:$4 sm:$0xff]   ;;  %v12446_v6 = vld [vmem:[#allocation8 + $0x5bc] ss:$12 sps:$4 sm:$0xff]  }
 0x327   :  { %v3342_v26 = vmax.f32 %v11102_v54, 0.0  ;;  %v3344_v63 = vmax.f32 %v11166_v61, 0.0  ;;  %4337 = vmatprep.subr.bf16.mxu0 %v12436_v22 }
 0x328   :  { %v3343_v34 = vmax.f32 %v11103_v32, 0.0  ;;  %v3345_v31 = vmax.f32 %v11167_v1, 0.0 }
 0x329   :  { %v3442_v3 = vpack.c.bf16 %v3342_v26, %v3338_v12  ;;  %v13831_v4 = vpack.c.bf16 %v3344_v63, %v3340_v60 }
 0x32a   :  { %v3443_v47 = vpack.c.bf16 %v3343_v34, %v3339_v42  ;;  %v2815_v28 = vpop.f32.mrb[92].mxu0  ;;  %v3201_v13 = vpop.f32.mrb[92].mxu1  ;;  %4338 = vmatpush1.bf16.msra.mxu0 %v12434_v59  ;;  %v13833_v33 = vpack.c.bf16 %v3345_v31, %v3341_v57 }
 0x32b   :  { %v11104_v5 = vadd.f32 %v2815_v28, %v13740_v41  ;;  %v11168_v56 = vadd.f32 %v3201_v13, %v13743_v23  ;;  %v2817_v22 = vpop.f32.mrb[93].mxu0  ;;  %v3203_v54 = vpop.f32.mrb[93].mxu1  ;;  %4339 = vmatprep.subr.bf16.mxu0 %v12441_v38  ;;  %v12444_v38 = vld [vmem:[#allocation8 + $0x5b8] ss:$12 sps:$4 sm:$0xff]  }
 0x32c   :  { %v11105_v43 = vadd.f32 %v2817_v22, %v13746_v52  ;;  %v11169_v61 = vadd.f32 %v3203_v54, %v13749_v35  ;;  %v2819_v32 = vpop.f32.mrb[94].mxu0  ;;  %v3205_v1 = vpop.f32.mrb[94].mxu1  ;;  %4214 = vmatprep.mubr.bf16.mxu0 %v3443_v47  ;;  %4588 = vmatprep.mubr.bf16.mxu1 %v3443_v47  ;;  %v12453_v47 = vld [vmem:[#allocation8 + $0x5d4] ss:$12 sps:$4 sm:$0xff]  }
 0x32d   :  { %v11106_v59 = vadd.f32 %v2819_v32, %v13740_v41  ;;  %v11170_v12 = vadd.f32 %v3205_v1, %v13743_v23  ;;  %v2821_v60 = vpop.f32.mrb[95].mxu0  ;;  %v3207_v28 = vpop.f32.mrb[95].mxu1  ;;  %4215 = vmatmul.mubr.bf16.gmra.mrb[152].mxu0 %v3442_v3  ;;  %4589 = vmatmul.mubr.bf16.gmra.mrb[152].mxu1 %v3442_v3  ;;  %v3346_v42 = vmax.f32 %v11104_v5, 0.0  ;;  %v3348_v57 = vmax.f32 %v11168_v56, 0.0 }
 0x32e   :  { %v11107_v26 = vadd.f32 %v2821_v60, %v13746_v52  ;;  %v11171_v63 = vadd.f32 %v3207_v28, %v13749_v35  ;;  %4340 = vmatpush1.bf16.msra.mxu0 %v12439_v49  ;;  %v3347_v13 = vmax.f32 %v11105_v43, 0.0  ;;  %v3349_v22 = vmax.f32 %v11169_v61, 0.0  ;;  %v12451_v28 = vld [vmem:[#allocation8 + $0x5d0] ss:$12 sps:$4 sm:$0xff]   ;;  %v12460_v43 = vld [vmem:[#allocation8 + $0x5ec] ss:$12 sps:$4 sm:$0xff]  }
 0x32f   :  { %v3350_v34 = vmax.f32 %v11106_v59, 0.0  ;;  %v3352_v31 = vmax.f32 %v11170_v12, 0.0  ;;  %4341 = vmatprep.subr.bf16.mxu0 %v12446_v6 }
 0x330   :  { %v3351_v54 = vmax.f32 %v11107_v26, 0.0  ;;  %v3353_v32 = vmax.f32 %v11171_v63, 0.0 }
 0x331   :  { %v3446_v1 = vpack.c.bf16 %v3350_v34, %v3346_v42  ;;  %v13843_v55 = vpack.c.bf16 %v3352_v31, %v3348_v57 }
 0x332   :  { %v3447_v3 = vpack.c.bf16 %v3351_v54, %v3347_v13  ;;  %v2825_v14 = vpop.f32.mrb[96].mxu0  ;;  %v3211_v60 = vpop.f32.mrb[96].mxu1  ;;  %4342 = vmatpush1.bf16.msra.mxu0 %v12444_v38  ;;  %v13845_v49 = vpack.c.bf16 %v3353_v32, %v3349_v22 }
 0x333   :  { %v11108_v5 = vadd.f32 %v2825_v14, %v13740_v41  ;;  %v11172_v56 = vadd.f32 %v3211_v60, %v13743_v23  ;;  %v2827_v6 = vpop.f32.mrb[97].mxu0  ;;  %v3213_v59 = vpop.f32.mrb[97].mxu1  ;;  %4343 = vmatprep.subr.bf16.mxu0 %v12453_v47  ;;  %v12458_v47 = vld [vmem:[#allocation8 + $0x5e8] ss:$12 sps:$4 sm:$0xff]  }
 0x334   :  { %v11109_v61 = vadd.f32 %v2827_v6, %v13746_v52  ;;  %v11173_v12 = vadd.f32 %v3213_v59, %v13749_v35  ;;  %v2829_v26 = vpop.f32.mrb[98].mxu0  ;;  %v3215_v63 = vpop.f32.mrb[98].mxu1  ;;  %4224 = vmatprep.mubr.bf16.mxu0 %v3447_v3  ;;  %4596 = vmatprep.mubr.bf16.mxu1 %v3447_v3  ;;  %v12467_v3 = vld [vmem:[#allocation8 + $0x4] ss:$12 sps:$4 sm:$0xff]  }
 0x335   :  { %v11110_v38 = vadd.f32 %v2829_v26, %v13740_v41  ;;  %v11174_v42 = vadd.f32 %v3215_v63, %v13743_v23  ;;  %v2831_v57 = vpop.f32.mrb[99].mxu0  ;;  %v3217_v14 = vpop.f32.mrb[99].mxu1  ;;  %4225 = vmatmul.mubr.bf16.gmra.mrb[156].mxu0 %v3446_v1  ;;  %4597 = vmatmul.mubr.bf16.gmra.mrb[156].mxu1 %v3446_v1  ;;  %v3354_v13 = vmax.f32 %v11108_v5, 0.0  ;;  %v3356_v22 = vmax.f32 %v11172_v56, 0.0 }
 0x336   :  { %v11111_v34 = vadd.f32 %v2831_v57, %v13746_v52  ;;  %v11175_v31 = vadd.f32 %v3217_v14, %v13749_v35  ;;  %4344 = vmatpush1.bf16.msra.mxu0 %v12451_v28  ;;  %v3355_v60 = vmax.f32 %v11109_v61, 0.0  ;;  %v3357_v6 = vmax.f32 %v11173_v12, 0.0 }
 0x337   :  { %v3358_v54 = vmax.f32 %v11110_v38, 0.0  ;;  %v3360_v32 = vmax.f32 %v11174_v42, 0.0  ;;  %4345 = vmatprep.subr.bf16.mxu0 %v12460_v43 }
 0x338   :  { %v3359_v59 = vmax.f32 %v11111_v34, 0.0  ;;  %v3361_v26 = vmax.f32 %v11175_v31, 0.0 }
 0x339   :  { %v3450_v63 = vpack.c.bf16 %v3358_v54, %v3354_v13  ;;  %v13855_v27 = vpack.c.bf16 %v3360_v32, %v3356_v22 }
 0x33a   :  { %v3451_v1 = vpack.c.bf16 %v3359_v59, %v3355_v60  ;;  %v2835_v37 = vpop.f32.mrb[100].mxu0  ;;  %v3221_v57 = vpop.f32.mrb[100].mxu1  ;;  %4346 = vmatpush1.bf16.msra.mxu0 %v12458_v47  ;;  %v13857_v14 = vpack.c.bf16 %v3361_v26, %v3357_v6 }
 0x33b   :  { %v11112_v28 = vadd.f32 %v2835_v37, %v13740_v41  ;;  %v11176_v5 = vadd.f32 %v3221_v57, %v13743_v23  ;;  %v2837_v56 = vpop.f32.mrb[101].mxu0  ;;  %v3223_v43 = vpop.f32.mrb[101].mxu1  ;;  %5342 = vmatprep.subr.bf16.mxu0 %v12467_v3 }
 0x33c   :  { %v11113_v61 = vadd.f32 %v2837_v56, %v13746_v52  ;;  %v11177_v12 = vadd.f32 %v3223_v43, %v13749_v35  ;;  %v2839_v38 = vpop.f32.mrb[102].mxu0  ;;  %v3225_v42 = vpop.f32.mrb[102].mxu1  ;;  %4234 = vmatprep.mubr.bf16.mxu0 %v3451_v1  ;;  %4604 = vmatprep.mubr.bf16.mxu1 %v3451_v1 }
 0x33d   :  { %v11114_v34 = vadd.f32 %v2839_v38, %v13740_v41  ;;  %v11178_v31 = vadd.f32 %v3225_v42, %v13743_v23  ;;  %v2841_v47 = vpop.f32.mrb[103].mxu0  ;;  %v3227_v13 = vpop.f32.mrb[103].mxu1  ;;  %4235 = vmatmul.mubr.bf16.gmra.mrb[160].mxu0 %v3450_v63  ;;  %4605 = vmatmul.mubr.bf16.gmra.mrb[160].mxu1 %v3450_v63  ;;  %v3362_v54 = vmax.f32 %v11112_v28, 0.0  ;;  %v3364_v32 = vmax.f32 %v11176_v5, 0.0 }
 0x33e   :  { %v11115_v37 = vadd.f32 %v2841_v47, %v13746_v52  ;;  %v11179_v22 = vadd.f32 %v3227_v13, %v13749_v35  ;;  %v3363_v6 = vmax.f32 %v11113_v61, 0.0  ;;  %v3365_v59 = vmax.f32 %v11177_v12, 0.0 }
 0x33f   :  { %v3366_v3 = vmax.f32 %v11114_v34, 0.0  ;;  %v3368_v60 = vmax.f32 %v11178_v31, 0.0 }
 0x340   :  { %v3367_v26 = vmax.f32 %v11115_v37, 0.0  ;;  %v3369_v1 = vmax.f32 %v11179_v22, 0.0 }
 0x341   :  { %v3454_v57 = vpack.c.bf16 %v3366_v3, %v3362_v54  ;;  %v13867_v56 = vpack.c.bf16 %v3368_v60, %v3364_v32 }
 0x342   :  { %v3455_v43 = vpack.c.bf16 %v3367_v26, %v3363_v6  ;;  %v2845_v38 = vpop.f32.mrb[104].mxu0  ;;  %v3231_v42 = vpop.f32.mrb[104].mxu1  ;;  %v13869_v53 = vpack.c.bf16 %v3369_v1, %v3365_v59 }
 0x343   :  { %v11116_v63 = vadd.f32 %v2845_v38, %v13740_v41  ;;  %v11180_v47 = vadd.f32 %v3231_v42, %v13743_v23  ;;  %v2847_v28 = vpop.f32.mrb[105].mxu0  ;;  %v3233_v5 = vpop.f32.mrb[105].mxu1 }
 0x344   :  { %v11117_v34 = vadd.f32 %v2847_v28, %v13746_v52  ;;  %v11181_v61 = vadd.f32 %v3233_v5, %v13749_v35  ;;  %v2849_v12 = vpop.f32.mrb[106].mxu0  ;;  %v3235_v31 = vpop.f32.mrb[106].mxu1  ;;  %4244 = vmatprep.mubr.bf16.mxu0 %v3455_v43  ;;  %4612 = vmatprep.mubr.bf16.mxu1 %v3455_v43 }
 0x345   :  { %v11118_v13 = vadd.f32 %v2849_v12, %v13740_v41  ;;  %v11182_v37 = vadd.f32 %v3235_v31, %v13743_v23  ;;  %v2851_v22 = vpop.f32.mrb[107].mxu0  ;;  %v3237_v54 = vpop.f32.mrb[107].mxu1  ;;  %4245 = vmatmul.mubr.bf16.gmra.mrb[164].mxu0 %v3454_v57  ;;  %4613 = vmatmul.mubr.bf16.gmra.mrb[164].mxu1 %v3454_v57  ;;  %v3370_v60 = vmax.f32 %v11116_v63, 0.0  ;;  %v3372_v6 = vmax.f32 %v11180_v47, 0.0 }
 0x346   :  { %v11119_v32 = vadd.f32 %v2851_v22, %v13746_v52  ;;  %v11183_v3 = vadd.f32 %v3237_v54, %v13749_v35  ;;  %v3371_v1 = vmax.f32 %v11117_v34, 0.0  ;;  %v3373_v38 = vmax.f32 %v11181_v61, 0.0 }
 0x347   :  { %v3374_v59 = vmax.f32 %v11118_v13, 0.0  ;;  %v3376_v26 = vmax.f32 %v11182_v37, 0.0 }
 0x348   :  { %v3375_v42 = vmax.f32 %v11119_v32, 0.0  ;;  %v3377_v43 = vmax.f32 %v11183_v3, 0.0 }
 0x349   :  { %v3458_v28 = vpack.c.bf16 %v3374_v59, %v3370_v60  ;;  %v13879_v5 = vpack.c.bf16 %v3376_v26, %v3372_v6 }
 0x34a   :  { %v3459_v12 = vpack.c.bf16 %v3375_v42, %v3371_v1  ;;  %v2855_v31 = vpop.f32.mrb[108].mxu0  ;;  %v3241_v40 = vpop.f32.mrb[108].mxu1  ;;  %v13881_v10 = vpack.c.bf16 %v3377_v43, %v3373_v38 }
 0x34b   :  { %v11120_v57 = vadd.f32 %v2855_v31, %v13740_v41  ;;  %v11184_v22 = vadd.f32 %v3241_v40, %v13743_v23  ;;  %v2857_v63 = vpop.f32.mrb[109].mxu0  ;;  %v3243_v47 = vpop.f32.mrb[109].mxu1 }
 0x34c   :  { %v11121_v13 = vadd.f32 %v2857_v63, %v13746_v52  ;;  %v11185_v34 = vadd.f32 %v3243_v47, %v13749_v35  ;;  %v2859_v61 = vpop.f32.mrb[110].mxu0  ;;  %v3245_v37 = vpop.f32.mrb[110].mxu1  ;;  %4254 = vmatprep.mubr.bf16.mxu0 %v3459_v12  ;;  %4620 = vmatprep.mubr.bf16.mxu1 %v3459_v12 }
 0x34d   :  { %v11122_v54 = vadd.f32 %v2859_v61, %v13740_v41  ;;  %v11186_v32 = vadd.f32 %v3245_v37, %v13743_v23  ;;  %v2861_v3 = vpop.f32.mrb[111].mxu0  ;;  %v3247_v60 = vpop.f32.mrb[111].mxu1  ;;  %4255 = vmatmul.mubr.bf16.gmra.mrb[168].mxu0 %v3458_v28  ;;  %4621 = vmatmul.mubr.bf16.gmra.mrb[168].mxu1 %v3458_v28  ;;  %v3378_v59 = vmax.f32 %v11120_v57, 0.0  ;;  %v3380_v26 = vmax.f32 %v11184_v22, 0.0 }
 0x34e   :  { %v11123_v40 = vadd.f32 %v2861_v3, %v13746_v52  ;;  %v11187_v6 = vadd.f32 %v3247_v60, %v13749_v35  ;;  %v3379_v42 = vmax.f32 %v11121_v13, 0.0  ;;  %v3381_v43 = vmax.f32 %v11185_v34, 0.0 }
 0x34f   :  { %v3382_v1 = vmax.f32 %v11122_v54, 0.0  ;;  %v3384_v38 = vmax.f32 %v11186_v32, 0.0 }
 0x350   :  { %v3383_v31 = vmax.f32 %v11123_v40, 0.0  ;;  %v3385_v12 = vmax.f32 %v11187_v6, 0.0 }
 0x351   :  { %v3462_v63 = vpack.c.bf16 %v3382_v1, %v3378_v59  ;;  %v13891_v47 = vpack.c.bf16 %v3384_v38, %v3380_v26 }
 0x352   :  { %v3463_v61 = vpack.c.bf16 %v3383_v31, %v3379_v42  ;;  %v2865_v37 = vpop.f32.mrb[112].mxu0  ;;  %v3251_v51 = vpop.f32.mrb[112].mxu1  ;;  %v13893_v19 = vpack.c.bf16 %v3385_v12, %v3381_v43 }
 0x353   :  { %v11124_v28 = vadd.f32 %v2865_v37, %v13740_v41  ;;  %v11188_v3 = vadd.f32 %v3251_v51, %v13743_v23  ;;  %v2867_v57 = vpop.f32.mrb[113].mxu0  ;;  %v3253_v22 = vpop.f32.mrb[113].mxu1 }
 0x354   :  { %v11125_v54 = vadd.f32 %v2867_v57, %v13746_v52  ;;  %v11189_v13 = vadd.f32 %v3253_v22, %v13749_v35  ;;  %v2869_v34 = vpop.f32.mrb[114].mxu0  ;;  %v3255_v32 = vpop.f32.mrb[114].mxu1  ;;  %4264 = vmatprep.mubr.bf16.mxu0 %v3463_v61  ;;  %4628 = vmatprep.mubr.bf16.mxu1 %v3463_v61 }
 0x355   :  { %v11126_v60 = vadd.f32 %v2869_v34, %v13740_v41  ;;  %v11190_v40 = vadd.f32 %v3255_v32, %v13743_v23  ;;  %v2871_v6 = vpop.f32.mrb[115].mxu0  ;;  %v3257_v59 = vpop.f32.mrb[115].mxu1  ;;  %4265 = vmatmul.mubr.bf16.gmra.mrb[172].mxu0 %v3462_v63  ;;  %4629 = vmatmul.mubr.bf16.gmra.mrb[172].mxu1 %v3462_v63  ;;  %v3386_v1 = vmax.f32 %v11124_v28, 0.0  ;;  %v3388_v38 = vmax.f32 %v11188_v3, 0.0 }
 0x356   :  { %v11127_v51 = vadd.f32 %v2871_v6, %v13746_v52  ;;  %v11191_v26 = vadd.f32 %v3257_v59, %v13749_v35  ;;  %v3387_v31 = vmax.f32 %v11125_v54, 0.0  ;;  %v3389_v12 = vmax.f32 %v11189_v13, 0.0 }
 0x357   :  { %v3390_v42 = vmax.f32 %v11126_v60, 0.0  ;;  %v3392_v43 = vmax.f32 %v11190_v40, 0.0  ;;  %v12501_v60 = vld [vmem:[#allocation8 + $0xc8] ss:$12 sps:$4 sm:$0xff]  }
 0x358   :  { %v3391_v37 = vmax.f32 %v11127_v51, 0.0  ;;  %v3393_v61 = vmax.f32 %v11191_v26, 0.0  ;;  %10500 = vmatprep.subr.bf16.mxu1 %v12501_v60 }
 0x359   :  { %v3466_v57 = vpack.c.bf16 %v3390_v42, %v3386_v1  ;;  %v13903_v22 = vpack.c.bf16 %v3392_v43, %v3388_v38 }
 0x35a   :  { %v3467_v34 = vpack.c.bf16 %v3391_v37, %v3387_v31  ;;  %v2875_v32 = vpop.f32.mrb[116].mxu0  ;;  %v3261_v50 = vpop.f32.mrb[116].mxu1  ;;  %v13905_v9 = vpack.c.bf16 %v3393_v61, %v3389_v12 }
 0x35b   :  { %v11128_v63 = vadd.f32 %v2875_v32, %v13740_v41  ;;  %v11192_v6 = vadd.f32 %v3261_v50, %v13743_v23  ;;  %v2877_v28 = vpop.f32.mrb[117].mxu0  ;;  %v3263_v3 = vpop.f32.mrb[117].mxu1 }
 0x35c   :  { %v11129_v54 = vadd.f32 %v2877_v28, %v13746_v52  ;;  %v11193_v13 = vadd.f32 %v3263_v3, %v13749_v35  ;;  %v2879_v40 = vpop.f32.mrb[118].mxu0  ;;  %v3265_v59 = vpop.f32.mrb[118].mxu1  ;;  %4274 = vmatprep.mubr.bf16.mxu0 %v3467_v34  ;;  %4636 = vmatprep.mubr.bf16.mxu1 %v3467_v34 }
 0x35d   :  { %v11130_v51 = vadd.f32 %v2879_v40, %v13740_v41  ;;  %v11194_v26 = vadd.f32 %v3265_v59, %v13743_v23  ;;  %v2881_v1 = vpop.f32.mrb[119].mxu0  ;;  %v3267_v38 = vpop.f32.mrb[119].mxu1  ;;  %4275 = vmatmul.mubr.bf16.gmra.mrb[176].mxu0 %v3466_v57  ;;  %4637 = vmatmul.mubr.bf16.gmra.mrb[176].mxu1 %v3466_v57  ;;  %v3394_v43 = vmax.f32 %v11128_v63, 0.0  ;;  %v3396_v31 = vmax.f32 %v11192_v6, 0.0 }
 0x35e   :  { %v11131_v50 = vadd.f32 %v2881_v1, %v13746_v52  ;;  %v11195_v42 = vadd.f32 %v3267_v38, %v13749_v35  ;;  %v3395_v61 = vmax.f32 %v11129_v54, 0.0  ;;  %v3397_v32 = vmax.f32 %v11193_v13, 0.0 }
 0x35f   :  { %v3398_v12 = vmax.f32 %v11130_v51, 0.0  ;;  %v3400_v37 = vmax.f32 %v11194_v26, 0.0 }
 0x360   :  { %v3399_v34 = vmax.f32 %v11131_v50, 0.0  ;;  %v3401_v28 = vmax.f32 %v11195_v42, 0.0 }
 0x361   :  { %v3470_v3 = vpack.c.bf16 %v3398_v12, %v3394_v43  ;;  %v13915_v40 = vpack.c.bf16 %v3400_v37, %v3396_v31 }
 0x362   :  { %v3471_v59 = vpack.c.bf16 %v3399_v34, %v3395_v61  ;;  %v2885_v0 = vpop.f32.mrb[120].mxu0  ;;  %v3271_v18 = vpop.f32.mrb[120].mxu1  ;;  %v13917_v57 = vpack.c.bf16 %v3401_v28, %v3397_v32 }
 0x363   :  { %v11132_v1 = vadd.f32 %v2885_v0, %v13740_v41  ;;  %v11196_v60 = vadd.f32 %v3271_v18, %v13743_v23  ;;  %v2887_v63 = vpop.f32.mrb[121].mxu0  ;;  %v3273_v6 = vpop.f32.mrb[121].mxu1 }
 0x364   :  { %v11133_v51 = vadd.f32 %v2887_v63, %v13746_v52  ;;  %v11197_v54 = vadd.f32 %v3273_v6, %v13749_v35  ;;  %v2889_v13 = vpop.f32.mrb[122].mxu0  ;;  %v3275_v26 = vpop.f32.mrb[122].mxu1  ;;  %4284 = vmatprep.mubr.bf16.mxu0 %v3471_v59  ;;  %4644 = vmatprep.mubr.bf16.mxu1 %v3471_v59 }
 0x365   :  { %v11134_v38 = vadd.f32 %v2889_v13, %v13740_v41  ;;  %v11198_v50 = vadd.f32 %v3275_v26, %v13743_v23  ;;  %v2891_v42 = vpop.f32.mrb[123].mxu0  ;;  %v3277_v43 = vpop.f32.mrb[123].mxu1  ;;  %4285 = vmatmul.mubr.bf16.gmra.mrb[180].mxu0 %v3470_v3  ;;  %4645 = vmatmul.mubr.bf16.gmra.mrb[180].mxu1 %v3470_v3  ;;  %v3402_v31 = vmax.f32 %v11132_v1, 0.0  ;;  %v3404_v12 = vmax.f32 %v11196_v60, 0.0 }
 0x366   :  { %v11135_v18 = vadd.f32 %v2891_v42, %v13746_v52  ;;  %v11199_v0 = vadd.f32 %v3277_v43, %v13749_v35  ;;  %v3403_v32 = vmax.f32 %v11133_v51, 0.0  ;;  %v3405_v34 = vmax.f32 %v11197_v54, 0.0 }
 0x367   :  { %v3406_v37 = vmax.f32 %v11134_v38, 0.0  ;;  %v3408_v61 = vmax.f32 %v11198_v50, 0.0 }
 0x368   :  { %v3407_v28 = vmax.f32 %v11135_v18, 0.0  ;;  %v3409_v59 = vmax.f32 %v11199_v0, 0.0 }
 0x369   :  { %v3474_v63 = vpack.c.bf16 %v3406_v37, %v3402_v31  ;;  %v13927_v6 = vpack.c.bf16 %v3408_v61, %v3404_v12 }
 0x36a   :  { %v3475_v13 = vpack.c.bf16 %v3407_v28, %v3403_v32  ;;  %v2895_v26 = vpop.f32.mrb[124].mxu0  ;;  %v3281_v16 = vpop.f32.mrb[124].mxu1  ;;  %v13929_v24 = vpack.c.bf16 %v3409_v59, %v3405_v34 }
 0x36b   :  { %v11136_v3 = vadd.f32 %v2895_v26, %v13740_v41  ;;  %v11200_v42 = vadd.f32 %v3281_v16, %v13743_v23  ;;  %v2897_v1 = vpop.f32.mrb[125].mxu0  ;;  %v3283_v60 = vpop.f32.mrb[125].mxu1 }
 0x36c   :  { %v11137_v38 = vadd.f32 %v2897_v1, %v13746_v52  ;;  %v11201_v51 = vadd.f32 %v3283_v60, %v13749_v35  ;;  %v2899_v54 = vpop.f32.mrb[126].mxu0  ;;  %v3285_v50 = vpop.f32.mrb[126].mxu1  ;;  %4294 = vmatprep.mubr.bf16.mxu0 %v3475_v13  ;;  %4652 = vmatprep.mubr.bf16.mxu1 %v3475_v13 }
 0x36d   :  { %v11138_v43 = vadd.f32 %v2899_v54, %v13740_v41  ;;  %v11202_v18 = vadd.f32 %v3285_v50, %v13743_v23  ;;  %v2901_v0 = vpop.f32.mrb[127].mxu0  ;;  %v3287_v31 = vpop.f32.mrb[127].mxu1  ;;  %4295 = vmatmul.mubr.bf16.gmra.mrb[184].mxu0 %v3474_v63  ;;  %4653 = vmatmul.mubr.bf16.gmra.mrb[184].mxu1 %v3474_v63  ;;  %v3410_v37 = vmax.f32 %v11136_v3, 0.0  ;;  %v3412_v61 = vmax.f32 %v11200_v42, 0.0  ;;  %v12470_v63 = vld [vmem:[#allocation8 + $0x1c] ss:$12 sps:$4 sm:$0xff]  }
 0x36e   :  { %v11139_v16 = vadd.f32 %v2901_v0, %v13746_v52  ;;  %v11203_v12 = vadd.f32 %v3287_v31, %v13749_v35  ;;  %v3411_v28 = vmax.f32 %v11137_v38, 0.0  ;;  %v3413_v59 = vmax.f32 %v11201_v51, 0.0  ;;  %v12465_v52 = vld [vmem:[#allocation8] ss:$12 sps:$4 sm:$0xff]   ;;  %v12502_v35 = vld [vmem:[#allocation8 + $0x8] ss:$12 sps:$4 sm:$0xff]  }
 0x36f   :  { %v3414_v32 = vmax.f32 %v11138_v43, 0.0  ;;  %v3416_v34 = vmax.f32 %v11202_v18, 0.0  ;;  %v12506_v3 = vld [vmem:[#allocation8 + $0xe0] ss:$12 sps:$4 sm:$0xff]   ;;  %v12468_v42 = vld [vmem:[#allocation8 + $0x18] ss:$12 sps:$4 sm:$0xff]  }
 0x370   :  { %v3415_v26 = vmax.f32 %v11139_v16, 0.0  ;;  %v3417_v13 = vmax.f32 %v11203_v12, 0.0  ;;  %v12507_v38 = vld [vmem:[#allocation8 + $0x20] ss:$12 sps:$4 sm:$0xff]   ;;  %v12471_v54 = vld [vmem:[#allocation8 + $0x30] ss:$12 sps:$4 sm:$0xff]  }
 0x371   :  { %v3478_v1 = vpack.c.bf16 %v3414_v32, %v3410_v37  ;;  %v13939_v41 = vpack.c.bf16 %v3416_v34, %v3412_v61  ;;  %v12473_v51 = vld [vmem:[#allocation8 + $0x34] ss:$12 sps:$4 sm:$0xff]   ;;  %v12512_v50 = vld [vmem:[#allocation8 + $0x38] ss:$12 sps:$4 sm:$0xff]   ;;  %v12514_v18 = vld [vmem:[#allocation8 + $0x50] ss:$12 sps:$4 sm:$0xff]  }
 0x372   :  { %v3479_v23 = vpack.c.bf16 %v3415_v26, %v3411_v28  ;;  %v13941_v60 = vpack.c.bf16 %v3417_v13, %v3413_v59  ;;  %v12476_v43 = vld [vmem:[#allocation8 + $0x4c] ss:$12 sps:$4 sm:$0xff]   ;;  %v12479_v0 = vld [vmem:[#allocation8 + $0x64] ss:$12 sps:$4 sm:$0xff]   ;;  %v12518_v31 = vld [vmem:[#allocation8 + $0x128] ss:$12 sps:$4 sm:$0xff]  }
 0x373   :  { %v12477_v16 = vld [vmem:[#allocation8 + $0x60] ss:$12 sps:$4 sm:$0xff]   ;;  %v12519_v12 = vld [vmem:[#allocation8 + $0x68] ss:$12 sps:$4 sm:$0xff]   ;;  %v12525_v34 = vld [vmem:[#allocation8 + $0x158] ss:$12 sps:$4 sm:$0xff]  }
 0x374   :  { %4304 = vmatprep.mubr.bf16.mxu0 %v3479_v23  ;;  %4660 = vmatprep.mubr.bf16.mxu1 %v3479_v23  ;;  %v12482_v37 = vld [vmem:[#allocation8 + $0x7c] ss:$12 sps:$4 sm:$0xff]   ;;  %v12521_v61 = vld [vmem:[#allocation8 + $0x80] ss:$12 sps:$4 sm:$0xff]   ;;  %v12526_v59 = vld [vmem:[#allocation8 + $0x98] ss:$12 sps:$4 sm:$0xff]  }
 0x375   :  { %4305 = vmatmul.mubr.bf16.gmra.mrb[188].mxu0 %v3478_v1  ;;  %4661 = vmatmul.mubr.bf16.gmra.mrb[188].mxu1 %v3478_v1  ;;  %v12485_v32 = vld [vmem:[#allocation8 + $0x94] ss:$12 sps:$4 sm:$0xff]   ;;  %v12483_v28 = vld [vmem:[#allocation8 + $0x90] ss:$12 sps:$4 sm:$0xff]   ;;  %v12488_v26 = vld [vmem:[#allocation8 + $0xac] ss:$12 sps:$4 sm:$0xff]  }
 0x376   :  { %4347 = vmatprep.mubr.bf16.mxu0 %v13761_v20  ;;  %4701 = vmatprep.mubr.bf16.mxu1 %v13761_v20  ;;  %v12511_v20 = vld [vmem:[#allocation8 + $0xf8] ss:$12 sps:$4 sm:$0xff]   ;;  %v12528_v13 = vld [vmem:[#allocation8 + $0xb0] ss:$12 sps:$4 sm:$0xff]   ;;  %v12489_v23 = vld [vmem:[#allocation8 + $0xc0] ss:$12 sps:$4 sm:$0xff]  }
 0x377   :  { %v12491_v1 = vld [vmem:[#allocation8 + $0xc4] ss:$12 sps:$4 sm:$0xff]  }
 0x37d   :  { %4348 = vmatmul.mubr.bf16.vlgmr.msra.gmra.mrb[128].mxu0 %v13759_v17  ;;  %4702 = vmatmul.mubr.bf16.vlgmr.msra.gmra.mrb[192].mxu1 %v13759_v17  ;;  %v12513_v17 = vld [vmem:[#allocation8 + $0x110] ss:$12 sps:$4 sm:$0xff]  }
 0x37e   :  { %4357 = vmatprep.mubr.bf16.mxu0 %v13773_v2  ;;  %4709 = vmatprep.mubr.bf16.mxu1 %v13773_v2  ;;  %v12474_v2 = vld [vmem:[#allocation8 + $0x48] ss:$12 sps:$4 sm:$0xff]  }
 0x37f   :  { %5343 = vmatpush1.bf16.msra.mxu0 %v12465_v52  ;;  %10501 = vmatpush3.bf16.msra.mxu1 %v12502_v35  ;;  %v12494_v52 = vld [vmem:[#allocation8 + $0xdc] ss:$12 sps:$4 sm:$0xff]  }
 0x380   :  { %5344 = vmatprep.subr.bf16.mxu0 %v12470_v63  ;;  %10502 = vmatprep.subr.bf16.mxu1 %v12506_v3  ;;  %v12495_v35 = vld [vmem:[#allocation8 + $0xf0] ss:$12 sps:$4 sm:$0xff]   ;;  %v12500_v63 = vld [vmem:[#allocation8 + $0x10c] ss:$12 sps:$4 sm:$0xff]  }
 0x381   :  { %v12503_v3 = vld [vmem:[#allocation8 + $0x120] ss:$12 sps:$4 sm:$0xff]  }
 0x383   :  { %5345 = vmatpush1.bf16.msra.mxu0 %v12468_v42  ;;  %10503 = vmatpush3.bf16.msra.mxu1 %v12507_v38  ;;  %v12510_v42 = vld [vmem:[#allocation8 + $0x13c] ss:$12 sps:$4 sm:$0xff]  }
 0x384   :  { %5346 = vmatprep.subr.bf16.mxu0 %v12473_v51  ;;  %10504 = vmatprep.subr.bf16.mxu1 %v12511_v20  ;;  %v12515_v38 = vld [vmem:[#allocation8 + $0x150] ss:$12 sps:$4 sm:$0xff]   ;;  %v12524_v51 = vld [vmem:[#allocation8 + $0x16c] ss:$12 sps:$4 sm:$0xff]  }
 0x385   :  { %4358 = vmatmul.mubr.bf16.gmra.mrb[132].mxu0 %v13771_v7  ;;  %4710 = vmatmul.mubr.bf16.gmra.mrb[196].mxu1 %v13771_v7  ;;  %v12520_v7 = vld [vmem:[#allocation8 + $0x140] ss:$12 sps:$4 sm:$0xff]  }
 0x386   :  { %4367 = vmatprep.mubr.bf16.mxu0 %v13785_v21  ;;  %4717 = vmatprep.mubr.bf16.mxu1 %v13785_v21  ;;  %v12480_v21 = vld [vmem:[#allocation8 + $0x78] ss:$12 sps:$4 sm:$0xff]  }
 0x387   :  { %5347 = vmatpush1.bf16.msra.mxu0 %v12471_v54  ;;  %10505 = vmatpush3.bf16.msra.mxu1 %v12512_v50 }
 0x388   :  { %5348 = vmatprep.subr.bf16.mxu0 %v12476_v43  ;;  %10506 = vmatprep.subr.bf16.mxu1 %v12513_v17  ;;  %v12565_v17 = vld [vmem:[#allocation8 + $0x248] ss:$12 sps:$4 sm:$0xff]  }
 0x38b   :  { %5349 = vmatpush1.bf16.msra.mxu0 %v12474_v2  ;;  %10507 = vmatpush3.bf16.msra.mxu1 %v12514_v18 }
 0x38c   :  { %5350 = vmatprep.subr.bf16.mxu0 %v12479_v0  ;;  %10508 = vmatprep.subr.bf16.mxu1 %v12518_v31 }
 0x38d   :  { %4368 = vmatmul.mubr.bf16.gmra.mrb[136].mxu0 %v13783_v8  ;;  %4718 = vmatmul.mubr.bf16.gmra.mrb[200].mxu1 %v13783_v8  ;;  %v12527_v8 = vld [vmem:[#allocation8 + $0x170] ss:$12 sps:$4 sm:$0xff]  }
 0x38e   :  { %4377 = vmatprep.mubr.bf16.mxu0 %v13797_v58  ;;  %4725 = vmatprep.mubr.bf16.mxu1 %v13797_v58  ;;  %v12486_v58 = vld [vmem:[#allocation8 + $0xa8] ss:$12 sps:$4 sm:$0xff]  }
 0x38f   :  { %5351 = vmatpush1.bf16.msra.mxu0 %v12477_v16  ;;  %10509 = vmatpush3.bf16.msra.mxu1 %v12519_v12 }
 0x390   :  { %5352 = vmatprep.subr.bf16.mxu0 %v12482_v37  ;;  %10510 = vmatprep.subr.bf16.mxu1 %v12520_v7 }
 0x393   :  { %5353 = vmatpush1.bf16.msra.mxu0 %v12480_v21  ;;  %10511 = vmatpush3.bf16.msra.mxu1 %v12521_v61 }
 0x394   :  { %5354 = vmatprep.subr.bf16.mxu0 %v12485_v32  ;;  %10512 = vmatprep.subr.bf16.mxu1 %v12525_v34 }
 0x395   :  { %4378 = vmatmul.mubr.bf16.gmra.mrb[140].mxu0 %v13795_v62  ;;  %4726 = vmatmul.mubr.bf16.gmra.mrb[204].mxu1 %v13795_v62  ;;  %v12492_v62 = vld [vmem:[#allocation8 + $0xd8] ss:$12 sps:$4 sm:$0xff]  }
 0x396   :  { %4387 = vmatprep.mubr.bf16.mxu0 %v13809_v11  ;;  %4733 = vmatprep.mubr.bf16.mxu1 %v13809_v11  ;;  %v12497_v11 = vld [vmem:[#allocation8 + $0xf4] ss:$12 sps:$4 sm:$0xff]  }
 0x397   :  { %5355 = vmatpush1.bf16.msra.mxu0 %v12483_v28  ;;  %10513 = vmatpush3.bf16.msra.mxu1 %v12526_v59 }
 0x398   :  { %5356 = vmatprep.subr.bf16.mxu0 %v12488_v26  ;;  %10514 = vmatprep.subr.bf16.mxu1 %v12527_v8  ;;  %v12529_v26 = vld [vmem:[#allocation8 + $0x180] ss:$12 sps:$4 sm:$0xff]  }
 0x39b   :  { %5357 = vmatpush1.bf16.msra.mxu0 %v12486_v58  ;;  %10515 = vmatpush3.bf16.msra.mxu1 %v12528_v13  ;;  %v12534_v58 = vld [vmem:[#allocation8 + $0x19c] ss:$12 sps:$4 sm:$0xff]  }
 0x39c   :  { %5358 = vmatprep.subr.bf16.mxu0 %v12491_v1  ;;  %10612 = vmatprep.subr.bf16.mxu1 %v12565_v17  ;;  %v12566_v1 = vld [vmem:[#allocation8 + $0x188] ss:$12 sps:$4 sm:$0xff]  }
 0x39d   :  { %4388 = vmatmul.mubr.bf16.gmra.mrb[144].mxu0 %v13807_v36  ;;  %4734 = vmatmul.mubr.bf16.gmra.mrb[208].mxu1 %v13807_v36  ;;  %v12498_v36 = vld [vmem:[#allocation8 + $0x108] ss:$12 sps:$4 sm:$0xff]  }
 0x39e   :  { %4397 = vmatprep.mubr.bf16.mxu0 %v13821_v46  ;;  %4741 = vmatprep.mubr.bf16.mxu1 %v13821_v46  ;;  %v12505_v46 = vld [vmem:[#allocation8 + $0x124] ss:$12 sps:$4 sm:$0xff]  }
 0x39f   :  { %5359 = vmatpush1.bf16.msra.mxu0 %v12489_v23  ;;  %v12537_v23 = vld [vmem:[#allocation8 + $0x1b4] ss:$12 sps:$4 sm:$0xff]  }
 0x3a0   :  { %5360 = vmatprep.subr.bf16.mxu0 %v12494_v52 }
 0x3a3   :  { %5361 = vmatpush1.bf16.msra.mxu0 %v12492_v62  ;;  %v12571_v62 = vld [vmem:[#allocation8 + $0x1a0] ss:$12 sps:$4 sm:$0xff]  }
 0x3a4   :  { %5362 = vmatprep.subr.bf16.mxu0 %v12497_v11 }
 0x3a5   :  { %4398 = vmatmul.mubr.bf16.gmra.mrb[148].mxu0 %v13819_v48  ;;  %4742 = vmatmul.mubr.bf16.gmra.mrb[212].mxu1 %v13819_v48  ;;  %v12508_v48 = vld [vmem:[#allocation8 + $0x138] ss:$12 sps:$4 sm:$0xff]  }
 0x3a6   :  { %4407 = vmatprep.mubr.bf16.mxu0 %v13833_v33  ;;  %4749 = vmatprep.mubr.bf16.mxu1 %v13833_v33  ;;  %v12517_v33 = vld [vmem:[#allocation8 + $0x154] ss:$12 sps:$4 sm:$0xff]  }
 0x3a7   :  { %5363 = vmatpush1.bf16.msra.mxu0 %v12495_v35 }
 0x3a8   :  { %5364 = vmatprep.subr.bf16.mxu0 %v12500_v63 }
 0x3ab   :  { %5365 = vmatpush1.bf16.msra.mxu0 %v12498_v36 }
 0x3ac   :  { %5366 = vmatprep.subr.bf16.mxu0 %v12505_v46  ;;  %v12575_v46 = vld [vmem:[#allocation8 + $0x278] ss:$12 sps:$4 sm:$0xff]  }
 0x3ad   :  { %4408 = vmatmul.mubr.bf16.gmra.mrb[152].mxu0 %v13831_v4  ;;  %4750 = vmatmul.mubr.bf16.gmra.mrb[216].mxu1 %v13831_v4  ;;  %v12522_v4 = vld [vmem:[#allocation8 + $0x168] ss:$12 sps:$4 sm:$0xff]  }
 0x3ae   :  { %4417 = vmatprep.mubr.bf16.mxu0 %v13845_v49  ;;  %4757 = vmatprep.mubr.bf16.mxu1 %v13845_v49  ;;  %v12531_v49 = vld [vmem:[#allocation8 + $0x184] ss:$12 sps:$4 sm:$0xff]  }
 0x3af   :  { %5367 = vmatpush1.bf16.msra.mxu0 %v12503_v3 }
 0x3b0   :  { %5368 = vmatprep.subr.bf16.mxu0 %v12510_v42  ;;  %v12540_v42 = vld [vmem:[#allocation8 + $0x1cc] ss:$12 sps:$4 sm:$0xff]  }
 0x3b3   :  { %5369 = vmatpush1.bf16.msra.mxu0 %v12508_v48  ;;  %v12577_v48 = vld [vmem:[#allocation8 + $0x290] ss:$12 sps:$4 sm:$0xff]  }
 0x3b4   :  { %5370 = vmatprep.subr.bf16.mxu0 %v12517_v33  ;;  %v12538_v33 = vld [vmem:[#allocation8 + $0x1c8] ss:$12 sps:$4 sm:$0xff]  }
 0x3b5   :  { %4418 = vmatmul.mubr.bf16.gmra.mrb[156].mxu0 %v13843_v55  ;;  %4758 = vmatmul.mubr.bf16.gmra.mrb[220].mxu1 %v13843_v55 }
 0x3b6   :  { %4427 = vmatprep.mubr.bf16.mxu0 %v13857_v14  ;;  %4765 = vmatprep.mubr.bf16.mxu1 %v13857_v14 }
 0x3b7   :  { %5371 = vmatpush1.bf16.msra.mxu0 %v12515_v38 }
 0x3b8   :  { %5372 = vmatprep.subr.bf16.mxu0 %v12524_v51  ;;  %v12543_v51 = vld [vmem:[#allocation8 + $0x1e4] ss:$12 sps:$4 sm:$0xff]  }
 0x3bb   :  { %5373 = vmatpush1.bf16.msra.mxu0 %v12522_v4  ;;  %v12578_v4 = vld [vmem:[#allocation8 + $0x1d0] ss:$12 sps:$4 sm:$0xff]  }
 0x3bc   :  { %5535 = vmatprep.subr.bf16.mxu0 %v12531_v49 }
 0x3bd   :  { %4428 = vmatmul.mubr.bf16.gmra.mrb[160].mxu0 %v13855_v27  ;;  %4766 = vmatmul.mubr.bf16.gmra.mrb[224].mxu1 %v13855_v27 }
 0x3be   :  { %4437 = vmatprep.mubr.bf16.mxu0 %v13869_v53  ;;  %4773 = vmatprep.mubr.bf16.mxu1 %v13869_v53 }
 0x3c5   :  { %4438 = vmatmul.mubr.bf16.gmra.mrb[164].mxu0 %v13867_v56  ;;  %4774 = vmatmul.mubr.bf16.gmra.mrb[228].mxu1 %v13867_v56 }
 0x3c6   :  { %4447 = vmatprep.mubr.bf16.mxu0 %v13881_v10  ;;  %4781 = vmatprep.mubr.bf16.mxu1 %v13881_v10 }
 0x3cd   :  { %4448 = vmatmul.mubr.bf16.gmra.mrb[168].mxu0 %v13879_v5  ;;  %4782 = vmatmul.mubr.bf16.gmra.mrb[232].mxu1 %v13879_v5 }
 0x3ce   :  { %4457 = vmatprep.mubr.bf16.mxu0 %v13893_v19  ;;  %4789 = vmatprep.mubr.bf16.mxu1 %v13893_v19 }
 0x3d0   :  { %v10292_v27 = vpop.f32.mrb[128].mxu1 }
 0x3d1   :  { %v10293_v55 = vpop.f32.mrb[129].mxu1 }
 0x3d2   :  { %v13989_v14 = vadd.f32 %v10293_v55, %v10292_v27  ;;  %v10295_v53 = vpop.f32.mrb[130].mxu1 }
 0x3d3   :  { %v10296_v20 = vpop.f32.mrb[131].mxu1 }
 0x3d4   :  { %v13991_v54 = vadd.f32 %v10296_v20, %v10295_v53  ;;  %v12582_v20 = vld [vmem:[#allocation8 + $0x2a8] ss:$12 sps:$4 sm:$0xff]  }
 0x3d5   :  { %4458 = vmatmul.mubr.bf16.gmra.mrb[172].mxu0 %v13891_v47  ;;  %4790 = vmatmul.mubr.bf16.gmra.mrb[236].mxu1 %v13891_v47 }
 0x3d6   :  { %4467 = vmatprep.mubr.bf16.mxu0 %v13905_v9  ;;  %4797 = vmatprep.mubr.bf16.mxu1 %v13905_v9 }
 0x3d8   :  { %v10298_v10 = vpop.f32.mrb[132].mxu1 }
 0x3d9   :  { %v10299_v56 = vpop.f32.mrb[133].mxu1 }
 0x3da   :  { %v13997_v5 = vadd.f32 %v10299_v56, %v10298_v10  ;;  %v10301_v19 = vpop.f32.mrb[134].mxu1  ;;  %v12583_v56 = vld [vmem:[#allocation8 + $0x1e8] ss:$12 sps:$4 sm:$0xff]  }
 0x3db   :  { %v10302_v50 = vpop.f32.mrb[135].mxu1 }
 0x3dc   :  { %v13999_v43 = vadd.f32 %v10302_v50, %v10301_v19  ;;  %v12584_v19 = vld [vmem:[#allocation8 + $0x2c0] ss:$12 sps:$4 sm:$0xff]   ;;  %v12544_v50 = vld [vmem:[#allocation8 + $0x1f8] ss:$12 sps:$4 sm:$0xff]  }
 0x3dd   :  { %4468 = vmatmul.mubr.bf16.gmra.mrb[176].mxu0 %v13903_v22  ;;  %4798 = vmatmul.mubr.bf16.gmra.mrb[240].mxu1 %v13903_v22 }
 0x3de   :  { %4477 = vmatprep.mubr.bf16.mxu0 %v13917_v57  ;;  %4805 = vmatprep.mubr.bf16.mxu1 %v13917_v57 }
 0x3e0   :  { %v10304_v47 = vpop.f32.mrb[136].mxu1 }
 0x3e1   :  { %v10305_v9 = vpop.f32.mrb[137].mxu1 }
 0x3e2   :  { %v14005_v2 = vadd.f32 %v10305_v9, %v10304_v47  ;;  %v10307_v18 = vpop.f32.mrb[138].mxu1  ;;  %v12549_v47 = vld [vmem:[#allocation8 + $0x214] ss:$12 sps:$4 sm:$0xff]  }
 0x3e3   :  { %v10308_v0 = vpop.f32.mrb[139].mxu1  ;;  %v12585_v9 = vld [vmem:[#allocation8 + $0x200] ss:$12 sps:$4 sm:$0xff]  }
 0x3e4   :  { %v14007_v31 = vadd.f32 %v10308_v0, %v10307_v18 }
 0x3e5   :  { %4478 = vmatmul.mubr.bf16.gmra.mrb[180].mxu0 %v13915_v40  ;;  %4806 = vmatmul.mubr.bf16.gmra.mrb[244].mxu1 %v13915_v40 }
 0x3e6   :  { %4487 = vmatprep.mubr.bf16.mxu0 %v13929_v24  ;;  %4813 = vmatprep.mubr.bf16.mxu1 %v13929_v24 }
 0x3e8   :  { %v10310_v22 = vpop.f32.mrb[140].mxu1 }
 0x3e9   :  { %v10311_v16 = vpop.f32.mrb[141].mxu1 }
 0x3ea   :  { %v14013_v57 = vadd.f32 %v10311_v16, %v10310_v22  ;;  %v10313_v12 = vpop.f32.mrb[142].mxu1 }
 0x3eb   :  { %v10314_v37 = vpop.f32.mrb[143].mxu1 }
 0x3ec   :  { %v14015_v7 = vadd.f32 %v10314_v37, %v10313_v12  ;;  %v12589_v12 = vld [vmem:[#allocation8 + $0x2d8] ss:$12 sps:$4 sm:$0xff]  }
 0x3ed   :  { %4488 = vmatmul.mubr.bf16.gmra.mrb[184].mxu0 %v13927_v6  ;;  %4814 = vmatmul.mubr.bf16.gmra.mrb[248].mxu1 %v13927_v6 }
 0x3ee   :  { %4497 = vmatprep.mubr.bf16.mxu0 %v13941_v60  ;;  %4821 = vmatprep.mubr.bf16.mxu1 %v13941_v60 }
 0x3f0   :  { %v10316_v40 = vpop.f32.mrb[144].mxu1 }
 0x3f1   :  { %v10317_v21 = vpop.f32.mrb[145].mxu1 }
 0x3f2   :  { %v14021_v61 = vadd.f32 %v10317_v21, %v10316_v40  ;;  %v10319_v24 = vpop.f32.mrb[146].mxu1  ;;  %v12590_v40 = vld [vmem:[#allocation8 + $0x218] ss:$12 sps:$4 sm:$0xff]  }
 0x3f3   :  { %v10320_v32 = vpop.f32.mrb[147].mxu1  ;;  %v15410_v21 = vld [vmem:[#allocation74_spill] sm:$0xff] }
 0x3f4   :  { %v14023_v34 = vadd.f32 %v10320_v32, %v10319_v24  ;;  %v12591_v24 = vld [vmem:[#allocation8 + $0x2f0] ss:$12 sps:$4 sm:$0xff]  }
 0x3f5   :  { %4498 = vmatmul.mubr.bf16.gmra.mrb[188].mxu0 %v13939_v41  ;;  %4822 = vmatmul.mubr.bf16.gmra.mrb[252].mxu1 %v13939_v41  ;;  %v12570_v41 = vld [vmem:[#allocation8 + $0x260] ss:$12 sps:$4 sm:$0xff]  }
 0x3f6   :  { %5374 = vmatprep.mubr.bf16.mxu0 %v13417_v45  ;;  %5760 = vmatprep.mubr.bf16.mxu1 %v13417_v45  ;;  %v12532_v45 = vld [vmem:[#allocation8 + $0x198] ss:$12 sps:$4 sm:$0xff]   ;;  %v15411_v32 = vld [vmem:[#allocation79_spill] sm:$0xff] }
 0x3f8   :  { %v10322_v6 = vpop.f32.mrb[148].mxu1 }
 0x3f9   :  { %v10323_v28 = vpop.f32.mrb[149].mxu1 }
 0x3fa   :  { %v14029_v59 = vadd.f32 %v10323_v28, %v10322_v6  ;;  %v10325_v60 = vpop.f32.mrb[150].mxu1  ;;  %v12550_v6 = vld [vmem:[#allocation8 + $0x228] ss:$12 sps:$4 sm:$0xff]  }
 0x3fb   :  { %v10326_v8 = vpop.f32.mrb[151].mxu1 }
 0x3fc   :  { %v14031_v13 = vadd.f32 %v10326_v8, %v10325_v60  ;;  %v12555_v60 = vld [vmem:[#allocation8 + $0x244] ss:$12 sps:$4 sm:$0xff]  }
 0x3fd   :  { %5375 = vmatmul.mubr.bf16.vlgmr.msra.gmra.mrb[128].mxu0 %v13413_v29  ;;  %5761 = vmatmul.mubr.bf16.vlgmr.msra.gmra.mrb[0].mxu1 %v13413_v29  ;;  %v12535_v29 = vld [vmem:[#allocation8 + $0x1b0] ss:$12 sps:$4 sm:$0xff]  }
 0x3fe   :  { %5384 = vmatprep.mubr.bf16.mxu0 %v13437_v25  ;;  %5536 = vmatpush1.bf16.msra.mxu0 %v12529_v26  ;;  %v12592_v26 = vld [vmem:[#allocation8 + $0x230] ss:$12 sps:$4 sm:$0xff]  }
 0x3ff   :  { %5768 = vmatprep.mubr.bf16.mxu1 %v13437_v25  ;;  %5537 = vmatprep.subr.bf16.mxu0 %v12534_v58  ;;  %v12576_v25 = vld [vmem:[#allocation8 + $0x1b8] ss:$12 sps:$4 sm:$0xff]  }
 0x400   :  { %v10328_v52 = vpop.f32.mrb[152].mxu1  ;;  %10613 = vmatpush3.bf16.msra.mxu1 %v12566_v1 }
 0x401   :  { %v10329_v11 = vpop.f32.mrb[153].mxu1  ;;  %10614 = vmatprep.subr.bf16.mxu1 %v12570_v41 }
 0x402   :  { %v14037_v35 = vadd.f32 %v10329_v11, %v10328_v52  ;;  %v10331_v63 = vpop.f32.mrb[154].mxu1  ;;  %5538 = vmatpush1.bf16.msra.mxu0 %v12532_v45  ;;  %v12553_v45 = vld [vmem:[#allocation8 + $0x240] ss:$12 sps:$4 sm:$0xff]   ;;  %v12558_v52 = vld [vmem:[#allocation8 + $0x25c] ss:$12 sps:$4 sm:$0xff]  }
 0x403   :  { %v10332_v36 = vpop.f32.mrb[155].mxu1  ;;  %5539 = vmatprep.subr.bf16.mxu0 %v12537_v23  ;;  %v15413_v11 = vld [vmem:[#allocation83_spill] sm:$0xff] }
 0x404   :  { %v14039_v3 = vadd.f32 %v10332_v36, %v10331_v63  ;;  %10615 = vmatpush3.bf16.msra.mxu1 %v12571_v62  ;;  %v15412_v62 = vld [vmem:[#allocation77_spill] sm:$0xff]  ;;  %v12556_v63 = vld [vmem:[#allocation8 + $0x258] ss:$12 sps:$4 sm:$0xff]  }
 0x405   :  { %5385 = vmatmul.mubr.bf16.gmra.mrb[132].mxu0 %v13433_v15  ;;  %5769 = vmatmul.mubr.bf16.gmra.mrb[4].mxu1 %v13433_v15  ;;  %v12541_v15 = vld [vmem:[#allocation8 + $0x1e0] ss:$12 sps:$4 sm:$0xff]  }
 0x406   :  { %5394 = vmatprep.mubr.bf16.mxu0 %v13457_v39  ;;  %5776 = vmatprep.mubr.bf16.mxu1 %v13457_v39  ;;  %v12546_v39 = vld [vmem:[#allocation8 + $0x1fc] ss:$12 sps:$4 sm:$0xff]  }
 0x407   :  { %5540 = vmatpush1.bf16.msra.mxu0 %v12535_v29  ;;  %10616 = vmatprep.subr.bf16.mxu1 %v12575_v46  ;;  %v12561_v29 = vld [vmem:[#allocation8 + $0x274] ss:$12 sps:$4 sm:$0xff]  }
 0x408   :  { %v10334_v38 = vpop.f32.mrb[156].mxu1  ;;  %5541 = vmatprep.subr.bf16.mxu0 %v12540_v42  ;;  %10617 = vmatpush3.bf16.msra.mxu1 %v12576_v25 }
 0x409   :  { %v10335_v49 = vpop.f32.mrb[157].mxu1  ;;  %10618 = vmatprep.subr.bf16.mxu1 %v12577_v48 }
 0x40a   :  { %v14045_v27 = vadd.f32 %v10335_v49, %v10334_v38  ;;  %v10337_v55 = vpop.f32.mrb[158].mxu1  ;;  %v15415_v49 = vld [vmem:[#allocation87_spill] sm:$0xff] }
 0x40b   :  { %v10338_v53 = vpop.f32.mrb[159].mxu1  ;;  %5542 = vmatpush1.bf16.msra.mxu0 %v12538_v33  ;;  %v12559_v33 = vld [vmem:[#allocation8 + $0x270] ss:$12 sps:$4 sm:$0xff]  }
 0x40c   :  { %v14047_v10 = vadd.f32 %v10338_v53, %v10337_v55  ;;  %5543 = vmatprep.subr.bf16.mxu0 %v12543_v51  ;;  %10619 = vmatpush3.bf16.msra.mxu1 %v12578_v4  ;;  %v12564_v51 = vld [vmem:[#allocation8 + $0x28c] ss:$12 sps:$4 sm:$0xff]   ;;  %v12562_v55 = vld [vmem:[#allocation8 + $0x288] ss:$12 sps:$4 sm:$0xff]  }
 0x40d   :  { %5395 = vmatmul.mubr.bf16.gmra.mrb[136].mxu0 %v13453_v30  ;;  %5777 = vmatmul.mubr.bf16.gmra.mrb[8].mxu1 %v13453_v30  ;;  %v12547_v30 = vld [vmem:[#allocation8 + $0x210] ss:$12 sps:$4 sm:$0xff]  }
 0x40e   :  { %5404 = vmatprep.mubr.bf16.mxu0 %v13477_v44  ;;  %5784 = vmatprep.mubr.bf16.mxu1 %v13477_v44  ;;  %v12552_v44 = vld [vmem:[#allocation8 + $0x22c] ss:$12 sps:$4 sm:$0xff]  }
 0x40f   :  { %5544 = vmatpush1.bf16.msra.mxu0 %v12541_v15  ;;  %10620 = vmatprep.subr.bf16.mxu1 %v12582_v20  ;;  %v15414_v4 = vld [vmem:[#allocation81_spill] sm:$0xff] }
 0x410   :  { %v10340_v17 = vpop.f32.mrb[160].mxu1  ;;  %5545 = vmatprep.subr.bf16.mxu0 %v12546_v39  ;;  %10621 = vmatpush3.bf16.msra.mxu1 %v12583_v56  ;;  %v12569_v15 = vld [vmem:[#allocation8 + $0x2a4] ss:$12 sps:$4 sm:$0xff]  }
 0x411   :  { %v10341_v18 = vpop.f32.mrb[161].mxu1  ;;  %10622 = vmatprep.subr.bf16.mxu1 %v12584_v19 }
 0x412   :  { %v14053_v0 = vadd.f32 %v10341_v18, %v10340_v17  ;;  %v10343_v22 = vpop.f32.mrb[162].mxu1  ;;  %v15417_v18 = vld [vmem:[#allocation91_spill] sm:$0xff] }
 0x413   :  { %v10344_v16 = vpop.f32.mrb[163].mxu1  ;;  %5546 = vmatpush1.bf16.msra.mxu0 %v12544_v50  ;;  %v12567_v50 = vld [vmem:[#allocation8 + $0x2a0] ss:$12 sps:$4 sm:$0xff]  }
 0x414   :  { %v14055_v37 = vadd.f32 %v10344_v16, %v10343_v22  ;;  %5547 = vmatprep.subr.bf16.mxu0 %v12549_v47  ;;  %10623 = vmatpush3.bf16.msra.mxu1 %v12585_v9  ;;  %v12574_v47 = vld [vmem:[#allocation8 + $0x2bc] ss:$12 sps:$4 sm:$0xff]   ;;  %v15416_v9 = vld [vmem:[#allocation85_spill] sm:$0xff]  ;;  %v12572_v22 = vld [vmem:[#allocation8 + $0x2b8] ss:$12 sps:$4 sm:$0xff]  }
 0x415   :  { %5405 = vmatmul.mubr.bf16.gmra.mrb[140].mxu0 %v15410_v21  ;;  %5785 = vmatmul.mubr.bf16.gmra.mrb[12].mxu1 %v15410_v21 }
 0x416   :  { %5414 = vmatprep.mubr.bf16.mxu0 %v15411_v32  ;;  %5792 = vmatprep.mubr.bf16.mxu1 %v15411_v32 }
 0x417   :  { %5548 = vmatpush1.bf16.msra.mxu0 %v12547_v30  ;;  %10624 = vmatprep.subr.bf16.mxu1 %v12589_v12  ;;  %v12581_v30 = vld [vmem:[#allocation8 + $0x2d4] ss:$12 sps:$4 sm:$0xff]  }
 0x418   :  { %v10346_v28 = vpop.f32.mrb[164].mxu1  ;;  %5549 = vmatprep.subr.bf16.mxu0 %v12552_v44  ;;  %10625 = vmatpush3.bf16.msra.mxu1 %v12590_v40 }
 0x419   :  { %v10347_v8 = vpop.f32.mrb[165].mxu1  ;;  %10626 = vmatprep.subr.bf16.mxu1 %v12591_v24  ;;  %v12579_v24 = vld [vmem:[#allocation8 + $0x2d0] ss:$12 sps:$4 sm:$0xff]  }
 0x41a   :  { %v14061_v58 = vadd.f32 %v10347_v8, %v10346_v28  ;;  %v10349_v1 = vpop.f32.mrb[166].mxu1  ;;  %v15418_v28 = vld [vmem:[#allocation89_spill] sm:$0xff] }
 0x41b   :  { %v10350_v41 = vpop.f32.mrb[167].mxu1  ;;  %5550 = vmatpush1.bf16.msra.mxu0 %v12550_v6  ;;  %v12588_v6 = vld [vmem:[#allocation8 + $0x2ec] ss:$12 sps:$4 sm:$0xff]  }
 0x41c   :  { %v14063_v23 = vadd.f32 %v10350_v41, %v10349_v1  ;;  %5551 = vmatprep.subr.bf16.mxu0 %v12555_v60  ;;  %10627 = vmatpush3.bf16.msra.mxu1 %v12592_v26  ;;  %v15419_v60 = vld [vmem:[#allocation95_spill] sm:$0xff]  ;;  %v12586_v26 = vld [vmem:[#allocation8 + $0x2e8] ss:$12 sps:$4 sm:$0xff]  }
 0x41d   :  { %5415 = vmatmul.mubr.bf16.gmra.mrb[144].mxu0 %v15412_v62  ;;  %5793 = vmatmul.mubr.bf16.gmra.mrb[16].mxu1 %v15412_v62  ;;  %v12595_v1 = vld [vmem:[#allocation5 + $0x24] ss:$48 sps:$4 sm:$0xff]  }
 0x41e   :  { %5424 = vmatprep.mubr.bf16.mxu0 %v15413_v11  ;;  %5800 = vmatprep.mubr.bf16.mxu1 %v15413_v11 }
 0x41f   :  { %5552 = vmatpush1.bf16.msra.mxu0 %v12553_v45 }
 0x420   :  { %v10352_v36 = vpop.f32.mrb[168].mxu1  ;;  %5553 = vmatprep.subr.bf16.mxu0 %v12558_v52 }
 0x421   :  { %v10353_v46 = vpop.f32.mrb[169].mxu1 }
 0x422   :  { %v14069_v42 = vadd.f32 %v10353_v46, %v10352_v36  ;;  %v10355_v25 = vpop.f32.mrb[170].mxu1  ;;  %v15420_v36 = vld [vmem:[#allocation93_spill] sm:$0xff] }
 0x423   :  { %v10356_v48 = vpop.f32.mrb[171].mxu1  ;;  %5554 = vmatpush1.bf16.msra.mxu0 %v12556_v63  ;;  %v12622_v63 = vld [vmem:[#allocation5 + $0x2c] ss:$48 sps:$4 sm:$0xff]  }
 0x424   :  { %v14071_v38 = vadd.f32 %v10356_v48, %v10355_v25  ;;  %5555 = vmatprep.subr.bf16.mxu0 %v12561_v29  ;;  %v15421_v29 = vld [vmem:[#allocation99_spill] sm:$0xff]  ;;  %7034 = vmatprep.subr.bf16.mxu1 %v12622_v63 }
 0x425   :  { %5425 = vmatmul.mubr.bf16.gmra.mrb[148].mxu0 %v15414_v4  ;;  %5801 = vmatmul.mubr.bf16.gmra.mrb[20].mxu1 %v15414_v4  ;;  %v15429_v63 = vld [vmem:[#allocation115_spill] sm:$0xff] }
 0x426   :  { %5434 = vmatprep.mubr.bf16.mxu0 %v15415_v49  ;;  %5808 = vmatprep.mubr.bf16.mxu1 %v15415_v49  ;;  %v15422_v49 = vld [vmem:[#allocation97_spill] sm:$0xff] }
 0x427   :  { %5556 = vmatpush1.bf16.msra.mxu0 %v12559_v33 }
 0x428   :  { %v10358_v53 = vpop.f32.mrb[172].mxu1  ;;  %5557 = vmatprep.subr.bf16.mxu0 %v12564_v51 }
 0x429   :  { %v10359_v20 = vpop.f32.mrb[173].mxu1 }
 0x42a   :  { %v14077_v39 = vadd.f32 %v10359_v20, %v10358_v53  ;;  %v10361_v56 = vpop.f32.mrb[174].mxu1 }
 0x42b   :  { %v10362_v19 = vpop.f32.mrb[175].mxu1  ;;  %5558 = vmatpush1.bf16.msra.mxu0 %v12562_v55  ;;  %v15423_v55 = vld [vmem:[#allocation103_spill] sm:$0xff] }
 0x42c   :  { %v14079_v17 = vadd.f32 %v10362_v19, %v10361_v56  ;;  %5559 = vmatprep.subr.bf16.mxu0 %v12569_v15 }
 0x42d   :  { %5435 = vmatmul.mubr.bf16.gmra.mrb[152].mxu0 %v15416_v9  ;;  %5809 = vmatmul.mubr.bf16.gmra.mrb[24].mxu1 %v15416_v9  ;;  %v15425_v9 = vld [vmem:[#allocation107_spill] sm:$0xff] }
 0x42e   :  { %5444 = vmatprep.mubr.bf16.mxu0 %v15417_v18  ;;  %5816 = vmatprep.mubr.bf16.mxu1 %v15417_v18 }
 0x42f   :  { %5560 = vmatpush1.bf16.msra.mxu0 %v12567_v50 }
 0x430   :  { %v10364_v16 = vpop.f32.mrb[176].mxu1  ;;  %5561 = vmatprep.subr.bf16.mxu0 %v12574_v47  ;;  %v15424_v47 = vld [vmem:[#allocation101_spill] sm:$0xff] }
 0x431   :  { %v10365_v12 = vpop.f32.mrb[177].mxu1 }
 0x432   :  { %v14085_v44 = vadd.f32 %v10365_v12, %v10364_v16  ;;  %v10367_v40 = vpop.f32.mrb[178].mxu1 }
 0x433   :  { %v10368_v21 = vpop.f32.mrb[179].mxu1  ;;  %5562 = vmatpush1.bf16.msra.mxu0 %v12572_v22 }
 0x434   :  { %v14087_v32 = vadd.f32 %v10368_v21, %v10367_v40  ;;  %5563 = vmatprep.subr.bf16.mxu0 %v12581_v30 }
 0x435   :  { %5445 = vmatmul.mubr.bf16.gmra.mrb[156].mxu0 %v15418_v28  ;;  %5817 = vmatmul.mubr.bf16.gmra.mrb[28].mxu1 %v15418_v28  ;;  %v15427_v28 = vld [vmem:[#allocation111_spill] sm:$0xff] }
 0x436   :  { %5454 = vmatprep.mubr.bf16.mxu0 %v15419_v60  ;;  %5824 = vmatprep.mubr.bf16.mxu1 %v15419_v60 }
 0x437   :  { %5564 = vmatpush1.bf16.msra.mxu0 %v12579_v24  ;;  %v15426_v24 = vld [vmem:[#allocation105_spill] sm:$0xff] }
 0x438   :  { %v10370_v8 = vpop.f32.mrb[180].mxu1  ;;  %5565 = vmatprep.subr.bf16.mxu0 %v12588_v6 }
 0x439   :  { %v10371_v41 = vpop.f32.mrb[181].mxu1 }
 0x43a   :  { %v14093_v45 = vadd.f32 %v10371_v41, %v10370_v8  ;;  %v10373_v52 = vpop.f32.mrb[182].mxu1 }
 0x43b   :  { %v10374_v62 = vpop.f32.mrb[183].mxu1  ;;  %5566 = vmatpush1.bf16.msra.mxu0 %v12586_v26 }
 0x43c   :  { %v14095_v11 = vadd.f32 %v10374_v62, %v10373_v52  ;;  %6648 = vmatprep.subr.bf16.mxu0 %v12595_v1  ;;  %v15428_v62 = vld [vmem:[#allocation109_spill] sm:$0xff] }
 0x43d   :  { %5455 = vmatmul.mubr.bf16.gmra.mrb[160].mxu0 %v15420_v36  ;;  %5825 = vmatmul.mubr.bf16.gmra.mrb[32].mxu1 %v15420_v36 }
 0x43e   :  { %5464 = vmatprep.mubr.bf16.mxu0 %v15421_v29  ;;  %5832 = vmatprep.mubr.bf16.mxu1 %v15421_v29 }
 0x440   :  { %v10376_v46 = vpop.f32.mrb[184].mxu1 }
 0x441   :  { %v10377_v25 = vpop.f32.mrb[185].mxu1 }
 0x442   :  { %v14101_v48 = vadd.f32 %v10377_v25, %v10376_v46  ;;  %v10379_v33 = vpop.f32.mrb[186].mxu1 }
 0x443   :  { %v10380_v51 = vpop.f32.mrb[187].mxu1 }
 0x444   :  { %v14103_v4 = vadd.f32 %v10380_v51, %v10379_v33 }
 0x445   :  { %5465 = vmatmul.mubr.bf16.gmra.mrb[164].mxu0 %v15422_v49  ;;  %5833 = vmatmul.mubr.bf16.gmra.mrb[36].mxu1 %v15422_v49  ;;  %v15430_v49 = vld [vmem:[#allocation113_spill] sm:$0xff] }
 0x446   :  { %5474 = vmatprep.mubr.bf16.mxu0 %v15423_v55  ;;  %5840 = vmatprep.mubr.bf16.mxu1 %v15423_v55  ;;  %v15431_v55 = vld [vmem:[#allocation119_spill] sm:$0xff] }
 0x448   :  { %v10382_v53 = vpop.f32.mrb[188].mxu1 }
 0x449   :  { %v10383_v15 = vpop.f32.mrb[189].mxu1 }
 0x44a   :  { %v14109_v20 = vadd.f32 %v10383_v15, %v10382_v53  ;;  %v10385_v56 = vpop.f32.mrb[190].mxu1 }
 0x44b   :  { %v10386_v19 = vpop.f32.mrb[191].mxu1 }
 0x44c   :  { %v14111_v50 = vadd.f32 %v10386_v19, %v10385_v56 }
 0x44d   :  { %5475 = vmatmul.mubr.bf16.gmra.mrb[168].mxu0 %v15424_v47  ;;  %5841 = vmatmul.mubr.bf16.gmra.mrb[40].mxu1 %v15424_v47 }
 0x44e   :  { %5484 = vmatprep.mubr.bf16.mxu0 %v15425_v9  ;;  %5848 = vmatprep.mubr.bf16.mxu1 %v15425_v9 }
 0x450   :  { %v10404_v18 = vpop.f32.mrb[192].mxu1 }
 0x451   :  { %v10405_v22 = vpop.f32.mrb[193].mxu1 }
 0x452   :  { %v10406_v16 = vadd.f32 %v10405_v22, %v10404_v18  ;;  %v10407_v30 = vpop.f32.mrb[194].mxu1  ;;  %v15432_v18 = vld [vmem:[#allocation117_spill] sm:$0xff]  ;;  %v15433_v22 = vld [vmem:[#allocation123_spill] sm:$0xff] }
 0x453   :  { %v10408_v12 = vpop.f32.mrb[195].mxu1 }
 0x454   :  { %v14118_v40 = vadd.f32 %v10406_v16, %v13989_v14  ;;  %v10409_v21 = vadd.f32 %v10408_v12, %v10407_v30 }
 0x455   :  { %5485 = vmatmul.mubr.bf16.gmra.mrb[172].mxu0 %v15426_v24  ;;  %5849 = vmatmul.mubr.bf16.gmra.mrb[44].mxu1 %v15426_v24 }
 0x456   :  { %v14123_v6 = vadd.f32 %v10409_v21, %v13991_v54  ;;  %5494 = vmatprep.mubr.bf16.mxu0 %v15427_v28  ;;  %5856 = vmatprep.mubr.bf16.mxu1 %v15427_v28 }
 0x458   :  { %v10410_v60 = vpop.f32.mrb[196].mxu1 }
 0x459   :  { %v10411_v26 = vpop.f32.mrb[197].mxu1 }
 0x45a   :  { %v10412_v8 = vadd.f32 %v10411_v26, %v10410_v60  ;;  %v10413_v1 = vpop.f32.mrb[198].mxu1  ;;  %v15434_v60 = vld [vmem:[#allocation121_spill] sm:$0xff] }
 0x45b   :  { %v10414_v41 = vpop.f32.mrb[199].mxu1  ;;  %v15435_v26 = vld [vmem:[#allocation69_spill] sm:$0xff] }
 0x45c   :  { %v14128_v14 = vadd.f32 %v10412_v8, %v13997_v5  ;;  %v10415_v52 = vadd.f32 %v10414_v41, %v10413_v1 }
 0x45d   :  { %5495 = vmatmul.mubr.bf16.gmra.mrb[176].mxu0 %v15428_v62  ;;  %5857 = vmatmul.mubr.bf16.gmra.mrb[48].mxu1 %v15428_v62 }
 0x45e   :  { %v14133_v54 = vadd.f32 %v10415_v52, %v13999_v43  ;;  %5504 = vmatprep.mubr.bf16.mxu0 %v15429_v63  ;;  %5864 = vmatprep.mubr.bf16.mxu1 %v15429_v63  ;;  %v12593_v63 = vld [vmem:[#allocation5 + $0x20] ss:$48 sps:$4 sm:$0xff]  }
 0x460   :  { %v10416_v36 = vpop.f32.mrb[200].mxu1 }
 0x461   :  { %v10417_v29 = vpop.f32.mrb[201].mxu1 }
 0x462   :  { %v10418_v46 = vadd.f32 %v10417_v29, %v10416_v36  ;;  %v10419_v25 = vpop.f32.mrb[202].mxu1 }
 0x463   :  { %v10420_v33 = vpop.f32.mrb[203].mxu1 }
 0x464   :  { %v14138_v5 = vadd.f32 %v10418_v46, %v14005_v2  ;;  %v10421_v51 = vadd.f32 %v10420_v33, %v10419_v25  ;;  %v12598_v46 = vld [vmem:[#allocation5 + $0x84] ss:$48 sps:$4 sm:$0xff]   ;;  %v12625_v25 = vld [vmem:[#allocation5 + $0x8c] ss:$48 sps:$4 sm:$0xff]  }
 0x465   :  { %5505 = vmatmul.mubr.bf16.gmra.mrb[180].mxu0 %v15430_v49  ;;  %5865 = vmatmul.mubr.bf16.gmra.mrb[52].mxu1 %v15430_v49  ;;  %v15436_v33 = vld [vmem:[#allocation68_spill] sm:$0xff] }
 0x466   :  { %v14143_v43 = vadd.f32 %v10421_v51, %v14007_v31  ;;  %5514 = vmatprep.mubr.bf16.mxu0 %v15431_v55  ;;  %5872 = vmatprep.mubr.bf16.mxu1 %v15431_v55  ;;  %v15437_v51 = vld [vmem:[#allocation71_spill] sm:$0xff]  ;;  %v12596_v49 = vld [vmem:[#allocation5 + $0x80] ss:$48 sps:$4 sm:$0xff]  }
 0x467   :  { %v12623_v55 = vld [vmem:[#allocation5 + $0x88] ss:$48 sps:$4 sm:$0xff]  }
 0x468   :  { %v10422_v53 = vpop.f32.mrb[204].mxu1 }
 0x469   :  { %v10423_v15 = vpop.f32.mrb[205].mxu1 }
 0x46a   :  { %v10424_v56 = vadd.f32 %v10423_v15, %v10422_v53  ;;  %v10425_v19 = vpop.f32.mrb[206].mxu1  ;;  %v12601_v53 = vld [vmem:[#allocation5 + $0xe4] ss:$48 sps:$4 sm:$0xff]   ;;  %v12631_v15 = vld [vmem:[#allocation5 + $0xec] ss:$48 sps:$4 sm:$0xff]  }
 0x46b   :  { %v10426_v47 = vpop.f32.mrb[207].mxu1 }
 0x46c   :  { %v14148_v2 = vadd.f32 %v10424_v56, %v14013_v57  ;;  %v10427_v9 = vadd.f32 %v10426_v47, %v10425_v19 }
 0x46d   :  { %5515 = vmatmul.mubr.bf16.gmra.mrb[184].mxu0 %v15432_v18  ;;  %5873 = vmatmul.mubr.bf16.gmra.mrb[56].mxu1 %v15432_v18  ;;  %v12629_v18 = vld [vmem:[#allocation5 + $0xe8] ss:$48 sps:$4 sm:$0xff]  }
 0x46e   :  { %v14153_v31 = vadd.f32 %v10427_v9, %v14015_v7  ;;  %5524 = vmatprep.mubr.bf16.mxu0 %v15433_v22  ;;  %5880 = vmatprep.mubr.bf16.mxu1 %v15433_v22 }
 0x470   :  { %v10428_v16 = vpop.f32.mrb[208].mxu1 }
 0x471   :  { %v10429_v30 = vpop.f32.mrb[209].mxu1 }
 0x472   :  { %v10430_v12 = vadd.f32 %v10429_v30, %v10428_v16  ;;  %v10431_v21 = vpop.f32.mrb[210].mxu1  ;;  %v12604_v30 = vld [vmem:[#allocation5 + $0x144] ss:$48 sps:$4 sm:$0xff]  }
 0x473   :  { %v10432_v24 = vpop.f32.mrb[211].mxu1 }
 0x474   :  { %v14158_v57 = vadd.f32 %v10430_v12, %v14021_v61  ;;  %v10433_v28 = vadd.f32 %v10432_v24, %v10431_v21  ;;  %v12620_v61 = vld [vmem:[#allocation5 + $0x28] ss:$48 sps:$4 sm:$0xff]   ;;  %v12634_v12 = vld [vmem:[#allocation5 + $0x14c] ss:$48 sps:$4 sm:$0xff]   ;;  %v15438_v21 = vld [vmem:[#allocation70_spill] sm:$0xff] }
 0x475   :  { %5525 = vmatmul.mubr.bf16.gmra.mrb[188].mxu0 %v15434_v60  ;;  %5881 = vmatmul.mubr.bf16.gmra.mrb[60].mxu1 %v15434_v60  ;;  %v12602_v60 = vld [vmem:[#allocation5 + $0x140] ss:$48 sps:$4 sm:$0xff]  }
 0x476   :  { %v14163_v7 = vadd.f32 %v10433_v28, %v14023_v34  ;;  %5567 = vmatprep.mubr.bf16.mxu0 %v15435_v26  ;;  %5921 = vmatprep.mubr.bf16.mxu1 %v15435_v26  ;;  %v15439_v28 = vld [vmem:[#allocation73_spill] sm:$0xff] }
 0x478   :  { %v10434_v8 = vpop.f32.mrb[212].mxu1 }
 0x479   :  { %v10435_v1 = vpop.f32.mrb[213].mxu1 }
 0x47a   :  { %v10436_v41 = vadd.f32 %v10435_v1, %v10434_v8  ;;  %v10437_v52 = vpop.f32.mrb[214].mxu1  ;;  %v12607_v8 = vld [vmem:[#allocation5 + $0x1a4] ss:$48 sps:$4 sm:$0xff]   ;;  %v12640_v1 = vld [vmem:[#allocation5 + $0x1ac] ss:$48 sps:$4 sm:$0xff]  }
 0x47b   :  { %v10438_v62 = vpop.f32.mrb[215].mxu1 }
 0x47c   :  { %v14168_v36 = vadd.f32 %v10436_v41, %v14029_v59  ;;  %v10439_v29 = vadd.f32 %v10438_v62, %v10437_v52 }
 0x47d   :  { %5568 = vmatmul.mubr.bf16.vlgmr.msra.gmra.mrb[128].mxu0 %v15436_v33  ;;  %5922 = vmatmul.mubr.bf16.vlgmr.msra.gmra.mrb[64].mxu1 %v15436_v33  ;;  %v12643_v33 = vld [vmem:[#allocation5 + $0x20c] ss:$48 sps:$4 sm:$0xff]  }
 0x47e   :  { %v14173_v34 = vadd.f32 %v10439_v29, %v14031_v13  ;;  %5577 = vmatprep.mubr.bf16.mxu0 %v15437_v51  ;;  %5929 = vmatprep.mubr.bf16.mxu1 %v15437_v51  ;;  %v12599_v13 = vld [vmem:[#allocation5 + $0xe0] ss:$48 sps:$4 sm:$0xff]  }
 0x47f   :  { %6649 = vmatpush1.bf16.msra.mxu0 %v12593_v63  ;;  %7035 = vmatpush1.bf16.msra.mxu1 %v12620_v61  ;;  %v12638_v61 = vld [vmem:[#allocation5 + $0x1a8] ss:$48 sps:$4 sm:$0xff]   ;;  %v15440_v51 = vld [vmem:[#allocation72_spill] sm:$0xff] }
 0x480   :  { %v10440_v59 = vpop.f32.mrb[216].mxu1  ;;  %6650 = vmatprep.subr.bf16.mxu0 %v12598_v46  ;;  %7036 = vmatprep.subr.bf16.mxu1 %v12625_v25  ;;  %v12610_v25 = vld [vmem:[#allocation5 + $0x204] ss:$48 sps:$4 sm:$0xff]  }
 0x481   :  { %v10441_v56 = vpop.f32.mrb[217].mxu1 }
 0x482   :  { %v10442_v19 = vadd.f32 %v10441_v56, %v10440_v59  ;;  %v10443_v47 = vpop.f32.mrb[218].mxu1  ;;  %v12608_v59 = vld [vmem:[#allocation5 + $0x200] ss:$48 sps:$4 sm:$0xff]   ;;  %v12649_v56 = vld [vmem:[#allocation5 + $0x26c] ss:$48 sps:$4 sm:$0xff]  }
 0x483   :  { %v10444_v9 = vpop.f32.mrb[219].mxu1  ;;  %6651 = vmatpush1.bf16.msra.mxu0 %v12596_v49  ;;  %7037 = vmatpush1.bf16.msra.mxu1 %v12623_v55  ;;  %v15441_v55 = vld [vmem:[#allocation76_spill] sm:$0xff] }
 0x484   :  { %v14178_v22 = vadd.f32 %v10442_v19, %v14037_v35  ;;  %v10445_v16 = vadd.f32 %v10444_v9, %v10443_v47  ;;  %6652 = vmatprep.subr.bf16.mxu0 %v12601_v53  ;;  %7038 = vmatprep.subr.bf16.mxu1 %v12631_v15  ;;  %v12632_v35 = vld [vmem:[#allocation5 + $0x148] ss:$48 sps:$4 sm:$0xff]   ;;  %v12613_v15 = vld [vmem:[#allocation5 + $0x264] ss:$48 sps:$4 sm:$0xff]  }
 0x485   :  { %5578 = vmatmul.mubr.bf16.gmra.mrb[132].mxu0 %v15438_v21  ;;  %5930 = vmatmul.mubr.bf16.gmra.mrb[68].mxu1 %v15438_v21  ;;  %v12652_v21 = vld [vmem:[#allocation5 + $0x2cc] ss:$48 sps:$4 sm:$0xff]  }
 0x486   :  { %v14183_v24 = vadd.f32 %v10445_v16, %v14039_v3  ;;  %5587 = vmatprep.mubr.bf16.mxu0 %v15439_v28  ;;  %5937 = vmatprep.mubr.bf16.mxu1 %v15439_v28  ;;  %v12605_v3 = vld [vmem:[#allocation5 + $0x1a0] ss:$48 sps:$4 sm:$0xff]   ;;  %v15442_v28 = vld [vmem:[#allocation75_spill] sm:$0xff] }
 0x487   :  { %6653 = vmatpush1.bf16.msra.mxu0 %v12599_v13  ;;  %7039 = vmatpush1.bf16.msra.mxu1 %v12629_v18  ;;  %v12647_v18 = vld [vmem:[#allocation5 + $0x268] ss:$48 sps:$4 sm:$0xff]  }
 0x488   :  { %v10446_v26 = vpop.f32.mrb[220].mxu1  ;;  %6654 = vmatprep.subr.bf16.mxu0 %v12604_v30  ;;  %7040 = vmatprep.subr.bf16.mxu1 %v12634_v12  ;;  %v12616_v12 = vld [vmem:[#allocation5 + $0x2c4] ss:$48 sps:$4 sm:$0xff]  }
 0x489   :  { %v10447_v41 = vpop.f32.mrb[221].mxu1 }
 0x48a   :  { %v10448_v52 = vadd.f32 %v10447_v41, %v10446_v26  ;;  %v10449_v62 = vpop.f32.mrb[222].mxu1  ;;  %v12614_v26 = vld [vmem:[#allocation5 + $0x2c0] ss:$48 sps:$4 sm:$0xff]   ;;  %v12658_v41 = vld [vmem:[#allocation5 + $0x32c] ss:$48 sps:$4 sm:$0xff]  }
 0x48b   :  { %v10450_v63 = vpop.f32.mrb[223].mxu1  ;;  %6655 = vmatpush1.bf16.msra.mxu0 %v12602_v60  ;;  %7041 = vmatpush1.bf16.msra.mxu1 %v12632_v35  ;;  %v15443_v35 = vld [vmem:[#allocation80_spill] sm:$0xff] }
 0x48c   :  { %v14188_v29 = vadd.f32 %v10448_v52, %v14045_v27  ;;  %v10451_v46 = vadd.f32 %v10450_v63, %v10449_v62  ;;  %6656 = vmatprep.subr.bf16.mxu0 %v12607_v8  ;;  %7042 = vmatprep.subr.bf16.mxu1 %v12640_v1  ;;  %v12641_v27 = vld [vmem:[#allocation5 + $0x208] ss:$48 sps:$4 sm:$0xff]   ;;  %v12619_v1 = vld [vmem:[#allocation5 + $0x324] ss:$48 sps:$4 sm:$0xff]  }
 0x48d   :  { %5588 = vmatmul.mubr.bf16.gmra.mrb[136].mxu0 %v15440_v51  ;;  %5938 = vmatmul.mubr.bf16.gmra.mrb[72].mxu1 %v15440_v51  ;;  %v12661_v51 = vld [vmem:[#allocation5 + $0x38c] ss:$48 sps:$4 sm:$0xff]  }
 0x48e   :  { %v14193_v49 = vadd.f32 %v10451_v46, %v14047_v10  ;;  %5597 = vmatprep.mubr.bf16.mxu0 %v15441_v55  ;;  %5945 = vmatprep.mubr.bf16.mxu1 %v15441_v55  ;;  %v12611_v10 = vld [vmem:[#allocation5 + $0x260] ss:$48 sps:$4 sm:$0xff]  }
 0x48f   :  { %6657 = vmatpush1.bf16.msra.mxu0 %v12605_v3  ;;  %7043 = vmatpush1.bf16.msra.mxu1 %v12638_v61  ;;  %v12656_v61 = vld [vmem:[#allocation5 + $0x328] ss:$48 sps:$4 sm:$0xff]   ;;  %v15444_v55 = vld [vmem:[#allocation78_spill] sm:$0xff] }
 0x490   :  { %v10452_v53 = vpop.f32.mrb[224].mxu1  ;;  %6658 = vmatprep.subr.bf16.mxu0 %v12610_v25  ;;  %7044 = vmatprep.subr.bf16.mxu1 %v12643_v33  ;;  %v12628_v33 = vld [vmem:[#allocation5 + $0x384] ss:$48 sps:$4 sm:$0xff]  }
 0x491   :  { %v10453_v19 = vpop.f32.mrb[225].mxu1 }
 0x492   :  { %v10454_v47 = vadd.f32 %v10453_v19, %v10452_v53  ;;  %v10455_v9 = vpop.f32.mrb[226].mxu1  ;;  %v12626_v53 = vld [vmem:[#allocation5 + $0x380] ss:$48 sps:$4 sm:$0xff]   ;;  %v12667_v19 = vld [vmem:[#allocation5 + $0x3ec] ss:$48 sps:$4 sm:$0xff]  }
 0x493   :  { %v10456_v13 = vpop.f32.mrb[227].mxu1  ;;  %6659 = vmatpush1.bf16.msra.mxu0 %v12608_v59  ;;  %7045 = vmatpush1.bf16.msra.mxu1 %v12641_v27  ;;  %v15445_v27 = vld [vmem:[#allocation84_spill] sm:$0xff] }
 0x494   :  { %v14198_v16 = vadd.f32 %v10454_v47, %v14053_v0  ;;  %v10457_v30 = vadd.f32 %v10456_v13, %v10455_v9  ;;  %6660 = vmatprep.subr.bf16.mxu0 %v12613_v15  ;;  %7046 = vmatprep.subr.bf16.mxu1 %v12649_v56  ;;  %v12650_v0 = vld [vmem:[#allocation5 + $0x2c8] ss:$48 sps:$4 sm:$0xff]   ;;  %v12637_v56 = vld [vmem:[#allocation5 + $0x3e4] ss:$48 sps:$4 sm:$0xff]  }
 0x495   :  { %5598 = vmatmul.mubr.bf16.gmra.mrb[140].mxu0 %v15442_v28  ;;  %5946 = vmatmul.mubr.bf16.gmra.mrb[76].mxu1 %v15442_v28  ;;  %v12670_v28 = vld [vmem:[#allocation5 + $0x44c] ss:$48 sps:$4 sm:$0xff]  }
 0x496   :  { %v14203_v60 = vadd.f32 %v10457_v30, %v14055_v37  ;;  %5607 = vmatprep.mubr.bf16.mxu0 %v15443_v35  ;;  %5953 = vmatprep.mubr.bf16.mxu1 %v15443_v35  ;;  %v12617_v37 = vld [vmem:[#allocation5 + $0x320] ss:$48 sps:$4 sm:$0xff]  }
 0x497   :  { %6661 = vmatpush1.bf16.msra.mxu0 %v12611_v10  ;;  %7047 = vmatpush1.bf16.msra.mxu1 %v12647_v18  ;;  %v12665_v18 = vld [vmem:[#allocation5 + $0x3e8] ss:$48 sps:$4 sm:$0xff]   ;;  %v15446_v35 = vld [vmem:[#allocation82_spill] sm:$0xff] }
 0x498   :  { %v10458_v8 = vpop.f32.mrb[228].mxu1  ;;  %6662 = vmatprep.subr.bf16.mxu0 %v12616_v12  ;;  %7048 = vmatprep.subr.bf16.mxu1 %v12652_v21  ;;  %v12646_v21 = vld [vmem:[#allocation5 + $0x444] ss:$48 sps:$4 sm:$0xff]  }
 0x499   :  { %v10459_v52 = vpop.f32.mrb[229].mxu1 }
 0x49a   :  { %v10460_v62 = vadd.f32 %v10459_v52, %v10458_v8  ;;  %v10461_v63 = vpop.f32.mrb[230].mxu1  ;;  %v12644_v8 = vld [vmem:[#allocation5 + $0x440] ss:$48 sps:$4 sm:$0xff]   ;;  %v12676_v52 = vld [vmem:[#allocation5 + $0x4ac] ss:$48 sps:$4 sm:$0xff]  }
 0x49b   :  { %v10462_v3 = vpop.f32.mrb[231].mxu1  ;;  %6663 = vmatpush1.bf16.msra.mxu0 %v12614_v26  ;;  %7049 = vmatpush1.bf16.msra.mxu1 %v12650_v0  ;;  %v15447_v0 = vld [vmem:[#allocation88_spill] sm:$0xff] }
 0x49c   :  { %v14208_v46 = vadd.f32 %v10460_v62, %v14061_v58  ;;  %v10463_v25 = vadd.f32 %v10462_v3, %v10461_v63  ;;  %6664 = vmatprep.subr.bf16.mxu0 %v12619_v1  ;;  %7050 = vmatprep.subr.bf16.mxu1 %v12658_v41  ;;  %v12659_v58 = vld [vmem:[#allocation5 + $0x388] ss:$48 sps:$4 sm:$0xff]   ;;  %v12655_v41 = vld [vmem:[#allocation5 + $0x4a4] ss:$48 sps:$4 sm:$0xff]  }
 0x49d   :  { %5608 = vmatmul.mubr.bf16.gmra.mrb[144].mxu0 %v15444_v55  ;;  %5954 = vmatmul.mubr.bf16.gmra.mrb[80].mxu1 %v15444_v55  ;;  %v12679_v55 = vld [vmem:[#allocation5 + $0x50c] ss:$48 sps:$4 sm:$0xff]  }
 0x49e   :  { %v14213_v59 = vadd.f32 %v10463_v25, %v14063_v23  ;;  %5617 = vmatprep.mubr.bf16.mxu0 %v15445_v27  ;;  %5961 = vmatprep.mubr.bf16.mxu1 %v15445_v27  ;;  %v12635_v23 = vld [vmem:[#allocation5 + $0x3e0] ss:$48 sps:$4 sm:$0xff]  }
 0x49f   :  { %6665 = vmatpush1.bf16.msra.mxu0 %v12617_v37  ;;  %7051 = vmatpush1.bf16.msra.mxu1 %v12656_v61  ;;  %v12674_v61 = vld [vmem:[#allocation5 + $0x4a8] ss:$48 sps:$4 sm:$0xff]   ;;  %v15448_v27 = vld [vmem:[#allocation86_spill] sm:$0xff] }
 0x4a0   :  { %v10464_v15 = vpop.f32.mrb[232].mxu1  ;;  %6666 = vmatprep.subr.bf16.mxu0 %v12628_v33  ;;  %7052 = vmatprep.subr.bf16.mxu1 %v12661_v51  ;;  %v12664_v51 = vld [vmem:[#allocation5 + $0x504] ss:$48 sps:$4 sm:$0xff]  }
 0x4a1   :  { %v10465_v47 = vpop.f32.mrb[233].mxu1 }
 0x4a2   :  { %v10466_v9 = vadd.f32 %v10465_v47, %v10464_v15  ;;  %v10467_v13 = vpop.f32.mrb[234].mxu1  ;;  %v12662_v15 = vld [vmem:[#allocation5 + $0x500] ss:$48 sps:$4 sm:$0xff]   ;;  %v12685_v47 = vld [vmem:[#allocation5 + $0x56c] ss:$48 sps:$4 sm:$0xff]  }
 0x4a3   :  { %v10468_v10 = vpop.f32.mrb[235].mxu1  ;;  %6667 = vmatpush1.bf16.msra.mxu0 %v12626_v53  ;;  %7053 = vmatpush1.bf16.msra.mxu1 %v12659_v58  ;;  %v15449_v58 = vld [vmem:[#allocation92_spill] sm:$0xff] }
 0x4a4   :  { %v14218_v30 = vadd.f32 %v10466_v9, %v14069_v42  ;;  %v10469_v12 = vadd.f32 %v10468_v10, %v10467_v13  ;;  %6668 = vmatprep.subr.bf16.mxu0 %v12637_v56  ;;  %7054 = vmatprep.subr.bf16.mxu1 %v12667_v19  ;;  %v12668_v42 = vld [vmem:[#allocation5 + $0x448] ss:$48 sps:$4 sm:$0xff]   ;;  %v12673_v19 = vld [vmem:[#allocation5 + $0x564] ss:$48 sps:$4 sm:$0xff]  }
 0x4a5   :  { %5618 = vmatmul.mubr.bf16.gmra.mrb[148].mxu0 %v15446_v35  ;;  %5962 = vmatmul.mubr.bf16.gmra.mrb[84].mxu1 %v15446_v35  ;;  %v12688_v35 = vld [vmem:[#allocation5 + $0x5cc] ss:$48 sps:$4 sm:$0xff]  }
 0x4a6   :  { %v14223_v26 = vadd.f32 %v10469_v12, %v14071_v38  ;;  %5627 = vmatprep.mubr.bf16.mxu0 %v15447_v0  ;;  %5969 = vmatprep.mubr.bf16.mxu1 %v15447_v0  ;;  %v12653_v38 = vld [vmem:[#allocation5 + $0x4a0] ss:$48 sps:$4 sm:$0xff]  }
 0x4a7   :  { %6669 = vmatpush1.bf16.msra.mxu0 %v12635_v23  ;;  %7055 = vmatpush1.bf16.msra.mxu1 %v12665_v18  ;;  %v12683_v18 = vld [vmem:[#allocation5 + $0x568] ss:$48 sps:$4 sm:$0xff]   ;;  %v15450_v0 = vld [vmem:[#allocation90_spill] sm:$0xff] }
 0x4a8   :  { %v10470_v1 = vpop.f32.mrb[236].mxu1  ;;  %6670 = vmatprep.subr.bf16.mxu0 %v12646_v21  ;;  %7056 = vmatprep.subr.bf16.mxu1 %v12670_v28  ;;  %v12682_v28 = vld [vmem:[#allocation5 + $0x5c4] ss:$48 sps:$4 sm:$0xff]  }
 0x4a9   :  { %v10471_v62 = vpop.f32.mrb[237].mxu1 }
 0x4aa   :  { %v10472_v63 = vadd.f32 %v10471_v62, %v10470_v1  ;;  %v10473_v3 = vpop.f32.mrb[238].mxu1  ;;  %v12680_v1 = vld [vmem:[#allocation5 + $0x5c0] ss:$48 sps:$4 sm:$0xff]  }
 0x4ab   :  { %v10474_v37 = vpop.f32.mrb[239].mxu1  ;;  %6671 = vmatpush1.bf16.msra.mxu0 %v12644_v8  ;;  %7057 = vmatpush1.bf16.msra.mxu1 %v12668_v42  ;;  %v15451_v42 = vld [vmem:[#allocation96_spill] sm:$0xff] }
 0x4ac   :  { %v14228_v25 = vadd.f32 %v10472_v63, %v14077_v39  ;;  %v10475_v33 = vadd.f32 %v10474_v37, %v10473_v3  ;;  %6672 = vmatprep.subr.bf16.mxu0 %v12655_v41  ;;  %7058 = vmatprep.subr.bf16.mxu1 %v12676_v52  ;;  %v12677_v39 = vld [vmem:[#allocation5 + $0x508] ss:$48 sps:$4 sm:$0xff]   ;;  %v12691_v52 = vld [vmem:[#allocation5 + $0x624] ss:$48 sps:$4 sm:$0xff]  }
 0x4ad   :  { %5628 = vmatmul.mubr.bf16.gmra.mrb[152].mxu0 %v15448_v27  ;;  %5970 = vmatmul.mubr.bf16.gmra.mrb[88].mxu1 %v15448_v27 }
 0x4ae   :  { %v14233_v53 = vadd.f32 %v10475_v33, %v14079_v17  ;;  %5637 = vmatprep.mubr.bf16.mxu0 %v15449_v58  ;;  %5977 = vmatprep.mubr.bf16.mxu1 %v15449_v58  ;;  %v12671_v17 = vld [vmem:[#allocation5 + $0x560] ss:$48 sps:$4 sm:$0xff]  }
 0x4af   :  { %6673 = vmatpush1.bf16.msra.mxu0 %v12653_v38  ;;  %7059 = vmatpush1.bf16.msra.mxu1 %v12674_v61  ;;  %v15452_v61 = vld [vmem:[#allocation94_spill] sm:$0xff] }
 0x4b0   :  { %v10476_v56 = vpop.f32.mrb[240].mxu1  ;;  %6674 = vmatprep.subr.bf16.mxu0 %v12664_v51  ;;  %7060 = vmatprep.subr.bf16.mxu1 %v12679_v55  ;;  %v15453_v51 = vld [vmem:[#allocation100_spill] sm:$0xff] }
 0x4b1   :  { %v10477_v9 = vpop.f32.mrb[241].mxu1 }
 0x4b2   :  { %v10478_v13 = vadd.f32 %v10477_v9, %v10476_v56  ;;  %v10479_v10 = vpop.f32.mrb[242].mxu1 }
 0x4b3   :  { %v10480_v23 = vpop.f32.mrb[243].mxu1  ;;  %6675 = vmatpush1.bf16.msra.mxu0 %v12662_v15  ;;  %7061 = vmatpush1.bf16.msra.mxu1 %v12677_v39 }
 0x4b4   :  { %v14238_v12 = vadd.f32 %v10478_v13, %v14085_v44  ;;  %v10481_v21 = vadd.f32 %v10480_v23, %v10479_v10  ;;  %6676 = vmatprep.subr.bf16.mxu0 %v12673_v19  ;;  %7062 = vmatprep.subr.bf16.mxu1 %v12685_v47  ;;  %v12686_v44 = vld [vmem:[#allocation5 + $0x5c8] ss:$48 sps:$4 sm:$0xff]   ;;  %v15454_v19 = vld [vmem:[#allocation98_spill] sm:$0xff]  ;;  %v15455_v47 = vld [vmem:[#allocation104_spill] sm:$0xff] }
 0x4b5   :  { %5638 = vmatmul.mubr.bf16.gmra.mrb[156].mxu0 %v15450_v0  ;;  %5978 = vmatmul.mubr.bf16.gmra.mrb[92].mxu1 %v15450_v0 }
 0x4b6   :  { %v14243_v8 = vadd.f32 %v10481_v21, %v14087_v32  ;;  %5647 = vmatprep.mubr.bf16.mxu0 %v15451_v42  ;;  %5985 = vmatprep.mubr.bf16.mxu1 %v15451_v42  ;;  %v15456_v21 = vld [vmem:[#allocation102_spill] sm:$0xff] }
 0x4b7   :  { %6677 = vmatpush1.bf16.msra.mxu0 %v12671_v17  ;;  %7063 = vmatpush1.bf16.msra.mxu1 %v12683_v18 }
 0x4b8   :  { %v10482_v41 = vpop.f32.mrb[244].mxu1  ;;  %6678 = vmatprep.subr.bf16.mxu0 %v12682_v28  ;;  %7064 = vmatprep.subr.bf16.mxu1 %v12688_v35  ;;  %v15457_v28 = vld [vmem:[#allocation108_spill] sm:$0xff] }
 0x4b9   :  { %v10483_v62 = vpop.f32.mrb[245].mxu1 }
 0x4ba   :  { %v10484_v63 = vadd.f32 %v10483_v62, %v10482_v41  ;;  %v10485_v3 = vpop.f32.mrb[246].mxu1  ;;  %v15459_v62 = vld [vmem:[#allocation112_spill] sm:$0xff] }
 0x4bb   :  { %v10486_v37 = vpop.f32.mrb[247].mxu1  ;;  %6679 = vmatpush1.bf16.msra.mxu0 %v12680_v1  ;;  %7065 = vmatpush1.bf16.msra.mxu1 %v12686_v44 }
 0x4bc   :  { %v14248_v32 = vadd.f32 %v10484_v63, %v14093_v45  ;;  %v10487_v38 = vadd.f32 %v10486_v37, %v10485_v3  ;;  %6841 = vmatprep.subr.bf16.mxu0 %v12691_v52  ;;  %v15458_v52 = vld [vmem:[#allocation106_spill] sm:$0xff] }
 0x4bd   :  { %5648 = vmatmul.mubr.bf16.gmra.mrb[160].mxu0 %v15452_v61  ;;  %5986 = vmatmul.mubr.bf16.gmra.mrb[96].mxu1 %v15452_v61 }
 0x4be   :  { %v14253_v33 = vadd.f32 %v10487_v38, %v14095_v11  ;;  %5657 = vmatprep.mubr.bf16.mxu0 %v15453_v51  ;;  %5993 = vmatprep.mubr.bf16.mxu1 %v15453_v51 }
 0x4c0   :  { %v10488_v55 = vpop.f32.mrb[248].mxu1 }
 0x4c1   :  { %v10489_v27 = vpop.f32.mrb[249].mxu1 }
 0x4c2   :  { %v10490_v58 = vadd.f32 %v10489_v27, %v10488_v55  ;;  %v10491_v15 = vpop.f32.mrb[250].mxu1  ;;  %v12709_v55 = vld [vmem:[#allocation5 + $0x62c] ss:$48 sps:$4 sm:$0xff]   ;;  %v15460_v27 = vld [vmem:[#allocation110_spill] sm:$0xff] }
 0x4c3   :  { %v10492_v39 = vpop.f32.mrb[251].mxu1  ;;  %7227 = vmatprep.subr.bf16.mxu1 %v12709_v55 }
 0x4c4   :  { %v14258_v45 = vadd.f32 %v10490_v58, %v14101_v48  ;;  %v10493_v56 = vadd.f32 %v10492_v39, %v10491_v15  ;;  %v15461_v58 = vld [vmem:[#allocation116_spill] sm:$0xff] }
 0x4c5   :  { %5658 = vmatmul.mubr.bf16.gmra.mrb[164].mxu0 %v15454_v19  ;;  %5994 = vmatmul.mubr.bf16.gmra.mrb[100].mxu1 %v15454_v19 }
 0x4c6   :  { %v14263_v11 = vadd.f32 %v10493_v56, %v14103_v4  ;;  %5667 = vmatprep.mubr.bf16.mxu0 %v15455_v47  ;;  %6001 = vmatprep.mubr.bf16.mxu1 %v15455_v47 }
 0x4c8   :  { %v10494_v9 = vpop.f32.mrb[252].mxu1 }
 0x4c9   :  { %v10495_v13 = vpop.f32.mrb[253].mxu1 }
 0x4ca   :  { %v10496_v10 = vadd.f32 %v10495_v13, %v10494_v9  ;;  %v10497_v23 = vpop.f32.mrb[254].mxu1  ;;  %v15462_v13 = vld [vmem:[#allocation114_spill] sm:$0xff] }
 0x4cb   :  { %v10498_v17 = vpop.f32.mrb[255].mxu1 }
 0x4cc   :  { %v14268_v48 = vadd.f32 %v10496_v10, %v14109_v20  ;;  %v10499_v18 = vadd.f32 %v10498_v17, %v10497_v23  ;;  %v15463_v10 = vld [vmem:[#allocation120_spill] sm:$0xff] }
 0x4cd   :  { %5668 = vmatmul.mubr.bf16.gmra.mrb[168].mxu0 %v15456_v21  ;;  %6002 = vmatmul.mubr.bf16.gmra.mrb[104].mxu1 %v15456_v21 }
 0x4ce   :  { %v14273_v4 = vadd.f32 %v10499_v18, %v14111_v50  ;;  %5677 = vmatprep.mubr.bf16.mxu0 %v15457_v28  ;;  %6009 = vmatprep.mubr.bf16.mxu1 %v15457_v28 }
 0x4d0   :  { %v10516_v35 = vpop.f32.mrb[0].mxu1 }
 0x4d1   :  { %v10517_v0 = vpop.f32.mrb[1].mxu1 }
 0x4d2   :  { %v10518_v42 = vadd.f32 %v10517_v0, %v10516_v35  ;;  %v10519_v1 = vpop.f32.mrb[2].mxu1  ;;  %v15464_v0 = vld [vmem:[#allocation118_spill] sm:$0xff] }
 0x4d3   :  { %v10520_v44 = vpop.f32.mrb[3].mxu1 }
 0x4d4   :  { %v10521_v41 = vadd.f32 %v10520_v44, %v10519_v1  ;;  %v14278_v20 = vadd.f32 %v10518_v42, %v14118_v40  ;;  %v15465_v42 = vld [vmem:[#allocation124_spill] sm:$0xff] }
 0x4d5   :  { %5678 = vmatmul.mubr.bf16.gmra.mrb[172].mxu0 %v15458_v52  ;;  %6010 = vmatmul.mubr.bf16.gmra.mrb[108].mxu1 %v15458_v52 }
 0x4d6   :  { %5687 = vmatprep.mubr.bf16.mxu0 %v15459_v62  ;;  %6017 = vmatprep.mubr.bf16.mxu1 %v15459_v62  ;;  %v14285_v50 = vadd.f32 %v10521_v41, %v14123_v6 }
 0x4d8   :  { %v10522_v63 = vpop.f32.mrb[4].mxu1 }
 0x4d9   :  { %v10523_v3 = vpop.f32.mrb[5].mxu1 }
 0x4da   :  { %v10524_v37 = vadd.f32 %v10523_v3, %v10522_v63  ;;  %v10525_v38 = vpop.f32.mrb[6].mxu1  ;;  %v15466_v3 = vld [vmem:[#allocation122_spill] sm:$0xff] }
 0x4db   :  { %v10526_v61 = vpop.f32.mrb[7].mxu1 }
 0x4dc   :  { %v10527_v51 = vadd.f32 %v10526_v61, %v10525_v38  ;;  %v14288_v40 = vadd.f32 %v10524_v37, %v14128_v14  ;;  %v15467_v37 = vld [vmem:[#allocation16_spill] sm:$0xff] }
 0x4dd   :  { %5688 = vmatmul.mubr.bf16.gmra.mrb[176].mxu0 %v15460_v27  ;;  %6018 = vmatmul.mubr.bf16.gmra.mrb[112].mxu1 %v15460_v27  ;;  %v12689_v27 = vld [vmem:[#allocation5 + $0x620] ss:$48 sps:$4 sm:$0xff]  }
 0x4de   :  { %5697 = vmatprep.mubr.bf16.mxu0 %v15461_v58  ;;  %6025 = vmatprep.mubr.bf16.mxu1 %v15461_v58  ;;  %v14295_v6 = vadd.f32 %v10527_v51, %v14133_v54 }
 0x4e0   :  { %v10528_v15 = vpop.f32.mrb[8].mxu1 }
 0x4e1   :  { %v10529_v39 = vpop.f32.mrb[9].mxu1 }
 0x4e2   :  { %v10530_v56 = vadd.f32 %v10529_v39, %v10528_v15  ;;  %v10531_v19 = vpop.f32.mrb[10].mxu1  ;;  %v12694_v15 = vld [vmem:[#allocation5 + $0x684] ss:$48 sps:$4 sm:$0xff]   ;;  %v12707_v39 = vld [vmem:[#allocation5 + $0x628] ss:$48 sps:$4 sm:$0xff]  }
 0x4e3   :  { %v10532_v47 = vpop.f32.mrb[11].mxu1 }
 0x4e4   :  { %v10533_v14 = vadd.f32 %v10532_v47, %v10531_v19  ;;  %v14298_v9 = vadd.f32 %v10530_v56, %v14138_v5  ;;  %v15468_v19 = vld [vmem:[#allocation17_spill] sm:$0xff] }
 0x4e5   :  { %5698 = vmatmul.mubr.bf16.gmra.mrb[180].mxu0 %v15462_v13  ;;  %6026 = vmatmul.mubr.bf16.gmra.mrb[116].mxu1 %v15462_v13  ;;  %v12715_v47 = vld [vmem:[#allocation5 + $0x68c] ss:$48 sps:$4 sm:$0xff]  }
 0x4e6   :  { %5707 = vmatprep.mubr.bf16.mxu0 %v15463_v10  ;;  %6033 = vmatprep.mubr.bf16.mxu1 %v15463_v10  ;;  %v14305_v54 = vadd.f32 %v10533_v14, %v14143_v43  ;;  %v12692_v14 = vld [vmem:[#allocation5 + $0x680] ss:$48 sps:$4 sm:$0xff]   ;;  %v12697_v10 = vld [vmem:[#allocation5 + $0x6e4] ss:$48 sps:$4 sm:$0xff]  }
 0x4e8   :  { %v10534_v23 = vpop.f32.mrb[12].mxu1 }
 0x4e9   :  { %v10535_v17 = vpop.f32.mrb[13].mxu1 }
 0x4ea   :  { %v10536_v18 = vadd.f32 %v10535_v17, %v10534_v23  ;;  %v10537_v21 = vpop.f32.mrb[14].mxu1 }
 0x4eb   :  { %v10538_v28 = vpop.f32.mrb[15].mxu1 }
 0x4ec   :  { %v10539_v35 = vadd.f32 %v10538_v28, %v10537_v21  ;;  %v14308_v5 = vadd.f32 %v10536_v18, %v14148_v2 }
 0x4ed   :  { %5708 = vmatmul.mubr.bf16.gmra.mrb[184].mxu0 %v15464_v0  ;;  %6034 = vmatmul.mubr.bf16.gmra.mrb[120].mxu1 %v15464_v0  ;;  %v12718_v0 = vld [vmem:[#allocation5 + $0x6ec] ss:$48 sps:$4 sm:$0xff]  }
 0x4ee   :  { %5717 = vmatprep.mubr.bf16.mxu0 %v15465_v42  ;;  %6041 = vmatprep.mubr.bf16.mxu1 %v15465_v42  ;;  %v14315_v43 = vadd.f32 %v10539_v35, %v14153_v31  ;;  %v12695_v35 = vld [vmem:[#allocation5 + $0x6e0] ss:$48 sps:$4 sm:$0xff]  }
 0x4f0   :  { %v10540_v1 = vpop.f32.mrb[16].mxu1 }
 0x4f1   :  { %v10541_v44 = vpop.f32.mrb[17].mxu1 }
 0x4f2   :  { %v10542_v41 = vadd.f32 %v10541_v44, %v10540_v1  ;;  %v10543_v52 = vpop.f32.mrb[18].mxu1  ;;  %v12700_v1 = vld [vmem:[#allocation5 + $0x744] ss:$48 sps:$4 sm:$0xff]  }
 0x4f3   :  { %v10544_v62 = vpop.f32.mrb[19].mxu1 }
 0x4f4   :  { %v10545_v63 = vadd.f32 %v10544_v62, %v10543_v52  ;;  %v14318_v2 = vadd.f32 %v10542_v41, %v14158_v57  ;;  %v15470_v41 = vld [vmem:[#allocation19_spill] sm:$0xff]  ;;  %v15471_v62 = vld [vmem:[#allocation20_spill] sm:$0xff] }
 0x4f5   :  { %5718 = vmatmul.mubr.bf16.gmra.mrb[188].mxu0 %v15466_v3  ;;  %6042 = vmatmul.mubr.bf16.gmra.mrb[124].mxu1 %v15466_v3  ;;  %v12721_v52 = vld [vmem:[#allocation5 + $0x74c] ss:$48 sps:$4 sm:$0xff]   ;;  %v12698_v3 = vld [vmem:[#allocation5 + $0x740] ss:$48 sps:$4 sm:$0xff]  }
 0x4f6   :  { %6680 = vmatprep.mubr.bf16.mxu0 %v15467_v37  ;;  %7066 = vmatprep.mubr.bf16.mxu1 %v15467_v37  ;;  %v14325_v31 = vadd.f32 %v10545_v63, %v14163_v7  ;;  %v15469_v7 = vld [vmem:[#allocation18_spill] sm:$0xff] }
 0x4f8   :  { %v10546_v38 = vpop.f32.mrb[20].mxu1 }
 0x4f9   :  { %v10547_v61 = vpop.f32.mrb[21].mxu1 }
 0x4fa   :  { %v10548_v51 = vadd.f32 %v10547_v61, %v10546_v38  ;;  %v10549_v55 = vpop.f32.mrb[22].mxu1  ;;  %v12703_v38 = vld [vmem:[#allocation5 + $0x7a4] ss:$48 sps:$4 sm:$0xff]  }
 0x4fb   :  { %v10550_v58 = vpop.f32.mrb[23].mxu1 }
 0x4fc   :  { %v10551_v57 = vadd.f32 %v10550_v58, %v10549_v55  ;;  %v14328_v56 = vadd.f32 %v10548_v51, %v14168_v36  ;;  %v12713_v36 = vld [vmem:[#allocation5 + $0x688] ss:$48 sps:$4 sm:$0xff]   ;;  %v12701_v58 = vld [vmem:[#allocation5 + $0x7a0] ss:$48 sps:$4 sm:$0xff]  }
 0x4fd   :  { %6681 = vmatmul.mubr.bf16.vlgmr.msra.gmra.mrb[192].mxu0 %v15468_v19  ;;  %7067 = vmatmul.mubr.bf16.vlgmr.msra.gmra.mrb[128].mxu1 %v15468_v19 }
 0x4fe   :  { %6842 = vmatpush1.bf16.msra.mxu0 %v12689_v27  ;;  %6690 = vmatprep.mubr.bf16.mxu0 %v15469_v7  ;;  %v14334_v13 = vadd.f32 %v10551_v57, %v14173_v34  ;;  %v12716_v34 = vld [vmem:[#allocation5 + $0x6e8] ss:$48 sps:$4 sm:$0xff]  }
 0x4ff   :  { %7076 = vmatprep.mubr.bf16.mxu1 %v15469_v7  ;;  %6843 = vmatprep.subr.bf16.mxu0 %v12694_v15  ;;  %v12727_v15 = vld [vmem:[#allocation5 + $0x7ac] ss:$48 sps:$4 sm:$0xff]  }
 0x500   :  { %v10552_v23 = vpop.f32.mrb[24].mxu1  ;;  %7228 = vmatpush1.bf16.msra.mxu1 %v12707_v39  ;;  %v12725_v39 = vld [vmem:[#allocation5 + $0x7a8] ss:$48 sps:$4 sm:$0xff]   ;;  %v12730_v7 = vld [vmem:[#allocation5 + $0x80c] ss:$48 sps:$4 sm:$0xff]  }
 0x501   :  { %v10553_v17 = vpop.f32.mrb[25].mxu1  ;;  %7229 = vmatprep.subr.bf16.mxu1 %v12715_v47  ;;  %v15472_v47 = vld [vmem:[#allocation21_spill] sm:$0xff] }
 0x502   :  { %v10554_v18 = vadd.f32 %v10553_v17, %v10552_v23  ;;  %v10555_v21 = vpop.f32.mrb[26].mxu1  ;;  %6844 = vmatpush1.bf16.msra.mxu0 %v12692_v14  ;;  %v15473_v14 = vld [vmem:[#allocation22_spill] sm:$0xff] }
 0x503   :  { %v10556_v28 = vpop.f32.mrb[27].mxu1  ;;  %6845 = vmatprep.subr.bf16.mxu0 %v12697_v10  ;;  %v12704_v23 = vld [vmem:[#allocation5 + $0x800] ss:$48 sps:$4 sm:$0xff]   ;;  %v12712_v17 = vld [vmem:[#allocation5 + $0x864] ss:$48 sps:$4 sm:$0xff]  }
 0x504   :  { %v10557_v42 = vadd.f32 %v10556_v28, %v10555_v21  ;;  %7230 = vmatpush1.bf16.msra.mxu1 %v12713_v36  ;;  %v14338_v44 = vadd.f32 %v10554_v18, %v14178_v22  ;;  %v12719_v22 = vld [vmem:[#allocation5 + $0x748] ss:$48 sps:$4 sm:$0xff]  }
 0x505   :  { %6691 = vmatmul.mubr.bf16.gmra.mrb[196].mxu0 %v15470_v41  ;;  %7077 = vmatmul.mubr.bf16.gmra.mrb[132].mxu1 %v15470_v41 }
 0x506   :  { %6700 = vmatprep.mubr.bf16.mxu0 %v15471_v62  ;;  %7086 = vmatprep.mubr.bf16.mxu1 %v15471_v62  ;;  %v14345_v63 = vadd.f32 %v10557_v42, %v14183_v24  ;;  %v12706_v24 = vld [vmem:[#allocation5 + $0x804] ss:$48 sps:$4 sm:$0xff]   ;;  %v12733_v42 = vld [vmem:[#allocation5 + $0x86c] ss:$48 sps:$4 sm:$0xff]  }
 0x507   :  { %6846 = vmatpush1.bf16.msra.mxu0 %v12695_v35  ;;  %7231 = vmatprep.subr.bf16.mxu1 %v12718_v0  ;;  %v12710_v0 = vld [vmem:[#allocation5 + $0x860] ss:$48 sps:$4 sm:$0xff]   ;;  %v12736_v62 = vld [vmem:[#allocation5 + $0x8cc] ss:$48 sps:$4 sm:$0xff]  }
 0x508   :  { %v10558_v37 = vpop.f32.mrb[28].mxu1  ;;  %6847 = vmatprep.subr.bf16.mxu0 %v12700_v1  ;;  %7232 = vmatpush1.bf16.msra.mxu1 %v12716_v34  ;;  %v12731_v34 = vld [vmem:[#allocation5 + $0x868] ss:$48 sps:$4 sm:$0xff]  }
 0x509   :  { %v10559_v61 = vpop.f32.mrb[29].mxu1  ;;  %7233 = vmatprep.subr.bf16.mxu1 %v12721_v52  ;;  %v15474_v52 = vld [vmem:[#allocation23_spill] sm:$0xff] }
 0x50a   :  { %v10560_v51 = vadd.f32 %v10559_v61, %v10558_v37  ;;  %v10561_v55 = vpop.f32.mrb[30].mxu1 }
 0x50b   :  { %v10562_v27 = vpop.f32.mrb[31].mxu1  ;;  %6848 = vmatpush1.bf16.msra.mxu0 %v12698_v3  ;;  %v15475_v3 = vld [vmem:[#allocation24_spill] sm:$0xff] }
 0x50c   :  { %v10563_v57 = vadd.f32 %v10562_v27, %v10561_v55  ;;  %6849 = vmatprep.subr.bf16.mxu0 %v12703_v38  ;;  %7234 = vmatpush1.bf16.msra.mxu1 %v12719_v22  ;;  %v14348_v19 = vadd.f32 %v10560_v51, %v14188_v29  ;;  %v12728_v29 = vld [vmem:[#allocation5 + $0x808] ss:$48 sps:$4 sm:$0xff]   ;;  %v12722_v38 = vld [vmem:[#allocation5 + $0x8c0] ss:$48 sps:$4 sm:$0xff]  }
 0x50d   :  { %6701 = vmatmul.mubr.bf16.gmra.mrb[200].mxu0 %v15472_v47  ;;  %7087 = vmatmul.mubr.bf16.gmra.mrb[136].mxu1 %v15472_v47 }
 0x50e   :  { %6710 = vmatprep.mubr.bf16.mxu0 %v15473_v14  ;;  %7096 = vmatprep.mubr.bf16.mxu1 %v15473_v14  ;;  %v14355_v10 = vadd.f32 %v10563_v57, %v14193_v49  ;;  %v12724_v49 = vld [vmem:[#allocation5 + $0x8c4] ss:$48 sps:$4 sm:$0xff]  }
 0x50f   :  { %6850 = vmatpush1.bf16.msra.mxu0 %v12701_v58  ;;  %7235 = vmatprep.subr.bf16.mxu1 %v12727_v15  ;;  %v15477_v57 = vld [vmem:[#allocation26_spill] sm:$0xff] }
 0x510   :  { %v10564_v36 = vpop.f32.mrb[32].mxu1  ;;  %6851 = vmatprep.subr.bf16.mxu0 %v12706_v24  ;;  %7236 = vmatpush1.bf16.msra.mxu1 %v12725_v39 }
 0x511   :  { %v10565_v18 = vpop.f32.mrb[33].mxu1  ;;  %7237 = vmatprep.subr.bf16.mxu1 %v12730_v7 }
 0x512   :  { %v10566_v21 = vadd.f32 %v10565_v18, %v10564_v36  ;;  %v10567_v28 = vpop.f32.mrb[34].mxu1 }
 0x513   :  { %v10568_v35 = vpop.f32.mrb[35].mxu1  ;;  %6852 = vmatpush1.bf16.msra.mxu0 %v12704_v23 }
 0x514   :  { %v10569_v1 = vadd.f32 %v10568_v35, %v10567_v28  ;;  %6853 = vmatprep.subr.bf16.mxu0 %v12712_v17  ;;  %7238 = vmatpush1.bf16.msra.mxu1 %v12728_v29  ;;  %v14358_v41 = vadd.f32 %v10566_v21, %v14198_v16  ;;  %v12734_v16 = vld [vmem:[#allocation5 + $0x8c8] ss:$48 sps:$4 sm:$0xff]   ;;  %v15479_v29 = vld [vmem:[#allocation28_spill] sm:$0xff] }
 0x515   :  { %6711 = vmatmul.mubr.bf16.gmra.mrb[204].mxu0 %v15474_v52  ;;  %7097 = vmatmul.mubr.bf16.gmra.mrb[140].mxu1 %v15474_v52  ;;  %v15478_v17 = vld [vmem:[#allocation27_spill] sm:$0xff] }
 0x516   :  { %6720 = vmatprep.mubr.bf16.mxu0 %v15475_v3  ;;  %7106 = vmatprep.mubr.bf16.mxu1 %v15475_v3  ;;  %v14365_v37 = vadd.f32 %v10569_v1, %v14203_v60  ;;  %v15476_v60 = vld [vmem:[#allocation25_spill] sm:$0xff] }
 0x517   :  { %6854 = vmatpush1.bf16.msra.mxu0 %v12710_v0  ;;  %7239 = vmatprep.subr.bf16.mxu1 %v12733_v42  ;;  %v15480_v1 = vld [vmem:[#allocation29_spill] sm:$0xff] }
 0x518   :  { %v10570_v22 = vpop.f32.mrb[36].mxu1  ;;  %6855 = vmatprep.subr.bf16.mxu0 %v12724_v49  ;;  %7240 = vmatpush1.bf16.msra.mxu1 %v12731_v34  ;;  %v15481_v49 = vld [vmem:[#allocation30_spill] sm:$0xff] }
 0x519   :  { %v10571_v61 = vpop.f32.mrb[37].mxu1  ;;  %7241 = vmatprep.subr.bf16.mxu1 %v12736_v62 }
 0x51a   :  { %v10572_v51 = vadd.f32 %v10571_v61, %v10570_v22  ;;  %v10573_v55 = vpop.f32.mrb[38].mxu1  ;;  %v15483_v61 = vld [vmem:[#allocation32_spill] sm:$0xff] }
 0x51b   :  { %v10574_v27 = vpop.f32.mrb[39].mxu1  ;;  %6856 = vmatpush1.bf16.msra.mxu0 %v12722_v38 }
 0x51c   :  { %v10575_v58 = vadd.f32 %v10574_v27, %v10573_v55  ;;  %7242 = vmatpush1.bf16.msra.mxu1 %v12734_v16  ;;  %v14368_v15 = vadd.f32 %v10572_v51, %v14208_v46  ;;  %v15482_v16 = vld [vmem:[#allocation31_spill] sm:$0xff] }
 0x51d   :  { %6721 = vmatmul.mubr.bf16.gmra.mrb[208].mxu0 %v15476_v60  ;;  %7107 = vmatmul.mubr.bf16.gmra.mrb[144].mxu1 %v15476_v60 }
 0x51e   :  { %6730 = vmatprep.mubr.bf16.mxu0 %v15477_v57  ;;  %7116 = vmatprep.mubr.bf16.mxu1 %v15477_v57  ;;  %v14375_v24 = vadd.f32 %v10575_v58, %v14213_v59 }
 0x520   :  { %v10576_v39 = vpop.f32.mrb[40].mxu1 }
 0x521   :  { %v10577_v47 = vpop.f32.mrb[41].mxu1 }
 0x522   :  { %v10578_v7 = vadd.f32 %v10577_v47, %v10576_v39  ;;  %v10579_v14 = vpop.f32.mrb[42].mxu1  ;;  %v15484_v39 = vld [vmem:[#allocation33_spill] sm:$0xff]  ;;  %v15485_v47 = vld [vmem:[#allocation34_spill] sm:$0xff] }
 0x523   :  { %v10580_v23 = vpop.f32.mrb[43].mxu1 }
 0x524   :  { %v10581_v36 = vadd.f32 %v10580_v23, %v10579_v14  ;;  %v14378_v46 = vadd.f32 %v10578_v7, %v14218_v30 }
 0x525   :  { %6731 = vmatmul.mubr.bf16.gmra.mrb[212].mxu0 %v15478_v17  ;;  %7117 = vmatmul.mubr.bf16.gmra.mrb[148].mxu1 %v15478_v17 }
 0x526   :  { %6740 = vmatprep.mubr.bf16.mxu0 %v15479_v29  ;;  %7126 = vmatprep.mubr.bf16.mxu1 %v15479_v29  ;;  %v14385_v59 = vadd.f32 %v10581_v36, %v14223_v26 }
 0x528   :  { %v10582_v18 = vpop.f32.mrb[44].mxu1 }
 0x529   :  { %v10583_v21 = vpop.f32.mrb[45].mxu1 }
 0x52a   :  { %v10584_v28 = vadd.f32 %v10583_v21, %v10582_v18  ;;  %v10585_v35 = vpop.f32.mrb[46].mxu1  ;;  %v15486_v18 = vld [vmem:[#allocation35_spill] sm:$0xff]  ;;  %v15487_v21 = vld [vmem:[#allocation36_spill] sm:$0xff] }
 0x52b   :  { %v10586_v0 = vpop.f32.mrb[47].mxu1 }
 0x52c   :  { %v10587_v42 = vadd.f32 %v10586_v0, %v10585_v35  ;;  %v14388_v30 = vadd.f32 %v10584_v28, %v14228_v25 }
 0x52d   :  { %6741 = vmatmul.mubr.bf16.gmra.mrb[216].mxu0 %v15480_v1  ;;  %7127 = vmatmul.mubr.bf16.gmra.mrb[152].mxu1 %v15480_v1 }
 0x52e   :  { %6750 = vmatprep.mubr.bf16.mxu0 %v15481_v49  ;;  %7136 = vmatprep.mubr.bf16.mxu1 %v15481_v49  ;;  %v14395_v26 = vadd.f32 %v10587_v42, %v14233_v53 }
 0x530   :  { %v10588_v34 = vpop.f32.mrb[48].mxu1 }
 0x531   :  { %v10589_v52 = vpop.f32.mrb[49].mxu1 }
 0x532   :  { %v10590_v62 = vadd.f32 %v10589_v52, %v10588_v34  ;;  %v10591_v3 = vpop.f32.mrb[50].mxu1  ;;  %v15488_v34 = vld [vmem:[#allocation37_spill] sm:$0xff]  ;;  %v15489_v52 = vld [vmem:[#allocation38_spill] sm:$0xff] }
 0x533   :  { %v10592_v38 = vpop.f32.mrb[51].mxu1 }
 0x534   :  { %v10593_v22 = vadd.f32 %v10592_v38, %v10591_v3  ;;  %v14398_v25 = vadd.f32 %v10590_v62, %v14238_v12 }
 0x535   :  { %6751 = vmatmul.mubr.bf16.gmra.mrb[220].mxu0 %v15482_v16  ;;  %7137 = vmatmul.mubr.bf16.gmra.mrb[156].mxu1 %v15482_v16 }
 0x536   :  { %6760 = vmatprep.mubr.bf16.mxu0 %v15483_v61  ;;  %7146 = vmatprep.mubr.bf16.mxu1 %v15483_v61  ;;  %v14405_v53 = vadd.f32 %v10593_v22, %v14243_v8 }
 0x538   :  { %v10594_v51 = vpop.f32.mrb[52].mxu1 }
 0x539   :  { %v10595_v55 = vpop.f32.mrb[53].mxu1 }
 0x53a   :  { %v10596_v27 = vadd.f32 %v10595_v55, %v10594_v51  ;;  %v10597_v58 = vpop.f32.mrb[54].mxu1  ;;  %v15490_v51 = vld [vmem:[#allocation39_spill] sm:$0xff]  ;;  %v12737_v55 = vld [vmem:[#allocation8 + $0x6c8] ss:$12 sps:$4 sm:$0xff]  }
 0x53b   :  { %v10598_v60 = vpop.f32.mrb[55].mxu1  ;;  %10724 = vmatprep.subr.bf16.mxu1 %v12737_v55 }
 0x53c   :  { %v10599_v57 = vadd.f32 %v10598_v60, %v10597_v58  ;;  %v14408_v12 = vadd.f32 %v10596_v27, %v14248_v32  ;;  %v15491_v58 = vld [vmem:[#allocation40_spill] sm:$0xff] }
 0x53d   :  { %6761 = vmatmul.mubr.bf16.gmra.mrb[224].mxu0 %v15484_v39  ;;  %7147 = vmatmul.mubr.bf16.gmra.mrb[160].mxu1 %v15484_v39 }
 0x53e   :  { %6770 = vmatprep.mubr.bf16.mxu0 %v15485_v47  ;;  %7156 = vmatprep.mubr.bf16.mxu1 %v15485_v47  ;;  %v14415_v8 = vadd.f32 %v10599_v57, %v14253_v33 }
 0x540   :  { %v10600_v7 = vpop.f32.mrb[56].mxu1 }
 0x541   :  { %v10601_v14 = vpop.f32.mrb[57].mxu1 }
 0x542   :  { %v10602_v23 = vadd.f32 %v10601_v14, %v10600_v7  ;;  %v10603_v36 = vpop.f32.mrb[58].mxu1  ;;  %v15492_v14 = vld [vmem:[#allocation41_spill] sm:$0xff] }
 0x543   :  { %v10604_v17 = vpop.f32.mrb[59].mxu1 }
 0x544   :  { %v10605_v29 = vadd.f32 %v10604_v17, %v10603_v36  ;;  %v14418_v32 = vadd.f32 %v10602_v23, %v14258_v45  ;;  %v15493_v36 = vld [vmem:[#allocation42_spill] sm:$0xff] }
 0x545   :  { %6771 = vmatmul.mubr.bf16.gmra.mrb[228].mxu0 %v15486_v18  ;;  %7157 = vmatmul.mubr.bf16.gmra.mrb[164].mxu1 %v15486_v18 }
 0x546   :  { %6780 = vmatprep.mubr.bf16.mxu0 %v15487_v21  ;;  %7166 = vmatprep.mubr.bf16.mxu1 %v15487_v21  ;;  %v14425_v33 = vadd.f32 %v10605_v29, %v14263_v11 }
 0x548   :  { %v10606_v28 = vpop.f32.mrb[60].mxu1 }
 0x549   :  { %v10607_v35 = vpop.f32.mrb[61].mxu1 }
 0x54a   :  { %v10608_v0 = vadd.f32 %v10607_v35, %v10606_v28  ;;  %v10609_v42 = vpop.f32.mrb[62].mxu1 }
 0x54b   :  { %v10610_v1 = vpop.f32.mrb[63].mxu1 }
 0x54c   :  { %v10611_v49 = vadd.f32 %v10610_v1, %v10609_v42  ;;  %v14428_v45 = vadd.f32 %v10608_v0, %v14268_v48  ;;  %v15494_v0 = vld [vmem:[#allocation43_spill] sm:$0xff]  ;;  %v15496_v42 = vld [vmem:[#allocation44_spill] sm:$0xff] }
 0x54d   :  { %6781 = vmatmul.mubr.bf16.gmra.mrb[232].mxu0 %v15488_v34  ;;  %7167 = vmatmul.mubr.bf16.gmra.mrb[168].mxu1 %v15488_v34 }
 0x54e   :  { %6790 = vmatprep.mubr.bf16.mxu0 %v15489_v52  ;;  %7176 = vmatprep.mubr.bf16.mxu1 %v15489_v52  ;;  %v14435_v11 = vadd.f32 %v10611_v49, %v14273_v4 }
 0x550   :  { %v10628_v62 = vpop.f32.mrb[64].mxu1 }
 0x551   :  { %v10629_v3 = vpop.f32.mrb[65].mxu1 }
 0x552   :  { %v10630_v38 = vadd.f32 %v10629_v3, %v10628_v62  ;;  %v10631_v22 = vpop.f32.mrb[66].mxu1 }
 0x553   :  { %v10632_v16 = vpop.f32.mrb[67].mxu1 }
 0x554   :  { %v14438_v61 = vadd.f32 %v10630_v38, %v14278_v20  ;;  %v10633_v48 = vadd.f32 %v10632_v16, %v10631_v22  ;;  %v15498_v38 = vld [vmem:[#allocation45_spill] sm:$0xff]  ;;  %v15500_v22 = vld [vmem:[#allocation46_spill] sm:$0xff] }
 0x555   :  { %6791 = vmatmul.mubr.bf16.gmra.mrb[236].mxu0 %v15490_v51  ;;  %7177 = vmatmul.mubr.bf16.gmra.mrb[172].mxu1 %v15490_v51 }
 0x556   :  { %v14443_v27 = vadd.f32 %v10633_v48, %v14285_v50  ;;  %6800 = vmatprep.mubr.bf16.mxu0 %v15491_v58  ;;  %7186 = vmatprep.mubr.bf16.mxu1 %v15491_v58  ;;  %v12741_v50 = vld [vmem:[#allocation8 + $0x604] ss:$12 sps:$4 sm:$0xff]  }
 0x557   :  { %8252 = vmatprep.subr.bf16.mxu0 %v12741_v50 }
 0x558   :  { %v10634_v4 = vpop.f32.mrb[68].mxu1 }
 0x559   :  { %v10635_v60 = vpop.f32.mrb[69].mxu1 }
 0x55a   :  { %v10636_v57 = vadd.f32 %v10635_v60, %v10634_v4  ;;  %v10637_v39 = vpop.f32.mrb[70].mxu1  ;;  %v15502_v60 = vld [vmem:[#allocation47_spill] sm:$0xff] }
 0x55b   :  { %v10638_v20 = vpop.f32.mrb[71].mxu1 }
 0x55c   :  { %v14448_v47 = vadd.f32 %v10636_v57, %v14288_v40  ;;  %v10639_v7 = vadd.f32 %v10638_v20, %v10637_v39  ;;  %v15504_v57 = vmov 0  }
 0x55d   :  { %6801 = vmatmul.mubr.bf16.gmra.mrb[240].mxu0 %v15492_v14  ;;  %7187 = vmatmul.mubr.bf16.gmra.mrb[176].mxu1 %v15492_v14 }
 0x55e   :  { %v14453_v23 = vadd.f32 %v10639_v7, %v14295_v6  ;;  %6810 = vmatprep.mubr.bf16.mxu0 %v15493_v36  ;;  %7196 = vmatprep.mubr.bf16.mxu1 %v15493_v36  ;;  %v12738_v36 = vld [vmem:[#allocation8 + $0x608] ss:$12 sps:$4 sm:$0xff]  }
 0x560   :  { %v10640_v17 = vpop.f32.mrb[72].mxu1 }
 0x561   :  { %v10641_v29 = vpop.f32.mrb[73].mxu1 }
 0x562   :  { %v10642_v18 = vadd.f32 %v10641_v29, %v10640_v17  ;;  %v10643_v21 = vpop.f32.mrb[74].mxu1 }
 0x563   :  { %v10644_v40 = vpop.f32.mrb[75].mxu1 }
 0x564   :  { %v14458_v28 = vadd.f32 %v10642_v18, %v14298_v9  ;;  %v10645_v35 = vadd.f32 %v10644_v40, %v10643_v21  ;;  %v12744_v18 = vld [vmem:[#allocation8 + $0x61c] ss:$12 sps:$4 sm:$0xff]   ;;  %v12745_v21 = vld [vmem:[#allocation8 + $0x6e0] ss:$12 sps:$4 sm:$0xff]  }
 0x565   :  { %6811 = vmatmul.mubr.bf16.gmra.mrb[244].mxu0 %v15494_v0  ;;  %7197 = vmatmul.mubr.bf16.gmra.mrb[180].mxu1 %v15494_v0  ;;  %v15506_v40 = vld [vmem:[#allocation48_spill] sm:$0xff]  ;;  %v12746_v0 = vld [vmem:[#allocation8 + $0x620] ss:$12 sps:$4 sm:$0xff]  }
 0x566   :  { %v14463_v6 = vadd.f32 %v10645_v35, %v14305_v54  ;;  %6820 = vmatprep.mubr.bf16.mxu0 %v15496_v42  ;;  %7206 = vmatprep.mubr.bf16.mxu1 %v15496_v42  ;;  %v12742_v35 = vld [vmem:[#allocation8 + $0x618] ss:$12 sps:$4 sm:$0xff]   ;;  %v12749_v42 = vld [vmem:[#allocation8 + $0x634] ss:$12 sps:$4 sm:$0xff]  }
 0x568   :  { %15495 = vst [vmem:[#allocation74_spill] sm:$0xff] %v14463_v6  ;;  %v10646_v1 = vpop.f32.mrb[76].mxu1 }
 0x569   :  { %v10647_v49 = vpop.f32.mrb[77].mxu1 }
 0x56a   :  { %v10648_v34 = vadd.f32 %v10647_v49, %v10646_v1  ;;  %v10649_v52 = vpop.f32.mrb[78].mxu1  ;;  %v12753_v1 = vld [vmem:[#allocation8 + $0x6f8] ss:$12 sps:$4 sm:$0xff]  }
 0x56b   :  { %v10650_v62 = vpop.f32.mrb[79].mxu1 }
 0x56c   :  { %v14468_v9 = vadd.f32 %v10648_v34, %v14308_v5  ;;  %v10651_v3 = vadd.f32 %v10650_v62, %v10649_v52 }
 0x56d   :  { %6821 = vmatmul.mubr.bf16.gmra.mrb[248].mxu0 %v15498_v38  ;;  %7207 = vmatmul.mubr.bf16.gmra.mrb[184].mxu1 %v15498_v38 }
 0x56e   :  { %15497 = vst [vmem:[#allocation79_spill] sm:$0xff] %v14468_v9  ;;  %v14473_v54 = vadd.f32 %v10651_v3, %v14315_v43  ;;  %6830 = vmatprep.mubr.bf16.mxu0 %v15500_v22  ;;  %7216 = vmatprep.mubr.bf16.mxu1 %v15500_v22  ;;  %v12754_v3 = vld [vmem:[#allocation8 + $0x638] ss:$12 sps:$4 sm:$0xff]  }
 0x570   :  { %15499 = vst [vmem:[#allocation77_spill] sm:$0xff] %v14473_v54  ;;  %v10652_v16 = vpop.f32.mrb[80].mxu1 }
 0x571   :  { %v10653_v48 = vpop.f32.mrb[81].mxu1 }
 0x572   :  { %v10654_v51 = vadd.f32 %v10653_v48, %v10652_v16  ;;  %v10655_v55 = vpop.f32.mrb[82].mxu1  ;;  %v12752_v16 = vld [vmem:[#allocation8 + $0x64c] ss:$12 sps:$4 sm:$0xff]   ;;  %v12761_v48 = vld [vmem:[#allocation8 + $0x710] ss:$12 sps:$4 sm:$0xff]  }
 0x573   :  { %v10656_v58 = vpop.f32.mrb[83].mxu1 }
 0x574   :  { %v14478_v5 = vadd.f32 %v10654_v51, %v14318_v2  ;;  %v10657_v4 = vadd.f32 %v10656_v58, %v10655_v55  ;;  %v12739_v2 = vld [vmem:[#allocation8 + $0x600] ss:$12 sps:$4 sm:$0xff]   ;;  %v12750_v58 = vld [vmem:[#allocation8 + $0x648] ss:$12 sps:$4 sm:$0xff]  }
 0x575   :  { %6831 = vmatmul.mubr.bf16.gmra.mrb[252].mxu0 %v15502_v60  ;;  %7217 = vmatmul.mubr.bf16.gmra.mrb[188].mxu1 %v15502_v60  ;;  %v15509_v51 = vld [vmem:[#allocation49_spill] sm:$0xff] }
 0x576   :  { %15501 = vst [vmem:[#allocation83_spill] sm:$0xff] %v14478_v5  ;;  %v14483_v43 = vadd.f32 %v10657_v4, %v14325_v31  ;;  %6873 = vmatprep.mubr.bf16.mxu0 %v15504_v57  ;;  %7259 = vmatprep.mubr.bf16.mxu1 %v15504_v57  ;;  %v12757_v60 = vld [vmem:[#allocation8 + $0x664] ss:$12 sps:$4 sm:$0xff]  }
 0x578   :  { %15503 = vst [vmem:[#allocation81_spill] sm:$0xff] %v14483_v43  ;;  %v10658_v39 = vpop.f32.mrb[84].mxu1 }
 0x579   :  { %v10659_v20 = vpop.f32.mrb[85].mxu1 }
 0x57a   :  { %v10660_v7 = vadd.f32 %v10659_v20, %v10658_v39  ;;  %v10661_v14 = vpop.f32.mrb[86].mxu1  ;;  %v12769_v39 = vld [vmem:[#allocation8 + $0x728] ss:$12 sps:$4 sm:$0xff]  }
 0x57b   :  { %v10662_v50 = vpop.f32.mrb[87].mxu1 }
 0x57c   :  { %v14488_v17 = vadd.f32 %v10660_v7, %v14328_v56  ;;  %v10663_v29 = vadd.f32 %v10662_v50, %v10661_v14 }
 0x57d   :  { %6874 = vmatmul.mubr.bf16.vlgmr.msra.gmra.mrb[192].mxu0 %v15506_v40  ;;  %7260 = vmatmul.mubr.bf16.vlgmr.msra.gmra.mrb[128].mxu1 %v15506_v40  ;;  %v15512_v40 = vld [vmem:[#allocation50_spill] sm:$0xff] }
 0x57e   :  { %15505 = vst [vmem:[#allocation87_spill] sm:$0xff] %v14488_v17  ;;  %v14493_v31 = vadd.f32 %v10663_v29, %v14334_v13  ;;  %6883 = vmatprep.mubr.bf16.mxu0 %v15504_v57  ;;  %7269 = vmatprep.mubr.bf16.mxu1 %v15504_v57  ;;  %v12747_v13 = vld [vmem:[#allocation8 + $0x630] ss:$12 sps:$4 sm:$0xff]  }
 0x57f   :  { %10725 = vmatpush3.bf16.msra.mxu1 %v12738_v36  ;;  %8253 = vmatpush1.bf16.msra.mxu0 %v12739_v2  ;;  %v12770_v36 = vld [vmem:[#allocation8 + $0x668] ss:$12 sps:$4 sm:$0xff]  }
 0x580   :  { %15507 = vst [vmem:[#allocation85_spill] sm:$0xff] %v14493_v31  ;;  %v10664_v56 = vpop.f32.mrb[88].mxu1  ;;  %8254 = vmatprep.subr.bf16.mxu0 %v12744_v18  ;;  %10726 = vmatprep.subr.bf16.mxu1 %v12745_v21  ;;  %v12760_v18 = vld [vmem:[#allocation8 + $0x67c] ss:$12 sps:$4 sm:$0xff]   ;;  %v12777_v21 = vld [vmem:[#allocation8 + $0x740] ss:$12 sps:$4 sm:$0xff]  }
 0x581   :  { %v10665_v49 = vpop.f32.mrb[89].mxu1 }
 0x582   :  { %v10666_v34 = vadd.f32 %v10665_v49, %v10664_v56  ;;  %v10667_v52 = vpop.f32.mrb[90].mxu1 }
 0x583   :  { %v10668_v62 = vpop.f32.mrb[91].mxu1  ;;  %8255 = vmatpush1.bf16.msra.mxu0 %v12742_v35  ;;  %10727 = vmatpush3.bf16.msra.mxu1 %v12746_v0  ;;  %v12758_v0 = vld [vmem:[#allocation8 + $0x678] ss:$12 sps:$4 sm:$0xff]  }
 0x584   :  { %v14498_v38 = vadd.f32 %v10666_v34, %v14338_v44  ;;  %v10669_v22 = vadd.f32 %v10668_v62, %v10667_v52  ;;  %8256 = vmatprep.subr.bf16.mxu0 %v12749_v42  ;;  %10728 = vmatprep.subr.bf16.mxu1 %v12753_v1  ;;  %v12762_v44 = vld [vmem:[#allocation8 + $0x650] ss:$12 sps:$4 sm:$0xff]   ;;  %v12765_v42 = vld [vmem:[#allocation8 + $0x694] ss:$12 sps:$4 sm:$0xff]   ;;  %v12785_v1 = vld [vmem:[#allocation8 + $0x758] ss:$12 sps:$4 sm:$0xff]  }
 0x585   :  { %6884 = vmatmul.mubr.bf16.gmra.mrb[196].mxu0 %v15509_v51  ;;  %7270 = vmatmul.mubr.bf16.gmra.mrb[132].mxu1 %v15509_v51  ;;  %v15515_v51 = vld [vmem:[#allocation51_spill] sm:$0xff] }
 0x586   :  { %15508 = vst [vmem:[#allocation91_spill] sm:$0xff] %v14498_v38  ;;  %v14503_v55 = vadd.f32 %v10669_v22, %v14345_v63  ;;  %6893 = vmatprep.mubr.bf16.mxu0 %v15504_v57  ;;  %7279 = vmatprep.mubr.bf16.mxu1 %v15504_v57  ;;  %v12755_v63 = vld [vmem:[#allocation8 + $0x660] ss:$12 sps:$4 sm:$0xff]  }
 0x587   :  { %8257 = vmatpush1.bf16.msra.mxu0 %v12747_v13  ;;  %10729 = vmatpush3.bf16.msra.mxu1 %v12754_v3  ;;  %v12786_v13 = vld [vmem:[#allocation8 + $0x698] ss:$12 sps:$4 sm:$0xff]  }
 0x588   :  { %15510 = vst [vmem:[#allocation89_spill] sm:$0xff] %v14503_v55  ;;  %v10670_v4 = vpop.f32.mrb[92].mxu1  ;;  %8258 = vmatprep.subr.bf16.mxu0 %v12752_v16  ;;  %10730 = vmatprep.subr.bf16.mxu1 %v12761_v48  ;;  %v12768_v16 = vld [vmem:[#allocation8 + $0x6ac] ss:$12 sps:$4 sm:$0xff]   ;;  %v12793_v48 = vld [vmem:[#allocation8 + $0x770] ss:$12 sps:$4 sm:$0xff]  }
 0x589   :  { %v10671_v20 = vpop.f32.mrb[93].mxu1 }
 0x58a   :  { %v10672_v7 = vadd.f32 %v10671_v20, %v10670_v4  ;;  %v10673_v14 = vpop.f32.mrb[94].mxu1 }
 0x58b   :  { %v10674_v50 = vpop.f32.mrb[95].mxu1  ;;  %8259 = vmatpush1.bf16.msra.mxu0 %v12750_v58  ;;  %10731 = vmatpush3.bf16.msra.mxu1 %v12762_v44  ;;  %v12766_v44 = vld [vmem:[#allocation8 + $0x6a8] ss:$12 sps:$4 sm:$0xff]  }
 0x58c   :  { %v14508_v2 = vadd.f32 %v10672_v7, %v14348_v19  ;;  %v10675_v29 = vadd.f32 %v10674_v50, %v10673_v14  ;;  %8260 = vmatprep.subr.bf16.mxu0 %v12757_v60  ;;  %10732 = vmatprep.subr.bf16.mxu1 %v12769_v39  ;;  %v12778_v19 = vld [vmem:[#allocation8 + $0x680] ss:$12 sps:$4 sm:$0xff]   ;;  %v12773_v60 = vld [vmem:[#allocation8 + $0x6c4] ss:$12 sps:$4 sm:$0xff]  }
 0x58d   :  { %6894 = vmatmul.mubr.bf16.gmra.mrb[200].mxu0 %v15512_v40  ;;  %7280 = vmatmul.mubr.bf16.gmra.mrb[136].mxu1 %v15512_v40  ;;  %v12771_v50 = vld [vmem:[#allocation8 + $0x6c0] ss:$12 sps:$4 sm:$0xff]  }
 0x58e   :  { %15511 = vst [vmem:[#allocation95_spill] sm:$0xff] %v14508_v2  ;;  %v14513_v35 = vadd.f32 %v10675_v29, %v14355_v10  ;;  %6903 = vmatprep.mubr.bf16.mxu0 %v15504_v57  ;;  %7289 = vmatprep.mubr.bf16.mxu1 %v15504_v57  ;;  %v12763_v10 = vld [vmem:[#allocation8 + $0x690] ss:$12 sps:$4 sm:$0xff]   ;;  %v15518_v29 = vld [vmem:[#allocation52_spill] sm:$0xff] }
 0x58f   :  { %8261 = vmatpush1.bf16.msra.mxu0 %v12755_v63  ;;  %10733 = vmatpush3.bf16.msra.mxu1 %v12770_v36  ;;  %v12776_v36 = vld [vmem:[#allocation8 + $0x6dc] ss:$12 sps:$4 sm:$0xff]  }
 0x590   :  { %15513 = vst [vmem:[#allocation93_spill] sm:$0xff] %v14513_v35  ;;  %v10676_v56 = vpop.f32.mrb[96].mxu1  ;;  %8262 = vmatprep.subr.bf16.mxu0 %v12760_v18  ;;  %10734 = vmatprep.subr.bf16.mxu1 %v12777_v21  ;;  %v12774_v21 = vld [vmem:[#allocation8 + $0x6d8] ss:$12 sps:$4 sm:$0xff]  }
 0x591   :  { %v10677_v49 = vpop.f32.mrb[97].mxu1 }
 0x592   :  { %v10678_v34 = vadd.f32 %v10677_v49, %v10676_v56  ;;  %v10679_v52 = vpop.f32.mrb[98].mxu1 }
 0x593   :  { %v10680_v62 = vpop.f32.mrb[99].mxu1  ;;  %8263 = vmatpush1.bf16.msra.mxu0 %v12758_v0  ;;  %10735 = vmatpush3.bf16.msra.mxu1 %v12778_v19 }
 0x594   :  { %v14518_v3 = vadd.f32 %v10678_v34, %v14358_v41  ;;  %v10681_v22 = vadd.f32 %v10680_v62, %v10679_v52  ;;  %8264 = vmatprep.subr.bf16.mxu0 %v12765_v42  ;;  %10736 = vmatprep.subr.bf16.mxu1 %v12785_v1  ;;  %v12794_v41 = vld [vmem:[#allocation8 + $0x6b0] ss:$12 sps:$4 sm:$0xff]   ;;  %v12784_v34 = vld [vmem:[#allocation8 + $0x70c] ss:$12 sps:$4 sm:$0xff]  }
 0x595   :  { %6904 = vmatmul.mubr.bf16.gmra.mrb[204].mxu0 %v15515_v51  ;;  %7290 = vmatmul.mubr.bf16.gmra.mrb[140].mxu1 %v15515_v51  ;;  %v12779_v1 = vld [vmem:[#allocation8 + $0x6f0] ss:$12 sps:$4 sm:$0xff]  }
 0x596   :  { %15514 = vst [vmem:[#allocation99_spill] sm:$0xff] %v14518_v3  ;;  %v14523_v58 = vadd.f32 %v10681_v22, %v14365_v37  ;;  %6913 = vmatprep.mubr.bf16.mxu0 %v15504_v57  ;;  %7299 = vmatprep.mubr.bf16.mxu1 %v15504_v57  ;;  %v15521_v52 = vld [vmem:[#allocation53_spill] sm:$0xff] }
 0x597   :  { %8265 = vmatpush1.bf16.msra.mxu0 %v12763_v10  ;;  %10737 = vmatpush3.bf16.msra.mxu1 %v12786_v13  ;;  %v12782_v10 = vld [vmem:[#allocation8 + $0x708] ss:$12 sps:$4 sm:$0xff]  }
 0x598   :  { %15516 = vst [vmem:[#allocation97_spill] sm:$0xff] %v14523_v58  ;;  %v10682_v4 = vpop.f32.mrb[100].mxu1  ;;  %8266 = vmatprep.subr.bf16.mxu0 %v12768_v16  ;;  %10738 = vmatprep.subr.bf16.mxu1 %v12793_v48 }
 0x599   :  { %v10683_v39 = vpop.f32.mrb[101].mxu1 }
 0x59a   :  { %v10684_v20 = vadd.f32 %v10683_v39, %v10682_v4  ;;  %v10685_v7 = vpop.f32.mrb[102].mxu1  ;;  %v12792_v4 = vld [vmem:[#allocation8 + $0x73c] ss:$12 sps:$4 sm:$0xff]  }
 0x59b   :  { %v10686_v14 = vpop.f32.mrb[103].mxu1  ;;  %8267 = vmatpush1.bf16.msra.mxu0 %v12766_v44  ;;  %10739 = vmatpush3.bf16.msra.mxu1 %v12794_v41  ;;  %v12787_v44 = vld [vmem:[#allocation8 + $0x720] ss:$12 sps:$4 sm:$0xff]  }
 0x59c   :  { %v14528_v37 = vadd.f32 %v10684_v20, %v14368_v15  ;;  %v10687_v63 = vadd.f32 %v10686_v14, %v10685_v7  ;;  %8268 = vmatprep.subr.bf16.mxu0 %v12773_v60  ;;  %v12781_v15 = vld [vmem:[#allocation8 + $0x6f4] ss:$12 sps:$4 sm:$0xff]   ;;  %v12790_v20 = vld [vmem:[#allocation8 + $0x738] ss:$12 sps:$4 sm:$0xff]  }
 0x59d   :  { %6914 = vmatmul.mubr.bf16.gmra.mrb[208].mxu0 %v15518_v29  ;;  %7300 = vmatmul.mubr.bf16.gmra.mrb[144].mxu1 %v15518_v29  ;;  %v15524_v60 = vld [vmem:[#allocation54_spill] sm:$0xff] }
 0x59e   :  { %15517 = vst [vmem:[#allocation103_spill] sm:$0xff] %v14528_v37  ;;  %v14533_v18 = vadd.f32 %v10687_v63, %v14375_v24  ;;  %6923 = vmatprep.mubr.bf16.mxu0 %v15504_v57  ;;  %7309 = vmatprep.mubr.bf16.mxu1 %v15504_v57 }
 0x59f   :  { %8269 = vmatpush1.bf16.msra.mxu0 %v12771_v50 }
 0x5a0   :  { %15519 = vst [vmem:[#allocation101_spill] sm:$0xff] %v14533_v18  ;;  %v10688_v40 = vpop.f32.mrb[104].mxu1  ;;  %8270 = vmatprep.subr.bf16.mxu0 %v12776_v36 }
 0x5a1   :  { %v10689_v0 = vpop.f32.mrb[105].mxu1 }
 0x5a2   :  { %v10690_v19 = vadd.f32 %v10689_v0, %v10688_v40  ;;  %v10691_v56 = vpop.f32.mrb[106].mxu1 }
 0x5a3   :  { %v10692_v42 = vpop.f32.mrb[107].mxu1  ;;  %8271 = vmatpush1.bf16.msra.mxu0 %v12774_v21  ;;  %v15527_v21 = vld [vmem:[#allocation55_spill] sm:$0xff] }
 0x5a4   :  { %v14538_v49 = vadd.f32 %v10690_v19, %v14378_v46  ;;  %v10693_v24 = vadd.f32 %v10692_v42, %v10691_v56  ;;  %8272 = vmatprep.subr.bf16.mxu0 %v12781_v15  ;;  %v12789_v46 = vld [vmem:[#allocation8 + $0x724] ss:$12 sps:$4 sm:$0xff]  }
 0x5a5   :  { %6924 = vmatmul.mubr.bf16.gmra.mrb[212].mxu0 %v15521_v52  ;;  %7310 = vmatmul.mubr.bf16.gmra.mrb[148].mxu1 %v15521_v52 }
 0x5a6   :  { %15520 = vst [vmem:[#allocation107_spill] sm:$0xff] %v14538_v49  ;;  %v14543_v62 = vadd.f32 %v10693_v24, %v14385_v59  ;;  %6933 = vmatprep.mubr.bf16.mxu0 %v15504_v57  ;;  %7319 = vmatprep.mubr.bf16.mxu1 %v15504_v57 }
 0x5a7   :  { %8273 = vmatpush1.bf16.msra.mxu0 %v12779_v1  ;;  %v15530_v1 = vld [vmem:[#allocation56_spill] sm:$0xff] }
 0x5a8   :  { %15522 = vst [vmem:[#allocation105_spill] sm:$0xff] %v14543_v62  ;;  %v10694_v13 = vpop.f32.mrb[108].mxu1  ;;  %8274 = vmatprep.subr.bf16.mxu0 %v12784_v34 }
 0x5a9   :  { %v10695_v22 = vpop.f32.mrb[109].mxu1 }
 0x5aa   :  { %v10696_v16 = vadd.f32 %v10695_v22, %v10694_v13  ;;  %v10697_v48 = vpop.f32.mrb[110].mxu1  ;;  %v15533_v22 = vld [vmem:[#allocation57_spill] sm:$0xff] }
 0x5ab   :  { %v10698_v51 = vpop.f32.mrb[111].mxu1  ;;  %8275 = vmatpush1.bf16.msra.mxu0 %v12782_v10 }
 0x5ac   :  { %v14548_v41 = vadd.f32 %v10696_v16, %v14388_v30  ;;  %v10699_v59 = vadd.f32 %v10698_v51, %v10697_v48  ;;  %8276 = vmatprep.subr.bf16.mxu0 %v12789_v46 }
 0x5ad   :  { %6934 = vmatmul.mubr.bf16.gmra.mrb[216].mxu0 %v15524_v60  ;;  %7320 = vmatmul.mubr.bf16.gmra.mrb[152].mxu1 %v15524_v60  ;;  %v15536_v60 = vld [vmem:[#allocation58_spill] sm:$0xff] }
 0x5ae   :  { %15523 = vst [vmem:[#allocation111_spill] sm:$0xff] %v14548_v41  ;;  %v14553_v39 = vadd.f32 %v10699_v59, %v14395_v26  ;;  %6943 = vmatprep.mubr.bf16.mxu0 %v15504_v57  ;;  %7329 = vmatprep.mubr.bf16.mxu1 %v15504_v57 }
 0x5af   :  { %8277 = vmatpush1.bf16.msra.mxu0 %v12787_v44 }
 0x5b0   :  { %15525 = vst [vmem:[#allocation109_spill] sm:$0xff] %v14553_v39  ;;  %v10700_v7 = vpop.f32.mrb[112].mxu1  ;;  %8278 = vmatprep.subr.bf16.mxu0 %v12792_v4 }
 0x5b1   :  { %v10701_v30 = vpop.f32.mrb[113].mxu1 }
 0x5b2   :  { %v10702_v14 = vadd.f32 %v10701_v30, %v10700_v7  ;;  %v10703_v50 = vpop.f32.mrb[114].mxu1  ;;  %v12795_v7 = vld [vmem:[#allocation8 + $0x750] ss:$12 sps:$4 sm:$0xff]  }
 0x5b3   :  { %v10704_v63 = vpop.f32.mrb[115].mxu1  ;;  %8279 = vmatpush1.bf16.msra.mxu0 %v12790_v20  ;;  %v12797_v20 = vld [vmem:[#allocation8 + $0x754] ss:$12 sps:$4 sm:$0xff]  }
 0x5b4   :  { %v14558_v36 = vadd.f32 %v10702_v14, %v14398_v25  ;;  %v10705_v29 = vadd.f32 %v10704_v63, %v10703_v50  ;;  %8280 = vmatprep.subr.bf16.mxu0 %v12797_v20  ;;  %v15538_v30 = vld [vmem:[#allocation59_spill] sm:$0xff]  ;;  %v12798_v14 = vld [vmem:[#allocation8 + $0x768] ss:$12 sps:$4 sm:$0xff]   ;;  %v12805_v63 = vld [vmem:[#allocation8 + $0x784] ss:$12 sps:$4 sm:$0xff]  }
 0x5b5   :  { %6944 = vmatmul.mubr.bf16.gmra.mrb[220].mxu0 %v15527_v21  ;;  %7330 = vmatmul.mubr.bf16.gmra.mrb[156].mxu1 %v15527_v21  ;;  %v12801_v50 = vld [vmem:[#allocation8 + $0x848] ss:$12 sps:$4 sm:$0xff]  }
 0x5b6   :  { %15526 = vst [vmem:[#allocation115_spill] sm:$0xff] %v14558_v36  ;;  %v14563_v26 = vadd.f32 %v10705_v29, %v14405_v53  ;;  %6953 = vmatprep.mubr.bf16.mxu0 %v15504_v57  ;;  %7339 = vmatprep.mubr.bf16.mxu1 %v15504_v57  ;;  %v15540_v29 = vld [vmem:[#allocation61_spill] sm:$0xff]  ;;  %v15541_v21 = vld [vmem:[#allocation62_spill] sm:$0xff] }
 0x5b7   :  { %8281 = vmatpush1.bf16.msra.mxu0 %v12795_v7  ;;  %10836 = vmatprep.subr.bf16.mxu1 %v12801_v50 }
 0x5b8   :  { %15528 = vst [vmem:[#allocation113_spill] sm:$0xff] %v14563_v26  ;;  %v10706_v40 = vpop.f32.mrb[116].mxu1 }
 0x5b9   :  { %v10707_v15 = vpop.f32.mrb[117].mxu1 }
 0x5ba   :  { %v10708_v0 = vadd.f32 %v10707_v15, %v10706_v40  ;;  %v10709_v19 = vpop.f32.mrb[118].mxu1  ;;  %v15542_v40 = vld [vmem:[#allocation63_spill] sm:$0xff] }
 0x5bb   :  { %v10710_v56 = vpop.f32.mrb[119].mxu1  ;;  %v6146_v15 = vld [vmem:[#allocation7 + $0x8] sm:$0xf] }
 0x5bc   :  { %v14568_v25 = vadd.f32 %v10708_v0, %v14408_v12  ;;  %v10711_v42 = vadd.f32 %v10710_v56, %v10709_v19  ;;  %v15543_v0 = vld [vmem:[#allocation64_spill] sm:$0xff]  ;;  %v15544_v56 = vld [vmem:[#allocation65_spill] sm:$0xff] }
 0x5bd   :  { %6954 = vmatmul.mubr.bf16.gmra.mrb[224].mxu0 %v15530_v1  ;;  %7340 = vmatmul.mubr.bf16.gmra.mrb[160].mxu1 %v15530_v1  ;;  %v14616_v19 = vrot.slane %v6146_v15, %v15543_v0  ;;  %v15545_v1 = vld [vmem:[#allocation66_spill] sm:$0xff] }
 0x5be   :  { %15529 = vst [vmem:[#allocation119_spill] sm:$0xff] %v14568_v25  ;;  %v14573_v53 = vadd.f32 %v10711_v42, %v14415_v8  ;;  %6963 = vmatprep.mubr.bf16.mxu0 %v15504_v57  ;;  %7349 = vmatprep.mubr.bf16.mxu1 %v15504_v57  ;;  %v14619_v42 = vrot.slane %v6146_v15, %v15544_v56 }
 0x5c0   :  { %15531 = vst [vmem:[#allocation117_spill] sm:$0xff] %v14573_v53  ;;  %v10712_v24 = vpop.f32.mrb[120].mxu1 }
 0x5c1   :  { %v10713_v34 = vpop.f32.mrb[121].mxu1 }
 0x5c2   :  { %v10714_v52 = vadd.f32 %v10713_v34, %v10712_v24  ;;  %v10715_v10 = vpop.f32.mrb[122].mxu1  ;;  %v14622_v24 = vrot.slane %v6146_v15, %v15545_v1  ;;  %v15546_v34 = vld [vmem:[#allocation67_spill] sm:$0xff] }
 0x5c3   :  { %v10716_v13 = vpop.f32.mrb[123].mxu1 }
 0x5c4   :  { %v14578_v12 = vadd.f32 %v10714_v52, %v14418_v32  ;;  %v10717_v46 = vadd.f32 %v10716_v13, %v10715_v10  ;;  %v14625_v52 = vrot.slane %v6146_v15, %v15546_v34 }
 0x5c5   :  { %6964 = vmatmul.mubr.bf16.gmra.mrb[228].mxu0 %v15533_v22  ;;  %7350 = vmatmul.mubr.bf16.gmra.mrb[164].mxu1 %v15533_v22 }
 0x5c6   :  { %15532 = vst [vmem:[#allocation123_spill] sm:$0xff] %v14578_v12  ;;  %v14583_v8 = vadd.f32 %v10717_v46, %v14425_v33  ;;  %6973 = vmatprep.mubr.bf16.mxu0 %v15504_v57  ;;  %7359 = vmatprep.mubr.bf16.mxu1 %v15504_v57 }
 0x5c8   :  { %15534 = vst [vmem:[#allocation121_spill] sm:$0xff] %v14583_v8  ;;  %v10718_v16 = vpop.f32.mrb[124].mxu1 }
 0x5c9   :  { %v10719_v48 = vpop.f32.mrb[125].mxu1 }
 0x5ca   :  { %v10720_v51 = vadd.f32 %v10719_v48, %v10718_v16  ;;  %v10721_v44 = vpop.f32.mrb[126].mxu1 }
 0x5cb   :  { %v10722_v59 = vpop.f32.mrb[127].mxu1 }
 0x5cc   :  { %v14588_v32 = vadd.f32 %v10720_v51, %v14428_v45  ;;  %v10723_v4 = vadd.f32 %v10722_v59, %v10721_v44  ;;  %v12800_v45 = vld [vmem:[#allocation8 + $0x76c] ss:$12 sps:$4 sm:$0xff]  }
 0x5cd   :  { %6974 = vmatmul.mubr.bf16.gmra.mrb[232].mxu0 %v15536_v60  ;;  %7360 = vmatmul.mubr.bf16.gmra.mrb[168].mxu1 %v15536_v60 }
 0x5ce   :  { %15535 = vst [vmem:[#allocation69_spill] sm:$0xff] %v14588_v32  ;;  %v14593_v33 = vadd.f32 %v10723_v4, %v14435_v11  ;;  %6983 = vmatprep.mubr.bf16.mxu0 %v15504_v57  ;;  %7369 = vmatprep.mubr.bf16.mxu1 %v15504_v57  ;;  %v15539_v11 = vld [vmem:[#allocation60_spill] sm:$0xff] }
 0x5cf   :  { %8282 = vmatprep.subr.bf16.mxu0 %v12800_v45 }
 0x5d0   :  { %15537 = vst [vmem:[#allocation68_spill] sm:$0xff] %v14593_v33  ;;  %8283 = vmatpush1.bf16.msra.mxu0 %v12798_v14 }
 0x5d1   :  { %8445 = vmatprep.subr.bf16.mxu0 %v12805_v63 }
 0x5d5   :  { %6984 = vmatmul.mubr.bf16.gmra.mrb[236].mxu0 %v15538_v30  ;;  %7370 = vmatmul.mubr.bf16.gmra.mrb[172].mxu1 %v15538_v30 }
 0x5d6   :  { %6993 = vmatprep.mubr.bf16.mxu0 %v15504_v57  ;;  %7379 = vmatprep.mubr.bf16.mxu1 %v15504_v57 }
 0x5dd   :  { %6994 = vmatmul.mubr.bf16.gmra.mrb[240].mxu0 %v15539_v11  ;;  %7380 = vmatmul.mubr.bf16.gmra.mrb[176].mxu1 %v15539_v11 }
 0x5de   :  { %7003 = vmatprep.mubr.bf16.mxu0 %v15504_v57  ;;  %7389 = vmatprep.mubr.bf16.mxu1 %v15504_v57 }
 0x5e5   :  { %7004 = vmatmul.mubr.bf16.gmra.mrb[244].mxu0 %v15540_v29  ;;  %7390 = vmatmul.mubr.bf16.gmra.mrb[180].mxu1 %v15540_v29 }
 0x5e6   :  { %7013 = vmatprep.mubr.bf16.mxu0 %v15504_v57  ;;  %7399 = vmatprep.mubr.bf16.mxu1 %v15504_v57 }
 0x5ed   :  { %7014 = vmatmul.mubr.bf16.gmra.mrb[248].mxu0 %v15541_v21  ;;  %7400 = vmatmul.mubr.bf16.gmra.mrb[184].mxu1 %v15541_v21 }
 0x5ee   :  { %7023 = vmatprep.mubr.bf16.mxu0 %v15504_v57  ;;  %7409 = vmatprep.mubr.bf16.mxu1 %v15504_v57 }
 0x5f5   :  { %7024 = vmatmul.mubr.bf16.gmra.mrb[252].mxu0 %v15542_v40  ;;  %7410 = vmatmul.mubr.bf16.gmra.mrb[188].mxu1 %v15542_v40 }
 0x650   :  { %v6875_v10 = vpop.f32.mrb[192].mxu0  ;;  %v7261_v13 = vpop.f32.mrb[128].mxu1 }
 0x651   :  { %v11204_v57 = vadd.f32 %v6875_v10, %v14616_v19  ;;  %v11268_v46 = vadd.f32 %v7261_v13, %v14619_v42  ;;  %v6877_v22 = vpop.f32.mrb[193].mxu0  ;;  %v7263_v16 = vpop.f32.mrb[129].mxu1 }
 0x652   :  { %v11205_v48 = vadd.f32 %v6877_v22, %v14622_v24  ;;  %v11269_v51 = vadd.f32 %v7263_v16, %v14625_v52  ;;  %v6879_v44 = vpop.f32.mrb[194].mxu0  ;;  %v7265_v59 = vpop.f32.mrb[130].mxu1 }
 0x653   :  { %v11206_v4 = vadd.f32 %v6879_v44, %v14616_v19  ;;  %v11270_v60 = vadd.f32 %v7265_v59, %v14619_v42  ;;  %v6881_v20 = vpop.f32.mrb[195].mxu0  ;;  %v7267_v7 = vpop.f32.mrb[131].mxu1  ;;  %v7420_v14 = vmax.f32 %v11204_v57, 0.0  ;;  %v7422_v11 = vmax.f32 %v11268_v46, 0.0  ;;  %v12802_v59 = vld [vmem:[#allocation8 + $0x788] ss:$12 sps:$4 sm:$0xff]  }
 0x654   :  { %v11207_v30 = vadd.f32 %v6881_v20, %v14622_v24  ;;  %v11271_v45 = vadd.f32 %v7267_v7, %v14625_v52  ;;  %v7421_v29 = vmax.f32 %v11205_v48, 0.0  ;;  %v7423_v21 = vmax.f32 %v11269_v51, 0.0  ;;  %v12803_v20 = vld [vmem:[#allocation8 + $0x780] ss:$12 sps:$4 sm:$0xff]   ;;  %v12808_v48 = vld [vmem:[#allocation8 + $0x79c] ss:$12 sps:$4 sm:$0xff]  }
 0x655   :  { %v7424_v50 = vmax.f32 %v11206_v4, 0.0  ;;  %v7426_v63 = vmax.f32 %v11270_v60, 0.0  ;;  %v12809_v51 = vld [vmem:[#allocation8 + $0x860] ss:$12 sps:$4 sm:$0xff]  }
 0x656   :  { %v7425_v40 = vmax.f32 %v11207_v30, 0.0  ;;  %v7427_v15 = vmax.f32 %v11271_v45, 0.0 }
 0x657   :  { %v7548_v34 = vpack.c.bf16 %v7424_v50, %v7420_v14  ;;  %v14635_v10 = vpack.c.bf16 %v7426_v63, %v7422_v11 }
 0x658   :  { %v7549_v13 = vpack.c.bf16 %v7425_v40, %v7421_v29  ;;  %v14637_v22 = vpack.c.bf16 %v7427_v15, %v7423_v21  ;;  %v6885_v16 = vpop.f32.mrb[196].mxu0  ;;  %v7271_v44 = vpop.f32.mrb[132].mxu1  ;;  %v12806_v15 = vld [vmem:[#allocation8 + $0x798] ss:$12 sps:$4 sm:$0xff]  }
 0x659   :  { %v11208_v7 = vadd.f32 %v6885_v16, %v14616_v19  ;;  %v11272_v57 = vadd.f32 %v7271_v44, %v14619_v42  ;;  %v6887_v46 = vpop.f32.mrb[197].mxu0  ;;  %v7273_v4 = vpop.f32.mrb[133].mxu1  ;;  %v12810_v16 = vld [vmem:[#allocation8 + $0x7a0] ss:$12 sps:$4 sm:$0xff]  }
 0x65a   :  { %v11209_v60 = vadd.f32 %v6887_v46, %v14622_v24  ;;  %v11273_v30 = vadd.f32 %v7273_v4, %v14625_v52  ;;  %v6889_v45 = vpop.f32.mrb[198].mxu0  ;;  %v7275_v14 = vpop.f32.mrb[134].mxu1  ;;  %8284 = vmatprep.mubr.bf16.mxu0 %v7549_v13  ;;  %8670 = vmatprep.mubr.bf16.mxu1 %v7549_v13  ;;  %v12813_v44 = vld [vmem:[#allocation8 + $0x7b4] ss:$12 sps:$4 sm:$0xff]  }
 0x65b   :  { %v11210_v11 = vadd.f32 %v6889_v45, %v14616_v19  ;;  %v11274_v50 = vadd.f32 %v7275_v14, %v14619_v42  ;;  %v6891_v63 = vpop.f32.mrb[199].mxu0  ;;  %v7277_v29 = vpop.f32.mrb[135].mxu1  ;;  %8285 = vmatmul.mubr.bf16.vlgmr.msra.gmra.mrb[128].mxu0 %v7548_v34  ;;  %8671 = vmatmul.mubr.bf16.vlgmr.msra.gmra.mrb[192].mxu1 %v7548_v34  ;;  %v7428_v46 = vmax.f32 %v11208_v7, 0.0  ;;  %v7430_v4 = vmax.f32 %v11272_v57, 0.0  ;;  %v12817_v45 = vld [vmem:[#allocation8 + $0x878] ss:$12 sps:$4 sm:$0xff]  }
 0x65c   :  { %v11211_v21 = vadd.f32 %v6891_v63, %v14622_v24  ;;  %v11275_v40 = vadd.f32 %v7277_v29, %v14625_v52  ;;  %10837 = vmatpush3.bf16.msra.mxu1 %v12802_v59  ;;  %8446 = vmatpush1.bf16.msra.mxu0 %v12803_v20  ;;  %v7429_v14 = vmax.f32 %v11209_v60, 0.0  ;;  %v7431_v32 = vmax.f32 %v11273_v30, 0.0  ;;  %v12811_v7 = vld [vmem:[#allocation8 + $0x7b0] ss:$12 sps:$4 sm:$0xff]   ;;  %v12818_v57 = vld [vmem:[#allocation8 + $0x7b8] ss:$12 sps:$4 sm:$0xff]  }
 0x65d   :  { %v7432_v13 = vmax.f32 %v11210_v11, 0.0  ;;  %v7434_v33 = vmax.f32 %v11274_v50, 0.0  ;;  %8447 = vmatprep.subr.bf16.mxu0 %v12808_v48  ;;  %10838 = vmatprep.subr.bf16.mxu1 %v12809_v51  ;;  %v12816_v11 = vld [vmem:[#allocation8 + $0x7cc] ss:$12 sps:$4 sm:$0xff]  }
 0x65e   :  { %v7433_v8 = vmax.f32 %v11211_v21, 0.0  ;;  %v7435_v34 = vmax.f32 %v11275_v40, 0.0 }
 0x65f   :  { %v7552_v12 = vpack.c.bf16 %v7432_v13, %v7428_v46  ;;  %v14647_v63 = vpack.c.bf16 %v7434_v33, %v7430_v4  ;;  %v12825_v33 = vld [vmem:[#allocation8 + $0x890] ss:$12 sps:$4 sm:$0xff]   ;;  %v12814_v4 = vld [vmem:[#allocation8 + $0x7c8] ss:$12 sps:$4 sm:$0xff]  }
 0x660   :  { %v7553_v29 = vpack.c.bf16 %v7433_v8, %v7429_v14  ;;  %v14649_v59 = vpack.c.bf16 %v7435_v34, %v7431_v32  ;;  %v6895_v20 = vpop.f32.mrb[200].mxu0  ;;  %v7281_v53 = vpop.f32.mrb[136].mxu1  ;;  %8448 = vmatpush1.bf16.msra.mxu0 %v12806_v15  ;;  %10839 = vmatpush3.bf16.msra.mxu1 %v12810_v16  ;;  %v12821_v13 = vld [vmem:[#allocation8 + $0x7e4] ss:$12 sps:$4 sm:$0xff]  }
 0x661   :  { %v11212_v48 = vadd.f32 %v6895_v20, %v14616_v19  ;;  %v11276_v51 = vadd.f32 %v7281_v53, %v14619_v42  ;;  %v6897_v60 = vpop.f32.mrb[201].mxu0  ;;  %v7283_v30 = vpop.f32.mrb[137].mxu1  ;;  %8449 = vmatprep.subr.bf16.mxu0 %v12813_v44  ;;  %10840 = vmatprep.subr.bf16.mxu1 %v12817_v45  ;;  %v12826_v45 = vld [vmem:[#allocation8 + $0x7d0] ss:$12 sps:$4 sm:$0xff]  }
 0x662   :  { %v11213_v8 = vadd.f32 %v6897_v60, %v14622_v24  ;;  %v11277_v32 = vadd.f32 %v7283_v30, %v14625_v52  ;;  %v6899_v50 = vpop.f32.mrb[202].mxu0  ;;  %v7285_v21 = vpop.f32.mrb[138].mxu1  ;;  %8294 = vmatprep.mubr.bf16.mxu0 %v7553_v29  ;;  %8678 = vmatprep.mubr.bf16.mxu1 %v7553_v29  ;;  %v12833_v60 = vld [vmem:[#allocation8 + $0x8a8] ss:$12 sps:$4 sm:$0xff]  }
 0x663   :  { %v11214_v40 = vadd.f32 %v6899_v50, %v14616_v19  ;;  %v11278_v15 = vadd.f32 %v7285_v21, %v14619_v42  ;;  %v6901_v16 = vpop.f32.mrb[203].mxu0  ;;  %v7287_v53 = vpop.f32.mrb[139].mxu1  ;;  %8295 = vmatmul.mubr.bf16.gmra.mrb[132].mxu0 %v7552_v12  ;;  %8679 = vmatmul.mubr.bf16.gmra.mrb[196].mxu1 %v7552_v12  ;;  %v7436_v14 = vmax.f32 %v11212_v48, 0.0  ;;  %v7438_v34 = vmax.f32 %v11276_v51, 0.0  ;;  %v12819_v48 = vld [vmem:[#allocation8 + $0x7e0] ss:$12 sps:$4 sm:$0xff]  }
 0x664   :  { %v11215_v44 = vadd.f32 %v6901_v16, %v14622_v24  ;;  %v11279_v46 = vadd.f32 %v7287_v53, %v14625_v52  ;;  %8450 = vmatpush1.bf16.msra.mxu0 %v12811_v7  ;;  %10841 = vmatpush3.bf16.msra.mxu1 %v12818_v57  ;;  %v7437_v30 = vmax.f32 %v11213_v8, 0.0  ;;  %v7439_v50 = vmax.f32 %v11277_v32, 0.0  ;;  %v12834_v51 = vld [vmem:[#allocation8 + $0x7e8] ss:$12 sps:$4 sm:$0xff]  }
 0x665   :  { %v7440_v29 = vmax.f32 %v11214_v40, 0.0  ;;  %v7442_v20 = vmax.f32 %v11278_v15, 0.0  ;;  %8451 = vmatprep.subr.bf16.mxu0 %v12816_v11  ;;  %10842 = vmatprep.subr.bf16.mxu1 %v12825_v33  ;;  %v12824_v40 = vld [vmem:[#allocation8 + $0x7fc] ss:$12 sps:$4 sm:$0xff]   ;;  %v12841_v15 = vld [vmem:[#allocation8 + $0x8c0] ss:$12 sps:$4 sm:$0xff]  }
 0x666   :  { %v7441_v21 = vmax.f32 %v11215_v44, 0.0  ;;  %v7443_v12 = vmax.f32 %v11279_v46, 0.0 }
 0x667   :  { %v7556_v25 = vpack.c.bf16 %v7440_v29, %v7436_v14  ;;  %v14659_v16 = vpack.c.bf16 %v7442_v20, %v7438_v34 }
 0x668   :  { %v7557_v53 = vpack.c.bf16 %v7441_v21, %v7437_v30  ;;  %v14661_v7 = vpack.c.bf16 %v7443_v12, %v7439_v50  ;;  %v6905_v57 = vpop.f32.mrb[204].mxu0  ;;  %v7291_v26 = vpop.f32.mrb[140].mxu1  ;;  %8452 = vmatpush1.bf16.msra.mxu0 %v12814_v4  ;;  %10843 = vmatpush3.bf16.msra.mxu1 %v12826_v45  ;;  %v12829_v30 = vld [vmem:[#allocation8 + $0x814] ss:$12 sps:$4 sm:$0xff]  }
 0x669   :  { %v11216_v11 = vadd.f32 %v6905_v57, %v14616_v19  ;;  %v11280_v33 = vadd.f32 %v7291_v26, %v14619_v42  ;;  %v6907_v8 = vpop.f32.mrb[205].mxu0  ;;  %v7293_v32 = vpop.f32.mrb[141].mxu1  ;;  %8453 = vmatprep.subr.bf16.mxu0 %v12821_v13  ;;  %10844 = vmatprep.subr.bf16.mxu1 %v12833_v60  ;;  %v12822_v60 = vld [vmem:[#allocation8 + $0x7f8] ss:$12 sps:$4 sm:$0xff]   ;;  %v12842_v50 = vld [vmem:[#allocation8 + $0x800] ss:$12 sps:$4 sm:$0xff]  }
 0x66a   :  { %v11217_v44 = vadd.f32 %v6907_v8, %v14622_v24  ;;  %v11281_v46 = vadd.f32 %v7293_v32, %v14625_v52  ;;  %v6909_v14 = vpop.f32.mrb[206].mxu0  ;;  %v7295_v34 = vpop.f32.mrb[142].mxu1  ;;  %8304 = vmatprep.mubr.bf16.mxu0 %v7557_v53  ;;  %8686 = vmatprep.mubr.bf16.mxu1 %v7557_v53  ;;  %v12849_v8 = vld [vmem:[#allocation8 + $0x8d8] ss:$12 sps:$4 sm:$0xff]  }
 0x66b   :  { %v11218_v4 = vadd.f32 %v6909_v14, %v14616_v19  ;;  %v11282_v45 = vadd.f32 %v7295_v34, %v14619_v42  ;;  %v6911_v29 = vpop.f32.mrb[207].mxu0  ;;  %v7297_v26 = vpop.f32.mrb[143].mxu1  ;;  %8305 = vmatmul.mubr.bf16.gmra.mrb[136].mxu0 %v7556_v25  ;;  %8687 = vmatmul.mubr.bf16.gmra.mrb[200].mxu1 %v7556_v25  ;;  %v7444_v21 = vmax.f32 %v11216_v11, 0.0  ;;  %v7446_v12 = vmax.f32 %v11280_v33, 0.0  ;;  %v12827_v11 = vld [vmem:[#allocation8 + $0x810] ss:$12 sps:$4 sm:$0xff]  }
 0x66c   :  { %v11219_v13 = vadd.f32 %v6911_v29, %v14622_v24  ;;  %v11283_v20 = vadd.f32 %v7297_v26, %v14625_v52  ;;  %8454 = vmatpush1.bf16.msra.mxu0 %v12819_v48  ;;  %10845 = vmatpush3.bf16.msra.mxu1 %v12834_v51  ;;  %v7445_v32 = vmax.f32 %v11217_v44, 0.0  ;;  %v7447_v14 = vmax.f32 %v11281_v46, 0.0  ;;  %v12850_v33 = vld [vmem:[#allocation8 + $0x818] ss:$12 sps:$4 sm:$0xff]  }
 0x66d   :  { %v7448_v53 = vmax.f32 %v11218_v4, 0.0  ;;  %v7450_v57 = vmax.f32 %v11282_v45, 0.0  ;;  %8455 = vmatprep.subr.bf16.mxu0 %v12824_v40  ;;  %10846 = vmatprep.subr.bf16.mxu1 %v12841_v15  ;;  %v12832_v4 = vld [vmem:[#allocation8 + $0x82c] ss:$12 sps:$4 sm:$0xff]   ;;  %v12857_v45 = vld [vmem:[#allocation8 + $0x8f0] ss:$12 sps:$4 sm:$0xff]  }
 0x66e   :  { %v7449_v34 = vmax.f32 %v11219_v13, 0.0  ;;  %v7451_v25 = vmax.f32 %v11283_v20, 0.0 }
 0x66f   :  { %v7560_v36 = vpack.c.bf16 %v7448_v53, %v7444_v21  ;;  %v14671_v29 = vpack.c.bf16 %v7450_v57, %v7446_v12 }
 0x670   :  { %v7561_v26 = vpack.c.bf16 %v7449_v34, %v7445_v32  ;;  %v14673_v48 = vpack.c.bf16 %v7451_v25, %v7447_v14  ;;  %v6915_v39 = vpop.f32.mrb[208].mxu0  ;;  %v7301_v51 = vpop.f32.mrb[144].mxu1  ;;  %8456 = vmatpush1.bf16.msra.mxu0 %v12822_v60  ;;  %10847 = vmatpush3.bf16.msra.mxu1 %v12842_v50  ;;  %v12858_v32 = vld [vmem:[#allocation8 + $0x830] ss:$12 sps:$4 sm:$0xff]  }
 0x671   :  { %v11220_v40 = vadd.f32 %v6915_v39, %v14616_v19  ;;  %v11284_v15 = vadd.f32 %v7301_v51, %v14619_v42  ;;  %v6917_v44 = vpop.f32.mrb[209].mxu0  ;;  %v7303_v46 = vpop.f32.mrb[145].mxu1  ;;  %8457 = vmatprep.subr.bf16.mxu0 %v12829_v30  ;;  %10848 = vmatprep.subr.bf16.mxu1 %v12849_v8  ;;  %v12830_v8 = vld [vmem:[#allocation8 + $0x828] ss:$12 sps:$4 sm:$0xff]   ;;  %v12837_v51 = vld [vmem:[#allocation8 + $0x844] ss:$12 sps:$4 sm:$0xff]  }
 0x672   :  { %v11221_v13 = vadd.f32 %v6917_v44, %v14622_v24  ;;  %v11285_v20 = vadd.f32 %v7303_v46, %v14625_v52  ;;  %v6919_v21 = vpop.f32.mrb[210].mxu0  ;;  %v7305_v12 = vpop.f32.mrb[146].mxu1  ;;  %8314 = vmatprep.mubr.bf16.mxu0 %v7561_v26  ;;  %8694 = vmatprep.mubr.bf16.mxu1 %v7561_v26 }
 0x673   :  { %v11222_v60 = vadd.f32 %v6919_v21, %v14616_v19  ;;  %v11286_v39 = vadd.f32 %v7305_v12, %v14619_v42  ;;  %v6921_v50 = vpop.f32.mrb[211].mxu0  ;;  %v7307_v53 = vpop.f32.mrb[147].mxu1  ;;  %8315 = vmatmul.mubr.bf16.gmra.mrb[140].mxu0 %v7560_v36  ;;  %8695 = vmatmul.mubr.bf16.gmra.mrb[204].mxu1 %v7560_v36  ;;  %v7452_v14 = vmax.f32 %v11220_v40, 0.0  ;;  %v7454_v34 = vmax.f32 %v11284_v15, 0.0  ;;  %v12835_v40 = vld [vmem:[#allocation8 + $0x840] ss:$12 sps:$4 sm:$0xff]  }
 0x674   :  { %v11223_v30 = vadd.f32 %v6921_v50, %v14622_v24  ;;  %v11287_v57 = vadd.f32 %v7307_v53, %v14625_v52  ;;  %8458 = vmatpush1.bf16.msra.mxu0 %v12827_v11  ;;  %10849 = vmatpush3.bf16.msra.mxu1 %v12850_v33  ;;  %v7453_v44 = vmax.f32 %v11221_v13, 0.0  ;;  %v7455_v46 = vmax.f32 %v11285_v20, 0.0  ;;  %v12840_v20 = vld [vmem:[#allocation8 + $0x85c] ss:$12 sps:$4 sm:$0xff]  }
 0x675   :  { %v7456_v25 = vmax.f32 %v11222_v60, 0.0  ;;  %v7458_v26 = vmax.f32 %v11286_v39, 0.0  ;;  %8459 = vmatprep.subr.bf16.mxu0 %v12832_v4  ;;  %10850 = vmatprep.subr.bf16.mxu1 %v12857_v45 }
 0x676   :  { %v7457_v21 = vmax.f32 %v11223_v30, 0.0  ;;  %v7459_v12 = vmax.f32 %v11287_v57, 0.0 }
 0x677   :  { %v7564_v36 = vpack.c.bf16 %v7456_v25, %v7452_v14  ;;  %v14683_v41 = vpack.c.bf16 %v7458_v26, %v7454_v34 }
 0x678   :  { %v7565_v50 = vpack.c.bf16 %v7457_v21, %v7453_v44  ;;  %v14685_v53 = vpack.c.bf16 %v7459_v12, %v7455_v46  ;;  %v6925_v11 = vpop.f32.mrb[212].mxu0  ;;  %v7311_v33 = vpop.f32.mrb[148].mxu1  ;;  %8460 = vmatpush1.bf16.msra.mxu0 %v12830_v8  ;;  %10851 = vmatpush3.bf16.msra.mxu1 %v12858_v32 }
 0x679   :  { %v11224_v15 = vadd.f32 %v6925_v11, %v14616_v19  ;;  %v11288_v4 = vadd.f32 %v7311_v33, %v14619_v42  ;;  %v6927_v45 = vpop.f32.mrb[213].mxu0  ;;  %v7313_v13 = vpop.f32.mrb[149].mxu1  ;;  %8461 = vmatprep.subr.bf16.mxu0 %v12837_v51  ;;  %v12838_v51 = vld [vmem:[#allocation8 + $0x858] ss:$12 sps:$4 sm:$0xff]  }
 0x67a   :  { %v11225_v60 = vadd.f32 %v6927_v45, %v14622_v24  ;;  %v11289_v39 = vadd.f32 %v7313_v13, %v14625_v52  ;;  %v6929_v30 = vpop.f32.mrb[214].mxu0  ;;  %v7315_v57 = vpop.f32.mrb[150].mxu1  ;;  %8324 = vmatprep.mubr.bf16.mxu0 %v7565_v50  ;;  %8702 = vmatprep.mubr.bf16.mxu1 %v7565_v50  ;;  %v12845_v50 = vld [vmem:[#allocation8 + $0x874] ss:$12 sps:$4 sm:$0xff]  }
 0x67b   :  { %v11226_v8 = vadd.f32 %v6929_v30, %v14616_v19  ;;  %v11290_v32 = vadd.f32 %v7315_v57, %v14619_v42  ;;  %v6931_v14 = vpop.f32.mrb[215].mxu0  ;;  %v7317_v34 = vpop.f32.mrb[151].mxu1  ;;  %8325 = vmatmul.mubr.bf16.gmra.mrb[144].mxu0 %v7564_v36  ;;  %8703 = vmatmul.mubr.bf16.gmra.mrb[208].mxu1 %v7564_v36  ;;  %v7460_v44 = vmax.f32 %v11224_v15, 0.0  ;;  %v7462_v46 = vmax.f32 %v11288_v4, 0.0 }
 0x67c   :  { %v11227_v25 = vadd.f32 %v6931_v14, %v14622_v24  ;;  %v11291_v26 = vadd.f32 %v7317_v34, %v14625_v52  ;;  %8462 = vmatpush1.bf16.msra.mxu0 %v12835_v40  ;;  %v7461_v11 = vmax.f32 %v11225_v60, 0.0  ;;  %v7463_v33 = vmax.f32 %v11289_v39, 0.0  ;;  %v12843_v40 = vld [vmem:[#allocation8 + $0x870] ss:$12 sps:$4 sm:$0xff]   ;;  %v12848_v60 = vld [vmem:[#allocation8 + $0x88c] ss:$12 sps:$4 sm:$0xff]  }
 0x67d   :  { %v7464_v21 = vmax.f32 %v11226_v8, 0.0  ;;  %v7466_v12 = vmax.f32 %v11290_v32, 0.0  ;;  %8463 = vmatprep.subr.bf16.mxu0 %v12840_v20 }
 0x67e   :  { %v7465_v45 = vmax.f32 %v11227_v25, 0.0  ;;  %v7467_v13 = vmax.f32 %v11291_v26, 0.0 }
 0x67f   :  { %v7568_v30 = vpack.c.bf16 %v7464_v21, %v7460_v44  ;;  %v14695_v57 = vpack.c.bf16 %v7466_v12, %v7462_v46 }
 0x680   :  { %v7569_v36 = vpack.c.bf16 %v7465_v45, %v7461_v11  ;;  %v14697_v62 = vpack.c.bf16 %v7467_v13, %v7463_v33  ;;  %v6935_v14 = vpop.f32.mrb[216].mxu0  ;;  %v7321_v34 = vpop.f32.mrb[152].mxu1  ;;  %8464 = vmatpush1.bf16.msra.mxu0 %v12838_v51  ;;  %v12846_v11 = vld [vmem:[#allocation8 + $0x888] ss:$12 sps:$4 sm:$0xff]  }
 0x681   :  { %v11228_v15 = vadd.f32 %v6935_v14, %v14616_v19  ;;  %v11292_v4 = vadd.f32 %v7321_v34, %v14619_v42  ;;  %v6937_v20 = vpop.f32.mrb[217].mxu0  ;;  %v7323_v8 = vpop.f32.mrb[153].mxu1  ;;  %8465 = vmatprep.subr.bf16.mxu0 %v12845_v50 }
 0x682   :  { %v11229_v39 = vadd.f32 %v6937_v20, %v14622_v24  ;;  %v11293_v32 = vadd.f32 %v7323_v8, %v14625_v52  ;;  %v6939_v25 = vpop.f32.mrb[218].mxu0  ;;  %v7325_v26 = vpop.f32.mrb[154].mxu1  ;;  %8334 = vmatprep.mubr.bf16.mxu0 %v7569_v36  ;;  %8710 = vmatprep.mubr.bf16.mxu1 %v7569_v36  ;;  %v12853_v36 = vld [vmem:[#allocation8 + $0x8a4] ss:$12 sps:$4 sm:$0xff]  }
 0x683   :  { %v11230_v44 = vadd.f32 %v6939_v25, %v14616_v19  ;;  %v11294_v51 = vadd.f32 %v7325_v26, %v14619_v42  ;;  %v6941_v46 = vpop.f32.mrb[219].mxu0  ;;  %v7327_v21 = vpop.f32.mrb[155].mxu1  ;;  %8335 = vmatmul.mubr.bf16.gmra.mrb[148].mxu0 %v7568_v30  ;;  %8711 = vmatmul.mubr.bf16.gmra.mrb[212].mxu1 %v7568_v30  ;;  %v7468_v33 = vmax.f32 %v11228_v15, 0.0  ;;  %v7470_v45 = vmax.f32 %v11292_v4, 0.0 }
 0x684   :  { %v11231_v12 = vadd.f32 %v6941_v46, %v14622_v24  ;;  %v11295_v50 = vadd.f32 %v7327_v21, %v14625_v52  ;;  %8466 = vmatpush1.bf16.msra.mxu0 %v12843_v40  ;;  %v7469_v34 = vmax.f32 %v11229_v39, 0.0  ;;  %v7471_v20 = vmax.f32 %v11293_v32, 0.0  ;;  %v12851_v40 = vld [vmem:[#allocation8 + $0x8a0] ss:$12 sps:$4 sm:$0xff]   ;;  %v12856_v39 = vld [vmem:[#allocation8 + $0x8bc] ss:$12 sps:$4 sm:$0xff]  }
 0x685   :  { %v7472_v13 = vmax.f32 %v11230_v44, 0.0  ;;  %v7474_v14 = vmax.f32 %v11294_v51, 0.0  ;;  %8467 = vmatprep.subr.bf16.mxu0 %v12848_v60 }
 0x686   :  { %v7473_v8 = vmax.f32 %v11231_v12, 0.0  ;;  %v7475_v25 = vmax.f32 %v11295_v50, 0.0 }
 0x687   :  { %v7572_v26 = vpack.c.bf16 %v7472_v13, %v7468_v33  ;;  %v14707_v49 = vpack.c.bf16 %v7474_v14, %v7470_v45 }
 0x688   :  { %v7573_v30 = vpack.c.bf16 %v7473_v8, %v7469_v34  ;;  %v14709_v18 = vpack.c.bf16 %v7475_v25, %v7471_v20  ;;  %v6945_v46 = vpop.f32.mrb[220].mxu0  ;;  %v7331_v21 = vpop.f32.mrb[156].mxu1  ;;  %8468 = vmatpush1.bf16.msra.mxu0 %v12846_v11  ;;  %v12854_v34 = vld [vmem:[#allocation8 + $0x8b8] ss:$12 sps:$4 sm:$0xff]  }
 0x689   :  { %v11232_v15 = vadd.f32 %v6945_v46, %v14616_v19  ;;  %v11296_v4 = vadd.f32 %v7331_v21, %v14619_v42  ;;  %v6947_v60 = vpop.f32.mrb[221].mxu0  ;;  %v7333_v44 = vpop.f32.mrb[157].mxu1  ;;  %8469 = vmatprep.subr.bf16.mxu0 %v12853_v36 }
 0x68a   :  { %v11233_v32 = vadd.f32 %v6947_v60, %v14622_v24  ;;  %v11297_v51 = vadd.f32 %v7333_v44, %v14625_v52  ;;  %v6949_v12 = vpop.f32.mrb[222].mxu0  ;;  %v7335_v50 = vpop.f32.mrb[158].mxu1  ;;  %8344 = vmatprep.mubr.bf16.mxu0 %v7573_v30  ;;  %8718 = vmatprep.mubr.bf16.mxu1 %v7573_v30  ;;  %v12861_v30 = vld [vmem:[#allocation8 + $0x8d4] ss:$12 sps:$4 sm:$0xff]  }
 0x68b   :  { %v11234_v33 = vadd.f32 %v6949_v12, %v14616_v19  ;;  %v11298_v11 = vadd.f32 %v7335_v50, %v14619_v42  ;;  %v6951_v45 = vpop.f32.mrb[223].mxu0  ;;  %v7337_v13 = vpop.f32.mrb[159].mxu1  ;;  %8345 = vmatmul.mubr.bf16.gmra.mrb[152].mxu0 %v7572_v26  ;;  %8719 = vmatmul.mubr.bf16.gmra.mrb[216].mxu1 %v7572_v26  ;;  %v7476_v20 = vmax.f32 %v11232_v15, 0.0  ;;  %v7478_v8 = vmax.f32 %v11296_v4, 0.0 }
 0x68c   :  { %v11235_v14 = vadd.f32 %v6951_v45, %v14622_v24  ;;  %v11299_v36 = vadd.f32 %v7337_v13, %v14625_v52  ;;  %8470 = vmatpush1.bf16.msra.mxu0 %v12851_v40  ;;  %v7477_v21 = vmax.f32 %v11233_v32, 0.0  ;;  %v7479_v60 = vmax.f32 %v11297_v51, 0.0  ;;  %v12859_v40 = vld [vmem:[#allocation8 + $0x8d0] ss:$12 sps:$4 sm:$0xff]   ;;  %v12864_v32 = vld [vmem:[#allocation8 + $0x8ec] ss:$12 sps:$4 sm:$0xff]  }
 0x68d   :  { %v7480_v25 = vmax.f32 %v11234_v33, 0.0  ;;  %v7482_v46 = vmax.f32 %v11298_v11, 0.0  ;;  %8471 = vmatprep.subr.bf16.mxu0 %v12856_v39 }
 0x68e   :  { %v7481_v44 = vmax.f32 %v11235_v14, 0.0  ;;  %v7483_v12 = vmax.f32 %v11299_v36, 0.0 }
 0x68f   :  { %v7576_v50 = vpack.c.bf16 %v7480_v25, %v7476_v20  ;;  %v14719_v37 = vpack.c.bf16 %v7482_v46, %v7478_v8 }
 0x690   :  { %v7577_v26 = vpack.c.bf16 %v7481_v44, %v7477_v21  ;;  %v14721_v58 = vpack.c.bf16 %v7483_v12, %v7479_v60  ;;  %v6955_v45 = vpop.f32.mrb[224].mxu0  ;;  %v7341_v13 = vpop.f32.mrb[160].mxu1  ;;  %8472 = vmatpush1.bf16.msra.mxu0 %v12854_v34  ;;  %v12862_v21 = vld [vmem:[#allocation8 + $0x8e8] ss:$12 sps:$4 sm:$0xff]  }
 0x691   :  { %v11236_v15 = vadd.f32 %v6955_v45, %v14616_v19  ;;  %v11300_v4 = vadd.f32 %v7341_v13, %v14619_v42  ;;  %v6957_v39 = vpop.f32.mrb[225].mxu0  ;;  %v7343_v33 = vpop.f32.mrb[161].mxu1  ;;  %8473 = vmatprep.subr.bf16.mxu0 %v12861_v30 }
 0x692   :  { %v11237_v51 = vadd.f32 %v6957_v39, %v14622_v24  ;;  %v11301_v11 = vadd.f32 %v7343_v33, %v14625_v52  ;;  %v6959_v14 = vpop.f32.mrb[226].mxu0  ;;  %v7345_v36 = vpop.f32.mrb[162].mxu1  ;;  %8354 = vmatprep.mubr.bf16.mxu0 %v7577_v26  ;;  %8726 = vmatprep.mubr.bf16.mxu1 %v7577_v26 }
 0x693   :  { %v11238_v20 = vadd.f32 %v6959_v14, %v14616_v19  ;;  %v11302_v34 = vadd.f32 %v7345_v36, %v14619_v42  ;;  %v6961_v8 = vpop.f32.mrb[227].mxu0  ;;  %v7347_v25 = vpop.f32.mrb[163].mxu1  ;;  %8355 = vmatmul.mubr.bf16.gmra.mrb[156].mxu0 %v7576_v50  ;;  %8727 = vmatmul.mubr.bf16.gmra.mrb[220].mxu1 %v7576_v50  ;;  %v7484_v60 = vmax.f32 %v11236_v15, 0.0  ;;  %v7486_v44 = vmax.f32 %v11300_v4, 0.0 }
 0x694   :  { %v11239_v46 = vadd.f32 %v6961_v8, %v14622_v24  ;;  %v11303_v30 = vadd.f32 %v7347_v25, %v14625_v52  ;;  %8474 = vmatpush1.bf16.msra.mxu0 %v12859_v40  ;;  %v7485_v26 = vmax.f32 %v11237_v51, 0.0  ;;  %v7487_v13 = vmax.f32 %v11301_v11, 0.0 }
 0x695   :  { %v7488_v12 = vmax.f32 %v11238_v20, 0.0  ;;  %v7490_v45 = vmax.f32 %v11302_v34, 0.0  ;;  %8475 = vmatprep.subr.bf16.mxu0 %v12864_v32 }
 0x696   :  { %v7489_v39 = vmax.f32 %v11239_v46, 0.0  ;;  %v7491_v33 = vmax.f32 %v11303_v30, 0.0 }
 0x697   :  { %v7580_v14 = vpack.c.bf16 %v7488_v12, %v7484_v60  ;;  %v14731_v36 = vpack.c.bf16 %v7490_v45, %v7486_v44 }
 0x698   :  { %v7581_v3 = vpack.c.bf16 %v7489_v39, %v7485_v26  ;;  %v14733_v50 = vpack.c.bf16 %v7491_v33, %v7487_v13  ;;  %v6965_v8 = vpop.f32.mrb[228].mxu0  ;;  %v7351_v35 = vpop.f32.mrb[164].mxu1  ;;  %8476 = vmatpush1.bf16.msra.mxu0 %v12862_v21 }
 0x699   :  { %v11240_v40 = vadd.f32 %v6965_v8, %v14616_v19  ;;  %v11304_v15 = vadd.f32 %v7351_v35, %v14619_v42  ;;  %v6967_v4 = vpop.f32.mrb[229].mxu0  ;;  %v7353_v20 = vpop.f32.mrb[165].mxu1 }
 0x69a   :  { %v11241_v32 = vadd.f32 %v6967_v4, %v14622_v24  ;;  %v11305_v51 = vadd.f32 %v7353_v20, %v14625_v52  ;;  %v6969_v11 = vpop.f32.mrb[230].mxu0  ;;  %v7355_v34 = vpop.f32.mrb[166].mxu1  ;;  %8364 = vmatprep.mubr.bf16.mxu0 %v7581_v3  ;;  %8734 = vmatprep.mubr.bf16.mxu1 %v7581_v3 }
 0x69b   :  { %v11242_v25 = vadd.f32 %v6969_v11, %v14616_v19  ;;  %v11306_v46 = vadd.f32 %v7355_v34, %v14619_v42  ;;  %v6971_v30 = vpop.f32.mrb[231].mxu0  ;;  %v7357_v21 = vpop.f32.mrb[167].mxu1  ;;  %8365 = vmatmul.mubr.bf16.gmra.mrb[160].mxu0 %v7580_v14  ;;  %8735 = vmatmul.mubr.bf16.gmra.mrb[224].mxu1 %v7580_v14  ;;  %v7492_v44 = vmax.f32 %v11240_v40, 0.0  ;;  %v7494_v12 = vmax.f32 %v11304_v15, 0.0 }
 0x69c   :  { %v11243_v35 = vadd.f32 %v6971_v30, %v14622_v24  ;;  %v11307_v60 = vadd.f32 %v7357_v21, %v14625_v52  ;;  %v7493_v13 = vmax.f32 %v11241_v32, 0.0  ;;  %v7495_v39 = vmax.f32 %v11305_v51, 0.0 }
 0x69d   :  { %v7496_v45 = vmax.f32 %v11242_v25, 0.0  ;;  %v7498_v26 = vmax.f32 %v11306_v46, 0.0 }
 0x69e   :  { %v7497_v33 = vmax.f32 %v11243_v35, 0.0  ;;  %v7499_v3 = vmax.f32 %v11307_v60, 0.0 }
 0x69f   :  { %v7584_v8 = vpack.c.bf16 %v7496_v45, %v7492_v44  ;;  %v14743_v4 = vpack.c.bf16 %v7498_v26, %v7494_v12 }
 0x6a0   :  { %v7585_v20 = vpack.c.bf16 %v7497_v33, %v7493_v13  ;;  %v14745_v11 = vpack.c.bf16 %v7499_v3, %v7495_v39  ;;  %v6975_v34 = vpop.f32.mrb[232].mxu0  ;;  %v7361_v14 = vpop.f32.mrb[168].mxu1 }
 0x6a1   :  { %v11244_v30 = vadd.f32 %v6975_v34, %v14616_v19  ;;  %v11308_v21 = vadd.f32 %v7361_v14, %v14619_v42  ;;  %v6977_v40 = vpop.f32.mrb[233].mxu0  ;;  %v7363_v15 = vpop.f32.mrb[169].mxu1 }
 0x6a2   :  { %v11245_v25 = vadd.f32 %v6977_v40, %v14622_v24  ;;  %v11309_v32 = vadd.f32 %v7363_v15, %v14625_v52  ;;  %v6979_v51 = vpop.f32.mrb[234].mxu0  ;;  %v7365_v46 = vpop.f32.mrb[170].mxu1  ;;  %8374 = vmatprep.mubr.bf16.mxu0 %v7585_v20  ;;  %8742 = vmatprep.mubr.bf16.mxu1 %v7585_v20 }
 0x6a3   :  { %v11246_v35 = vadd.f32 %v6979_v51, %v14616_v19  ;;  %v11310_v60 = vadd.f32 %v7365_v46, %v14619_v42  ;;  %v6981_v44 = vpop.f32.mrb[235].mxu0  ;;  %v7367_v12 = vpop.f32.mrb[171].mxu1  ;;  %8375 = vmatmul.mubr.bf16.gmra.mrb[164].mxu0 %v7584_v8  ;;  %8743 = vmatmul.mubr.bf16.gmra.mrb[228].mxu1 %v7584_v8  ;;  %v7500_v13 = vmax.f32 %v11244_v30, 0.0  ;;  %v7502_v39 = vmax.f32 %v11308_v21, 0.0 }
 0x6a4   :  { %v11247_v45 = vadd.f32 %v6981_v44, %v14622_v24  ;;  %v11311_v26 = vadd.f32 %v7367_v12, %v14625_v52  ;;  %v7501_v34 = vmax.f32 %v11245_v25, 0.0  ;;  %v7503_v14 = vmax.f32 %v11309_v32, 0.0 }
 0x6a5   :  { %v7504_v33 = vmax.f32 %v11246_v35, 0.0  ;;  %v7506_v3 = vmax.f32 %v11310_v60, 0.0 }
 0x6a6   :  { %v7505_v40 = vmax.f32 %v11247_v45, 0.0  ;;  %v7507_v20 = vmax.f32 %v11311_v26, 0.0 }
 0x6a7   :  { %v7588_v15 = vpack.c.bf16 %v7504_v33, %v7500_v13  ;;  %v14755_v51 = vpack.c.bf16 %v7506_v3, %v7502_v39 }
 0x6a8   :  { %v7589_v46 = vpack.c.bf16 %v7505_v40, %v7501_v34  ;;  %v14757_v2 = vpack.c.bf16 %v7507_v20, %v7503_v14  ;;  %v6985_v55 = vpop.f32.mrb[236].mxu0  ;;  %v7371_v8 = vpop.f32.mrb[172].mxu1 }
 0x6a9   :  { %v11248_v44 = vadd.f32 %v6985_v55, %v14616_v19  ;;  %v11312_v12 = vadd.f32 %v7371_v8, %v14619_v42  ;;  %v6987_v30 = vpop.f32.mrb[237].mxu0  ;;  %v7373_v21 = vpop.f32.mrb[173].mxu1 }
 0x6aa   :  { %v11249_v35 = vadd.f32 %v6987_v30, %v14622_v24  ;;  %v11313_v25 = vadd.f32 %v7373_v21, %v14625_v52  ;;  %v6989_v32 = vpop.f32.mrb[238].mxu0  ;;  %v7375_v60 = vpop.f32.mrb[174].mxu1  ;;  %8384 = vmatprep.mubr.bf16.mxu0 %v7589_v46  ;;  %8750 = vmatprep.mubr.bf16.mxu1 %v7589_v46 }
 0x6ab   :  { %v11250_v45 = vadd.f32 %v6989_v32, %v14616_v19  ;;  %v11314_v26 = vadd.f32 %v7375_v60, %v14619_v42  ;;  %v6991_v13 = vpop.f32.mrb[239].mxu0  ;;  %v7377_v39 = vpop.f32.mrb[175].mxu1  ;;  %8385 = vmatmul.mubr.bf16.gmra.mrb[168].mxu0 %v7588_v15  ;;  %8751 = vmatmul.mubr.bf16.gmra.mrb[232].mxu1 %v7588_v15  ;;  %v7508_v3 = vmax.f32 %v11248_v44, 0.0  ;;  %v7510_v34 = vmax.f32 %v11312_v12, 0.0 }
 0x6ac   :  { %v11251_v55 = vadd.f32 %v6991_v13, %v14622_v24  ;;  %v11315_v33 = vadd.f32 %v7377_v39, %v14625_v52  ;;  %v7509_v20 = vmax.f32 %v11249_v35, 0.0  ;;  %v7511_v8 = vmax.f32 %v11313_v25, 0.0 }
 0x6ad   :  { %v7512_v14 = vmax.f32 %v11250_v45, 0.0  ;;  %v7514_v40 = vmax.f32 %v11314_v26, 0.0 }
 0x6ae   :  { %v7513_v30 = vmax.f32 %v11251_v55, 0.0  ;;  %v7515_v46 = vmax.f32 %v11315_v33, 0.0 }
 0x6af   :  { %v7592_v21 = vpack.c.bf16 %v7512_v14, %v7508_v3  ;;  %v14767_v32 = vpack.c.bf16 %v7514_v40, %v7510_v34 }
 0x6b0   :  { %v7593_v60 = vpack.c.bf16 %v7513_v30, %v7509_v20  ;;  %v14769_v38 = vpack.c.bf16 %v7515_v46, %v7511_v8  ;;  %v6995_v31 = vpop.f32.mrb[240].mxu0  ;;  %v7381_v15 = vpop.f32.mrb[176].mxu1 }
 0x6b1   :  { %v11252_v13 = vadd.f32 %v6995_v31, %v14616_v19  ;;  %v11316_v39 = vadd.f32 %v7381_v15, %v14619_v42  ;;  %v6997_v44 = vpop.f32.mrb[241].mxu0  ;;  %v7383_v12 = vpop.f32.mrb[177].mxu1 }
 0x6b2   :  { %v11253_v45 = vadd.f32 %v6997_v44, %v14622_v24  ;;  %v11317_v35 = vadd.f32 %v7383_v12, %v14625_v52  ;;  %v6999_v25 = vpop.f32.mrb[242].mxu0  ;;  %v7385_v26 = vpop.f32.mrb[178].mxu1  ;;  %8394 = vmatprep.mubr.bf16.mxu0 %v7593_v60  ;;  %8758 = vmatprep.mubr.bf16.mxu1 %v7593_v60 }
 0x6b3   :  { %v11254_v55 = vadd.f32 %v6999_v25, %v14616_v19  ;;  %v11318_v33 = vadd.f32 %v7385_v26, %v14619_v42  ;;  %v7001_v3 = vpop.f32.mrb[243].mxu0  ;;  %v7387_v34 = vpop.f32.mrb[179].mxu1  ;;  %8395 = vmatmul.mubr.bf16.gmra.mrb[172].mxu0 %v7592_v21  ;;  %8759 = vmatmul.mubr.bf16.gmra.mrb[236].mxu1 %v7592_v21  ;;  %v7516_v40 = vmax.f32 %v11252_v13, 0.0  ;;  %v7518_v20 = vmax.f32 %v11316_v39, 0.0 }
 0x6b4   :  { %v11255_v31 = vadd.f32 %v7001_v3, %v14622_v24  ;;  %v11319_v14 = vadd.f32 %v7387_v34, %v14625_v52  ;;  %v7517_v46 = vmax.f32 %v11253_v45, 0.0  ;;  %v7519_v15 = vmax.f32 %v11317_v35, 0.0 }
 0x6b5   :  { %v7520_v8 = vmax.f32 %v11254_v55, 0.0  ;;  %v7522_v30 = vmax.f32 %v11318_v33, 0.0 }
 0x6b6   :  { %v7521_v44 = vmax.f32 %v11255_v31, 0.0  ;;  %v7523_v60 = vmax.f32 %v11319_v14, 0.0 }
 0x6b7   :  { %v7596_v12 = vpack.c.bf16 %v7520_v8, %v7516_v40  ;;  %v14779_v25 = vpack.c.bf16 %v7522_v30, %v7518_v20 }
 0x6b8   :  { %v7597_v26 = vpack.c.bf16 %v7521_v44, %v7517_v46  ;;  %v14781_v17 = vpack.c.bf16 %v7523_v60, %v7519_v15  ;;  %v7005_v43 = vpop.f32.mrb[244].mxu0  ;;  %v7391_v21 = vpop.f32.mrb[180].mxu1 }
 0x6b9   :  { %v11256_v3 = vadd.f32 %v7005_v43, %v14616_v19  ;;  %v11320_v34 = vadd.f32 %v7391_v21, %v14619_v42  ;;  %v7007_v13 = vpop.f32.mrb[245].mxu0  ;;  %v7393_v39 = vpop.f32.mrb[181].mxu1 }
 0x6ba   :  { %v11257_v55 = vadd.f32 %v7007_v13, %v14622_v24  ;;  %v11321_v45 = vadd.f32 %v7393_v39, %v14625_v52  ;;  %v7009_v35 = vpop.f32.mrb[246].mxu0  ;;  %v7395_v33 = vpop.f32.mrb[182].mxu1  ;;  %8404 = vmatprep.mubr.bf16.mxu0 %v7597_v26  ;;  %8766 = vmatprep.mubr.bf16.mxu1 %v7597_v26 }
 0x6bb   :  { %v11258_v31 = vadd.f32 %v7009_v35, %v14616_v19  ;;  %v11322_v14 = vadd.f32 %v7395_v33, %v14619_v42  ;;  %v7011_v40 = vpop.f32.mrb[247].mxu0  ;;  %v7397_v20 = vpop.f32.mrb[183].mxu1  ;;  %8405 = vmatmul.mubr.bf16.gmra.mrb[176].mxu0 %v7596_v12  ;;  %8767 = vmatmul.mubr.bf16.gmra.mrb[240].mxu1 %v7596_v12  ;;  %v7524_v30 = vmax.f32 %v11256_v3, 0.0  ;;  %v7526_v46 = vmax.f32 %v11320_v34, 0.0 }
 0x6bc   :  { %v11259_v43 = vadd.f32 %v7011_v40, %v14622_v24  ;;  %v11323_v8 = vadd.f32 %v7397_v20, %v14625_v52  ;;  %v7525_v60 = vmax.f32 %v11257_v55, 0.0  ;;  %v7527_v21 = vmax.f32 %v11321_v45, 0.0 }
 0x6bd   :  { %v7528_v15 = vmax.f32 %v11258_v31, 0.0  ;;  %v7530_v44 = vmax.f32 %v11322_v14, 0.0 }
 0x6be   :  { %v7529_v13 = vmax.f32 %v11259_v43, 0.0  ;;  %v7531_v26 = vmax.f32 %v11323_v8, 0.0 }
 0x6bf   :  { %v7600_v39 = vpack.c.bf16 %v7528_v15, %v7524_v30  ;;  %v14791_v35 = vpack.c.bf16 %v7530_v44, %v7526_v46 }
 0x6c0   :  { %v7601_v33 = vpack.c.bf16 %v7529_v13, %v7525_v60  ;;  %v14793_v5 = vpack.c.bf16 %v7531_v26, %v7527_v21  ;;  %v7015_v54 = vpop.f32.mrb[248].mxu0  ;;  %v7401_v12 = vpop.f32.mrb[184].mxu1 }
 0x6c1   :  { %v11260_v40 = vadd.f32 %v7015_v54, %v14616_v19  ;;  %v11324_v20 = vadd.f32 %v7401_v12, %v14619_v42  ;;  %v7017_v3 = vpop.f32.mrb[249].mxu0  ;;  %v7403_v34 = vpop.f32.mrb[185].mxu1 }
 0x6c2   :  { %v11261_v31 = vadd.f32 %v7017_v3, %v14622_v24  ;;  %v11325_v55 = vadd.f32 %v7403_v34, %v14625_v52  ;;  %v7019_v45 = vpop.f32.mrb[250].mxu0  ;;  %v7405_v14 = vpop.f32.mrb[186].mxu1  ;;  %8414 = vmatprep.mubr.bf16.mxu0 %v7601_v33  ;;  %8774 = vmatprep.mubr.bf16.mxu1 %v7601_v33 }
 0x6c3   :  { %v11262_v43 = vadd.f32 %v7019_v45, %v14616_v19  ;;  %v11326_v8 = vadd.f32 %v7405_v14, %v14619_v42  ;;  %v7021_v30 = vpop.f32.mrb[251].mxu0  ;;  %v7407_v46 = vpop.f32.mrb[187].mxu1  ;;  %8415 = vmatmul.mubr.bf16.gmra.mrb[180].mxu0 %v7600_v39  ;;  %8775 = vmatmul.mubr.bf16.gmra.mrb[244].mxu1 %v7600_v39  ;;  %v7532_v44 = vmax.f32 %v11260_v40, 0.0  ;;  %v7534_v60 = vmax.f32 %v11324_v20, 0.0 }
 0x6c4   :  { %v11263_v54 = vadd.f32 %v7021_v30, %v14622_v24  ;;  %v11327_v15 = vadd.f32 %v7407_v46, %v14625_v52  ;;  %v7533_v26 = vmax.f32 %v11261_v31, 0.0  ;;  %v7535_v12 = vmax.f32 %v11325_v55, 0.0 }
 0x6c5   :  { %v7536_v21 = vmax.f32 %v11262_v43, 0.0  ;;  %v7538_v13 = vmax.f32 %v11326_v8, 0.0 }
 0x6c6   :  { %v7537_v3 = vmax.f32 %v11263_v54, 0.0  ;;  %v7539_v33 = vmax.f32 %v11327_v15, 0.0 }
 0x6c7   :  { %v7604_v34 = vpack.c.bf16 %v7536_v21, %v7532_v44  ;;  %v14803_v45 = vpack.c.bf16 %v7538_v13, %v7534_v60 }
 0x6c8   :  { %v7605_v14 = vpack.c.bf16 %v7537_v3, %v7533_v26  ;;  %v14805_v9 = vpack.c.bf16 %v7539_v33, %v7535_v12  ;;  %v7025_v6 = vpop.f32.mrb[252].mxu0  ;;  %v7411_v39 = vpop.f32.mrb[188].mxu1 }
 0x6c9   :  { %v11264_v30 = vadd.f32 %v7025_v6, %v14616_v19  ;;  %v11328_v46 = vadd.f32 %v7411_v39, %v14619_v42  ;;  %v7027_v40 = vpop.f32.mrb[253].mxu0  ;;  %v7413_v20 = vpop.f32.mrb[189].mxu1 }
 0x6ca   :  { %v11265_v43 = vadd.f32 %v7027_v40, %v14622_v24  ;;  %v11329_v31 = vadd.f32 %v7413_v20, %v14625_v52  ;;  %v7029_v55 = vpop.f32.mrb[254].mxu0  ;;  %v7415_v8 = vpop.f32.mrb[190].mxu1  ;;  %8424 = vmatprep.mubr.bf16.mxu0 %v7605_v14  ;;  %8782 = vmatprep.mubr.bf16.mxu1 %v7605_v14 }
 0x6cb   :  { %v11266_v54 = vadd.f32 %v7029_v55, %v14616_v19  ;;  %v11330_v15 = vadd.f32 %v7415_v8, %v14619_v42  ;;  %v7031_v44 = vpop.f32.mrb[255].mxu0  ;;  %v7417_v60 = vpop.f32.mrb[191].mxu1  ;;  %8425 = vmatmul.mubr.bf16.gmra.mrb[184].mxu0 %v7604_v34  ;;  %8783 = vmatmul.mubr.bf16.gmra.mrb[248].mxu1 %v7604_v34  ;;  %v7540_v13 = vmax.f32 %v11264_v30, 0.0  ;;  %v7542_v26 = vmax.f32 %v11328_v46, 0.0 }
 0x6cc   :  { %v11267_v6 = vadd.f32 %v7031_v44, %v14622_v24  ;;  %v11331_v21 = vadd.f32 %v7417_v60, %v14625_v52  ;;  %v7541_v33 = vmax.f32 %v11265_v43, 0.0  ;;  %v7543_v39 = vmax.f32 %v11329_v31, 0.0 }
 0x6cd   :  { %v7544_v12 = vmax.f32 %v11266_v54, 0.0  ;;  %v7546_v3 = vmax.f32 %v11330_v15, 0.0 }
 0x6ce   :  { %v7545_v40 = vmax.f32 %v11267_v6, 0.0  ;;  %v7547_v14 = vmax.f32 %v11331_v21, 0.0 }
 0x6cf   :  { %v7608_v20 = vpack.c.bf16 %v7544_v12, %v7540_v13  ;;  %v14815_v19 = vpack.c.bf16 %v7546_v3, %v7542_v26 }
 0x6d0   :  { %v7609_v42 = vpack.c.bf16 %v7545_v40, %v7541_v33  ;;  %v14817_v55 = vpack.c.bf16 %v7547_v14, %v7543_v39 }
 0x6d2   :  { %8434 = vmatprep.mubr.bf16.mxu0 %v7609_v42  ;;  %8790 = vmatprep.mubr.bf16.mxu1 %v7609_v42 }
 0x6d3   :  { %8435 = vmatmul.mubr.bf16.gmra.mrb[188].mxu0 %v7608_v20  ;;  %8791 = vmatmul.mubr.bf16.gmra.mrb[252].mxu1 %v7608_v20 }
 0x6d4   :  { %8477 = vmatprep.mubr.bf16.mxu0 %v14637_v22  ;;  %8831 = vmatprep.mubr.bf16.mxu1 %v14637_v22 }
 0x6db   :  { %8478 = vmatmul.mubr.bf16.vlgmr.msra.gmra.mrb[128].mxu0 %v14635_v10  ;;  %8832 = vmatmul.mubr.bf16.vlgmr.msra.gmra.mrb[0].mxu1 %v14635_v10 }
 0x6dc   :  { %8487 = vmatprep.mubr.bf16.mxu0 %v14649_v59  ;;  %8839 = vmatprep.mubr.bf16.mxu1 %v14649_v59 }
 0x6e3   :  { %8488 = vmatmul.mubr.bf16.gmra.mrb[132].mxu0 %v14647_v63  ;;  %8840 = vmatmul.mubr.bf16.gmra.mrb[4].mxu1 %v14647_v63 }
 0x6e4   :  { %8497 = vmatprep.mubr.bf16.mxu0 %v14661_v7  ;;  %8847 = vmatprep.mubr.bf16.mxu1 %v14661_v7 }
 0x6eb   :  { %8498 = vmatmul.mubr.bf16.gmra.mrb[136].mxu0 %v14659_v16  ;;  %8848 = vmatmul.mubr.bf16.gmra.mrb[8].mxu1 %v14659_v16 }
 0x6ec   :  { %8507 = vmatprep.mubr.bf16.mxu0 %v14673_v48  ;;  %8855 = vmatprep.mubr.bf16.mxu1 %v14673_v48 }
 0x6f3   :  { %8508 = vmatmul.mubr.bf16.gmra.mrb[140].mxu0 %v14671_v29  ;;  %8856 = vmatmul.mubr.bf16.gmra.mrb[12].mxu1 %v14671_v29 }
 0x6f4   :  { %8517 = vmatprep.mubr.bf16.mxu0 %v14685_v53  ;;  %8863 = vmatprep.mubr.bf16.mxu1 %v14685_v53 }
 0x6fb   :  { %8518 = vmatmul.mubr.bf16.gmra.mrb[144].mxu0 %v14683_v41  ;;  %8864 = vmatmul.mubr.bf16.gmra.mrb[16].mxu1 %v14683_v41 }
 0x6fc   :  { %8527 = vmatprep.mubr.bf16.mxu0 %v14697_v62  ;;  %8871 = vmatprep.mubr.bf16.mxu1 %v14697_v62 }
 0x703   :  { %8528 = vmatmul.mubr.bf16.gmra.mrb[148].mxu0 %v14695_v57  ;;  %8872 = vmatmul.mubr.bf16.gmra.mrb[20].mxu1 %v14695_v57 }
 0x704   :  { %8537 = vmatprep.mubr.bf16.mxu0 %v14709_v18  ;;  %8879 = vmatprep.mubr.bf16.mxu1 %v14709_v18 }
 0x70b   :  { %8538 = vmatmul.mubr.bf16.gmra.mrb[152].mxu0 %v14707_v49  ;;  %8880 = vmatmul.mubr.bf16.gmra.mrb[24].mxu1 %v14707_v49 }
 0x70c   :  { %8547 = vmatprep.mubr.bf16.mxu0 %v14721_v58  ;;  %8887 = vmatprep.mubr.bf16.mxu1 %v14721_v58 }
 0x713   :  { %8548 = vmatmul.mubr.bf16.gmra.mrb[156].mxu0 %v14719_v37  ;;  %8888 = vmatmul.mubr.bf16.gmra.mrb[28].mxu1 %v14719_v37 }
 0x714   :  { %8557 = vmatprep.mubr.bf16.mxu0 %v14733_v50  ;;  %8895 = vmatprep.mubr.bf16.mxu1 %v14733_v50 }
 0x71b   :  { %8558 = vmatmul.mubr.bf16.gmra.mrb[160].mxu0 %v14731_v36  ;;  %8896 = vmatmul.mubr.bf16.gmra.mrb[32].mxu1 %v14731_v36 }
 0x71c   :  { %8567 = vmatprep.mubr.bf16.mxu0 %v14745_v11  ;;  %8903 = vmatprep.mubr.bf16.mxu1 %v14745_v11 }
 0x723   :  { %8568 = vmatmul.mubr.bf16.gmra.mrb[164].mxu0 %v14743_v4  ;;  %8904 = vmatmul.mubr.bf16.gmra.mrb[36].mxu1 %v14743_v4 }
 0x724   :  { %8577 = vmatprep.mubr.bf16.mxu0 %v14757_v2  ;;  %8911 = vmatprep.mubr.bf16.mxu1 %v14757_v2 }
 0x72b   :  { %8578 = vmatmul.mubr.bf16.gmra.mrb[168].mxu0 %v14755_v51  ;;  %8912 = vmatmul.mubr.bf16.gmra.mrb[40].mxu1 %v14755_v51 }
 0x72c   :  { %8587 = vmatprep.mubr.bf16.mxu0 %v14769_v38  ;;  %8919 = vmatprep.mubr.bf16.mxu1 %v14769_v38 }
 0x72e   :  { %v10740_v58 = vpop.f32.mrb[192].mxu1 }
 0x72f   :  { %v10741_v37 = vpop.f32.mrb[193].mxu1 }
 0x730   :  { %v14865_v18 = vadd.f32 %v10741_v37, %v10740_v58  ;;  %v10743_v49 = vpop.f32.mrb[194].mxu1 }
 0x731   :  { %v10744_v62 = vpop.f32.mrb[195].mxu1 }
 0x732   :  { %v14867_v41 = vadd.f32 %v10744_v62, %v10743_v49 }
 0x733   :  { %8588 = vmatmul.mubr.bf16.gmra.mrb[172].mxu0 %v14767_v32  ;;  %8920 = vmatmul.mubr.bf16.gmra.mrb[44].mxu1 %v14767_v32 }
 0x734   :  { %8597 = vmatprep.mubr.bf16.mxu0 %v14781_v17  ;;  %8927 = vmatprep.mubr.bf16.mxu1 %v14781_v17 }
 0x736   :  { %v10746_v2 = vpop.f32.mrb[196].mxu1 }
 0x737   :  { %v10747_v24 = vpop.f32.mrb[197].mxu1 }
 0x738   :  { %v14873_v52 = vadd.f32 %v10747_v24, %v10746_v2  ;;  %v10749_v38 = vpop.f32.mrb[198].mxu1 }
 0x739   :  { %v10750_v10 = vpop.f32.mrb[199].mxu1 }
 0x73a   :  { %v14875_v22 = vadd.f32 %v10750_v10, %v10749_v38 }
 0x73b   :  { %8598 = vmatmul.mubr.bf16.gmra.mrb[176].mxu0 %v14779_v25  ;;  %8928 = vmatmul.mubr.bf16.gmra.mrb[48].mxu1 %v14779_v25 }
 0x73c   :  { %8607 = vmatprep.mubr.bf16.mxu0 %v14793_v5  ;;  %8935 = vmatprep.mubr.bf16.mxu1 %v14793_v5 }
 0x73e   :  { %v10752_v63 = vpop.f32.mrb[200].mxu1 }
 0x73f   :  { %v10753_v59 = vpop.f32.mrb[201].mxu1 }
 0x740   :  { %v14881_v16 = vadd.f32 %v10753_v59, %v10752_v63  ;;  %v10755_v17 = vpop.f32.mrb[202].mxu1 }
 0x741   :  { %v10756_v7 = vpop.f32.mrb[203].mxu1 }
 0x742   :  { %v14883_v29 = vadd.f32 %v10756_v7, %v10755_v17 }
 0x743   :  { %8608 = vmatmul.mubr.bf16.gmra.mrb[180].mxu0 %v14791_v35  ;;  %8936 = vmatmul.mubr.bf16.gmra.mrb[52].mxu1 %v14791_v35 }
 0x744   :  { %8617 = vmatprep.mubr.bf16.mxu0 %v14805_v9  ;;  %8943 = vmatprep.mubr.bf16.mxu1 %v14805_v9 }
 0x746   :  { %v10758_v48 = vpop.f32.mrb[204].mxu1 }
 0x747   :  { %v10759_v53 = vpop.f32.mrb[205].mxu1 }
 0x748   :  { %v14889_v57 = vadd.f32 %v10759_v53, %v10758_v48  ;;  %v10761_v5 = vpop.f32.mrb[206].mxu1 }
 0x749   :  { %v10762_v36 = vpop.f32.mrb[207].mxu1 }
 0x74a   :  { %v14891_v50 = vadd.f32 %v10762_v36, %v10761_v5 }
 0x74b   :  { %8618 = vmatmul.mubr.bf16.gmra.mrb[184].mxu0 %v14803_v45  ;;  %8944 = vmatmul.mubr.bf16.gmra.mrb[56].mxu1 %v14803_v45 }
 0x74c   :  { %8627 = vmatprep.mubr.bf16.mxu0 %v14817_v55  ;;  %8951 = vmatprep.mubr.bf16.mxu1 %v14817_v55 }
 0x74e   :  { %v10764_v4 = vpop.f32.mrb[208].mxu1 }
 0x74f   :  { %v10765_v11 = vpop.f32.mrb[209].mxu1 }
 0x750   :  { %v14897_v51 = vadd.f32 %v10765_v11, %v10764_v4  ;;  %v10767_v9 = vpop.f32.mrb[210].mxu1 }
 0x751   :  { %v10768_v32 = vpop.f32.mrb[211].mxu1 }
 0x752   :  { %v14899_v25 = vadd.f32 %v10768_v32, %v10767_v9 }
 0x753   :  { %8628 = vmatmul.mubr.bf16.gmra.mrb[188].mxu0 %v14815_v19  ;;  %8952 = vmatmul.mubr.bf16.gmra.mrb[60].mxu1 %v14815_v19 }
 0x756   :  { %v10770_v35 = vpop.f32.mrb[212].mxu1 }
 0x757   :  { %v10771_v34 = vpop.f32.mrb[213].mxu1 }
 0x758   :  { %v14903_v30 = vadd.f32 %v10771_v34, %v10770_v35  ;;  %v10773_v45 = vpop.f32.mrb[214].mxu1 }
 0x759   :  { %v10774_v46 = vpop.f32.mrb[215].mxu1 }
 0x75a   :  { %v14905_v43 = vadd.f32 %v10774_v46, %v10773_v45 }
 0x75e   :  { %v10776_v31 = vpop.f32.mrb[216].mxu1 }
 0x75f   :  { %v10777_v8 = vpop.f32.mrb[217].mxu1 }
 0x760   :  { %v14907_v54 = vadd.f32 %v10777_v8, %v10776_v31  ;;  %v10779_v15 = vpop.f32.mrb[218].mxu1 }
 0x761   :  { %v10780_v44 = vpop.f32.mrb[219].mxu1 }
 0x762   :  { %v14909_v60 = vadd.f32 %v10780_v44, %v10779_v15 }
 0x766   :  { %v10782_v6 = vpop.f32.mrb[220].mxu1 }
 0x767   :  { %v10783_v21 = vpop.f32.mrb[221].mxu1 }
 0x768   :  { %v14911_v13 = vadd.f32 %v10783_v21, %v10782_v6  ;;  %v10785_v26 = vpop.f32.mrb[222].mxu1 }
 0x769   :  { %v10786_v12 = vpop.f32.mrb[223].mxu1 }
 0x76a   :  { %v14913_v3 = vadd.f32 %v10786_v12, %v10785_v26 }
 0x76e   :  { %v10788_v33 = vpop.f32.mrb[224].mxu1 }
 0x76f   :  { %v10789_v39 = vpop.f32.mrb[225].mxu1 }
 0x770   :  { %v14915_v40 = vadd.f32 %v10789_v39, %v10788_v33  ;;  %v10791_v14 = vpop.f32.mrb[226].mxu1 }
 0x771   :  { %v10792_v20 = vpop.f32.mrb[227].mxu1 }
 0x772   :  { %v14917_v19 = vadd.f32 %v10792_v20, %v10791_v14 }
 0x776   :  { %v10794_v42 = vpop.f32.mrb[228].mxu1 }
 0x777   :  { %v10795_v55 = vpop.f32.mrb[229].mxu1 }
 0x778   :  { %v14919_v58 = vadd.f32 %v10795_v55, %v10794_v42  ;;  %v10797_v37 = vpop.f32.mrb[230].mxu1 }
 0x779   :  { %v10798_v49 = vpop.f32.mrb[231].mxu1 }
 0x77a   :  { %v14921_v62 = vadd.f32 %v10798_v49, %v10797_v37  ;;  %v9056_v37 = vld [vmem:[#allocation10] sm:$0x7] }
 0x77e   :  { %v10800_v2 = vpop.f32.mrb[232].mxu1 }
 0x77f   :  { %v10801_v24 = vpop.f32.mrb[233].mxu1 }
 0x780   :  { %v14923_v38 = vadd.f32 %v10801_v24, %v10800_v2  ;;  %v10803_v10 = vpop.f32.mrb[234].mxu1  ;;  %v14948_v24 = vrot.slane %v9056_v37, %v15543_v0 }
 0x781   :  { %v10804_v63 = vpop.f32.mrb[235].mxu1 }
 0x782   :  { %v14925_v59 = vadd.f32 %v10804_v63, %v10803_v10  ;;  %v14951_v10 = vrot.slane %v9056_v37, %v15545_v1 }
 0x786   :  { %v10806_v17 = vpop.f32.mrb[236].mxu1 }
 0x787   :  { %v10807_v7 = vpop.f32.mrb[237].mxu1 }
 0x788   :  { %v14927_v48 = vadd.f32 %v10807_v7, %v10806_v17  ;;  %v10809_v53 = vpop.f32.mrb[238].mxu1 }
 0x789   :  { %v10810_v5 = vpop.f32.mrb[239].mxu1 }
 0x78a   :  { %v14929_v36 = vadd.f32 %v10810_v5, %v10809_v53 }
 0x78e   :  { %v10812_v4 = vpop.f32.mrb[240].mxu1 }
 0x78f   :  { %v10813_v11 = vpop.f32.mrb[241].mxu1 }
 0x790   :  { %v14931_v9 = vadd.f32 %v10813_v11, %v10812_v4  ;;  %v10815_v32 = vpop.f32.mrb[242].mxu1 }
 0x791   :  { %v10816_v35 = vpop.f32.mrb[243].mxu1 }
 0x792   :  { %v14933_v34 = vadd.f32 %v10816_v35, %v10815_v32 }
 0x796   :  { %v10818_v45 = vpop.f32.mrb[244].mxu1 }
 0x797   :  { %v10819_v46 = vpop.f32.mrb[245].mxu1 }
 0x798   :  { %v14935_v31 = vadd.f32 %v10819_v46, %v10818_v45  ;;  %v10821_v8 = vpop.f32.mrb[246].mxu1  ;;  %v14956_v45 = vrot.slane %v9056_v37, %v15544_v56 }
 0x799   :  { %v10822_v15 = vpop.f32.mrb[247].mxu1 }
 0x79a   :  { %v14937_v44 = vadd.f32 %v10822_v15, %v10821_v8 }
 0x79e   :  { %v10824_v6 = vpop.f32.mrb[248].mxu1 }
 0x79f   :  { %v10825_v21 = vpop.f32.mrb[249].mxu1 }
 0x7a0   :  { %v14939_v26 = vadd.f32 %v10825_v21, %v10824_v6  ;;  %v10827_v12 = vpop.f32.mrb[250].mxu1 }
 0x7a1   :  { %v10828_v33 = vpop.f32.mrb[251].mxu1 }
 0x7a2   :  { %v14941_v39 = vadd.f32 %v10828_v33, %v10827_v12 }
 0x7a6   :  { %v10830_v14 = vpop.f32.mrb[252].mxu1 }
 0x7a7   :  { %v10831_v20 = vpop.f32.mrb[253].mxu1 }
 0x7a8   :  { %v14943_v42 = vadd.f32 %v10831_v20, %v10830_v14  ;;  %v10833_v55 = vpop.f32.mrb[254].mxu1 }
 0x7a9   :  { %v10834_v49 = vpop.f32.mrb[255].mxu1 }
 0x7aa   :  { %v14945_v2 = vadd.f32 %v10834_v49, %v10833_v55 }
 0x7ae   :  { %v8479_v63 = vpop.f32.mrb[128].mxu0  ;;  %v10852_v17 = vpop.f32.mrb[0].mxu1 }
 0x7af   :  { %v9073_v7 = vadd.f32 %v14948_v24, %v8479_v63  ;;  %v8481_v53 = vpop.f32.mrb[129].mxu0  ;;  %v10853_v5 = vpop.f32.mrb[1].mxu1 }
 0x7b0   :  { %v9074_v4 = vadd.f32 %v14951_v10, %v8481_v53  ;;  %v10854_v11 = vadd.f32 %v10853_v5, %v10852_v17  ;;  %v8483_v32 = vpop.f32.mrb[130].mxu0  ;;  %v10855_v35 = vpop.f32.mrb[2].mxu1 }
 0x7b1   :  { %v9076_v0 = vadd.f32 %v14948_v24, %v8483_v32  ;;  %v8485_v46 = vpop.f32.mrb[131].mxu0  ;;  %v10856_v8 = vpop.f32.mrb[3].mxu1 }
 0x7b2   :  { %v10212_v1 = vpack.c.bf16 %v9074_v4, %v9073_v7  ;;  %v8834_v15 = vadd.f32 %v10854_v11, %v14865_v18  ;;  %v9077_v6 = vadd.f32 %v14951_v10, %v8485_v46  ;;  %v10857_v21 = vadd.f32 %v10856_v8, %v10855_v35 }
 0x7b4   :  { %9489 = vst [vmem:[#allocation11] sm:$0xff] %v10212_v1  ;;  %v8962_v12 = vadd.f32 %v8834_v15, %v14438_v61  ;;  %v10214_v33 = vpack.c.bf16 %v9077_v6, %v9076_v0  ;;  %v8837_v14 = vadd.f32 %v10857_v21, %v14867_v41 }
 0x7b6   :  { %v9075_v20 = vadd.f32 %v14956_v45, %v8962_v12  ;;  %9491 = vst [vmem:[#allocation11 + $0xc] sm:$0xff] %v10214_v33  ;;  %v8965_v56 = vadd.f32 %v8837_v14, %v14443_v27  ;;  %v8489_v55 = vpop.f32.mrb[132].mxu0  ;;  %v10858_v37 = vpop.f32.mrb[4].mxu1 }
 0x7b7   :  { %v9079_v49 = vadd.f32 %v14948_v24, %v8489_v55  ;;  %v8491_v63 = vpop.f32.mrb[133].mxu0  ;;  %v10859_v18 = vpop.f32.mrb[5].mxu1 }
 0x7b8   :  { %v10213_v17 = vpack.c.bf16 %v9075_v20, %v9075_v20  ;;  %v9078_v7 = vadd.f32 %v14956_v45, %v8965_v56  ;;  %v9080_v53 = vadd.f32 %v14951_v10, %v8491_v63  ;;  %v10860_v61 = vadd.f32 %v10859_v18, %v10858_v37  ;;  %v8493_v5 = vpop.f32.mrb[134].mxu0  ;;  %v10861_v4 = vpop.f32.mrb[6].mxu1 }
 0x7b9   :  { %v9082_v41 = vadd.f32 %v14948_v24, %v8493_v5  ;;  %v8495_v11 = vpop.f32.mrb[135].mxu0  ;;  %v10862_v32 = vpop.f32.mrb[7].mxu1 }
 0x7ba   :  { %9490 = vst [vmem:[#allocation11 + $0x8] sm:$0xf] %v10213_v17  ;;  %v10215_v27 = vpack.c.bf16 %v9078_v7, %v9078_v7  ;;  %v10216_v35 = vpack.c.bf16 %v9080_v53, %v9079_v49  ;;  %v8842_v0 = vadd.f32 %v10860_v61, %v14873_v52  ;;  %v9083_v46 = vadd.f32 %v14951_v10, %v8495_v11 }
 0x7bb   :  { %v10863_v8 = vadd.f32 %v10862_v32, %v10861_v4 }
 0x7bc   :  { %9492 = vst [vmem:[#allocation11 + $0x14] sm:$0xf] %v10215_v27  ;;  %9493 = vst [vmem:[#allocation11 + $0x18] sm:$0xff] %v10216_v35  ;;  %v8968_v1 = vadd.f32 %v8842_v0, %v14448_v47  ;;  %v10218_v15 = vpack.c.bf16 %v9083_v46, %v9082_v41  ;;  %v15547_v35 = vld [vmem:[#allocation74_spill] sm:$0xff] }
 0x7bd   :  { %v8845_v6 = vadd.f32 %v10863_v8, %v14875_v22 }
 0x7be   :  { %v9081_v21 = vadd.f32 %v14956_v45, %v8968_v1  ;;  %9495 = vst [vmem:[#allocation11 + $0x24] sm:$0xff] %v10218_v15  ;;  %v8499_v12 = vpop.f32.mrb[136].mxu0  ;;  %v10864_v33 = vpop.f32.mrb[8].mxu1 }
 0x7bf   :  { %v8971_v14 = vadd.f32 %v8845_v6, %v14453_v23  ;;  %v9085_v20 = vadd.f32 %v14948_v24, %v8499_v12  ;;  %v8501_v52 = vpop.f32.mrb[137].mxu0  ;;  %v10865_v56 = vpop.f32.mrb[9].mxu1 }
 0x7c0   :  { %v10217_v55 = vpack.c.bf16 %v9081_v21, %v9081_v21  ;;  %v9086_v37 = vadd.f32 %v14951_v10, %v8501_v52  ;;  %v10866_v49 = vadd.f32 %v10865_v56, %v10864_v33  ;;  %v8503_v63 = vpop.f32.mrb[138].mxu0  ;;  %v10867_v47 = vpop.f32.mrb[10].mxu1 }
 0x7c1   :  { %v9084_v18 = vadd.f32 %v14956_v45, %v8971_v14  ;;  %v9088_v22 = vadd.f32 %v14948_v24, %v8503_v63  ;;  %v8505_v17 = vpop.f32.mrb[139].mxu0  ;;  %v10868_v7 = vpop.f32.mrb[11].mxu1 }
 0x7c2   :  { %9494 = vst [vmem:[#allocation11 + $0x20] sm:$0xf] %v10217_v55  ;;  %v10220_v53 = vpack.c.bf16 %v9086_v37, %v9085_v20  ;;  %v8850_v23 = vadd.f32 %v10866_v49, %v14881_v16  ;;  %v9089_v61 = vadd.f32 %v14951_v10, %v8505_v17  ;;  %v10869_v5 = vadd.f32 %v10868_v7, %v10867_v47  ;;  %v15548_v47 = vld [vmem:[#allocation79_spill] sm:$0xff] }
 0x7c3   :  { %v10219_v4 = vpack.c.bf16 %v9084_v18, %v9084_v18 }
 0x7c4   :  { %9497 = vst [vmem:[#allocation11 + $0x30] sm:$0xff] %v10220_v53  ;;  %v8974_v41 = vadd.f32 %v8850_v23, %v14458_v28  ;;  %v10222_v11 = vpack.c.bf16 %v9089_v61, %v9088_v22  ;;  %v8853_v32 = vadd.f32 %v10869_v5, %v14883_v29  ;;  %v15549_v61 = vld [vmem:[#allocation77_spill] sm:$0xff] }
 0x7c5   :  { %9496 = vst [vmem:[#allocation11 + $0x2c] sm:$0xf] %v10219_v4 }
 0x7c6   :  { %v9087_v27 = vadd.f32 %v14956_v45, %v8974_v41  ;;  %9499 = vst [vmem:[#allocation11 + $0x3c] sm:$0xff] %v10222_v11  ;;  %v8977_v0 = vadd.f32 %v8853_v32, %v15547_v35  ;;  %v8509_v46 = vpop.f32.mrb[140].mxu0  ;;  %v10870_v8 = vpop.f32.mrb[12].mxu1 }
 0x7c7   :  { %v9091_v16 = vadd.f32 %v14948_v24, %v8509_v46  ;;  %v8511_v1 = vpop.f32.mrb[141].mxu0  ;;  %v10871_v15 = vpop.f32.mrb[13].mxu1 }
 0x7c8   :  { %v10221_v6 = vpack.c.bf16 %v9087_v27, %v9087_v27  ;;  %v9090_v21 = vadd.f32 %v14956_v45, %v8977_v0  ;;  %v9092_v28 = vadd.f32 %v14951_v10, %v8511_v1  ;;  %v10872_v12 = vadd.f32 %v10871_v15, %v10870_v8  ;;  %v8513_v33 = vpop.f32.mrb[142].mxu0  ;;  %v10873_v29 = vpop.f32.mrb[14].mxu1 }
 0x7c9   :  { %v9094_v14 = vadd.f32 %v14948_v24, %v8513_v33  ;;  %v8515_v20 = vpop.f32.mrb[143].mxu0  ;;  %v10874_v52 = vpop.f32.mrb[15].mxu1 }
 0x7ca   :  { %9498 = vst [vmem:[#allocation11 + $0x38] sm:$0xf] %v10221_v6  ;;  %v10223_v56 = vpack.c.bf16 %v9090_v21, %v9090_v21  ;;  %v10224_v55 = vpack.c.bf16 %v9092_v28, %v9091_v16  ;;  %v8858_v37 = vadd.f32 %v10872_v12, %v14889_v57  ;;  %v9095_v49 = vadd.f32 %v14951_v10, %v8515_v20  ;;  %v15550_v12 = vld [vmem:[#allocation83_spill] sm:$0xff] }
 0x7cb   :  { %v10875_v63 = vadd.f32 %v10874_v52, %v10873_v29  ;;  %v15551_v52 = vld [vmem:[#allocation81_spill] sm:$0xff] }
 0x7cc   :  { %9500 = vst [vmem:[#allocation11 + $0x44] sm:$0xf] %v10223_v56  ;;  %9501 = vst [vmem:[#allocation11 + $0x48] sm:$0xff] %v10224_v55  ;;  %v8980_v18 = vadd.f32 %v8858_v37, %v15548_v47  ;;  %v10226_v22 = vpack.c.bf16 %v9095_v49, %v9094_v14 }
 0x7cd   :  { %v8861_v17 = vadd.f32 %v10875_v63, %v14891_v50 }
 0x7ce   :  { %v9093_v7 = vadd.f32 %v14956_v45, %v8980_v18  ;;  %9503 = vst [vmem:[#allocation11 + $0x54] sm:$0xff] %v10226_v22  ;;  %v8519_v53 = vpop.f32.mrb[144].mxu0  ;;  %v10876_v23 = vpop.f32.mrb[16].mxu1 }
 0x7cf   :  { %v8983_v5 = vadd.f32 %v8861_v17, %v15549_v61  ;;  %v9097_v4 = vadd.f32 %v14948_v24, %v8519_v53  ;;  %v8521_v57 = vpop.f32.mrb[145].mxu0  ;;  %v10877_v41 = vpop.f32.mrb[17].mxu1 }
 0x7d0   :  { %v10225_v11 = vpack.c.bf16 %v9093_v7, %v9093_v7  ;;  %v9098_v32 = vadd.f32 %v14951_v10, %v8521_v57  ;;  %v10878_v27 = vadd.f32 %v10877_v41, %v10876_v23  ;;  %v8523_v35 = vpop.f32.mrb[146].mxu0  ;;  %v10879_v0 = vpop.f32.mrb[18].mxu1 }
 0x7d1   :  { %v9096_v46 = vadd.f32 %v14956_v45, %v8983_v5  ;;  %v9100_v50 = vadd.f32 %v14948_v24, %v8523_v35  ;;  %v8525_v8 = vpop.f32.mrb[147].mxu0  ;;  %v10880_v16 = vpop.f32.mrb[19].mxu1 }
 0x7d2   :  { %9502 = vst [vmem:[#allocation11 + $0x50] sm:$0xf] %v10225_v11  ;;  %v10228_v1 = vpack.c.bf16 %v9098_v32, %v9097_v4  ;;  %v8866_v15 = vadd.f32 %v10878_v27, %v14897_v51  ;;  %v9101_v6 = vadd.f32 %v14951_v10, %v8525_v8  ;;  %v10881_v21 = vadd.f32 %v10880_v16, %v10879_v0  ;;  %v15552_v32 = vld [vmem:[#allocation87_spill] sm:$0xff]  ;;  %v15553_v16 = vld [vmem:[#allocation85_spill] sm:$0xff] }
 0x7d3   :  { %v10227_v28 = vpack.c.bf16 %v9096_v46, %v9096_v46 }
 0x7d4   :  { %9505 = vst [vmem:[#allocation11 + $0x60] sm:$0xff] %v10228_v1  ;;  %v8986_v33 = vadd.f32 %v8866_v15, %v15550_v12  ;;  %v10230_v29 = vpack.c.bf16 %v9101_v6, %v9100_v50  ;;  %v8869_v14 = vadd.f32 %v10881_v21, %v14899_v25 }
 0x7d5   :  { %9504 = vst [vmem:[#allocation11 + $0x5c] sm:$0xf] %v10227_v28 }
 0x7d6   :  { %v9099_v20 = vadd.f32 %v14956_v45, %v8986_v33  ;;  %9507 = vst [vmem:[#allocation11 + $0x6c] sm:$0xff] %v10230_v29  ;;  %v8989_v56 = vadd.f32 %v8869_v14, %v15551_v52  ;;  %v8529_v55 = vpop.f32.mrb[148].mxu0  ;;  %v10882_v37 = vpop.f32.mrb[20].mxu1 }
 0x7d7   :  { %v9103_v51 = vadd.f32 %v14948_v24, %v8529_v55  ;;  %v8531_v49 = vpop.f32.mrb[149].mxu0  ;;  %v10883_v63 = vpop.f32.mrb[21].mxu1 }
 0x7d8   :  { %v10229_v47 = vpack.c.bf16 %v9099_v20, %v9099_v20  ;;  %v9102_v18 = vadd.f32 %v14956_v45, %v8989_v56  ;;  %v9104_v22 = vadd.f32 %v14951_v10, %v8531_v49  ;;  %v10884_v17 = vadd.f32 %v10883_v63, %v10882_v37  ;;  %v8533_v7 = vpop.f32.mrb[150].mxu0  ;;  %v10885_v25 = vpop.f32.mrb[22].mxu1  ;;  %v15554_v63 = vld [vmem:[#allocation91_spill] sm:$0xff] }
 0x7d9   :  { %v9106_v53 = vadd.f32 %v14948_v24, %v8533_v7  ;;  %v8535_v23 = vpop.f32.mrb[151].mxu0  ;;  %v10886_v61 = vpop.f32.mrb[23].mxu1  ;;  %v15555_v7 = vld [vmem:[#allocation89_spill] sm:$0xff] }
 0x7da   :  { %9506 = vst [vmem:[#allocation11 + $0x68] sm:$0xf] %v10229_v47  ;;  %v10231_v5 = vpack.c.bf16 %v9102_v18, %v9102_v18  ;;  %v10232_v4 = vpack.c.bf16 %v9104_v22, %v9103_v51  ;;  %v8874_v57 = vadd.f32 %v10884_v17, %v14903_v30  ;;  %v9107_v41 = vadd.f32 %v14951_v10, %v8535_v23 }
 0x7db   :  { %v10887_v11 = vadd.f32 %v10886_v61, %v10885_v25 }
 0x7dc   :  { %9508 = vst [vmem:[#allocation11 + $0x74] sm:$0xf] %v10231_v5  ;;  %9509 = vst [vmem:[#allocation11 + $0x78] sm:$0xff] %v10232_v4  ;;  %v8992_v27 = vadd.f32 %v8874_v57, %v15552_v32  ;;  %v10234_v35 = vpack.c.bf16 %v9107_v41, %v9106_v53 }
 0x7dd   :  { %v8877_v0 = vadd.f32 %v10887_v11, %v14905_v43 }
 0x7de   :  { %v9105_v46 = vadd.f32 %v14956_v45, %v8992_v27  ;;  %9511 = vst [vmem:[#allocation11 + $0x84] sm:$0xff] %v10234_v35  ;;  %v8539_v50 = vpop.f32.mrb[152].mxu0  ;;  %v10888_v8 = vpop.f32.mrb[24].mxu1 }
 0x7df   :  { %v8995_v1 = vadd.f32 %v8877_v0, %v15553_v16  ;;  %v9109_v15 = vadd.f32 %v14948_v24, %v8539_v50  ;;  %v8541_v30 = vpop.f32.mrb[153].mxu0  ;;  %v10889_v6 = vpop.f32.mrb[25].mxu1 }
 0x7e0   :  { %v10233_v21 = vpack.c.bf16 %v9105_v46, %v9105_v46  ;;  %v9110_v28 = vadd.f32 %v14951_v10, %v8541_v30  ;;  %v10890_v12 = vadd.f32 %v10889_v6, %v10888_v8  ;;  %v8543_v33 = vpop.f32.mrb[154].mxu0  ;;  %v10891_v29 = vpop.f32.mrb[26].mxu1 }
 0x7e1   :  { %v9108_v14 = vadd.f32 %v14956_v45, %v8995_v1  ;;  %v9112_v43 = vadd.f32 %v14948_v24, %v8543_v33  ;;  %v8545_v20 = vpop.f32.mrb[155].mxu0  ;;  %v10892_v52 = vpop.f32.mrb[27].mxu1 }
 0x7e2   :  { %9510 = vst [vmem:[#allocation11 + $0x80] sm:$0xf] %v10233_v21  ;;  %v10236_v56 = vpack.c.bf16 %v9110_v28, %v9109_v15  ;;  %v8882_v55 = vadd.f32 %v10890_v12, %v14907_v54  ;;  %v9113_v37 = vadd.f32 %v14951_v10, %v8545_v20  ;;  %v10893_v51 = vadd.f32 %v10892_v52, %v10891_v29  ;;  %v15556_v15 = vld [vmem:[#allocation95_spill] sm:$0xff]  ;;  %v15557_v29 = vld [vmem:[#allocation93_spill] sm:$0xff] }
 0x7e3   :  { %v10235_v49 = vpack.c.bf16 %v9108_v14, %v9108_v14 }
 0x7e4   :  { %9513 = vst [vmem:[#allocation11 + $0x90] sm:$0xff] %v10236_v56  ;;  %v8998_v47 = vadd.f32 %v8882_v55, %v15554_v63  ;;  %v10238_v18 = vpack.c.bf16 %v9113_v37, %v9112_v43  ;;  %v8885_v22 = vadd.f32 %v10893_v51, %v14909_v60 }
 0x7e5   :  { %9512 = vst [vmem:[#allocation11 + $0x8c] sm:$0xf] %v10235_v49 }
 0x7e6   :  { %v9111_v17 = vadd.f32 %v14956_v45, %v8998_v47  ;;  %9515 = vst [vmem:[#allocation11 + $0x9c] sm:$0xff] %v10238_v18  ;;  %v9001_v25 = vadd.f32 %v8885_v22, %v15555_v7  ;;  %v8549_v53 = vpop.f32.mrb[156].mxu0  ;;  %v10894_v23 = vpop.f32.mrb[28].mxu1 }
 0x7e7   :  { %v9115_v54 = vadd.f32 %v14948_v24, %v8549_v53  ;;  %v8551_v61 = vpop.f32.mrb[157].mxu0  ;;  %v10895_v5 = vpop.f32.mrb[29].mxu1  ;;  %v15558_v53 = vld [vmem:[#allocation99_spill] sm:$0xff] }
 0x7e8   :  { %v10237_v4 = vpack.c.bf16 %v9111_v17, %v9111_v17  ;;  %v9114_v57 = vadd.f32 %v14956_v45, %v9001_v25  ;;  %v9116_v41 = vadd.f32 %v14951_v10, %v8551_v61  ;;  %v10896_v11 = vadd.f32 %v10895_v5, %v10894_v23  ;;  %v8553_v32 = vpop.f32.mrb[158].mxu0  ;;  %v10897_v60 = vpop.f32.mrb[30].mxu1 }
 0x7e9   :  { %v9118_v27 = vadd.f32 %v14948_v24, %v8553_v32  ;;  %v8555_v35 = vpop.f32.mrb[159].mxu0  ;;  %v10898_v0 = vpop.f32.mrb[31].mxu1 }
 0x7ea   :  { %9514 = vst [vmem:[#allocation11 + $0x98] sm:$0xf] %v10237_v4  ;;  %v10239_v46 = vpack.c.bf16 %v9114_v57, %v9114_v57  ;;  %v10240_v50 = vpack.c.bf16 %v9116_v41, %v9115_v54  ;;  %v8890_v8 = vadd.f32 %v10896_v11, %v14911_v13  ;;  %v9119_v16 = vadd.f32 %v14951_v10, %v8555_v35  ;;  %v15559_v4 = vld [vmem:[#allocation97_spill] sm:$0xff] }
 0x7eb   :  { %v10899_v1 = vadd.f32 %v10898_v0, %v10897_v60 }
 0x7ec   :  { %9516 = vst [vmem:[#allocation11 + $0xa4] sm:$0xf] %v10239_v46  ;;  %9517 = vst [vmem:[#allocation11 + $0xa8] sm:$0xff] %v10240_v50  ;;  %v9004_v30 = vadd.f32 %v8890_v8, %v15556_v15  ;;  %v10242_v6 = vpack.c.bf16 %v9119_v16, %v9118_v27 }
 0x7ed   :  { %v8893_v21 = vadd.f32 %v10899_v1, %v14913_v3 }
 0x7ee   :  { %v9117_v28 = vadd.f32 %v14956_v45, %v9004_v30  ;;  %9519 = vst [vmem:[#allocation11 + $0xb4] sm:$0xff] %v10242_v6  ;;  %v8559_v12 = vpop.f32.mrb[160].mxu0  ;;  %v10900_v33 = vpop.f32.mrb[32].mxu1 }
 0x7ef   :  { %v9007_v14 = vadd.f32 %v8893_v21, %v15557_v29  ;;  %v9121_v43 = vadd.f32 %v14948_v24, %v8559_v12  ;;  %v8561_v13 = vpop.f32.mrb[161].mxu0  ;;  %v10901_v20 = vpop.f32.mrb[33].mxu1  ;;  %v15560_v12 = vld [vmem:[#allocation103_spill] sm:$0xff] }
 0x7f0   :  { %v10241_v52 = vpack.c.bf16 %v9117_v28, %v9117_v28  ;;  %v9122_v56 = vadd.f32 %v14951_v10, %v8561_v13  ;;  %v10902_v55 = vadd.f32 %v10901_v20, %v10900_v33  ;;  %v8563_v37 = vpop.f32.mrb[162].mxu0  ;;  %v10903_v51 = vpop.f32.mrb[34].mxu1 }
 0x7f1   :  { %v9120_v49 = vadd.f32 %v14956_v45, %v9007_v14  ;;  %v9124_v3 = vadd.f32 %v14948_v24, %v8563_v37  ;;  %v8565_v63 = vpop.f32.mrb[163].mxu0  ;;  %v10904_v47 = vpop.f32.mrb[35].mxu1 }
 0x7f2   :  { %9518 = vst [vmem:[#allocation11 + $0xb0] sm:$0xf] %v10241_v52  ;;  %v10244_v18 = vpack.c.bf16 %v9122_v56, %v9121_v43  ;;  %v8898_v22 = vadd.f32 %v10902_v55, %v14915_v40  ;;  %v9125_v17 = vadd.f32 %v14951_v10, %v8565_v63  ;;  %v10905_v7 = vadd.f32 %v10904_v47, %v10903_v51  ;;  %v15561_v52 = vld [vmem:[#allocation101_spill] sm:$0xff] }
 0x7f3   :  { %v10243_v25 = vpack.c.bf16 %v9120_v49, %v9120_v49 }
 0x7f4   :  { %9521 = vst [vmem:[#allocation11 + $0xc0] sm:$0xff] %v10244_v18  ;;  %v9010_v23 = vadd.f32 %v8898_v22, %v15558_v53  ;;  %v10246_v54 = vpack.c.bf16 %v9125_v17, %v9124_v3  ;;  %v8901_v61 = vadd.f32 %v10905_v7, %v14917_v19 }
 0x7f5   :  { %9520 = vst [vmem:[#allocation11 + $0xbc] sm:$0xf] %v10243_v25 }
 0x7f6   :  { %v9123_v5 = vadd.f32 %v14956_v45, %v9010_v23  ;;  %9523 = vst [vmem:[#allocation11 + $0xcc] sm:$0xff] %v10246_v54  ;;  %v9013_v57 = vadd.f32 %v8901_v61, %v15559_v4  ;;  %v8569_v41 = vpop.f32.mrb[164].mxu0  ;;  %v10906_v11 = vpop.f32.mrb[36].mxu1  ;;  %v15562_v61 = vld [vmem:[#allocation107_spill] sm:$0xff] }
 0x7f7   :  { %v9127_v40 = vadd.f32 %v14948_v24, %v8569_v41  ;;  %v8571_v32 = vpop.f32.mrb[165].mxu0  ;;  %v10907_v60 = vpop.f32.mrb[37].mxu1 }
 0x7f8   :  { %v10245_v27 = vpack.c.bf16 %v9123_v5, %v9123_v5  ;;  %v9126_v35 = vadd.f32 %v14956_v45, %v9013_v57  ;;  %v9128_v0 = vadd.f32 %v14951_v10, %v8571_v32  ;;  %v10908_v46 = vadd.f32 %v10907_v60, %v10906_v11  ;;  %v8573_v50 = vpop.f32.mrb[166].mxu0  ;;  %v10909_v19 = vpop.f32.mrb[38].mxu1  ;;  %v15563_v11 = vld [vmem:[#allocation105_spill] sm:$0xff] }
 0x7f9   :  { %v9130_v8 = vadd.f32 %v14948_v24, %v8573_v50  ;;  %v8575_v16 = vpop.f32.mrb[167].mxu0  ;;  %v10910_v1 = vpop.f32.mrb[39].mxu1 }
 0x7fa   :  { %9522 = vst [vmem:[#allocation11 + $0xc8] sm:$0xf] %v10245_v27  ;;  %v10247_v15 = vpack.c.bf16 %v9126_v35, %v9126_v35  ;;  %v10248_v30 = vpack.c.bf16 %v9128_v0, %v9127_v40  ;;  %v8906_v6 = vadd.f32 %v10908_v46, %v14919_v58  ;;  %v9131_v21 = vadd.f32 %v14951_v10, %v8575_v16 }
 0x7fb   :  { %v10911_v28 = vadd.f32 %v10910_v1, %v10909_v19 }
 0x7fc   :  { %9524 = vst [vmem:[#allocation11 + $0xd4] sm:$0xf] %v10247_v15  ;;  %9525 = vst [vmem:[#allocation11 + $0xd8] sm:$0xff] %v10248_v30  ;;  %v9016_v33 = vadd.f32 %v8906_v6, %v15560_v12  ;;  %v10250_v29 = vpack.c.bf16 %v9131_v21, %v9130_v8 }
 0x7fd   :  { %v8909_v14 = vadd.f32 %v10911_v28, %v14921_v62 }
 0x7fe   :  { %v9129_v43 = vadd.f32 %v14956_v45, %v9016_v33  ;;  %9527 = vst [vmem:[#allocation11 + $0xe4] sm:$0xff] %v10250_v29  ;;  %v8579_v13 = vpop.f32.mrb[168].mxu0  ;;  %v10912_v20 = vpop.f32.mrb[40].mxu1  ;;  %v15564_v33 = vld [vmem:[#allocation111_spill] sm:$0xff] }
 0x7ff   :  { %v9019_v56 = vadd.f32 %v8909_v14, %v15561_v52  ;;  %v9133_v55 = vadd.f32 %v14948_v24, %v8579_v13  ;;  %v8581_v58 = vpop.f32.mrb[169].mxu0  ;;  %v10913_v37 = vpop.f32.mrb[41].mxu1 }
 0x800   :  { %v10249_v51 = vpack.c.bf16 %v9129_v43, %v9129_v43  ;;  %v9134_v49 = vadd.f32 %v14951_v10, %v8581_v58  ;;  %v10914_v3 = vadd.f32 %v10913_v37, %v10912_v20  ;;  %v8583_v63 = vpop.f32.mrb[170].mxu0  ;;  %v10915_v47 = vpop.f32.mrb[42].mxu1 }
 0x801   :  { %v9132_v18 = vadd.f32 %v14956_v45, %v9019_v56  ;;  %v9136_v62 = vadd.f32 %v14948_v24, %v8583_v63  ;;  %v8585_v22 = vpop.f32.mrb[171].mxu0  ;;  %v10916_v17 = vpop.f32.mrb[43].mxu1  ;;  %v15565_v56 = vld [vmem:[#allocation109_spill] sm:$0xff] }
 0x802   :  { %9526 = vst [vmem:[#allocation11 + $0xe0] sm:$0xf] %v10249_v51  ;;  %v10252_v7 = vpack.c.bf16 %v9134_v49, %v9133_v55  ;;  %v8914_v25 = vadd.f32 %v10914_v3, %v14923_v38  ;;  %v9137_v53 = vadd.f32 %v14951_v10, %v8585_v22  ;;  %v10917_v23 = vadd.f32 %v10916_v17, %v10915_v47 }
 0x803   :  { %v10251_v54 = vpack.c.bf16 %v9132_v18, %v9132_v18 }
 0x804   :  { %9529 = vst [vmem:[#allocation11 + $0xf0] sm:$0xff] %v10252_v7  ;;  %v9022_v5 = vadd.f32 %v8914_v25, %v15562_v61  ;;  %v10254_v4 = vpack.c.bf16 %v9137_v53, %v9136_v62  ;;  %v8917_v57 = vadd.f32 %v10917_v23, %v14925_v59 }
 0x805   :  { %9528 = vst [vmem:[#allocation11 + $0xec] sm:$0xf] %v10251_v54  ;;  %v15566_v54 = vld [vmem:[#allocation115_spill] sm:$0xff] }
 0x806   :  { %v9135_v41 = vadd.f32 %v14956_v45, %v9022_v5  ;;  %9531 = vst [vmem:[#allocation11 + $0xfc] sm:$0xff] %v10254_v4  ;;  %v9025_v40 = vadd.f32 %v8917_v57, %v15563_v11  ;;  %v8589_v32 = vpop.f32.mrb[172].mxu0  ;;  %v10918_v60 = vpop.f32.mrb[44].mxu1 }
 0x807   :  { %v9139_v38 = vadd.f32 %v14948_v24, %v8589_v32  ;;  %v8591_v27 = vpop.f32.mrb[173].mxu0  ;;  %v10919_v35 = vpop.f32.mrb[45].mxu1 }
 0x808   :  { %v10253_v0 = vpack.c.bf16 %v9135_v41, %v9135_v41  ;;  %v9138_v46 = vadd.f32 %v14956_v45, %v9025_v40  ;;  %v9140_v50 = vadd.f32 %v14951_v10, %v8591_v27  ;;  %v10920_v19 = vadd.f32 %v10919_v35, %v10918_v60  ;;  %v8593_v8 = vpop.f32.mrb[174].mxu0  ;;  %v10921_v59 = vpop.f32.mrb[46].mxu1  ;;  %v15567_v41 = vld [vmem:[#allocation113_spill] sm:$0xff] }
 0x809   :  { %v9142_v16 = vadd.f32 %v14948_v24, %v8593_v8  ;;  %v8595_v1 = vpop.f32.mrb[175].mxu0  ;;  %v10922_v15 = vpop.f32.mrb[47].mxu1 }
 0x80a   :  { %9530 = vst [vmem:[#allocation11 + $0xf8] sm:$0xf] %v10253_v0  ;;  %v10255_v30 = vpack.c.bf16 %v9138_v46, %v9138_v46  ;;  %v10256_v6 = vpack.c.bf16 %v9140_v50, %v9139_v38  ;;  %v8922_v21 = vadd.f32 %v10920_v19, %v14927_v48  ;;  %v9143_v28 = vadd.f32 %v14951_v10, %v8595_v1 }
 0x80b   :  { %v10923_v12 = vadd.f32 %v10922_v15, %v10921_v59 }
 0x80c   :  { %9532 = vst [vmem:[#allocation11 + $0x104] sm:$0xf] %v10255_v30  ;;  %9533 = vst [vmem:[#allocation11 + $0x108] sm:$0xff] %v10256_v6  ;;  %v9028_v29 = vadd.f32 %v8922_v21, %v15564_v33  ;;  %v10258_v14 = vpack.c.bf16 %v9143_v28, %v9142_v16  ;;  %v15568_v21 = vld [vmem:[#allocation119_spill] sm:$0xff] }
 0x80d   :  { %v8925_v43 = vadd.f32 %v10923_v12, %v14929_v36 }
 0x80e   :  { %v9141_v13 = vadd.f32 %v14956_v45, %v9028_v29  ;;  %9535 = vst [vmem:[#allocation11 + $0x114] sm:$0xff] %v10258_v14  ;;  %v8599_v20 = vpop.f32.mrb[176].mxu0  ;;  %v10924_v52 = vpop.f32.mrb[48].mxu1 }
 0x80f   :  { %v9031_v55 = vadd.f32 %v8925_v43, %v15565_v56  ;;  %v9145_v58 = vadd.f32 %v14948_v24, %v8599_v20  ;;  %v8601_v48 = vpop.f32.mrb[177].mxu0  ;;  %v10925_v37 = vpop.f32.mrb[49].mxu1 }
 0x810   :  { %v10257_v51 = vpack.c.bf16 %v9141_v13, %v9141_v13  ;;  %v9146_v49 = vadd.f32 %v14951_v10, %v8601_v48  ;;  %v10926_v3 = vadd.f32 %v10925_v37, %v10924_v52  ;;  %v8603_v63 = vpop.f32.mrb[178].mxu0  ;;  %v10927_v47 = vpop.f32.mrb[50].mxu1  ;;  %v15569_v13 = vld [vmem:[#allocation117_spill] sm:$0xff] }
 0x811   :  { %v9144_v18 = vadd.f32 %v14956_v45, %v9031_v55  ;;  %v9148_v36 = vadd.f32 %v14948_v24, %v8603_v63  ;;  %v8605_v62 = vpop.f32.mrb[179].mxu0  ;;  %v10928_v22 = vpop.f32.mrb[51].mxu1 }
 0x812   :  { %9534 = vst [vmem:[#allocation11 + $0x110] sm:$0xf] %v10257_v51  ;;  %v10260_v17 = vpack.c.bf16 %v9146_v49, %v9145_v58  ;;  %v8930_v7 = vadd.f32 %v10926_v3, %v14931_v9  ;;  %v9149_v25 = vadd.f32 %v14951_v10, %v8605_v62  ;;  %v10929_v53 = vadd.f32 %v10928_v22, %v10927_v47 }
 0x813   :  { %v10259_v23 = vpack.c.bf16 %v9144_v18, %v9144_v18 }
 0x814   :  { %9537 = vst [vmem:[#allocation11 + $0x120] sm:$0xff] %v10260_v17  ;;  %v9034_v61 = vadd.f32 %v8930_v7, %v15566_v54  ;;  %v10262_v5 = vpack.c.bf16 %v9149_v25, %v9148_v36  ;;  %v8933_v4 = vadd.f32 %v10929_v53, %v14933_v34  ;;  %v15570_v17 = vld [vmem:[#allocation123_spill] sm:$0xff]  ;;  %v15571_v54 = vld [vmem:[#allocation121_spill] sm:$0xff] }
 0x815   :  { %9536 = vst [vmem:[#allocation11 + $0x11c] sm:$0xf] %v10259_v23 }
 0x816   :  { %v9147_v57 = vadd.f32 %v14956_v45, %v9034_v61  ;;  %9539 = vst [vmem:[#allocation11 + $0x12c] sm:$0xff] %v10262_v5  ;;  %v9037_v11 = vadd.f32 %v8933_v4, %v15567_v41  ;;  %v8609_v40 = vpop.f32.mrb[180].mxu0  ;;  %v10930_v32 = vpop.f32.mrb[52].mxu1 }
 0x817   :  { %v9151_v9 = vadd.f32 %v14948_v24, %v8609_v40  ;;  %v8611_v60 = vpop.f32.mrb[181].mxu0  ;;  %v10931_v38 = vpop.f32.mrb[53].mxu1 }
 0x818   :  { %v10261_v27 = vpack.c.bf16 %v9147_v57, %v9147_v57  ;;  %v9150_v35 = vadd.f32 %v14956_v45, %v9037_v11  ;;  %v9152_v0 = vadd.f32 %v14951_v10, %v8611_v60  ;;  %v10932_v46 = vadd.f32 %v10931_v38, %v10930_v32  ;;  %v8613_v50 = vpop.f32.mrb[182].mxu0  ;;  %v10933_v34 = vpop.f32.mrb[54].mxu1 }
 0x819   :  { %v9154_v19 = vadd.f32 %v14948_v24, %v8613_v50  ;;  %v8615_v8 = vpop.f32.mrb[183].mxu0  ;;  %v10934_v59 = vpop.f32.mrb[55].mxu1 }
 0x81a   :  { %9538 = vst [vmem:[#allocation11 + $0x128] sm:$0xf] %v10261_v27  ;;  %v10263_v16 = vpack.c.bf16 %v9150_v35, %v9150_v35  ;;  %v10264_v1 = vpack.c.bf16 %v9152_v0, %v9151_v9  ;;  %v8938_v15 = vadd.f32 %v10932_v46, %v14935_v31  ;;  %v9155_v30 = vadd.f32 %v14951_v10, %v8615_v8  ;;  %v15572_v8 = vld [vmem:[#allocation69_spill] sm:$0xff] }
 0x81b   :  { %v10935_v6 = vadd.f32 %v10934_v59, %v10933_v34 }
 0x81c   :  { %9540 = vst [vmem:[#allocation11 + $0x134] sm:$0xf] %v10263_v16  ;;  %9541 = vst [vmem:[#allocation11 + $0x138] sm:$0xff] %v10264_v1  ;;  %v9040_v28 = vadd.f32 %v8938_v15, %v15568_v21  ;;  %v10266_v12 = vpack.c.bf16 %v9155_v30, %v9154_v19 }
 0x81d   :  { %v8941_v33 = vadd.f32 %v10935_v6, %v14937_v44 }
 0x81e   :  { %v9153_v29 = vadd.f32 %v14956_v45, %v9040_v28  ;;  %9543 = vst [vmem:[#allocation11 + $0x144] sm:$0xff] %v10266_v12  ;;  %v8619_v14 = vpop.f32.mrb[184].mxu0  ;;  %v10936_v43 = vpop.f32.mrb[56].mxu1 }
 0x81f   :  { %v9043_v20 = vadd.f32 %v8941_v33, %v15569_v13  ;;  %v9157_v52 = vadd.f32 %v14948_v24, %v8619_v14  ;;  %v8621_v31 = vpop.f32.mrb[185].mxu0  ;;  %v10937_v56 = vpop.f32.mrb[57].mxu1 }
 0x820   :  { %v10265_v55 = vpack.c.bf16 %v9153_v29, %v9153_v29  ;;  %v9158_v58 = vadd.f32 %v14951_v10, %v8621_v31  ;;  %v10938_v48 = vadd.f32 %v10937_v56, %v10936_v43  ;;  %v8623_v37 = vpop.f32.mrb[186].mxu0  ;;  %v10939_v51 = vpop.f32.mrb[58].mxu1 }
 0x821   :  { %v9156_v49 = vadd.f32 %v14956_v45, %v9043_v20  ;;  %v9160_v44 = vadd.f32 %v14948_v24, %v8623_v37  ;;  %v8625_v3 = vpop.f32.mrb[187].mxu0  ;;  %v10940_v63 = vpop.f32.mrb[59].mxu1 }
 0x822   :  { %9542 = vst [vmem:[#allocation11 + $0x140] sm:$0xf] %v10265_v55  ;;  %v10268_v47 = vpack.c.bf16 %v9158_v58, %v9157_v52  ;;  %v8946_v18 = vadd.f32 %v10938_v48, %v14939_v26  ;;  %v9161_v36 = vadd.f32 %v14951_v10, %v8625_v3  ;;  %v10941_v62 = vadd.f32 %v10940_v63, %v10939_v51 }
 0x823   :  { %v10267_v22 = vpack.c.bf16 %v9156_v49, %v9156_v49 }
 0x824   :  { %9545 = vst [vmem:[#allocation11 + $0x150] sm:$0xff] %v10268_v47  ;;  %v9046_v7 = vadd.f32 %v8946_v18, %v15570_v17  ;;  %v10270_v25 = vpack.c.bf16 %v9161_v36, %v9160_v44  ;;  %v8949_v53 = vadd.f32 %v10941_v62, %v14941_v39 }
 0x825   :  { %9544 = vst [vmem:[#allocation11 + $0x14c] sm:$0xf] %v10267_v22 }
 0x826   :  { %v9159_v23 = vadd.f32 %v14956_v45, %v9046_v7  ;;  %9547 = vst [vmem:[#allocation11 + $0x15c] sm:$0xff] %v10270_v25  ;;  %v9049_v61 = vadd.f32 %v8949_v53, %v15571_v54  ;;  %v8629_v5 = vpop.f32.mrb[188].mxu0  ;;  %v10942_v4 = vpop.f32.mrb[60].mxu1 }
 0x827   :  { %v9163_v26 = vadd.f32 %v14948_v24, %v8629_v5  ;;  %v8631_v57 = vpop.f32.mrb[189].mxu0  ;;  %v10943_v41 = vpop.f32.mrb[61].mxu1 }
 0x828   :  { %v10269_v11 = vpack.c.bf16 %v9159_v23, %v9159_v23  ;;  %v9162_v40 = vadd.f32 %v14956_v45, %v9049_v61  ;;  %v9164_v32 = vadd.f32 %v14951_v10, %v8631_v57  ;;  %v10944_v9 = vadd.f32 %v10943_v41, %v10942_v4  ;;  %v8633_v60 = vpop.f32.mrb[190].mxu0  ;;  %v10945_v39 = vpop.f32.mrb[62].mxu1 }
 0x829   :  { %v9166_v38 = vadd.f32 %v14948_v24, %v8633_v60  ;;  %v8635_v27 = vpop.f32.mrb[191].mxu0  ;;  %v10946_v35 = vpop.f32.mrb[63].mxu1  ;;  %v15573_v24 = vld [vmem:[#allocation68_spill] sm:$0xff] }
 0x82a   :  { %9546 = vst [vmem:[#allocation11 + $0x158] sm:$0xf] %v10269_v11  ;;  %v10271_v0 = vpack.c.bf16 %v9162_v40, %v9162_v40  ;;  %v10272_v46 = vpack.c.bf16 %v9164_v32, %v9163_v26  ;;  %v8954_v50 = vadd.f32 %v10944_v9, %v14943_v42  ;;  %v9167_v34 = vadd.f32 %v14951_v10, %v8635_v27 }
 0x82b   :  { %v10947_v19 = vadd.f32 %v10946_v35, %v10945_v39 }
 0x82c   :  { %9548 = vst [vmem:[#allocation11 + $0x164] sm:$0xf] %v10271_v0  ;;  %9549 = vst [vmem:[#allocation11 + $0x168] sm:$0xff] %v10272_v46  ;;  %v9052_v59 = vadd.f32 %v8954_v50, %v15572_v8  ;;  %v10274_v16 = vpack.c.bf16 %v9167_v34, %v9166_v38 }
 0x82d   :  { %v8957_v1 = vadd.f32 %v10947_v19, %v14945_v2 }
 0x82e   :  { %v9165_v15 = vadd.f32 %v14956_v45, %v9052_v59  ;;  %9551 = vst [vmem:[#allocation11 + $0x174] sm:$0xff] %v10274_v16 }
 0x82f   :  { %v9055_v30 = vadd.f32 %v8957_v1, %v15573_v24 }
 0x830   :  { %v10273_v6 = vpack.c.bf16 %v9165_v15, %v9165_v15 }
 0x831   :  { %v9168_v21 = vadd.f32 %v14956_v45, %v9055_v30 }
 0x832   :  { %9550 = vst [vmem:[#allocation11 + $0x170] sm:$0xf] %v10273_v6 }
 0x833   :  { %v10275_v42 = vpack.c.bf16 %v9168_v21, %v9168_v21 }
 0x835   :  { %9552 = vst [vmem:[#allocation11 + $0x17c] sm:$0xf] %v10275_v42 }
 0x836   :  { %9557 = vsyncadd [#allocation4], 5376  ;;  %s13017_s4 = smov [#allocation11]  }
 0x837   :  { %s9558_s7 = sshll.u32 %s13017_s4, 4  ;;  %s9559_s7 = int_to_ptr.vmem [resolvable:$true] %s9558_s7 }
 0x838   :  { %s12975_s8 = scalar_lea.vmem %s9559_s7, 768  ;;  %s12979_s9 = scalar_lea.vmem %s9559_s7, 6144 }
 0x839   :  { %p12976_p12 = scmp.ne.s32.totalorder %s9559_s7, %s12975_s8  ;;  %p12980_p13 = scmp.lt.s32.totalorder %s9559_s7, %s9559_s7 }
 0x83a   :  { %p12981_p0 = scmp.lt.s32.totalorder %s12979_s9, %s12975_s8 }
 0x83c   :  { %p12982_p1 = por %p12981_p0, %p12980_p13 }
 0x83e   :  { %p12983_p2 = pnand %p12982_p1, %p12976_p12 }
 0x840   :  { %12986 = shalt.err (!%p12983_p2)
}
 0x841   :  { %s12987_s12 = scalar_lea.hbm %s15136_s5, 768 }
 0x842   :  { %p12988_p3 = scmp.ne.s32.totalorder %s15136_s5, %s12987_s12  ;;  %p12991_p4 = scmp.lt.u32.totalorder %s12987_s12, %s15136_s5 }
 0x844   :  { %p12993_p5 = pnand %p12991_p4, %p12988_p3 }
 0x846   :  { %12996 = shalt.err (!%p12993_p5)
}
 0x847   :  { %9564 = dma.vmem_to_hbm [thread:$0]  %s9559_s7, 768, %s15136_s5, [#allocation4], %s13009_s1, %s13009_s1, %s13010_s17  }
 0x848   :  { %13003 = dma.done.wait [#allocation4], 6144  }
 0x849   :  { %13004 = vsyncadd [#allocation4], 4294961152 }
 0x84a   :  { %9568 = vsyncpa [#allocation3], 1 }
 0x84b   :  { %9569 = vsyncpa [#allocation6], 1 }
 0x84c   :  { %9570 = vsyncpa [#allocation9], 1 }
 0x84d   :  { %9571 = vsyncpa [#allocation4], 1 }

</bundles_post_ra>
